<compile_context>
chip_gen: v5e
topology: v5e:2x2
jax: 0.10.0
libtpu: 0.0.40
codegen_flags: <defaults>
</compile_context>

<pallas_src>
import functools
import math

import jax
import jax.numpy as jnp
from jax import lax
from jax.experimental import pallas as pl
from jax.experimental.pallas import tpu as pltpu

# ----------------------------- configuration -----------------------------
NET_WIDTH = 32          # W
DEFOR_DEPTH = 2         # D  (feature_out: Linear + (ReLU, Linear) * (D-1))
BOUNDS = 1.6
FEAT_DIM = 16           # hexplane feature dim (grid_out_dim, grid_pe == 0)
GRID_RES = 8            # hexplane spatial/time resolution
HEAD_DIMS = (3, 3, 4, 1, 48)     # pos, scales, rotations, opacity, shs(16*3)
HEAD_OFFSETS = (0, 3, 6, 10, 11)  # column offsets of each head in the slab
PLANE_COMBOS = ((0, 1), (0, 2), (1, 2), (0, 3), (1, 3), (2, 3))

# packed per-point slab layout (64 lanes):
#   [ 0: 3) point xyz   [ 3: 6) scales   [ 6:10) rotations
#   [10:11) opacity     [11:59) shs      [59:63) normalized (x,y,z,t)
#   [63:64) zero pad
COL_COORD = 59
PACK_W = 64
N_POINTS = 256


# ------------------------------ Pallas kernel ------------------------------
def deformation_kernel(pk_ref, planes_ref, wf0_ref, bf0_ref, wfh_ref, bfh_ref,
                       wh1_ref, bh1_ref, w2_ref, b2_ref, out_ref):
    pk = pk_ref[...]                                   # (T, 64) f32, lane-dense
    T = pk.shape[0]
    R = GRID_RES

    # ---- hexplane grid query, in-kernel -----------------------------------
    # Bilinear sampling of six (R*R, F) planes expressed as one-hot-weight
    # matmuls (T, R*R) @ (R*R, F): avoids per-lane gathers entirely.
    col = lax.broadcasted_iota(jnp.int32, (T, R * R), 1)
    idx0, frac = [], []
    for a in range(4):
        pos = pk[:, COL_COORD + a:COL_COORD + a + 1] * (R - 1)   # (T,1) in [0,R-1]
        f0 = jnp.clip(jnp.floor(pos), 0.0, float(R - 2))
        idx0.append(f0.astype(jnp.int32))
        frac.append(pos - f0)

    feat = None
    for p, (a, b) in enumerate(PLANE_COMBOS):
        u0, v0, wu, wv = idx0[a], idx0[b], frac[a], frac[b]
        base = v0 * R + u0                                       # (T,1) int32
        S = ((col == base).astype(jnp.float32) * (1.0 - wu) * (1.0 - wv)
             + (col == base + 1).astype(jnp.float32) * wu * (1.0 - wv)
             + (col == base + R).astype(jnp.float32) * (1.0 - wu) * wv
             + (col == base + R + 1).astype(jnp.float32) * wu * wv)
        fp = jnp.dot(S, planes_ref[p], preferred_element_type=jnp.float32)
        feat = fp if feat is None else feat * fp                 # (T, F)

    # ---- feature_out: Linear(F,W) then (ReLU, Linear(W,W)) * (D-1) --------
    h = jnp.dot(feat.astype(jnp.bfloat16), wf0_ref[...],
                preferred_element_type=jnp.float32) + bf0_ref[...]
    for i in range(DEFOR_DEPTH - 1):
        h = jnp.dot(jnp.maximum(h, 0.0).astype(jnp.bfloat16), wfh_ref[i],
                    preferred_element_type=jnp.float32) + bfh_ref[i]

    # ---- five deformation heads fused into two matmuls --------------------
    # layer1: per-head Linear(W,W) concatenated -> (W, 5W)
    # layer2: block-diagonal (5W, 64); column blocks = per-head Linear(W,out_k)
    #         placed at the residual's column offsets -> packed delta slab.
    h1 = jnp.maximum(
        jnp.dot(jnp.maximum(h, 0.0).astype(jnp.bfloat16), wh1_ref[...],
                preferred_element_type=jnp.float32) + bh1_ref[...], 0.0)
    delta = jnp.dot(h1.astype(jnp.bfloat16), w2_ref[...],
                    preferred_element_type=jnp.float32) + b2_ref[...]  # (T, 64)

    # mask == 1 (static_mlp=False, empty_voxel=False): single full-width
    # residual add + one unmasked lane-dense store.
    out_ref[...] = pk + delta


# ------------------------------ kernel wrapper ------------------------------
def _choose_tile(n):
    # Large tiles amortize per-grid-step overhead; keep >=2 grid steps so the
    # "parallel" axis can shard across v7x's two TensorCores.
    for t in (1024, 512, 256, 128):
        if n >= 2 * t:
            return t
    return 128


def run_deformation_mlp(packed, params):
    n = packed.shape[0]
    tile = _choose_tile(n)
    n_pad = ((n + tile - 1) // tile) * tile
    if n_pad != n:
        packed = jnp.pad(packed, ((0, n_pad - n), (0, 0)))

    def full_spec(shape):
        nd = len(shape)
        return pl.BlockSpec(shape, lambda i, _nd=nd: (0,) * _nd)

    row_spec = pl.BlockSpec((tile, PACK_W), lambda i: (i, 0))

    weight_names = ('planes', 'wf0', 'bf0', 'wfh', 'bfh', 'wh1', 'bh1', 'w2', 'b2')
    weights = [params[k] for k in weight_names]

    out = pl.pallas_call(
        deformation_kernel,
        out_shape=jax.ShapeDtypeStruct((n_pad, PACK_W), jnp.float32),
        grid=(n_pad // tile,),
        in_specs=[row_spec] + [full_spec(w.shape) for w in weights],
        out_specs=row_spec,
        compiler_params=pltpu.CompilerParams(
            dimension_semantics=("parallel",)),
    )(packed, *weights)
    return out[:n]


# --------------------------- full forward (wrapper) -------------------------
def deformation_fields_forward(params, point, scales, rotations, opacity, shs, time):
    n = point.shape[0]
    # poc_fre(point/scales/rotations): only the leading raw columns of the
    # positional encodings are consumed downstream (point_emb[:,:3] == point,
    # scales_emb[:,:3] == scales, rotations_emb[:,:4] == rotations), so the
    # sin/cos columns are never materialized.
    xyz_n = jnp.clip((point / BOUNDS + 1.0) * 0.5, 0.0, 1.0)
    coords = jnp.concatenate([xyz_n, jnp.clip(time[:, :1], 0.0, 1.0)], axis=-1)

    packed = jnp.concatenate(
        [point, scales[:, :3], rotations[:, :4], opacity[:, :1],
         shs.reshape(n, 48), coords,
         jnp.zeros((n, PACK_W - 63), jnp.float32)], axis=-1).astype(jnp.float32)

    out = run_deformation_mlp(packed, params)
    pts = out[:, 0:3]
    sc = out[:, 3:6]
    rot = out[:, 6:10]
    opa = out[:, 10:11]
    shs_out = out[:, 11:59].reshape(n, 16, 3)
    return pts, sc, rot, opa, shs_out


# ----------------------------- pure-JAX reference ----------------------------
def _bilinear_sample_ref(plane, u, v):
    R = plane.shape[0]
    x = u * (R - 1)
    y = v * (R - 1)
    x0 = jnp.clip(jnp.floor(x), 0.0, R - 2).astype(jnp.int32)
    y0 = jnp.clip(jnp.floor(y), 0.0, R - 2).astype(jnp.int32)
    wx = (x - x0.astype(x.dtype))[:, None]
    wy = (y - y0.astype(y.dtype))[:, None]
    f00 = plane[y0, x0]
    f01 = plane[y0, x0 + 1]
    f10 = plane[y0 + 1, x0]
    f11 = plane[y0 + 1, x0 + 1]
    return (f00 * (1 - wx) * (1 - wy) + f01 * wx * (1 - wy)
            + f10 * (1 - wx) * wy + f11 * wx * wy)


def reference_forward(params, point, scales, rotations, opacity, shs, time):
    n = point.shape[0]
    xyz_n = jnp.clip((point / BOUNDS + 1.0) * 0.5, 0.0, 1.0)
    coords = jnp.concatenate([xyz_n, jnp.clip(time[:, :1], 0.0, 1.0)], axis=-1)

    feat = jnp.ones((n, FEAT_DIM), jnp.float32)
    for p, (a, b) in enumerate(PLANE_COMBOS):
        plane = params['planes'][p].reshape(GRID_RES, GRID_RES, FEAT_DIM)
        feat = feat * _bilinear_sample_ref(plane, coords[:, a], coords[:, b])

    h = jnp.dot(feat.astype(jnp.bfloat16), params['wf0'],
                preferred_element_type=jnp.float32) + params['bf0']
    for i in range(DEFOR_DEPTH - 1):
        h = jnp.dot(jnp.maximum(h, 0.0).astype(jnp.bfloat16), params['wfh'][i],
                    preferred_element_type=jnp.float32) + params['bfh'][i]
    h1 = jnp.maximum(
        jnp.dot(jnp.maximum(h, 0.0).astype(jnp.bfloat16), params['wh1'],
                preferred_element_type=jnp.float32) + params['bh1'], 0.0)
    delta = jnp.dot(h1.astype(jnp.bfloat16), params['w2'],
                    preferred_element_type=jnp.float32) + params['b2']

    pts = point + delta[:, 0:3]
    sc = scales + delta[:, 3:6]
    rot = rotations + delta[:, 6:10]
    opa = opacity[:, :1] + delta[:, 10:11]
    shs_out = shs + delta[:, 11:59].reshape(n, 16, 3)
    return pts, sc, rot, opa, shs_out


# ----------------------------- parameter init ------------------------------
def xavier_uniform(key, shape):
    fan_in, fan_out = shape[-2], shape[-1]
    limit = math.sqrt(6.0 / (fan_in + fan_out))
    return jax.random.uniform(key, shape, jnp.float32, -limit, limit)


def uniform_bias(key, fan_in, width):
    b = 1.0 / math.sqrt(fan_in)
    return jax.random.uniform(key, (1, width), jnp.float32, -b, b)


def init_params(key):
    W = NET_WIDTH
    keys = jax.random.split(key, 32)
    ki = iter(keys)

    # hexplane: 6 planes of shape (R*R, F), init ~ U(0.5, 1.5)
    planes = jax.random.uniform(next(ki), (6, GRID_RES * GRID_RES, FEAT_DIM),
                                jnp.float32, 0.5, 1.5)

    # feature_out
    wf0 = xavier_uniform(next(ki), (FEAT_DIM, W))
    bf0 = uniform_bias(next(ki), FEAT_DIM, W)
    wfh = jnp.stack([xavier_uniform(next(ki), (W, W))
                     for _ in range(DEFOR_DEPTH - 1)], 0)
    bfh = jnp.stack([uniform_bias(next(ki), W, W)
                     for _ in range(DEFOR_DEPTH - 1)], 0)

    # heads: layer1 concatenated, layer2 block-diagonal into the packed slab
    wh1 = jnp.concatenate([xavier_uniform(next(ki), (W, W)) for _ in range(5)],
                          axis=1)                                 # (W, 5W)
    bh1 = jnp.concatenate([uniform_bias(next(ki), W, W) for _ in range(5)],
                          axis=1)                                 # (1, 5W)

    w2 = jnp.zeros((5 * W, PACK_W), jnp.float32)
    b2 = jnp.zeros((1, PACK_W), jnp.float32)
    for k, (off, dim) in enumerate(zip(HEAD_OFFSETS, HEAD_DIMS)):
        w2 = w2.at[k * W:(k + 1) * W, off:off + dim].set(
            xavier_uniform(next(ki), (W, dim)))
        b2 = b2.at[:, off:off + dim].set(
            jax.random.uniform(next(ki), (1, dim), jnp.float32,
                               -1.0 / math.sqrt(W), 1.0 / math.sqrt(W)))

    # matmul weights in bf16 (f32 accumulation in-kernel); biases/planes f32
    return dict(
        planes=planes,
        wf0=wf0.astype(jnp.bfloat16), bf0=bf0,
        wfh=wfh.astype(jnp.bfloat16), bfh=bfh,
        wh1=wh1.astype(jnp.bfloat16), bh1=bh1,
        w2=w2.astype(jnp.bfloat16), b2=b2)


# ----------------------------------- main -----------------------------------
if __name__ == "__main__":
    key = jax.random.PRNGKey(0)
    kp, kin = jax.random.split(key)
    params = init_params(kp)

    k1, k2, k3, k4, k5, k6 = jax.random.split(kin, 6)
    point = jax.random.uniform(k1, (N_POINTS, 3), jnp.float32, -1.0, 1.0)
    scales = jax.random.normal(k2, (N_POINTS, 3), jnp.float32) * 0.1
    rotations = jax.random.normal(k3, (N_POINTS, 4), jnp.float32)
    opacity = jax.random.uniform(k4, (N_POINTS, 1), jnp.float32)
    shs = jax.random.normal(k5, (N_POINTS, 16, 3), jnp.float32) * 0.1
    time_emb = jax.random.uniform(k6, (N_POINTS, 1), jnp.float32)

    fwd = jax.jit(functools.partial(deformation_fields_forward, params))
    outs = fwd(point, scales, rotations, opacity, shs, time_emb)
    jax.block_until_ready(outs)
    pts, sc, rot, opa, shs_out = outs

    assert pts.shape == (N_POINTS, 3)
    assert sc.shape == (N_POINTS, 3)
    assert rot.shape == (N_POINTS, 4)
    assert opa.shape == (N_POINTS, 1)
    assert shs_out.shape == (N_POINTS, 16, 3)

    # pure-JAX reference (same bf16 weights, gather-based hexplane)
    refs = jax.jit(functools.partial(reference_forward, params))(
        point, scales, rotations, opacity, shs, time_emb)
    for got, want in zip(outs, refs):
        assert bool(jnp.all(jnp.isfinite(got)))
        assert bool(jnp.allclose(got, want, rtol=5e-2, atol=5e-2)), (
            "max abs diff", float(jnp.max(jnp.abs(got - want))))

    print("KERNEL_OK")
</pallas_src>

<mosaic_0001>
module attributes {stable_mosaic.version = 11 : i64} {
  func.func @deformation_kernel(%arg0: i32, %arg1: memref<128x64xf32, #tpu.memory_space<vmem>>, %arg2: memref<6x64x16xf32, #tpu.memory_space<vmem>>, %arg3: memref<16x32xbf16, #tpu.memory_space<vmem>>, %arg4: memref<1x32xf32, #tpu.memory_space<vmem>>, %arg5: memref<1x32x32xbf16, #tpu.memory_space<vmem>>, %arg6: memref<1x1x32xf32, #tpu.memory_space<vmem>>, %arg7: memref<32x160xbf16, #tpu.memory_space<vmem>>, %arg8: memref<1x160xf32, #tpu.memory_space<vmem>>, %arg9: memref<160x64xbf16, #tpu.memory_space<vmem>>, %arg10: memref<1x64xf32, #tpu.memory_space<vmem>>, %arg11: memref<128x64xf32, #tpu.memory_space<vmem>>) attributes {dimension_semantics = [#tpu.dimension_semantics<parallel>], iteration_bounds = array<i64: 2>, scalar_prefetch = 0 : i64, scratch_operands = 0 : i64, tpu.core_type = #tpu.core_type<tc>, window_params = [{transform_indices = @transform_0, window_bounds = array<i64: 128, 64>}, {pipeline_mode = #tpu.pipeline_mode<synchronous>, transform_indices = @transform_1, window_bounds = array<i64: 6, 64, 16>}, {pipeline_mode = #tpu.pipeline_mode<synchronous>, transform_indices = @transform_2, window_bounds = array<i64: 16, 32>}, {pipeline_mode = #tpu.pipeline_mode<synchronous>, transform_indices = @transform_3, window_bounds = array<i64: 1, 32>}, {pipeline_mode = #tpu.pipeline_mode<synchronous>, transform_indices = @transform_4, window_bounds = array<i64: 1, 32, 32>}, {pipeline_mode = #tpu.pipeline_mode<synchronous>, transform_indices = @transform_5, window_bounds = array<i64: 1, 1, 32>}, {pipeline_mode = #tpu.pipeline_mode<synchronous>, transform_indices = @transform_6, window_bounds = array<i64: 32, 160>}, {pipeline_mode = #tpu.pipeline_mode<synchronous>, transform_indices = @transform_7, window_bounds = array<i64: 1, 160>}, {pipeline_mode = #tpu.pipeline_mode<synchronous>, transform_indices = @transform_8, window_bounds = array<i64: 160, 64>}, {pipeline_mode = #tpu.pipeline_mode<synchronous>, transform_indices = @transform_9, window_bounds = array<i64: 1, 64>}, {transform_indices = @transform_10, window_bounds = array<i64: 128, 64>}]} {
    %c0 = arith.constant 0 : index
    %c0_0 = arith.constant 0 : index
    %0 = vector.load %arg1[%c0, %c0_0] : memref<128x64xf32, #tpu.memory_space<vmem>>, vector<128x64xf32>
    %1 = tpu.iota {dimensions = array<i32: 1>} : vector<128x64xi32>
    %2 = vector.extract_strided_slice %0 {offsets = [0, 59], sizes = [128, 1], strides = [1, 1]} : vector<128x64xf32> to vector<128x1xf32>
    %cst = arith.constant 7.000000e+00 : f32
    %3 = vector.broadcast %cst : f32 to vector<128x1xf32>
    %4 = arith.mulf %2, %3 : vector<128x1xf32>
    %5 = math.floor %4 : vector<128x1xf32>
    %cst_1 = arith.constant 0.000000e+00 : f32
    %cst_2 = arith.constant 6.000000e+00 : f32
    %6 = vector.broadcast %cst_1 : f32 to vector<128x1xf32>
    %7 = arith.maximumf %6, %5 : vector<128x1xf32>
    %8 = vector.broadcast %cst_2 : f32 to vector<128x1xf32>
    %9 = arith.minimumf %8, %7 : vector<128x1xf32>
    %10 = arith.fptosi %9 : vector<128x1xf32> to vector<128x1xi32>
    %11 = arith.subf %4, %9 : vector<128x1xf32>
    %12 = vector.extract_strided_slice %0 {offsets = [0, 60], sizes = [128, 1], strides = [1, 1]} : vector<128x64xf32> to vector<128x1xf32>
    %cst_3 = arith.constant 7.000000e+00 : f32
    %13 = vector.broadcast %cst_3 : f32 to vector<128x1xf32>
    %14 = arith.mulf %12, %13 : vector<128x1xf32>
    %15 = math.floor %14 : vector<128x1xf32>
    %cst_4 = arith.constant 0.000000e+00 : f32
    %cst_5 = arith.constant 6.000000e+00 : f32
    %16 = vector.broadcast %cst_4 : f32 to vector<128x1xf32>
    %17 = arith.maximumf %16, %15 : vector<128x1xf32>
    %18 = vector.broadcast %cst_5 : f32 to vector<128x1xf32>
    %19 = arith.minimumf %18, %17 : vector<128x1xf32>
    %20 = arith.fptosi %19 : vector<128x1xf32> to vector<128x1xi32>
    %21 = arith.subf %14, %19 : vector<128x1xf32>
    %22 = vector.extract_strided_slice %0 {offsets = [0, 61], sizes = [128, 1], strides = [1, 1]} : vector<128x64xf32> to vector<128x1xf32>
    %cst_6 = arith.constant 7.000000e+00 : f32
    %23 = vector.broadcast %cst_6 : f32 to vector<128x1xf32>
    %24 = arith.mulf %22, %23 : vector<128x1xf32>
    %25 = math.floor %24 : vector<128x1xf32>
    %cst_7 = arith.constant 0.000000e+00 : f32
    %cst_8 = arith.constant 6.000000e+00 : f32
    %26 = vector.broadcast %cst_7 : f32 to vector<128x1xf32>
    %27 = arith.maximumf %26, %25 : vector<128x1xf32>
    %28 = vector.broadcast %cst_8 : f32 to vector<128x1xf32>
    %29 = arith.minimumf %28, %27 : vector<128x1xf32>
    %30 = arith.fptosi %29 : vector<128x1xf32> to vector<128x1xi32>
    %31 = arith.subf %24, %29 : vector<128x1xf32>
    %32 = vector.extract_strided_slice %0 {offsets = [0, 62], sizes = [128, 1], strides = [1, 1]} : vector<128x64xf32> to vector<128x1xf32>
    %cst_9 = arith.constant 7.000000e+00 : f32
    %33 = vector.broadcast %cst_9 : f32 to vector<128x1xf32>
    %34 = arith.mulf %32, %33 : vector<128x1xf32>
    %35 = math.floor %34 : vector<128x1xf32>
    %cst_10 = arith.constant 0.000000e+00 : f32
    %cst_11 = arith.constant 6.000000e+00 : f32
    %36 = vector.broadcast %cst_10 : f32 to vector<128x1xf32>
    %37 = arith.maximumf %36, %35 : vector<128x1xf32>
    %38 = vector.broadcast %cst_11 : f32 to vector<128x1xf32>
    %39 = arith.minimumf %38, %37 : vector<128x1xf32>
    %40 = arith.fptosi %39 : vector<128x1xf32> to vector<128x1xi32>
    %41 = arith.subf %34, %39 : vector<128x1xf32>
    %c8_i32 = arith.constant 8 : i32
    %42 = vector.broadcast %c8_i32 : i32 to vector<128x1xi32>
    %43 = arith.muli %20, %42 : vector<128x1xi32>
    %44 = arith.addi %43, %10 : vector<128x1xi32>
    %45 = vector.broadcast %44 : vector<128x1xi32> to vector<128x64xi32>
    %46 = arith.cmpi eq, %1, %45 : vector<128x64xi32>
    %47 = arith.extui %46 : vector<128x64xi1> to vector<128x64xi32>
    %48 = arith.sitofp %47 : vector<128x64xi32> to vector<128x64xf32>
    %cst_12 = arith.constant 1.000000e+00 : f32
    %49 = vector.broadcast %cst_12 : f32 to vector<128x1xf32>
    %50 = arith.subf %49, %11 : vector<128x1xf32>
    %51 = vector.broadcast %50 : vector<128x1xf32> to vector<128x64xf32>
    %52 = arith.mulf %48, %51 : vector<128x64xf32>
    %cst_13 = arith.constant 1.000000e+00 : f32
    %53 = vector.broadcast %cst_13 : f32 to vector<128x1xf32>
    %54 = arith.subf %53, %21 : vector<128x1xf32>
    %55 = vector.broadcast %54 : vector<128x1xf32> to vector<128x64xf32>
    %56 = arith.mulf %52, %55 : vector<128x64xf32>
    %c1_i32 = arith.constant 1 : i32
    %57 = vector.broadcast %c1_i32 : i32 to vector<128x1xi32>
    %58 = arith.addi %44, %57 : vector<128x1xi32>
    %59 = vector.broadcast %58 : vector<128x1xi32> to vector<128x64xi32>
    %60 = arith.cmpi eq, %1, %59 : vector<128x64xi32>
    %61 = arith.extui %60 : vector<128x64xi1> to vector<128x64xi32>
    %62 = arith.sitofp %61 : vector<128x64xi32> to vector<128x64xf32>
    %63 = vector.broadcast %11 : vector<128x1xf32> to vector<128x64xf32>
    %64 = arith.mulf %62, %63 : vector<128x64xf32>
    %cst_14 = arith.constant 1.000000e+00 : f32
    %65 = vector.broadcast %cst_14 : f32 to vector<128x1xf32>
    %66 = arith.subf %65, %21 : vector<128x1xf32>
    %67 = vector.broadcast %66 : vector<128x1xf32> to vector<128x64xf32>
    %68 = arith.mulf %64, %67 : vector<128x64xf32>
    %69 = arith.addf %56, %68 : vector<128x64xf32>
    %c8_i32_15 = arith.constant 8 : i32
    %70 = vector.broadcast %c8_i32_15 : i32 to vector<128x1xi32>
    %71 = arith.addi %44, %70 : vector<128x1xi32>
    %72 = vector.broadcast %71 : vector<128x1xi32> to vector<128x64xi32>
    %73 = arith.cmpi eq, %1, %72 : vector<128x64xi32>
    %74 = arith.extui %73 : vector<128x64xi1> to vector<128x64xi32>
    %75 = arith.sitofp %74 : vector<128x64xi32> to vector<128x64xf32>
    %cst_16 = arith.constant 1.000000e+00 : f32
    %76 = vector.broadcast %cst_16 : f32 to vector<128x1xf32>
    %77 = arith.subf %76, %11 : vector<128x1xf32>
    %78 = vector.broadcast %77 : vector<128x1xf32> to vector<128x64xf32>
    %79 = arith.mulf %75, %78 : vector<128x64xf32>
    %80 = vector.broadcast %21 : vector<128x1xf32> to vector<128x64xf32>
    %81 = arith.mulf %79, %80 : vector<128x64xf32>
    %82 = arith.addf %69, %81 : vector<128x64xf32>
    %c8_i32_17 = arith.constant 8 : i32
    %83 = vector.broadcast %c8_i32_17 : i32 to vector<128x1xi32>
    %84 = arith.addi %44, %83 : vector<128x1xi32>
    %c1_i32_18 = arith.constant 1 : i32
    %85 = vector.broadcast %c1_i32_18 : i32 to vector<128x1xi32>
    %86 = arith.addi %84, %85 : vector<128x1xi32>
    %87 = vector.broadcast %86 : vector<128x1xi32> to vector<128x64xi32>
    %88 = arith.cmpi eq, %1, %87 : vector<128x64xi32>
    %89 = arith.extui %88 : vector<128x64xi1> to vector<128x64xi32>
    %90 = arith.sitofp %89 : vector<128x64xi32> to vector<128x64xf32>
    %91 = vector.broadcast %11 : vector<128x1xf32> to vector<128x64xf32>
    %92 = arith.mulf %90, %91 : vector<128x64xf32>
    %93 = vector.broadcast %21 : vector<128x1xf32> to vector<128x64xf32>
    %94 = arith.mulf %92, %93 : vector<128x64xf32>
    %95 = arith.addf %82, %94 : vector<128x64xf32>
    %c0_19 = arith.constant 0 : index
    %c0_20 = arith.constant 0 : index
    %c0_21 = arith.constant 0 : index
    %96 = vector.load %arg2[%c0_19, %c0_20, %c0_21] : memref<6x64x16xf32, #tpu.memory_space<vmem>>, vector<1x64x16xf32>
    %97 = vector.shape_cast %96 : vector<1x64x16xf32> to vector<64x16xf32>
    %cst_22 = arith.constant dense<0.000000e+00> : vector<128x16xf32>
    %98 = tpu.matmul %95, %97, %cst_22 {dimension_numbers = #tpu.dot_dimension_numbers<[1], [0], [0], [1], [0, 0, 1, 1], [], []>} : vector<128x64xf32>, vector<64x16xf32>, vector<128x16xf32> -> vector<128x16xf32>
    %c8_i32_23 = arith.constant 8 : i32
    %99 = vector.broadcast %c8_i32_23 : i32 to vector<128x1xi32>
    %100 = arith.muli %30, %99 : vector<128x1xi32>
    %101 = arith.addi %100, %10 : vector<128x1xi32>
    %102 = vector.broadcast %101 : vector<128x1xi32> to vector<128x64xi32>
    %103 = arith.cmpi eq, %1, %102 : vector<128x64xi32>
    %104 = arith.extui %103 : vector<128x64xi1> to vector<128x64xi32>
    %105 = arith.sitofp %104 : vector<128x64xi32> to vector<128x64xf32>
    %cst_24 = arith.constant 1.000000e+00 : f32
    %106 = vector.broadcast %cst_24 : f32 to vector<128x1xf32>
    %107 = arith.subf %106, %11 : vector<128x1xf32>
    %108 = vector.broadcast %107 : vector<128x1xf32> to vector<128x64xf32>
    %109 = arith.mulf %105, %108 : vector<128x64xf32>
    %cst_25 = arith.constant 1.000000e+00 : f32
    %110 = vector.broadcast %cst_25 : f32 to vector<128x1xf32>
    %111 = arith.subf %110, %31 : vector<128x1xf32>
    %112 = vector.broadcast %111 : vector<128x1xf32> to vector<128x64xf32>
    %113 = arith.mulf %109, %112 : vector<128x64xf32>
    %c1_i32_26 = arith.constant 1 : i32
    %114 = vector.broadcast %c1_i32_26 : i32 to vector<128x1xi32>
    %115 = arith.addi %101, %114 : vector<128x1xi32>
    %116 = vector.broadcast %115 : vector<128x1xi32> to vector<128x64xi32>
    %117 = arith.cmpi eq, %1, %116 : vector<128x64xi32>
    %118 = arith.extui %117 : vector<128x64xi1> to vector<128x64xi32>
    %119 = arith.sitofp %118 : vector<128x64xi32> to vector<128x64xf32>
    %120 = vector.broadcast %11 : vector<128x1xf32> to vector<128x64xf32>
    %121 = arith.mulf %119, %120 : vector<128x64xf32>
    %cst_27 = arith.constant 1.000000e+00 : f32
    %122 = vector.broadcast %cst_27 : f32 to vector<128x1xf32>
    %123 = arith.subf %122, %31 : vector<128x1xf32>
    %124 = vector.broadcast %123 : vector<128x1xf32> to vector<128x64xf32>
    %125 = arith.mulf %121, %124 : vector<128x64xf32>
    %126 = arith.addf %113, %125 : vector<128x64xf32>
    %c8_i32_28 = arith.constant 8 : i32
    %127 = vector.broadcast %c8_i32_28 : i32 to vector<128x1xi32>
    %128 = arith.addi %101, %127 : vector<128x1xi32>
    %129 = vector.broadcast %128 : vector<128x1xi32> to vector<128x64xi32>
    %130 = arith.cmpi eq, %1, %129 : vector<128x64xi32>
    %131 = arith.extui %130 : vector<128x64xi1> to vector<128x64xi32>
    %132 = arith.sitofp %131 : vector<128x64xi32> to vector<128x64xf32>
    %cst_29 = arith.constant 1.000000e+00 : f32
    %133 = vector.broadcast %cst_29 : f32 to vector<128x1xf32>
    %134 = arith.subf %133, %11 : vector<128x1xf32>
    %135 = vector.broadcast %134 : vector<128x1xf32> to vector<128x64xf32>
    %136 = arith.mulf %132, %135 : vector<128x64xf32>
    %137 = vector.broadcast %31 : vector<128x1xf32> to vector<128x64xf32>
    %138 = arith.mulf %136, %137 : vector<128x64xf32>
    %139 = arith.addf %126, %138 : vector<128x64xf32>
    %c8_i32_30 = arith.constant 8 : i32
    %140 = vector.broadcast %c8_i32_30 : i32 to vector<128x1xi32>
    %141 = arith.addi %101, %140 : vector<128x1xi32>
    %c1_i32_31 = arith.constant 1 : i32
    %142 = vector.broadcast %c1_i32_31 : i32 to vector<128x1xi32>
    %143 = arith.addi %141, %142 : vector<128x1xi32>
    %144 = vector.broadcast %143 : vector<128x1xi32> to vector<128x64xi32>
    %145 = arith.cmpi eq, %1, %144 : vector<128x64xi32>
    %146 = arith.extui %145 : vector<128x64xi1> to vector<128x64xi32>
    %147 = arith.sitofp %146 : vector<128x64xi32> to vector<128x64xf32>
    %148 = vector.broadcast %11 : vector<128x1xf32> to vector<128x64xf32>
    %149 = arith.mulf %147, %148 : vector<128x64xf32>
    %150 = vector.broadcast %31 : vector<128x1xf32> to vector<128x64xf32>
    %151 = arith.mulf %149, %150 : vector<128x64xf32>
    %152 = arith.addf %139, %151 : vector<128x64xf32>
    %c1 = arith.constant 1 : index
    %c0_32 = arith.constant 0 : index
    %c0_33 = arith.constant 0 : index
    %153 = vector.load %arg2[%c1, %c0_32, %c0_33] : memref<6x64x16xf32, #tpu.memory_space<vmem>>, vector<1x64x16xf32>
    %154 = vector.shape_cast %153 : vector<1x64x16xf32> to vector<64x16xf32>
    %cst_34 = arith.constant dense<0.000000e+00> : vector<128x16xf32>
    %155 = tpu.matmul %152, %154, %cst_34 {dimension_numbers = #tpu.dot_dimension_numbers<[1], [0], [0], [1], [0, 0, 1, 1], [], []>} : vector<128x64xf32>, vector<64x16xf32>, vector<128x16xf32> -> vector<128x16xf32>
    %156 = arith.mulf %98, %155 : vector<128x16xf32>
    %c8_i32_35 = arith.constant 8 : i32
    %157 = vector.broadcast %c8_i32_35 : i32 to vector<128x1xi32>
    %158 = arith.muli %30, %157 : vector<128x1xi32>
    %159 = arith.addi %158, %20 : vector<128x1xi32>
    %160 = vector.broadcast %159 : vector<128x1xi32> to vector<128x64xi32>
    %161 = arith.cmpi eq, %1, %160 : vector<128x64xi32>
    %162 = arith.extui %161 : vector<128x64xi1> to vector<128x64xi32>
    %163 = arith.sitofp %162 : vector<128x64xi32> to vector<128x64xf32>
    %cst_36 = arith.constant 1.000000e+00 : f32
    %164 = vector.broadcast %cst_36 : f32 to vector<128x1xf32>
    %165 = arith.subf %164, %21 : vector<128x1xf32>
    %166 = vector.broadcast %165 : vector<128x1xf32> to vector<128x64xf32>
    %167 = arith.mulf %163, %166 : vector<128x64xf32>
    %cst_37 = arith.constant 1.000000e+00 : f32
    %168 = vector.broadcast %cst_37 : f32 to vector<128x1xf32>
    %169 = arith.subf %168, %31 : vector<128x1xf32>
    %170 = vector.broadcast %169 : vector<128x1xf32> to vector<128x64xf32>
    %171 = arith.mulf %167, %170 : vector<128x64xf32>
    %c1_i32_38 = arith.constant 1 : i32
    %172 = vector.broadcast %c1_i32_38 : i32 to vector<128x1xi32>
    %173 = arith.addi %159, %172 : vector<128x1xi32>
    %174 = vector.broadcast %173 : vector<128x1xi32> to vector<128x64xi32>
    %175 = arith.cmpi eq, %1, %174 : vector<128x64xi32>
    %176 = arith.extui %175 : vector<128x64xi1> to vector<128x64xi32>
    %177 = arith.sitofp %176 : vector<128x64xi32> to vector<128x64xf32>
    %178 = vector.broadcast %21 : vector<128x1xf32> to vector<128x64xf32>
    %179 = arith.mulf %177, %178 : vector<128x64xf32>
    %cst_39 = arith.constant 1.000000e+00 : f32
    %180 = vector.broadcast %cst_39 : f32 to vector<128x1xf32>
    %181 = arith.subf %180, %31 : vector<128x1xf32>
    %182 = vector.broadcast %181 : vector<128x1xf32> to vector<128x64xf32>
    %183 = arith.mulf %179, %182 : vector<128x64xf32>
    %184 = arith.addf %171, %183 : vector<128x64xf32>
    %c8_i32_40 = arith.constant 8 : i32
    %185 = vector.broadcast %c8_i32_40 : i32 to vector<128x1xi32>
    %186 = arith.addi %159, %185 : vector<128x1xi32>
    %187 = vector.broadcast %186 : vector<128x1xi32> to vector<128x64xi32>
    %188 = arith.cmpi eq, %1, %187 : vector<128x64xi32>
    %189 = arith.extui %188 : vector<128x64xi1> to vector<128x64xi32>
    %190 = arith.sitofp %189 : vector<128x64xi32> to vector<128x64xf32>
    %cst_41 = arith.constant 1.000000e+00 : f32
    %191 = vector.broadcast %cst_41 : f32 to vector<128x1xf32>
    %192 = arith.subf %191, %21 : vector<128x1xf32>
    %193 = vector.broadcast %192 : vector<128x1xf32> to vector<128x64xf32>
    %194 = arith.mulf %190, %193 : vector<128x64xf32>
    %195 = vector.broadcast %31 : vector<128x1xf32> to vector<128x64xf32>
    %196 = arith.mulf %194, %195 : vector<128x64xf32>
    %197 = arith.addf %184, %196 : vector<128x64xf32>
    %c8_i32_42 = arith.constant 8 : i32
    %198 = vector.broadcast %c8_i32_42 : i32 to vector<128x1xi32>
    %199 = arith.addi %159, %198 : vector<128x1xi32>
    %c1_i32_43 = arith.constant 1 : i32
    %200 = vector.broadcast %c1_i32_43 : i32 to vector<128x1xi32>
    %201 = arith.addi %199, %200 : vector<128x1xi32>
    %202 = vector.broadcast %201 : vector<128x1xi32> to vector<128x64xi32>
    %203 = arith.cmpi eq, %1, %202 : vector<128x64xi32>
    %204 = arith.extui %203 : vector<128x64xi1> to vector<128x64xi32>
    %205 = arith.sitofp %204 : vector<128x64xi32> to vector<128x64xf32>
    %206 = vector.broadcast %21 : vector<128x1xf32> to vector<128x64xf32>
    %207 = arith.mulf %205, %206 : vector<128x64xf32>
    %208 = vector.broadcast %31 : vector<128x1xf32> to vector<128x64xf32>
    %209 = arith.mulf %207, %208 : vector<128x64xf32>
    %210 = arith.addf %197, %209 : vector<128x64xf32>
    %c2 = arith.constant 2 : index
    %c0_44 = arith.constant 0 : index
    %c0_45 = arith.constant 0 : index
    %211 = vector.load %arg2[%c2, %c0_44, %c0_45] : memref<6x64x16xf32, #tpu.memory_space<vmem>>, vector<1x64x16xf32>
    %212 = vector.shape_cast %211 : vector<1x64x16xf32> to vector<64x16xf32>
    %cst_46 = arith.constant dense<0.000000e+00> : vector<128x16xf32>
    %213 = tpu.matmul %210, %212, %cst_46 {dimension_numbers = #tpu.dot_dimension_numbers<[1], [0], [0], [1], [0, 0, 1, 1], [], []>} : vector<128x64xf32>, vector<64x16xf32>, vector<128x16xf32> -> vector<128x16xf32>
    %214 = arith.mulf %156, %213 : vector<128x16xf32>
    %c8_i32_47 = arith.constant 8 : i32
    %215 = vector.broadcast %c8_i32_47 : i32 to vector<128x1xi32>
    %216 = arith.muli %40, %215 : vector<128x1xi32>
    %217 = arith.addi %216, %10 : vector<128x1xi32>
    %218 = vector.broadcast %217 : vector<128x1xi32> to vector<128x64xi32>
    %219 = arith.cmpi eq, %1, %218 : vector<128x64xi32>
    %220 = arith.extui %219 : vector<128x64xi1> to vector<128x64xi32>
    %221 = arith.sitofp %220 : vector<128x64xi32> to vector<128x64xf32>
    %cst_48 = arith.constant 1.000000e+00 : f32
    %222 = vector.broadcast %cst_48 : f32 to vector<128x1xf32>
    %223 = arith.subf %222, %11 : vector<128x1xf32>
    %224 = vector.broadcast %223 : vector<128x1xf32> to vector<128x64xf32>
    %225 = arith.mulf %221, %224 : vector<128x64xf32>
    %cst_49 = arith.constant 1.000000e+00 : f32
    %226 = vector.broadcast %cst_49 : f32 to vector<128x1xf32>
    %227 = arith.subf %226, %41 : vector<128x1xf32>
    %228 = vector.broadcast %227 : vector<128x1xf32> to vector<128x64xf32>
    %229 = arith.mulf %225, %228 : vector<128x64xf32>
    %c1_i32_50 = arith.constant 1 : i32
    %230 = vector.broadcast %c1_i32_50 : i32 to vector<128x1xi32>
    %231 = arith.addi %217, %230 : vector<128x1xi32>
    %232 = vector.broadcast %231 : vector<128x1xi32> to vector<128x64xi32>
    %233 = arith.cmpi eq, %1, %232 : vector<128x64xi32>
    %234 = arith.extui %233 : vector<128x64xi1> to vector<128x64xi32>
    %235 = arith.sitofp %234 : vector<128x64xi32> to vector<128x64xf32>
    %236 = vector.broadcast %11 : vector<128x1xf32> to vector<128x64xf32>
    %237 = arith.mulf %235, %236 : vector<128x64xf32>
    %cst_51 = arith.constant 1.000000e+00 : f32
    %238 = vector.broadcast %cst_51 : f32 to vector<128x1xf32>
    %239 = arith.subf %238, %41 : vector<128x1xf32>
    %240 = vector.broadcast %239 : vector<128x1xf32> to vector<128x64xf32>
    %241 = arith.mulf %237, %240 : vector<128x64xf32>
    %242 = arith.addf %229, %241 : vector<128x64xf32>
    %c8_i32_52 = arith.constant 8 : i32
    %243 = vector.broadcast %c8_i32_52 : i32 to vector<128x1xi32>
    %244 = arith.addi %217, %243 : vector<128x1xi32>
    %245 = vector.broadcast %244 : vector<128x1xi32> to vector<128x64xi32>
    %246 = arith.cmpi eq, %1, %245 : vector<128x64xi32>
    %247 = arith.extui %246 : vector<128x64xi1> to vector<128x64xi32>
    %248 = arith.sitofp %247 : vector<128x64xi32> to vector<128x64xf32>
    %cst_53 = arith.constant 1.000000e+00 : f32
    %249 = vector.broadcast %cst_53 : f32 to vector<128x1xf32>
    %250 = arith.subf %249, %11 : vector<128x1xf32>
    %251 = vector.broadcast %250 : vector<128x1xf32> to vector<128x64xf32>
    %252 = arith.mulf %248, %251 : vector<128x64xf32>
    %253 = vector.broadcast %41 : vector<128x1xf32> to vector<128x64xf32>
    %254 = arith.mulf %252, %253 : vector<128x64xf32>
    %255 = arith.addf %242, %254 : vector<128x64xf32>
    %c8_i32_54 = arith.constant 8 : i32
    %256 = vector.broadcast %c8_i32_54 : i32 to vector<128x1xi32>
    %257 = arith.addi %217, %256 : vector<128x1xi32>
    %c1_i32_55 = arith.constant 1 : i32
    %258 = vector.broadcast %c1_i32_55 : i32 to vector<128x1xi32>
    %259 = arith.addi %257, %258 : vector<128x1xi32>
    %260 = vector.broadcast %259 : vector<128x1xi32> to vector<128x64xi32>
    %261 = arith.cmpi eq, %1, %260 : vector<128x64xi32>
    %262 = arith.extui %261 : vector<128x64xi1> to vector<128x64xi32>
    %263 = arith.sitofp %262 : vector<128x64xi32> to vector<128x64xf32>
    %264 = vector.broadcast %11 : vector<128x1xf32> to vector<128x64xf32>
    %265 = arith.mulf %263, %264 : vector<128x64xf32>
    %266 = vector.broadcast %41 : vector<128x1xf32> to vector<128x64xf32>
    %267 = arith.mulf %265, %266 : vector<128x64xf32>
    %268 = arith.addf %255, %267 : vector<128x64xf32>
    %c3 = arith.constant 3 : index
    %c0_56 = arith.constant 0 : index
    %c0_57 = arith.constant 0 : index
    %269 = vector.load %arg2[%c3, %c0_56, %c0_57] : memref<6x64x16xf32, #tpu.memory_space<vmem>>, vector<1x64x16xf32>
    %270 = vector.shape_cast %269 : vector<1x64x16xf32> to vector<64x16xf32>
    %cst_58 = arith.constant dense<0.000000e+00> : vector<128x16xf32>
    %271 = tpu.matmul %268, %270, %cst_58 {dimension_numbers = #tpu.dot_dimension_numbers<[1], [0], [0], [1], [0, 0, 1, 1], [], []>} : vector<128x64xf32>, vector<64x16xf32>, vector<128x16xf32> -> vector<128x16xf32>
    %272 = arith.mulf %214, %271 : vector<128x16xf32>
    %c8_i32_59 = arith.constant 8 : i32
    %273 = vector.broadcast %c8_i32_59 : i32 to vector<128x1xi32>
    %274 = arith.muli %40, %273 : vector<128x1xi32>
    %275 = arith.addi %274, %20 : vector<128x1xi32>
    %276 = vector.broadcast %275 : vector<128x1xi32> to vector<128x64xi32>
    %277 = arith.cmpi eq, %1, %276 : vector<128x64xi32>
    %278 = arith.extui %277 : vector<128x64xi1> to vector<128x64xi32>
    %279 = arith.sitofp %278 : vector<128x64xi32> to vector<128x64xf32>
    %cst_60 = arith.constant 1.000000e+00 : f32
    %280 = vector.broadcast %cst_60 : f32 to vector<128x1xf32>
    %281 = arith.subf %280, %21 : vector<128x1xf32>
    %282 = vector.broadcast %281 : vector<128x1xf32> to vector<128x64xf32>
    %283 = arith.mulf %279, %282 : vector<128x64xf32>
    %cst_61 = arith.constant 1.000000e+00 : f32
    %284 = vector.broadcast %cst_61 : f32 to vector<128x1xf32>
    %285 = arith.subf %284, %41 : vector<128x1xf32>
    %286 = vector.broadcast %285 : vector<128x1xf32> to vector<128x64xf32>
    %287 = arith.mulf %283, %286 : vector<128x64xf32>
    %c1_i32_62 = arith.constant 1 : i32
    %288 = vector.broadcast %c1_i32_62 : i32 to vector<128x1xi32>
    %289 = arith.addi %275, %288 : vector<128x1xi32>
    %290 = vector.broadcast %289 : vector<128x1xi32> to vector<128x64xi32>
    %291 = arith.cmpi eq, %1, %290 : vector<128x64xi32>
    %292 = arith.extui %291 : vector<128x64xi1> to vector<128x64xi32>
    %293 = arith.sitofp %292 : vector<128x64xi32> to vector<128x64xf32>
    %294 = vector.broadcast %21 : vector<128x1xf32> to vector<128x64xf32>
    %295 = arith.mulf %293, %294 : vector<128x64xf32>
    %cst_63 = arith.constant 1.000000e+00 : f32
    %296 = vector.broadcast %cst_63 : f32 to vector<128x1xf32>
    %297 = arith.subf %296, %41 : vector<128x1xf32>
    %298 = vector.broadcast %297 : vector<128x1xf32> to vector<128x64xf32>
    %299 = arith.mulf %295, %298 : vector<128x64xf32>
    %300 = arith.addf %287, %299 : vector<128x64xf32>
    %c8_i32_64 = arith.constant 8 : i32
    %301 = vector.broadcast %c8_i32_64 : i32 to vector<128x1xi32>
    %302 = arith.addi %275, %301 : vector<128x1xi32>
    %303 = vector.broadcast %302 : vector<128x1xi32> to vector<128x64xi32>
    %304 = arith.cmpi eq, %1, %303 : vector<128x64xi32>
    %305 = arith.extui %304 : vector<128x64xi1> to vector<128x64xi32>
    %306 = arith.sitofp %305 : vector<128x64xi32> to vector<128x64xf32>
    %cst_65 = arith.constant 1.000000e+00 : f32
    %307 = vector.broadcast %cst_65 : f32 to vector<128x1xf32>
    %308 = arith.subf %307, %21 : vector<128x1xf32>
    %309 = vector.broadcast %308 : vector<128x1xf32> to vector<128x64xf32>
    %310 = arith.mulf %306, %309 : vector<128x64xf32>
    %311 = vector.broadcast %41 : vector<128x1xf32> to vector<128x64xf32>
    %312 = arith.mulf %310, %311 : vector<128x64xf32>
    %313 = arith.addf %300, %312 : vector<128x64xf32>
    %c8_i32_66 = arith.constant 8 : i32
    %314 = vector.broadcast %c8_i32_66 : i32 to vector<128x1xi32>
    %315 = arith.addi %275, %314 : vector<128x1xi32>
    %c1_i32_67 = arith.constant 1 : i32
    %316 = vector.broadcast %c1_i32_67 : i32 to vector<128x1xi32>
    %317 = arith.addi %315, %316 : vector<128x1xi32>
    %318 = vector.broadcast %317 : vector<128x1xi32> to vector<128x64xi32>
    %319 = arith.cmpi eq, %1, %318 : vector<128x64xi32>
    %320 = arith.extui %319 : vector<128x64xi1> to vector<128x64xi32>
    %321 = arith.sitofp %320 : vector<128x64xi32> to vector<128x64xf32>
    %322 = vector.broadcast %21 : vector<128x1xf32> to vector<128x64xf32>
    %323 = arith.mulf %321, %322 : vector<128x64xf32>
    %324 = vector.broadcast %41 : vector<128x1xf32> to vector<128x64xf32>
    %325 = arith.mulf %323, %324 : vector<128x64xf32>
    %326 = arith.addf %313, %325 : vector<128x64xf32>
    %c4 = arith.constant 4 : index
    %c0_68 = arith.constant 0 : index
    %c0_69 = arith.constant 0 : index
    %327 = vector.load %arg2[%c4, %c0_68, %c0_69] : memref<6x64x16xf32, #tpu.memory_space<vmem>>, vector<1x64x16xf32>
    %328 = vector.shape_cast %327 : vector<1x64x16xf32> to vector<64x16xf32>
    %cst_70 = arith.constant dense<0.000000e+00> : vector<128x16xf32>
    %329 = tpu.matmul %326, %328, %cst_70 {dimension_numbers = #tpu.dot_dimension_numbers<[1], [0], [0], [1], [0, 0, 1, 1], [], []>} : vector<128x64xf32>, vector<64x16xf32>, vector<128x16xf32> -> vector<128x16xf32>
    %330 = arith.mulf %272, %329 : vector<128x16xf32>
    %c8_i32_71 = arith.constant 8 : i32
    %331 = vector.broadcast %c8_i32_71 : i32 to vector<128x1xi32>
    %332 = arith.muli %40, %331 : vector<128x1xi32>
    %333 = arith.addi %332, %30 : vector<128x1xi32>
    %334 = vector.broadcast %333 : vector<128x1xi32> to vector<128x64xi32>
    %335 = arith.cmpi eq, %1, %334 : vector<128x64xi32>
    %336 = arith.extui %335 : vector<128x64xi1> to vector<128x64xi32>
    %337 = arith.sitofp %336 : vector<128x64xi32> to vector<128x64xf32>
    %cst_72 = arith.constant 1.000000e+00 : f32
    %338 = vector.broadcast %cst_72 : f32 to vector<128x1xf32>
    %339 = arith.subf %338, %31 : vector<128x1xf32>
    %340 = vector.broadcast %339 : vector<128x1xf32> to vector<128x64xf32>
    %341 = arith.mulf %337, %340 : vector<128x64xf32>
    %cst_73 = arith.constant 1.000000e+00 : f32
    %342 = vector.broadcast %cst_73 : f32 to vector<128x1xf32>
    %343 = arith.subf %342, %41 : vector<128x1xf32>
    %344 = vector.broadcast %343 : vector<128x1xf32> to vector<128x64xf32>
    %345 = arith.mulf %341, %344 : vector<128x64xf32>
    %c1_i32_74 = arith.constant 1 : i32
    %346 = vector.broadcast %c1_i32_74 : i32 to vector<128x1xi32>
    %347 = arith.addi %333, %346 : vector<128x1xi32>
    %348 = vector.broadcast %347 : vector<128x1xi32> to vector<128x64xi32>
    %349 = arith.cmpi eq, %1, %348 : vector<128x64xi32>
    %350 = arith.extui %349 : vector<128x64xi1> to vector<128x64xi32>
    %351 = arith.sitofp %350 : vector<128x64xi32> to vector<128x64xf32>
    %352 = vector.broadcast %31 : vector<128x1xf32> to vector<128x64xf32>
    %353 = arith.mulf %351, %352 : vector<128x64xf32>
    %cst_75 = arith.constant 1.000000e+00 : f32
    %354 = vector.broadcast %cst_75 : f32 to vector<128x1xf32>
    %355 = arith.subf %354, %41 : vector<128x1xf32>
    %356 = vector.broadcast %355 : vector<128x1xf32> to vector<128x64xf32>
    %357 = arith.mulf %353, %356 : vector<128x64xf32>
    %358 = arith.addf %345, %357 : vector<128x64xf32>
    %c8_i32_76 = arith.constant 8 : i32
    %359 = vector.broadcast %c8_i32_76 : i32 to vector<128x1xi32>
    %360 = arith.addi %333, %359 : vector<128x1xi32>
    %361 = vector.broadcast %360 : vector<128x1xi32> to vector<128x64xi32>
    %362 = arith.cmpi eq, %1, %361 : vector<128x64xi32>
    %363 = arith.extui %362 : vector<128x64xi1> to vector<128x64xi32>
    %364 = arith.sitofp %363 : vector<128x64xi32> to vector<128x64xf32>
    %cst_77 = arith.constant 1.000000e+00 : f32
    %365 = vector.broadcast %cst_77 : f32 to vector<128x1xf32>
    %366 = arith.subf %365, %31 : vector<128x1xf32>
    %367 = vector.broadcast %366 : vector<128x1xf32> to vector<128x64xf32>
    %368 = arith.mulf %364, %367 : vector<128x64xf32>
    %369 = vector.broadcast %41 : vector<128x1xf32> to vector<128x64xf32>
    %370 = arith.mulf %368, %369 : vector<128x64xf32>
    %371 = arith.addf %358, %370 : vector<128x64xf32>
    %c8_i32_78 = arith.constant 8 : i32
    %372 = vector.broadcast %c8_i32_78 : i32 to vector<128x1xi32>
    %373 = arith.addi %333, %372 : vector<128x1xi32>
    %c1_i32_79 = arith.constant 1 : i32
    %374 = vector.broadcast %c1_i32_79 : i32 to vector<128x1xi32>
    %375 = arith.addi %373, %374 : vector<128x1xi32>
    %376 = vector.broadcast %375 : vector<128x1xi32> to vector<128x64xi32>
    %377 = arith.cmpi eq, %1, %376 : vector<128x64xi32>
    %378 = arith.extui %377 : vector<128x64xi1> to vector<128x64xi32>
    %379 = arith.sitofp %378 : vector<128x64xi32> to vector<128x64xf32>
    %380 = vector.broadcast %31 : vector<128x1xf32> to vector<128x64xf32>
    %381 = arith.mulf %379, %380 : vector<128x64xf32>
    %382 = vector.broadcast %41 : vector<128x1xf32> to vector<128x64xf32>
    %383 = arith.mulf %381, %382 : vector<128x64xf32>
    %384 = arith.addf %371, %383 : vector<128x64xf32>
    %c5 = arith.constant 5 : index
    %c0_80 = arith.constant 0 : index
    %c0_81 = arith.constant 0 : index
    %385 = vector.load %arg2[%c5, %c0_80, %c0_81] : memref<6x64x16xf32, #tpu.memory_space<vmem>>, vector<1x64x16xf32>
    %386 = vector.shape_cast %385 : vector<1x64x16xf32> to vector<64x16xf32>
    %cst_82 = arith.constant dense<0.000000e+00> : vector<128x16xf32>
    %387 = tpu.matmul %384, %386, %cst_82 {dimension_numbers = #tpu.dot_dimension_numbers<[1], [0], [0], [1], [0, 0, 1, 1], [], []>} : vector<128x64xf32>, vector<64x16xf32>, vector<128x16xf32> -> vector<128x16xf32>
    %388 = arith.mulf %330, %387 : vector<128x16xf32>
    %389 = arith.truncf %388 : vector<128x16xf32> to vector<128x16xbf16>
    %c0_83 = arith.constant 0 : index
    %c0_84 = arith.constant 0 : index
    %390 = vector.load %arg3[%c0_83, %c0_84] : memref<16x32xbf16, #tpu.memory_space<vmem>>, vector<16x32xbf16>
    %cst_85 = arith.constant dense<0.000000e+00> : vector<128x32xf32>
    %391 = tpu.matmul %389, %390, %cst_85 {dimension_numbers = #tpu.dot_dimension_numbers<[1], [0], [0], [1], [0, 0, 1, 1], [], []>} : vector<128x16xbf16>, vector<16x32xbf16>, vector<128x32xf32> -> vector<128x32xf32>
    %c0_86 = arith.constant 0 : index
    %c0_87 = arith.constant 0 : index
    %392 = vector.load %arg4[%c0_86, %c0_87] : memref<1x32xf32, #tpu.memory_space<vmem>>, vector<1x32xf32>
    %393 = vector.broadcast %392 : vector<1x32xf32> to vector<128x32xf32>
    %394 = arith.addf %391, %393 : vector<128x32xf32>
    %cst_88 = arith.constant 0.000000e+00 : f32
    %395 = vector.broadcast %cst_88 : f32 to vector<128x32xf32>
    %396 = arith.maximumf %394, %395 : vector<128x32xf32>
    %397 = arith.truncf %396 : vector<128x32xf32> to vector<128x32xbf16>
    %c0_89 = arith.constant 0 : index
    %c0_90 = arith.constant 0 : index
    %c0_91 = arith.constant 0 : index
    %398 = vector.load %arg5[%c0_89, %c0_90, %c0_91] : memref<1x32x32xbf16, #tpu.memory_space<vmem>>, vector<1x32x32xbf16>
    %399 = vector.shape_cast %398 : vector<1x32x32xbf16> to vector<32x32xbf16>
    %cst_92 = arith.constant dense<0.000000e+00> : vector<128x32xf32>
    %400 = tpu.matmul %397, %399, %cst_92 {dimension_numbers = #tpu.dot_dimension_numbers<[1], [0], [0], [1], [0, 0, 1, 1], [], []>} : vector<128x32xbf16>, vector<32x32xbf16>, vector<128x32xf32> -> vector<128x32xf32>
    %c0_93 = arith.constant 0 : index
    %c0_94 = arith.constant 0 : index
    %c0_95 = arith.constant 0 : index
    %401 = vector.load %arg6[%c0_93, %c0_94, %c0_95] : memref<1x1x32xf32, #tpu.memory_space<vmem>>, vector<1x1x32xf32>
    %402 = vector.shape_cast %401 : vector<1x1x32xf32> to vector<1x32xf32>
    %403 = vector.broadcast %402 : vector<1x32xf32> to vector<128x32xf32>
    %404 = arith.addf %400, %403 : vector<128x32xf32>
    %cst_96 = arith.constant 0.000000e+00 : f32
    %405 = vector.broadcast %cst_96 : f32 to vector<128x32xf32>
    %406 = arith.maximumf %404, %405 : vector<128x32xf32>
    %407 = arith.truncf %406 : vector<128x32xf32> to vector<128x32xbf16>
    %c0_97 = arith.constant 0 : index
    %c0_98 = arith.constant 0 : index
    %408 = vector.load %arg7[%c0_97, %c0_98] : memref<32x160xbf16, #tpu.memory_space<vmem>>, vector<32x160xbf16>
    %cst_99 = arith.constant dense<0.000000e+00> : vector<128x160xf32>
    %409 = tpu.matmul %407, %408, %cst_99 {dimension_numbers = #tpu.dot_dimension_numbers<[1], [0], [0], [1], [0, 0, 1, 1], [], []>} : vector<128x32xbf16>, vector<32x160xbf16>, vector<128x160xf32> -> vector<128x160xf32>
    %c0_100 = arith.constant 0 : index
    %c0_101 = arith.constant 0 : index
    %410 = vector.load %arg8[%c0_100, %c0_101] : memref<1x160xf32, #tpu.memory_space<vmem>>, vector<1x160xf32>
    %411 = vector.broadcast %410 : vector<1x160xf32> to vector<128x160xf32>
    %412 = arith.addf %409, %411 : vector<128x160xf32>
    %cst_102 = arith.constant 0.000000e+00 : f32
    %413 = vector.broadcast %cst_102 : f32 to vector<128x160xf32>
    %414 = arith.maximumf %412, %413 : vector<128x160xf32>
    %415 = arith.truncf %414 : vector<128x160xf32> to vector<128x160xbf16>
    %c0_103 = arith.constant 0 : index
    %c0_104 = arith.constant 0 : index
    %416 = vector.load %arg9[%c0_103, %c0_104] : memref<160x64xbf16, #tpu.memory_space<vmem>>, vector<160x64xbf16>
    %cst_105 = arith.constant dense<0.000000e+00> : vector<128x64xf32>
    %417 = tpu.matmul %415, %416, %cst_105 {dimension_numbers = #tpu.dot_dimension_numbers<[1], [0], [0], [1], [0, 0, 1, 1], [], []>} : vector<128x160xbf16>, vector<160x64xbf16>, vector<128x64xf32> -> vector<128x64xf32>
    %c0_106 = arith.constant 0 : index
    %c0_107 = arith.constant 0 : index
    %418 = vector.load %arg10[%c0_106, %c0_107] : memref<1x64xf32, #tpu.memory_space<vmem>>, vector<1x64xf32>
    %419 = vector.broadcast %418 : vector<1x64xf32> to vector<128x64xf32>
    %420 = arith.addf %417, %419 : vector<128x64xf32>
    %421 = arith.addf %0, %420 : vector<128x64xf32>
    %c0_108 = arith.constant 0 : index
    %c0_109 = arith.constant 0 : index
    %422 = vector.load %arg11[%c0_108, %c0_109] : memref<128x64xf32, #tpu.memory_space<vmem>>, vector<128x64xf32>
    tpu.vector_store %arg11[%c0_108, %c0_109], %421 {strides = array<i32>} : memref<128x64xf32, #tpu.memory_space<vmem>>, vector<128x64xf32>,
    return
  }
  func.func @transform_0(%arg0: i32) -> (i32, i32) {
    %c0_i32 = arith.constant 0 : i32
    %c0_i32_0 = arith.constant 0 : i32
    return %arg0, %c0_i32 : i32, i32
  }
  func.func @transform_1(%arg0: i32) -> (i32, i32, i32) {
    %c0_i32 = arith.constant 0 : i32
    %c0_i32_0 = arith.constant 0 : i32
    %c0_i32_1 = arith.constant 0 : i32
    %c0_i32_2 = arith.constant 0 : i32
    return %c0_i32, %c0_i32_0, %c0_i32_1 : i32, i32, i32
  }
  func.func @transform_2(%arg0: i32) -> (i32, i32) {
    %c0_i32 = arith.constant 0 : i32
    %c0_i32_0 = arith.constant 0 : i32
    %c0_i32_1 = arith.constant 0 : i32
    return %c0_i32, %c0_i32_0 : i32, i32
  }
  func.func @transform_3(%arg0: i32) -> (i32, i32) {
    %c0_i32 = arith.constant 0 : i32
    %c0_i32_0 = arith.constant 0 : i32
    %c0_i32_1 = arith.constant 0 : i32
    return %c0_i32, %c0_i32_0 : i32, i32
  }
  func.func @transform_4(%arg0: i32) -> (i32, i32, i32) {
    %c0_i32 = arith.constant 0 : i32
    %c0_i32_0 = arith.constant 0 : i32
    %c0_i32_1 = arith.constant 0 : i32
    %c0_i32_2 = arith.constant 0 : i32
    return %c0_i32, %c0_i32_0, %c0_i32_1 : i32, i32, i32
  }
  func.func @transform_5(%arg0: i32) -> (i32, i32, i32) {
    %c0_i32 = arith.constant 0 : i32
    %c0_i32_0 = arith.constant 0 : i32
    %c0_i32_1 = arith.constant 0 : i32
    %c0_i32_2 = arith.constant 0 : i32
    return %c0_i32, %c0_i32_0, %c0_i32_1 : i32, i32, i32
  }
  func.func @transform_6(%arg0: i32) -> (i32, i32) {
    %c0_i32 = arith.constant 0 : i32
    %c0_i32_0 = arith.constant 0 : i32
    %c0_i32_1 = arith.constant 0 : i32
    return %c0_i32, %c0_i32_0 : i32, i32
  }
  func.func @transform_7(%arg0: i32) -> (i32, i32) {
    %c0_i32 = arith.constant 0 : i32
    %c0_i32_0 = arith.constant 0 : i32
    %c0_i32_1 = arith.constant 0 : i32
    return %c0_i32, %c0_i32_0 : i32, i32
  }
  func.func @transform_8(%arg0: i32) -> (i32, i32) {
    %c0_i32 = arith.constant 0 : i32
    %c0_i32_0 = arith.constant 0 : i32
    %c0_i32_1 = arith.constant 0 : i32
    return %c0_i32, %c0_i32_0 : i32, i32
  }
  func.func @transform_9(%arg0: i32) -> (i32, i32) {
    %c0_i32 = arith.constant 0 : i32
    %c0_i32_0 = arith.constant 0 : i32
    %c0_i32_1 = arith.constant 0 : i32
    return %c0_i32, %c0_i32_0 : i32, i32
  }
  func.func @transform_10(%arg0: i32) -> (i32, i32) {
    %c0_i32 = arith.constant 0 : i32
    %c0_i32_0 = arith.constant 0 : i32
    return %arg0, %c0_i32 : i32, i32
  }
}

</mosaic_0001>

<bundles_post_ra>
// kernel: deformation_fields_forward.1
= control target key start
LH: loop header
LB: loop body
LE: loop exit
PB: predicated region body
PF: predicated region fallthrough
CT: control target
= control target key end

     0   :  { %s7054_s13 = smov 0   ;;  %s11749_s0 = inlined_call_operand.vmem [shape: f32[256,64], index: 0, kind: input, shape index: {}]   ;;  %s11750_s1 = inlined_call_operand.vmem [shape: f32[6,64,16], index: 1, kind: input, shape index: {}]   ;;  %s11751_s2 = inlined_call_operand.vmem [shape: bf16[16,32], index: 2, kind: input, shape index: {}]   ;;  %s11752_s3 = inlined_call_operand.vmem [shape: f32[1,32], index: 3, kind: input, shape index: {}]   ;;  %s11753_s4 = inlined_call_operand.vmem [shape: bf16[1,32,32], index: 4, kind: input, shape index: {}]   ;;  %s11754_s5 = inlined_call_operand.vmem [shape: f32[1,1,32], index: 5, kind: input, shape index: {}]   ;;  %s11755_s6 = inlined_call_operand.vmem [shape: bf16[32,160], index: 6, kind: input, shape index: {}]   ;;  %s11756_s7 = inlined_call_operand.vmem [shape: f32[1,160], index: 7, kind: input, shape index: {}]   ;;  %s11757_s8 = inlined_call_operand.vmem [shape: bf16[160,64], index: 8, kind: input, shape index: {}]   ;;  %s11758_s9 = inlined_call_operand.vmem [shape: f32[1,64], index: 9, kind: input, shape index: {}]   ;;  %s11759_s10 = inlined_call_operand.vmem [shape: f32[256,64], index: 10, kind: output, shape index: {}]  }
   0x1 LB: > { %s6244_s14 = sadd.s32 4294967295, %s6989_s13   ;;  %p6248_p0 = scmp.ge.s32.totalorder %s6989_s13, 1  ;;  %s6989_s13 = sphi %s7054_s13, %s20_s13  }
   0x2   : > { %p313_p1 = scmp.lt.s32.totalorder %s6989_s13, 3 }
   0x4   : > { %p314_p2 = pnand %p6248_p0, %p313_p1 }
   0x6   : > { %317 = sbr.rel (%p314_p2) target bundleno = 2544 (0x9f0), region = 60 }
   0xb   : > { %s6249_s15 = sshll.u32 %s6244_s14, 4  ;;  %s6991_s20 = smov 1   ;;  %v11760_v38 = vmov 59   ;;  %vm1462_vm10 = vcmask 523264  }
   0xc   : > { %p352_p3 = scmp.lt.s32.totalorder %s6249_s15, 31  ;;  %6949 = vset.pattern.permute.xlu1 %v11760_v38  ;;  %6948 = vset.pattern.permute.xlu0 %v11760_v38  ;;  %s6994_s21 = smov 2  }
   0xd   : > { %6950 = vset.pattern.permute.xlu2 %v11760_v38 }
   0xe   : > { %s13474_s15 = smov (!%p352_p3, %s6249_s15), 31 }
   0xf   : > { %s6250_s16 = sshll.u32 %s13474_s15, 3 }
  0x10   : > { %s7070_s19 = scalar_lea.vmem %s11749_s0, %s6250_s16  ;;  %s11666_s27 = scalar_lea.vmem %s11759_s10, %s6250_s16 }
  0x11   : > { %v366_v0 = vld [vmem:[%s7070_s19 + $0x10] sm:$0xff]  ;;  %v364_v1 = vld [vmem:[%s7070_s19] sm:$0xff]  ;;  %v367_v2 = vld [vmem:[%s7070_s19 + $0x18] sm:$0xff] }
  0x12   : > { %v7075_v3 = vmul.f32 7.0, %v366_v0  ;;  %v7077_v4 = vmul.f32 7.0, %v364_v1  ;;  %v7079_v5 = vmul.f32 7.0, %v367_v2  ;;  %v365_v6 = vld [vmem:[%s7070_s19 + $0x8] sm:$0xff]  ;;  %v371_v11 = vld [vmem:[%s7070_s19 + $0x38] sm:$0xff]  ;;  %v370_v12 = vld [vmem:[%s7070_s19 + $0x30] sm:$0xff] }
  0x13   : > { %v7082_v7 = vmul.f32 7.0, %v365_v6  ;;  %v7094_v16 = vmul.f32 7.0, %v371_v11  ;;  %v7096_v17 = vmul.f32 7.0, %v370_v12  ;;  %v368_v24 = vld [vmem:[%s7070_s19 + $0x20] sm:$0xff]  ;;  %v369_v27 = vld [vmem:[%s7070_s19 + $0x28] sm:$0xff]  ;;  %v374_v30 = vld [vmem:[%s7070_s19 + $0x50] sm:$0xff] }
  0x14   : > { %v400_v8 = vfloor.f32 %v7075_v3  ;;  %v398_v9 = vfloor.f32 %v7077_v4  ;;  %v401_v10 = vfloor.f32 %v7079_v5  ;;  %v373_v31 = vld [vmem:[%s7070_s19 + $0x48] sm:$0xff]  ;;  %v7124_v32 = vmul.f32 7.0, %v368_v24  ;;  %v372_v43 = vld [vmem:[%s7070_s19 + $0x40] sm:$0xff]  ;;  %v375_v63 = vld [vmem:[%s7070_s19 + $0x58] sm:$0xff] }
  0x15   : > { %v399_v13 = vfloor.f32 %v7082_v7  ;;  %v405_v25 = vfloor.f32 %v7094_v16  ;;  %v404_v26 = vfloor.f32 %v7096_v17  ;;  %v7126_v33 = vmul.f32 7.0, %v369_v27  ;;  %v377_v50 = vld [vmem:[%s7070_s19 + $0x68] sm:$0xff]  ;;  %v376_v53 = vld [vmem:[%s7070_s19 + $0x60] sm:$0xff] }
  0x16   : > { %v7090_v14 = vmax.f32 %v400_v8, 0.0  ;;  %v7092_v15 = vmax.f32 %v398_v9, 0.0  ;;  %v7100_v20 = vmax.f32 %v401_v10, 0.0  ;;  %v7132_v36 = vmul.f32 7.0, %v374_v30  ;;  %v379_v9 = vld [vmem:[%s7070_s19 + $0x78] sm:$0xff] }
  0x17   : > { %v7102_v21 = vmax.f32 %v399_v13, 0.0  ;;  %v7128_v34 = vmax.f32 %v405_v25, 0.0  ;;  %v7130_v35 = vmax.f32 %v404_v26, 0.0  ;;  %v7134_v37 = vmul.f32 7.0, %v373_v31  ;;  %v378_v31 = vld [vmem:[%s7070_s19 + $0x70] sm:$0xff] }
  0x18   : > { %v432_v18 = vmin.f32 %v7090_v14, 6.0  ;;  %v430_v19 = vmin.f32 %v7092_v15, 6.0  ;;  %v433_v28 = vmin.f32 %v7100_v20, 6.0  ;;  %v402_v41 = vfloor.f32 %v7124_v32 }
  0x19   : > { %v431_v29 = vmin.f32 %v7102_v21, 6.0  ;;  %v403_v42 = vfloor.f32 %v7126_v33  ;;  %v437_v45 = vmin.f32 %v7128_v34, 6.0  ;;  %v408_v46 = vfloor.f32 %v7132_v36 }
  0x1a   : > { %v7106_v22 = vcvt.f32.s32 %v432_v18  ;;  %v7110_v23 = vcvt.f32.s32 %v430_v19  ;;  %v7140_v39 = vcvt.f32.s32 %v433_v28  ;;  %v7150_v44 = vmax.f32 %v402_v41, 0.0 }
  0x1b   : > { %v7144_v40 = vcvt.f32.s32 %v431_v29  ;;  %v407_v47 = vfloor.f32 %v7134_v37  ;;  %v436_v48 = vmin.f32 %v7130_v35, 6.0  ;;  %v7162_v51 = vmax.f32 %v403_v42, 0.0 }
  0x1c   : > { %12348 = vst [vmem:[#allocation2_spill] sm:$0xff] %v7106_v22  ;;  %498 = vrot.lane.b32.xlu1 %v7106_v22, %s6991_s20  ;;  %494 = vrot.lane.b32.xlu0 %v7110_v23, %s6991_s20  ;;  %v434_v49 = vmin.f32 %v7150_v44, 6.0  ;;  %v7164_v52 = vmul.f32 7.0, %v372_v43  ;;  %v7173_v55 = vcvt.f32.s32 %v437_v45  ;;  %v7175_v56 = vmax.f32 %v408_v46, 0.0 }
  0x1d   : > { %12349 = vst [vmem:[#allocation3_spill] sm:$0xff] %v7110_v23  ;;  %v7177_v57 = vmax.f32 %v407_v47, 0.0  ;;  %v7179_v58 = vmul.f32 7.0, %v377_v50  ;;  %v7183_v59 = vcvt.f32.s32 %v436_v48  ;;  %v7187_v60 = vmul.f32 7.0, %v376_v53 }
  0x1e   : > { %12350 = vst [vmem:[#allocation4_spill] sm:$0xff] %v7140_v39  ;;  %v7169_v54 = vcvt.f32.s32 %v434_v49  ;;  %v435_v61 = vmin.f32 %v7162_v51, 6.0  ;;  %v406_v62 = vfloor.f32 %v7164_v52  ;;  %v440_v0 = vmin.f32 %v7175_v56, 6.0 }
  0x1f   : > { %12351 = vst [vmem:[#allocation5_spill] sm:$0xff] %v7144_v40  ;;  %v439_v1 = vmin.f32 %v7177_v57, 6.0  ;;  %v411_v2 = vfloor.f32 %v7179_v58  ;;  %v410_v6 = vfloor.f32 %v7187_v60  ;;  %v393_v11 = vmul.f32 7.0, %v375_v63 }
  0x20   : > { %12352 = vst [vmem:[#allocation6_spill] sm:$0xff] %v7169_v54  ;;  %502 = vrot.lane.b32.xlu2 %v7169_v54, %s6991_s20  ;;  %v7200_v8 = vcvt.f32.s32 %v435_v61  ;;  %v422_v10 = vmax.f32 %v406_v62, 0.0  ;;  %v7205_v12 = vcvt.f32.s32 %v440_v0  ;;  %v7209_v24 = vmul.f32 7.0, %v379_v9 }
  0x21   : > { %12353 = vst [vmem:[#allocation7_spill] sm:$0xff] %v7173_v55  ;;  %v7207_v13 = vmax.f32 %v411_v2, 0.0  ;;  %v7211_v25 = vcvt.f32.s32 %v439_v1  ;;  %v426_v26 = vmax.f32 %v410_v6, 0.0  ;;  %v409_v30 = vfloor.f32 %v393_v11 }
  0x22   : > { %12354 = vst [vmem:[#allocation8_spill] sm:$0xff] %v7183_v59  ;;  %v438_v27 = vmin.f32 %v422_v10, 6.0  ;;  %v413_v42 = vfloor.f32 %v7209_v24  ;;  %v396_v50 = vmul.f32 7.0, %v378_v31  ;;  %v7235_v2 = vsub.f32 %v7082_v7, %v431_v29 }
  0x23   : > { %12355 = vst [vmem:[#allocation9_spill] sm:$0xff] %v7200_v8  ;;  %v443_v41 = vmin.f32 %v7207_v13, 6.0  ;;  %v442_v43 = vmin.f32 %v426_v26, 6.0  ;;  %v425_v47 = vmax.f32 %v409_v30, 0.0  ;;  %v7253_v21 = vsub.f32 %v7077_v4, %v430_v19 }
  0x24   : > { %500 = vrot.lane.b32.xlu1 %v7140_v39, %s6991_s20  ;;  %496 = vrot.lane.b32.xlu0 %v7144_v40, %s6991_s20  ;;  %12356 = vst [vmem:[#allocation10_spill] sm:$0xff] %v7205_v12  ;;  %v7222_v46 = vcvt.f32.s32 %v438_v27  ;;  %v429_v51 = vmax.f32 %v413_v42, 0.0  ;;  %v412_v63 = vfloor.f32 %v396_v50  ;;  %v7244_v26 = vsub.f32 1.0, %v7235_v2 }
  0x25   : > { %12357 = vst [vmem:[#allocation11_spill] sm:$0xff] %v7211_v25  ;;  %v7226_v53 = vcvt.f32.s32 %v443_v41  ;;  %v7228_v57 = vcvt.f32.s32 %v442_v43  ;;  %v441_v62 = vmin.f32 %v425_v47, 6.0  ;;  %v7258_v29 = vsub.f32 %v7079_v5, %v433_v28 }
  0x26   : > { %12358 = vst [vmem:[#allocation12_spill] sm:$0xff] %v7222_v46  ;;  %v445_v6 = vmin.f32 %v429_v51, 6.0  ;;  %v428_v10 = vmax.f32 %v412_v63, 0.0  ;;  %v7268_v42 = vsub.f32 %v7075_v3, %v432_v18  ;;  %v7274_v15 = vsub.f32 1.0, %v7253_v21 }
  0x27   : > { %12359 = vst [vmem:[#allocation13_spill] sm:$0xff] %v7226_v53  ;;  %v7241_v9 = vcvt.f32.s32 %v441_v62  ;;  %v7271_v4 = vsub.f32 1.0, %v7258_v29  ;;  %v7281_v5 = vsub.f32 %v7096_v17, %v436_v48  ;;  %v7284_v19 = vsub.f32 %v7126_v33, %v435_v61 }
  0x28   : > { %504 = vrot.lane.b32.xlu2 %v7200_v8, %s6991_s20  ;;  %12360 = vst [vmem:[#allocation14_spill] sm:$0xff] %v7228_v57  ;;  %v7246_v30 = vcvt.f32.s32 %v445_v6  ;;  %v444_v7 = vmin.f32 %v428_v10, 6.0  ;;  %v7289_v3 = vsub.f32 1.0, %v7268_v42  ;;  %v7294_v14 = vsub.f32 %v7124_v32, %v434_v49 }
  0x29   : > { %12361 = vst [vmem:[#allocation15_spill] sm:$0xff] %v7235_v2  ;;  %v7297_v18 = vsub.f32 1.0, %v7281_v5  ;;  %v7300_v17 = vsub.f32 1.0, %v7284_v19  ;;  %v7304_v20 = vsub.f32 %v7134_v37, %v439_v1  ;;  %v7307_v28 = vsub.f32 %v7164_v52, %v438_v27 }
  0x2a   : > { %12362 = vst [vmem:[#allocation16_spill] sm:$0xff] %v7241_v9  ;;  %v7263_v31 = vcvt.f32.s32 %v444_v7  ;;  %v7312_v32 = vsub.f32 1.0, %v7294_v14  ;;  %v7317_v33 = vsub.f32 %v7094_v16, %v437_v45  ;;  %v7327_v44 = vsub.f32 %v7187_v60, %v442_v43 }
  0x2b   : > { %12363 = vst [vmem:[#allocation17_spill] sm:$0xff] %v7244_v26  ;;  %v7320_v35 = vsub.f32 1.0, %v7304_v20  ;;  %v7323_v37 = vsub.f32 1.0, %v7307_v28  ;;  %v7329_v48 = vsub.f32 %v393_v11, %v441_v62  ;;  %v7339_v34 = vsub.f32 %v7132_v36, %v440_v0 }
  0x2c   : > { %508 = vrot.lane.b32.xlu1 %v7173_v55, %s6991_s20  ;;  %506 = vrot.lane.b32.xlu0 %v7183_v59, %s6991_s20  ;;  %12364 = vst [vmem:[#allocation18_spill] sm:$0xff] %v7246_v30  ;;  %v7334_v16 = vsub.f32 1.0, %v7317_v33  ;;  %v7342_v45 = vsub.f32 1.0, %v7327_v44  ;;  %v7349_v52 = vsub.f32 %v7209_v24, %v445_v6  ;;  %v7351_v60 = vsub.f32 %v396_v50, %v444_v7 }
  0x2d   : > { %12365 = vst [vmem:[#allocation19_spill] sm:$0xff] %v7253_v21  ;;  %v7345_v49 = vsub.f32 1.0, %v7329_v48  ;;  %v7356_v36 = vsub.f32 1.0, %v7339_v34  ;;  %v7361_v56 = vsub.f32 %v7179_v58, %v443_v41  ;;  %v11762_v58 = vmov 60  }
  0x2e   : > { %12366 = vst [vmem:[#allocation20_spill] sm:$0xff] %v7258_v29  ;;  %v7364_v61 = vsub.f32 1.0, %v7349_v52  ;;  %v7367_v0 = vsub.f32 1.0, %v7351_v60  ;;  %v7383_v13 = vmul.u32 8, %v7110_v23  ;;  %v7391_v47 = vmul.u32 8, %v7140_v39 }
  0x2f   : > { %12367 = vst [vmem:[#allocation21_spill] sm:$0xff] %v7263_v31  ;;  %v7373_v1 = vsub.f32 1.0, %v7361_v56  ;;  %v7394_v50 = vmul.u32 8, %v7144_v40  ;;  %v7398_v63 = vmul.u32 8, %v7106_v22  ;;  %v7409_v7 = vmul.u32 8, %v7200_v8 }
  0x30   : > { %510 = vrot.lane.b32.xlu2 %v7222_v46, %s6991_s20  ;;  %12368 = vst [vmem:[#allocation22_spill] sm:$0xff] %v7268_v42  ;;  %v7415_v38 = vmul.u32 8, %v7169_v54 }
  0x31   : > { %12369 = vst [vmem:[#allocation23_spill] sm:$0xff] %v7271_v4 }
  0x32   : > { %12370 = vst [vmem:[#allocation24_spill] sm:$0xff] %v7274_v15 }
  0x33   : > { %12371 = vst [vmem:[#allocation25_spill] sm:$0xff] %v7281_v5 }
  0x34   : > { %514 = vrot.lane.b32.xlu1 %v7205_v12, %s6991_s20  ;;  %512 = vrot.lane.b32.xlu0 %v7211_v25, %s6991_s20  ;;  %12372 = vst [vmem:[#allocation26_spill] sm:$0xff] %v7284_v19 }
  0x35   : > { %12373 = vst [vmem:[#allocation27_spill] sm:$0xff] %v7289_v3 }
  0x36   : > { %12374 = vst [vmem:[#allocation28_spill] sm:$0xff] %v7294_v14 }
  0x37   : > { %12375 = vst [vmem:[#allocation29_spill] sm:$0xff] %v7297_v18 }
  0x38   : > { %516 = vrot.lane.b32.xlu2 %v7241_v9, %s6991_s20  ;;  %12376 = vst [vmem:[#allocation30_spill] sm:$0xff] %v7300_v17 }
  0x39   : > { %12377 = vst [vmem:[#allocation31_spill] sm:$0xff] %v7304_v20 }
  0x3a   : > { %12378 = vst [vmem:[#allocation32_spill] sm:$0xff] %v7307_v28 }
  0x3b   : > { %12379 = vst [vmem:[#allocation33_spill] sm:$0xff] %v7312_v32 }
  0x3c   : > { %520 = vrot.lane.b32.xlu1 %v7226_v53, %s6991_s20  ;;  %518 = vrot.lane.b32.xlu0 %v7228_v57, %s6991_s20  ;;  %12380 = vst [vmem:[#allocation34_spill] sm:$0xff] %v7317_v33 }
  0x3d   : > { %12381 = vst [vmem:[#allocation35_spill] sm:$0xff] %v7320_v35 }
  0x3e   : > { %12382 = vst [vmem:[#allocation36_spill] sm:$0xff] %v7323_v37 }
  0x3f   : > { %12383 = vst [vmem:[#allocation37_spill] sm:$0xff] %v7327_v44 }
  0x40   : > { %522 = vrot.lane.b32.xlu2 %v7263_v31, %s6991_s20  ;;  %12384 = vst [vmem:[#allocation38_spill] sm:$0xff] %v7329_v48 }
  0x41   : > { %12385 = vst [vmem:[#allocation39_spill] sm:$0xff] %v7334_v16 }
  0x42   : > { %12386 = vst [vmem:[#allocation40_spill] sm:$0xff] %v7339_v34 }
  0x43   : > { %12387 = vst [vmem:[#allocation41_spill] sm:$0xff] %v7342_v45 }
  0x44   : > { %661 = vperm.xlu1 %6949, %v7244_v26   ;;  %524 = vrot.lane.b32.xlu0 %v7246_v30, %s6991_s20  ;;  %12388 = vst [vmem:[#allocation42_spill] sm:$0xff] %v7345_v49 }
  0x45   : > { %12389 = vst [vmem:[#allocation43_spill] sm:$0xff] %v7349_v52 }
  0x46   : > { %12390 = vst [vmem:[#allocation44_spill] sm:$0xff] %v7351_v60 }
  0x47   : > { %12391 = vst [vmem:[#allocation45_spill] sm:$0xff] %v7356_v36 }
  0x48   : > { %666 = vperm.xlu2 %6950, %v7289_v3   ;;  %12392 = vst [vmem:[#allocation46_spill] sm:$0xff] %v7361_v56 }
  0x49   : > { %12393 = vst [vmem:[#allocation47_spill] sm:$0xff] %v7364_v61 }
  0x4a   : > { %12394 = vst [vmem:[#allocation48_spill] sm:$0xff] %v7367_v0 }
  0x4b   : > { %12395 = vst [vmem:[#allocation49_spill] sm:$0xff] %v7373_v1 }
  0x4c   : > { %671 = vperm.xlu1 %6949, %v7271_v4   ;;  %656 = vperm.xlu0 %6948, %v7274_v15   ;;  %12396 = vst [vmem:[#allocation50_spill] sm:$0xff] %v7383_v13 }
  0x4d   : > { %12398 = vst [vmem:[#allocation52_spill] sm:$0xff] %v7391_v47 }
  0x4e   : > { %12399 = vst [vmem:[#allocation53_spill] sm:$0xff] %v7394_v50 }
  0x4f   : > { %12400 = vst [vmem:[#allocation54_spill] sm:$0xff] %v7398_v63 }
  0x50   : > { %676 = vperm.xlu2 %6950, %v7312_v32   ;;  %12403 = vst [vmem:[#allocation57_spill] sm:$0xff] %v7409_v7 }
  0x51   : > { %12405 = vst [vmem:[#allocation59_spill] sm:$0xff] %v7415_v38 }
  0x54   : > { %686 = vperm.xlu1 %6949, %v7297_v18   ;;  %681 = vperm.xlu0 %6948, %v7300_v17  }
  0x58   : > { %691 = vperm.xlu2 %6950, %v7334_v16  }
  0x5c   : > { %701 = vperm.xlu1 %6949, %v7320_v35   ;;  %696 = vperm.xlu0 %6948, %v7323_v37  }
  0x60   : > { %706 = vperm.xlu2 %6950, %v7356_v36  }
  0x64   : > { %716 = vperm.xlu1 %6949, %v7342_v45   ;;  %711 = vperm.xlu0 %6948, %v7345_v49  }
  0x68   : > { %721 = vperm.xlu2 %6950, %v7373_v1  }
  0x6c   : > { %731 = vperm.xlu1 %6949, %v7364_v61   ;;  %726 = vperm.xlu0 %6948, %v7367_v0  }
  0x70   : > { %6951 = vset.pattern.permute.xlu2 %v11762_v58 }
  0x71   : > { %751 = vperm.xlu2 %6951, %v7274_v15   ;;  %v12406_v15 = vmov 60  }
  0x74   : > { %949 = vperm.xlu0 %6948, %v7235_v2   ;;  %6952 = vset.pattern.permute.xlu1 %v11762_v58 }
  0x7a   : > { %v503_v11 = vpop.permute.xlu2 %502 }
  0x7c   : > { %974 = vperm.xlu0 %6948, %v7281_v5  }
  0x82   : > { %v505_v43 = vpop.permute.xlu2 %504 }
  0x84   : > { %989 = vperm.xlu0 %6948, %v7304_v20  }
  0x8a   : > { %v511_v58 = vpop.permute.xlu2 %510 }
  0x8c   : > { %1004 = vperm.xlu0 %6948, %v7327_v44  }
  0x8e   : > { %v499_v24 = vpop.permute.xlu1 %498  ;;  %v495_v27 = vpop.permute.xlu0 %494 }
  0x8f   : > { %v7387_v41 = vadd.s32 %v495_v27, %v7383_v13  ;;  %v7412_v27 = vadd.s32 %v499_v24, %v7398_v63  ;;  %v7432_v63 = vmul.u32 8, %v7183_v59 }
  0x91   : > { %12397 = vst [vmem:[#allocation51_spill] sm:$0xff] %v7387_v41  ;;  %543 = vperm.xlu1 %6952, %v7387_v41  }
  0x92   : > { %12404 = vst [vmem:[#allocation58_spill] sm:$0xff] %v7412_v27 }
  0x93   : > { %12411 = vst [vmem:[#allocation64_spill] sm:$0xff] %v7432_v63 }
  0x94   : > { %1019 = vperm.xlu0 %6948, %v7349_v52  }
  0x96   : > { %v501_v51 = vpop.permute.xlu1 %500  ;;  %v497_v62 = vpop.permute.xlu0 %496 }
  0x97   : > { %v7401_v6 = vadd.s32 %v501_v51, %v7391_v47  ;;  %v7404_v10 = vadd.s32 %v497_v62, %v7394_v50  ;;  %v7419_v51 = vadd.s32 %v505_v43, %v7409_v7  ;;  %v7423_v62 = vmul.u32 8, %v7173_v55 }
  0x98   : > { %v7426_v50 = vadd.s32 %v503_v11, %v7415_v38  ;;  %v7437_v43 = vmul.u32 8, %v7222_v46  ;;  %v7447_v11 = vmul.u32 8, %v7205_v12  ;;  %v7453_v46 = vmul.u32 8, %v7211_v25 }
  0x99   : > { %12401 = vst [vmem:[#allocation55_spill] sm:$0xff] %v7401_v6  ;;  %546 = vperm.xlu2 %6951, %v7404_v10   ;;  %552 = vperm.xlu1 %6952, %v7401_v6  }
  0x9a   : > { %12402 = vst [vmem:[#allocation56_spill] sm:$0xff] %v7404_v10  ;;  %v7443_v8 = vadd.s32 %v511_v58, %v7437_v43  ;;  %v7458_v58 = vmul.u32 8, %v7241_v9  ;;  %v7474_v9 = vmul.u32 8, %v7228_v57 }
  0x9b   : > { %12407 = vst [vmem:[#allocation60_spill] sm:$0xff] %v7419_v51 }
  0x9c   : > { %6955 = vset.pattern.permute.xlu0 %v12406_v15  ;;  %12408 = vst [vmem:[#allocation61_spill] sm:$0xff] %v7423_v62 }
  0x9d   : > { %549 = vperm.xlu0 %6955, %v7412_v27   ;;  %12409 = vst [vmem:[#allocation62_spill] sm:$0xff] %v7426_v50 }
  0x9e   : > { %v509_v47 = vpop.permute.xlu1 %508  ;;  %v507_v13 = vpop.permute.xlu0 %506  ;;  %12412 = vst [vmem:[#allocation65_spill] sm:$0xff] %v7437_v43 }
  0x9f   : > { %v7429_v24 = vadd.s32 %v509_v47, %v7423_v62  ;;  %v7440_v7 = vadd.s32 %v507_v13, %v7432_v63  ;;  %12414 = vst [vmem:[#allocation67_spill] sm:$0xff] %v7443_v8  ;;  %v517_v47 = vpop.permute.xlu2 %516 }
  0xa0   : > { %12415 = vst [vmem:[#allocation68_spill] sm:$0xff] %v7447_v11  ;;  %v7464_v43 = vadd.s32 %v517_v47, %v7458_v58 }
  0xa1   : > { %12410 = vst [vmem:[#allocation63_spill] sm:$0xff] %v7429_v24  ;;  %555 = vperm.xlu2 %6951, %v7426_v50   ;;  %558 = vperm.xlu1 %6952, %v7419_v51  }
  0xa2   : > { %12413 = vst [vmem:[#allocation66_spill] sm:$0xff] %v7440_v7 }
  0xa3   : > { %12417 = vst [vmem:[#allocation70_spill] sm:$0xff] %v7453_v46 }
  0xa4   : > { %12418 = vst [vmem:[#allocation71_spill] sm:$0xff] %v7458_v58 }
  0xa5   : > { %564 = vperm.xlu0 %6955, %v7429_v24   ;;  %12420 = vst [vmem:[#allocation73_spill] sm:$0xff] %v7464_v43 }
  0xa6   : > { %v515_v62 = vpop.permute.xlu1 %514  ;;  %v513_v38 = vpop.permute.xlu0 %512  ;;  %12423 = vst [vmem:[#allocation76_spill] sm:$0xff] %v7474_v9 }
  0xa7   : > { %v7450_v59 = vadd.s32 %v515_v62, %v7447_v11  ;;  %v7461_v13 = vadd.s32 %v513_v38, %v7453_v46  ;;  %v7468_v62 = vmul.u32 8, %v7226_v53  ;;  %v523_v63 = vpop.permute.xlu2 %522  ;;  %v7479_v38 = vmul.u32 8, %v7263_v31 }
  0xa9   : > { %12416 = vst [vmem:[#allocation69_spill] sm:$0xff] %v7450_v59  ;;  %561 = vperm.xlu2 %6951, %v7440_v7   ;;  %567 = vperm.xlu1 %6952, %v7443_v8   ;;  %v7485_v58 = vadd.s32 %v523_v63, %v7479_v38 }
  0xaa   : > { %12419 = vst [vmem:[#allocation72_spill] sm:$0xff] %v7461_v13 }
  0xab   : > { %12421 = vst [vmem:[#allocation74_spill] sm:$0xff] %v7468_v62 }
  0xac   : > { %12424 = vst [vmem:[#allocation77_spill] sm:$0xff] %v7479_v38 }
  0xad   : > { %573 = vperm.xlu0 %6955, %v7450_v59   ;;  %12426 = vst [vmem:[#allocation79_spill] sm:$0xff] %v7485_v58 }
  0xae   : > { %v519_v11 = vpop.permute.xlu0 %518  ;;  %v521_v25 = vpop.permute.xlu1 %520 }
  0xaf   : > { %v7471_v39 = vadd.s32 %v521_v25, %v7468_v62  ;;  %v7482_v47 = vadd.s32 %v519_v11, %v7474_v9  ;;  %v7489_v62 = vmul.u32 8, %v7246_v30  ;;  %v7493_v46 = vpop.permute.xlu2 %666 }
  0xb0   : > { %12428 = vst [vmem:[#allocation81_spill] sm:$0xff] %v7493_v46 }
  0xb1   : > { %12422 = vst [vmem:[#allocation75_spill] sm:$0xff] %v7471_v39  ;;  %570 = vperm.xlu2 %6951, %v7461_v13   ;;  %576 = vperm.xlu1 %6952, %v7464_v43  }
  0xb2   : > { %12425 = vst [vmem:[#allocation78_spill] sm:$0xff] %v7482_v47 }
  0xb3   : > { %12427 = vst [vmem:[#allocation80_spill] sm:$0xff] %v7489_v62 }
  0xb5   : > { %582 = vperm.xlu0 %6955, %v7471_v39  }
  0xb6   : > { %v525_v25 = vpop.permute.xlu0 %524  ;;  %v7508_v9 = vpop.permute.xlu1 %661 }
  0xb7   : > { %v7496_v31 = vadd.s32 %v525_v25, %v7489_v62  ;;  %v7503_v63 = vpop.permute.xlu2 %676  ;;  %12433 = vst [vmem:[#allocation86_spill] sm:$0xff] %v7508_v9 }
  0xb8   : > { %12431 = vst [vmem:[#allocation84_spill] sm:$0xff] %v7503_v63 }
  0xb9   : > { %579 = vperm.xlu2 %6951, %v7482_v47   ;;  %585 = vperm.xlu1 %6952, %v7485_v58   ;;  %12429 = vst [vmem:[#allocation82_spill] sm:$0xff] %v7496_v31 }
  0xbd   : > { %755 = vperm.xlu0 %6955, %v7244_v26  }
  0xbe   : > { %v7499_v11 = vpop.permute.xlu0 %656 }
  0xbf   : > { %12430 = vst [vmem:[#allocation83_spill] sm:$0xff] %v7499_v11  ;;  %v7512_v25 = vpop.permute.xlu2 %691 }
  0xc0   : > { %12434 = vst [vmem:[#allocation87_spill] sm:$0xff] %v7512_v25  ;;  %v7634_v25 = vadd.s32 1, %v7496_v31 }
  0xc1   : > { %588 = vperm.xlu2 %6951, %v7496_v31   ;;  %759 = vperm.xlu1 %6952, %v7289_v3   ;;  %v7519_v3 = vpop.permute.xlu1 %671 }
  0xc2   : > { %12436 = vst [vmem:[#allocation89_spill] sm:$0xff] %v7519_v3 }
  0xc3   : > { %12469 = vst [vmem:[#allocation122_spill] sm:$0xff] %v7634_v25 }
  0xc5   : > { %775 = vperm.xlu0 %6955, %v7297_v18  }
  0xc6   : > { %v7506_v38 = vpop.permute.xlu0 %681 }
  0xc7   : > { %12432 = vst [vmem:[#allocation85_spill] sm:$0xff] %v7506_v38  ;;  %v7524_v62 = vpop.permute.xlu2 %706 }
  0xc8   : > { %12438 = vst [vmem:[#allocation91_spill] sm:$0xff] %v7524_v62  ;;  %v7595_v62 = vadd.s32 1, %v7429_v24 }
  0xc9   : > { %763 = vperm.xlu2 %6951, %v7271_v4   ;;  %767 = vperm.xlu1 %6952, %v7312_v32   ;;  %v7528_v32 = vpop.permute.xlu1 %686 }
  0xca   : > { %12439 = vst [vmem:[#allocation92_spill] sm:$0xff] %v7528_v32  ;;  %v12473_v32 = vmov 59  }
  0xcb   : > { %12459 = vst [vmem:[#allocation112_spill] sm:$0xff] %v7595_v62 }
  0xcd   : > { %787 = vperm.xlu0 %6955, %v7320_v35  }
  0xce   : > { %v7515_v26 = vpop.permute.xlu0 %696 }
  0xcf   : > { %12435 = vst [vmem:[#allocation88_spill] sm:$0xff] %v7515_v26  ;;  %v7533_v4 = vpop.permute.xlu2 %721  ;;  %v7625_v26 = vadd.s32 8, %v7412_v27 }
  0xd0   : > { %12441 = vst [vmem:[#allocation94_spill] sm:$0xff] %v7533_v4  ;;  %v7562_v4 = vadd.s32 1, %v7401_v6 }
  0xd1   : > { %771 = vperm.xlu2 %6951, %v7300_v17   ;;  %779 = vperm.xlu1 %6952, %v7334_v16   ;;  %v7580_v17 = vadd.s32 1, %v7440_v7  ;;  %12467 = vst [vmem:[#allocation120_spill] sm:$0xff] %v7625_v26 }
  0xd2   : > { %12450 = vst [vmem:[#allocation103_spill] sm:$0xff] %v7562_v4 }
  0xd3   : > { %12455 = vst [vmem:[#allocation108_spill] sm:$0xff] %v7580_v17 }
  0xd5   : > { %799 = vperm.xlu0 %6955, %v7342_v45   ;;  %v7538_v45 = vadd.s32 1, %v7412_v27  ;;  %v7643_v27 = vadd.s32 8, %v7429_v24 }
  0xd6   : > { %v7522_v18 = vpop.permute.xlu0 %711 }
  0xd7   : > { %12437 = vst [vmem:[#allocation90_spill] sm:$0xff] %v7522_v18  ;;  %v7577_v18 = vadd.s32 1, %v7426_v50 }
  0xd8   : > { %12442 = vst [vmem:[#allocation95_spill] sm:$0xff] %v7538_v45 }
  0xd9   : > { %783 = vperm.xlu2 %6951, %v7323_v37   ;;  %791 = vperm.xlu1 %6952, %v7356_v36   ;;  %v7543_v36 = vpop.permute.xlu1 %701  ;;  %v7546_v37 = vadd.s32 1, %v7387_v41  ;;  %12454 = vst [vmem:[#allocation107_spill] sm:$0xff] %v7577_v18 }
  0xda   : > { %12444 = vst [vmem:[#allocation97_spill] sm:$0xff] %v7543_v36  ;;  %v7598_v36 = vadd.s32 1, %v7461_v13 }
  0xdb   : > { %12445 = vst [vmem:[#allocation98_spill] sm:$0xff] %v7546_v37 }
  0xdc   : > { %12460 = vst [vmem:[#allocation113_spill] sm:$0xff] %v7598_v36 }
  0xdd   : > { %811 = vperm.xlu0 %6955, %v7364_v61   ;;  %v7550_v61 = vpop.permute.xlu2 %751  ;;  %12471 = vst [vmem:[#allocation124_spill] sm:$0xff] %v7643_v27 }
  0xde   : > { %v7531_v35 = vpop.permute.xlu0 %726  ;;  %12446 = vst [vmem:[#allocation99_spill] sm:$0xff] %v7550_v61 }
  0xdf   : > { %12440 = vst [vmem:[#allocation93_spill] sm:$0xff] %v7531_v35 }
  0xe1   : > { %795 = vperm.xlu2 %6951, %v7345_v49   ;;  %803 = vperm.xlu1 %6952, %v7373_v1   ;;  %v7553_v1 = vadd.s32 1, %v7419_v51  ;;  %v7564_v49 = vpop.permute.xlu1 %716 }
  0xe2   : > { %12451 = vst [vmem:[#allocation104_spill] sm:$0xff] %v7564_v49  ;;  %v7589_v49 = vadd.s32 1, %v7464_v43 }
  0xe3   : > { %12447 = vst [vmem:[#allocation100_spill] sm:$0xff] %v7553_v1 }
  0xe4   : > { %12457 = vst [vmem:[#allocation110_spill] sm:$0xff] %v7589_v49 }
  0xe5   : > { %853 = vperm.xlu0 %6955, %v7538_v45   ;;  %v7559_v45 = vadd.s32 1, %v7404_v10 }
  0xe6   : > { %v7541_v16 = vpop.permute.xlu0 %949 }
  0xe7   : > { %12443 = vst [vmem:[#allocation96_spill] sm:$0xff] %v7541_v16 }
  0xe8   : > { %12449 = vst [vmem:[#allocation102_spill] sm:$0xff] %v7559_v45 }
  0xe9   : > { %807 = vperm.xlu2 %6951, %v7367_v0   ;;  %847 = vperm.xlu1 %6952, %v7546_v37   ;;  %v7571_v0 = vadd.s32 1, %v7443_v8 }
  0xeb   : > { %12452 = vst [vmem:[#allocation105_spill] sm:$0xff] %v7571_v0 }
  0xed   : > { %862 = vperm.xlu0 %6955, %v7553_v1  }
  0xee   : > { %v7556_v35 = vpop.permute.xlu0 %974 }
  0xef   : > { %12448 = vst [vmem:[#allocation101_spill] sm:$0xff] %v7556_v35  ;;  %v7669_v35 = vadd.s32 8, %v7471_v39 }
  0xf1   : > { %850 = vperm.xlu2 %6951, %v7559_v45   ;;  %856 = vperm.xlu1 %6952, %v7562_v4   ;;  %v7584_v4 = vpop.permute.xlu1 %731  ;;  %12480 = vst [vmem:[#allocation132_spill] sm:$0xff] %v7669_v35 }
  0xf2   : > { %12456 = vst [vmem:[#allocation109_spill] sm:$0xff] %v7584_v4  ;;  %v7607_v4 = vadd.s32 1, %v7485_v58 }
  0xf3   : > { %v7568_v37 = vpop.permute.xlu2 %546 }
  0xf4   : > { %12462 = vst [vmem:[#allocation115_spill] sm:$0xff] %v7607_v4 }
  0xf5   : > { %871 = vperm.xlu0 %6955, %v7571_v0  }
  0xf6   : > { %v7574_v1 = vpop.permute.xlu0 %989 }
  0xf7   : > { %12453 = vst [vmem:[#allocation106_spill] sm:$0xff] %v7574_v1  ;;  %v7616_v1 = vadd.s32 1, %v7482_v47 }
  0xf9   : > { %859 = vperm.xlu2 %6951, %v7577_v18   ;;  %865 = vperm.xlu1 %6952, %v7580_v17   ;;  %12465 = vst [vmem:[#allocation118_spill] sm:$0xff] %v7616_v1 }
  0xfb   : > { %v7586_v45 = vpop.permute.xlu2 %555 }
  0xfd   : > { %880 = vperm.xlu0 %6955, %v7589_v49  }
  0xfe   : > { %v7592_v0 = vpop.permute.xlu0 %1004 }
  0xff   : > { %12458 = vst [vmem:[#allocation111_spill] sm:$0xff] %v7592_v0  ;;  %v7613_v0 = vadd.s32 1, %v7450_v59 }
 0x101   : > { %868 = vperm.xlu2 %6951, %v7595_v62   ;;  %874 = vperm.xlu1 %6952, %v7598_v36   ;;  %12464 = vst [vmem:[#allocation117_spill] sm:$0xff] %v7613_v0 }
 0x103   : > { %v7602_v17 = vpop.permute.xlu2 %561  ;;  %v7604_v18 = vpop.permute.xlu1 %543 }
 0x104   : > { %12461 = vst [vmem:[#allocation114_spill] sm:$0xff] %v7602_v17 }
 0x105   : > { %889 = vperm.xlu0 %6955, %v7607_v4  }
 0x106   : > { %v7610_v49 = vpop.permute.xlu0 %1019 }
 0x107   : > { %12463 = vst [vmem:[#allocation116_spill] sm:$0xff] %v7610_v49  ;;  %v7631_v49 = vadd.s32 1, %v7471_v39 }
 0x109   : > { %877 = vperm.xlu2 %6951, %v7613_v0   ;;  %883 = vperm.xlu1 %6952, %v7616_v1   ;;  %12468 = vst [vmem:[#allocation121_spill] sm:$0xff] %v7631_v49 }
 0x10b   : > { %v7620_v36 = vpop.permute.xlu2 %570  ;;  %v7622_v62 = vpop.permute.xlu1 %552 }
 0x10c   : > { %12466 = vst [vmem:[#allocation119_spill] sm:$0xff] %v7620_v36 }
 0x10d   : > { %1093 = vperm.xlu0 %6955, %v7625_v26  }
 0x10f   : > { %v7628_v4 = vpop.permute.xlu0 %549 }
 0x111   : > { %886 = vperm.xlu2 %6951, %v7631_v49   ;;  %892 = vperm.xlu1 %6952, %v7634_v25  }
 0x113   : > { %v7638_v1 = vpop.permute.xlu2 %579  ;;  %v7640_v0 = vpop.permute.xlu1 %558 }
 0x114   : > { %12470 = vst [vmem:[#allocation123_spill] sm:$0xff] %v7638_v1  ;;  %v7657_v1 = vadd.s32 8, %v7450_v59 }
 0x115   : > { %1108 = vperm.xlu0 %6955, %v7643_v27  }
 0x116   : > { %12476 = vst [vmem:[#allocation128_spill] sm:$0xff] %v7657_v1 }
 0x117   : > { %v7646_v36 = vpop.permute.xlu0 %564 }
 0x118   : > { %12472 = vst [vmem:[#allocation125_spill] sm:$0xff] %v7646_v36 }
 0x119   : > { %6953 = vset.pattern.permute.xlu2 %v12473_v32  ;;  %6954 = vset.pattern.permute.xlu1 %v12473_v32 }
 0x11a   : > { %944 = vperm.xlu2 %6953, %v7253_v21   ;;  %954 = vperm.xlu1 %6954, %v7268_v42  }
 0x11b   : > { %v7652_v25 = vpop.permute.xlu2 %588  ;;  %v7654_v49 = vpop.permute.xlu1 %567 }
 0x11c   : > { %12474 = vst [vmem:[#allocation126_spill] sm:$0xff] %v7652_v25 }
 0x11d   : > { %12475 = vst [vmem:[#allocation127_spill] sm:$0xff] %v7654_v49  ;;  %1117 = vperm.xlu0 %6955, %v7657_v1  }
 0x11f   : > { %v7660_v24 = vpop.permute.xlu0 %573 }
 0x120   : > { %12477 = vst [vmem:[#allocation129_spill] sm:$0xff] %v7660_v24 }
 0x122   : > { %959 = vperm.xlu2 %6953, %v7258_v29   ;;  %964 = vperm.xlu1 %6954, %v7294_v14  }
 0x123   : > { %v7664_v32 = vpop.permute.xlu2 %763  ;;  %v7666_v36 = vpop.permute.xlu1 %576 }
 0x124   : > { %12478 = vst [vmem:[#allocation130_spill] sm:$0xff] %v7664_v32 }
 0x125   : > { %12479 = vst [vmem:[#allocation131_spill] sm:$0xff] %v7666_v36  ;;  %1126 = vperm.xlu0 %6955, %v7669_v35  }
 0x127   : > { %v7672_v25 = vpop.permute.xlu0 %582 }
 0x128   : > { %12481 = vst [vmem:[#allocation133_spill] sm:$0xff] %v7672_v25 }
 0x12a   : > { %969 = vperm.xlu2 %6953, %v7284_v19   ;;  %979 = vperm.xlu1 %6954, %v7317_v33  }
 0x12b   : > { %v7676_v59 = vpop.permute.xlu2 %771  ;;  %v7678_v24 = vpop.permute.xlu1 %585 }
 0x12c   : > { %12482 = vst [vmem:[#allocation134_spill] sm:$0xff] %v7676_v59 }
 0x12d   : > { %12483 = vst [vmem:[#allocation135_spill] sm:$0xff] %v7678_v24  ;;  %1199 = vperm.xlu0 %6955, %v7253_v21  }
 0x12f   : > { %v7681_v49 = vpop.permute.xlu0 %755 }
 0x130   : > { %12484 = vst [vmem:[#allocation136_spill] sm:$0xff] %v7681_v49 }
 0x132   : > { %984 = vperm.xlu2 %6953, %v7307_v28   ;;  %994 = vperm.xlu1 %6954, %v7339_v34  }
 0x133   : > { %v7685_v39 = vpop.permute.xlu2 %783  ;;  %v7687_v36 = vpop.permute.xlu1 %759 }
 0x134   : > { %12485 = vst [vmem:[#allocation137_spill] sm:$0xff] %v7685_v39  ;;  %v7702_v39 = vadd.s32 8, %v7387_v41  ;;  %v7718_v41 = vadd.s32 8, %v7401_v6  ;;  %v7734_v6 = vadd.s32 8, %v7419_v51 }
 0x135   : > { %12486 = vst [vmem:[#allocation138_spill] sm:$0xff] %v7687_v36  ;;  %1211 = vperm.xlu0 %6955, %v7258_v29  }
 0x136   : > { %12491 = vst [vmem:[#allocation143_spill] sm:$0xff] %v7702_v39 }
 0x137   : > { %v7690_v25 = vpop.permute.xlu0 %775  ;;  %12496 = vst [vmem:[#allocation148_spill] sm:$0xff] %v7718_v41 }
 0x138   : > { %12487 = vst [vmem:[#allocation139_spill] sm:$0xff] %v7690_v25 }
 0x139   : > { %12500 = vst [vmem:[#allocation152_spill] sm:$0xff] %v7734_v6 }
 0x13a   : > { %999 = vperm.xlu2 %6953, %v7329_v48   ;;  %1009 = vperm.xlu1 %6954, %v7361_v56  }
 0x13b   : > { %v7694_v24 = vpop.permute.xlu2 %795  ;;  %v7696_v21 = vpop.permute.xlu1 %767 }
 0x13c   : > { %12488 = vst [vmem:[#allocation140_spill] sm:$0xff] %v7694_v24 }
 0x13d   : > { %12489 = vst [vmem:[#allocation141_spill] sm:$0xff] %v7696_v21  ;;  %1223 = vperm.xlu0 %6955, %v7281_v5   ;;  %v7715_v5 = vadd.s32 8, %v7404_v10  ;;  %v7731_v10 = vadd.s32 8, %v7426_v50  ;;  %v7749_v50 = vadd.s32 8, %v7443_v8  ;;  %v7767_v8 = vadd.s32 8, %v7464_v43 }
 0x13e   : > { %v7785_v43 = vadd.s32 8, %v7485_v58 }
 0x13f   : > { %v7699_v17 = vpop.permute.xlu0 %787  ;;  %12495 = vst [vmem:[#allocation147_spill] sm:$0xff] %v7715_v5 }
 0x140   : > { %12490 = vst [vmem:[#allocation142_spill] sm:$0xff] %v7699_v17 }
 0x141   : > { %12499 = vst [vmem:[#allocation151_spill] sm:$0xff] %v7731_v10 }
 0x142   : > { %1014 = vperm.xlu2 %6953, %v7351_v60   ;;  %6956 = vset.pattern.permute.xlu1 %v12406_v15  ;;  %12503 = vst [vmem:[#allocation155_spill] sm:$0xff] %v7749_v50 }
 0x143   : > { %v7706_v29 = vpop.permute.xlu2 %807  ;;  %v7708_v25 = vpop.permute.xlu1 %779  ;;  %1087 = vperm.xlu1 %6956, %v7702_v39   ;;  %12507 = vst [vmem:[#allocation159_spill] sm:$0xff] %v7767_v8 }
 0x144   : > { %12492 = vst [vmem:[#allocation144_spill] sm:$0xff] %v7706_v29 }
 0x145   : > { %12493 = vst [vmem:[#allocation145_spill] sm:$0xff] %v7708_v25  ;;  %1235 = vperm.xlu0 %6955, %v7304_v20  }
 0x146   : > { %12512 = vst [vmem:[#allocation164_spill] sm:$0xff] %v7785_v43 }
 0x147   : > { %v7712_v24 = vpop.permute.xlu0 %799 }
 0x148   : > { %12494 = vst [vmem:[#allocation146_spill] sm:$0xff] %v7712_v24 }
 0x14a   : > { %6957 = vset.pattern.permute.xlu2 %v12406_v15 }
 0x14b   : > { %1090 = vperm.xlu2 %6957, %v7715_v5   ;;  %v7722_v17 = vpop.permute.xlu2 %850  ;;  %v7724_v29 = vpop.permute.xlu1 %791  ;;  %1096 = vperm.xlu1 %6956, %v7718_v41  }
 0x14c   : > { %12497 = vst [vmem:[#allocation149_spill] sm:$0xff] %v7724_v29 }
 0x14d   : > { %1247 = vperm.xlu0 %6955, %v7327_v44   ;;  %v7746_v44 = vadd.s32 8, %v7440_v7  ;;  %v7764_v7 = vadd.s32 8, %v7461_v13  ;;  %v7782_v13 = vadd.s32 8, %v7482_v47  ;;  %v7800_v47 = vadd.s32 8, %v7496_v31 }
 0x14e   : > { %v7819_v31 = vadd.s32 1, %v7785_v43 }
 0x14f   : > { %v7728_v20 = vpop.permute.xlu0 %811  ;;  %12502 = vst [vmem:[#allocation154_spill] sm:$0xff] %v7746_v44 }
 0x150   : > { %12498 = vst [vmem:[#allocation150_spill] sm:$0xff] %v7728_v20 }
 0x151   : > { %12506 = vst [vmem:[#allocation158_spill] sm:$0xff] %v7764_v7 }
 0x152   : > { %12511 = vst [vmem:[#allocation163_spill] sm:$0xff] %v7782_v13 }
 0x153   : > { %1099 = vperm.xlu2 %6957, %v7731_v10   ;;  %v7737_v15 = vpop.permute.xlu2 %859  ;;  %v7739_v24 = vpop.permute.xlu1 %803  ;;  %1102 = vperm.xlu1 %6956, %v7734_v6   ;;  %12516 = vst [vmem:[#allocation168_spill] sm:$0xff] %v7800_v47 }
 0x154   : > { %12501 = vst [vmem:[#allocation153_spill] sm:$0xff] %v7739_v24  ;;  %v7758_v24 = vadd.s32 1, %v7625_v26  ;;  %v7776_v26 = vadd.s32 1, %v7734_v6  ;;  %v7794_v6 = vadd.s32 1, %v7749_v50 }
 0x155   : > { %1259 = vperm.xlu0 %6955, %v7349_v52   ;;  %12521 = vst [vmem:[#allocation173_spill] sm:$0xff] %v7819_v31 }
 0x156   : > { %12505 = vst [vmem:[#allocation157_spill] sm:$0xff] %v7758_v24 }
 0x157   : > { %v7743_v29 = vpop.permute.xlu0 %853  ;;  %12509 = vst [vmem:[#allocation161_spill] sm:$0xff] %v7776_v26 }
 0x158   : > { %12514 = vst [vmem:[#allocation166_spill] sm:$0xff] %v7794_v6 }
 0x15b   : > { %1105 = vperm.xlu2 %6957, %v7746_v44   ;;  %v7752_v51 = vpop.permute.xlu2 %868  ;;  %1111 = vperm.xlu1 %6956, %v7749_v50   ;;  %v7755_v20 = vpop.permute.xlu1 %847 }
 0x15c   : > { %12504 = vst [vmem:[#allocation156_spill] sm:$0xff] %v7752_v51 }
 0x15d   : > { %1317 = vperm.xlu0 %6955, %v7758_v24  }
 0x15f   : > { %v7761_v52 = vpop.permute.xlu0 %862 }
 0x163   : > { %1114 = vperm.xlu2 %6957, %v7764_v7   ;;  %v7770_v25 = vpop.permute.xlu2 %877  ;;  %1120 = vperm.xlu1 %6956, %v7767_v8   ;;  %v7773_v51 = vpop.permute.xlu1 %856 }
 0x164   : > { %12508 = vst [vmem:[#allocation160_spill] sm:$0xff] %v7770_v25 }
 0x165   : > { %1326 = vperm.xlu0 %6955, %v7776_v26  }
 0x167   : > { %v7779_v24 = vpop.permute.xlu0 %871 }
 0x168   : > { %12510 = vst [vmem:[#allocation162_spill] sm:$0xff] %v7779_v24 }
 0x16b   : > { %1123 = vperm.xlu2 %6957, %v7782_v13   ;;  %v7788_v25 = vpop.permute.xlu2 %886  ;;  %1129 = vperm.xlu1 %6956, %v7785_v43   ;;  %v7791_v59 = vpop.permute.xlu1 %865 }
 0x16c   : > { %12513 = vst [vmem:[#allocation165_spill] sm:$0xff] %v7788_v25  ;;  %v7807_v25 = vadd.s32 1, %v7767_v8 }
 0x16d   : > { %1335 = vperm.xlu0 %6955, %v7794_v6  }
 0x16e   : > { %12517 = vst [vmem:[#allocation169_spill] sm:$0xff] %v7807_v25 }
 0x16f   : > { %v7797_v26 = vpop.permute.xlu0 %880 }
 0x170   : > { %12515 = vst [vmem:[#allocation167_spill] sm:$0xff] %v7797_v26 }
 0x173   : > { %1132 = vperm.xlu2 %6957, %v7800_v47   ;;  %1203 = vperm.xlu1 %6956, %v7235_v2   ;;  %v7804_v58 = vpop.permute.xlu1 %874 }
 0x174   : > { %v7809_v24 = vpop.permute.xlu2 %944 }
 0x175   : > { %12518 = vst [vmem:[#allocation170_spill] sm:$0xff] %v7809_v24  ;;  %1344 = vperm.xlu0 %6955, %v7807_v25  }
 0x177   : > { %v7812_v50 = vpop.permute.xlu0 %889 }
 0x178   : > { %12519 = vst [vmem:[#allocation171_spill] sm:$0xff] %v7812_v50  ;;  %v7917_v50 = vadd.s32 1, %v7782_v13 }
 0x17a   : > { %12547 = vst [vmem:[#allocation199_spill] sm:$0xff] %v7917_v50 }
 0x17b   : > { %1207 = vperm.xlu2 %6957, %v7268_v42   ;;  %1215 = vperm.xlu1 %6956, %v7294_v14   ;;  %v7816_v6 = vpop.permute.xlu1 %883 }
 0x17c   : > { %12520 = vst [vmem:[#allocation172_spill] sm:$0xff] %v7816_v6  ;;  %v7821_v2 = vpop.permute.xlu2 %959  ;;  %v12564_v6 = vld [vmem:[#allocation11_spill] sm:$0xff] }
 0x17d   : > { %12522 = vst [vmem:[#allocation174_spill] sm:$0xff] %v7821_v2  ;;  %1353 = vperm.xlu0 %6955, %v7819_v31  }
 0x17f   : > { %v7824_v8 = vpop.permute.xlu0 %1093 }
 0x183   : > { %1219 = vperm.xlu2 %6957, %v7284_v19   ;;  %1227 = vperm.xlu1 %6956, %v7317_v33   ;;  %v7828_v25 = vpop.permute.xlu1 %892 }
 0x184   : > { %12523 = vst [vmem:[#allocation175_spill] sm:$0xff] %v7828_v25  ;;  %v7830_v42 = vpop.permute.xlu2 %969  ;;  %v7873_v25 = vadd.s32 1, %v7718_v41 }
 0x185   : > { %12524 = vst [vmem:[#allocation176_spill] sm:$0xff] %v7830_v42  ;;  %1578 = vrot.lane.b32.xlu0 %v7144_v40, %s6994_s21 }
 0x186   : > { %12536 = vst [vmem:[#allocation188_spill] sm:$0xff] %v7873_v25 }
 0x187   : > { %v7834_v43 = vpop.permute.xlu0 %1108 }
 0x18b   : > { %1231 = vperm.xlu2 %6957, %v7307_v28   ;;  %1239 = vperm.xlu1 %6956, %v7339_v34   ;;  %v7857_v28 = vadd.s32 1, %v7702_v39 }
 0x18c   : > { %v7838_v31 = vpop.permute.xlu2 %984  ;;  %v7840_v14 = vpop.permute.xlu1 %954 }
 0x18d   : > { %12525 = vst [vmem:[#allocation177_spill] sm:$0xff] %v7838_v31  ;;  %1584 = vrot.lane.b32.xlu0 %v7169_v54, %s6994_s21 }
 0x18e   : > { %12526 = vst [vmem:[#allocation178_spill] sm:$0xff] %v7840_v14 }
 0x18f   : > { %v7844_v33 = vpop.permute.xlu0 %1117  ;;  %12531 = vst [vmem:[#allocation183_spill] sm:$0xff] %v7857_v28 }
 0x190   : > { %12527 = vst [vmem:[#allocation179_spill] sm:$0xff] %v7844_v33 }
 0x193   : > { %1243 = vperm.xlu2 %6957, %v7329_v48   ;;  %1251 = vperm.xlu1 %6956, %v7361_v56  }
 0x194   : > { %v7848_v40 = vpop.permute.xlu2 %999  ;;  %v7850_v19 = vpop.permute.xlu1 %964 }
 0x195   : > { %12528 = vst [vmem:[#allocation180_spill] sm:$0xff] %v7848_v40  ;;  %1590 = vrot.lane.b32.xlu0 %v7173_v55, %s6994_s21  ;;  %v7870_v55 = vadd.s32 1, %v7715_v5  ;;  %v7889_v5 = vadd.s32 1, %v7746_v44  ;;  %v12565_v40 = vld [vmem:[#allocation16_spill] sm:$0xff] }
 0x196   : > { %12529 = vst [vmem:[#allocation181_spill] sm:$0xff] %v7850_v19 }
 0x197   : > { %v7854_v34 = vpop.permute.xlu0 %1126  ;;  %12535 = vst [vmem:[#allocation187_spill] sm:$0xff] %v7870_v55 }
 0x198   : > { %12530 = vst [vmem:[#allocation182_spill] sm:$0xff] %v7854_v34  ;;  %v6995_v34 = vmov 61  }
 0x199   : > { %12540 = vst [vmem:[#allocation192_spill] sm:$0xff] %v7889_v5  ;;  %6958 = vset.pattern.permute.xlu0 %v6995_v34 }
 0x19b   : > { %1255 = vperm.xlu2 %6957, %v7351_v60   ;;  %1311 = vperm.xlu1 %6956, %v7857_v28   ;;  %v7886_v60 = vadd.s32 1, %v7731_v10  ;;  %v7914_v10 = vadd.s32 1, %v7657_v1 }
 0x19c   : > { %v7861_v54 = vpop.permute.xlu2 %1014  ;;  %v7863_v48 = vpop.permute.xlu1 %979 }
 0x19d   : > { %12532 = vst [vmem:[#allocation184_spill] sm:$0xff] %v7861_v54  ;;  %1596 = vrot.lane.b32.xlu0 %v7205_v12, %s6994_s21  ;;  %v7903_v54 = vadd.s32 1, %v7764_v7 }
 0x19e   : > { %12533 = vst [vmem:[#allocation185_spill] sm:$0xff] %v7863_v48 }
 0x19f   : > { %v7867_v56 = vpop.permute.xlu0 %1199  ;;  %12539 = vst [vmem:[#allocation191_spill] sm:$0xff] %v7886_v60 }
 0x1a0   : > { %12534 = vst [vmem:[#allocation186_spill] sm:$0xff] %v7867_v56 }
 0x1a1   : > { %12544 = vst [vmem:[#allocation196_spill] sm:$0xff] %v7903_v54 }
 0x1a2   : > { %12546 = vst [vmem:[#allocation198_spill] sm:$0xff] %v7914_v10 }
 0x1a3   : > { %1314 = vperm.xlu2 %6957, %v7870_v55   ;;  %1320 = vperm.xlu1 %6956, %v7873_v25  }
 0x1a4   : > { %v7877_v28 = vpop.permute.xlu1 %994 }
 0x1a5   : > { %12537 = vst [vmem:[#allocation189_spill] sm:$0xff] %v7877_v28  ;;  %v7879_v39 = vpop.permute.xlu2 %1090  ;;  %1602 = vrot.lane.b32.xlu0 %v7226_v53, %s6994_s21  ;;  %v7900_v53 = vadd.s32 1, %v7643_v27  ;;  %v7928_v27 = vadd.s32 1, %v7669_v35  ;;  %v1457_v28 = vld [vmem:[%s11750_s1 + $0x18] sm:$0xff] }
 0x1a7   : > { %v7883_v12 = vpop.permute.xlu0 %1211  ;;  %12543 = vst [vmem:[#allocation195_spill] sm:$0xff] %v7900_v53 }
 0x1a8   : > { %12538 = vst [vmem:[#allocation190_spill] sm:$0xff] %v7883_v12 }
 0x1a9   : > { %12550 = vst [vmem:[#allocation202_spill] sm:$0xff] %v7928_v27 }
 0x1ab   : > { %1323 = vperm.xlu2 %6957, %v7886_v60   ;;  %1329 = vperm.xlu1 %6956, %v7889_v5  }
 0x1ac   : > { %v7893_v55 = vpop.permute.xlu1 %1009 }
 0x1ad   : > { %12541 = vst [vmem:[#allocation193_spill] sm:$0xff] %v7893_v55  ;;  %v7895_v25 = vpop.permute.xlu2 %1099  ;;  %v7931_v55 = vadd.s32 1, %v7800_v47 }
 0x1af   : > { %v7897_v41 = vpop.permute.xlu0 %1223  ;;  %12551 = vst [vmem:[#allocation203_spill] sm:$0xff] %v7931_v55 }
 0x1b0   : > { %12542 = vst [vmem:[#allocation194_spill] sm:$0xff] %v7897_v41 }
 0x1b3   : > { %1332 = vperm.xlu2 %6957, %v7900_v53   ;;  %1338 = vperm.xlu1 %6956, %v7903_v54  }
 0x1b5   : > { %v7907_v44 = vpop.permute.xlu2 %1105  ;;  %v7909_v60 = vpop.permute.xlu1 %1087 }
 0x1b7   : > { %v7911_v5 = vpop.permute.xlu0 %1235 }
 0x1b8   : > { %12545 = vst [vmem:[#allocation197_spill] sm:$0xff] %v7911_v5  ;;  %v380_v5 = vlaneseq }
 0x1bb   : > { %1341 = vperm.xlu2 %6957, %v7914_v10   ;;  %1347 = vperm.xlu1 %6956, %v7917_v50  }
 0x1bd   : > { %v7921_v7 = vpop.permute.xlu2 %1114  ;;  %v7923_v53 = vpop.permute.xlu1 %1096 }
 0x1be   : > { %12548 = vst [vmem:[#allocation200_spill] sm:$0xff] %v7921_v7 }
 0x1bf   : > { %v7925_v54 = vpop.permute.xlu0 %1247 }
 0x1c0   : > { %12549 = vst [vmem:[#allocation201_spill] sm:$0xff] %v7925_v54 }
 0x1c3   : > { %1350 = vperm.xlu2 %6957, %v7928_v27   ;;  %1356 = vperm.xlu1 %6956, %v7931_v55   ;;  %v12555_v27 = vld [vmem:[#allocation4_spill] sm:$0xff]  ;;  %v12556_v55 = vld [vmem:[#allocation9_spill] sm:$0xff] }
 0x1c5   : > { %v7935_v13 = vpop.permute.xlu2 %1123  ;;  %v7937_v10 = vpop.permute.xlu1 %1102 }
 0x1c6   : > { %12552 = vst [vmem:[#allocation204_spill] sm:$0xff] %v7935_v13 }
 0x1c7   : > { %v7939_v50 = vpop.permute.xlu0 %1259 }
 0x1c8   : > { %12553 = vst [vmem:[#allocation205_spill] sm:$0xff] %v7939_v50 }
 0x1cb   : > { %1576 = vrot.lane.b32.xlu2 %v7110_v23, %s6994_s21  ;;  %1580 = vrot.lane.b32.xlu1 %v7106_v22, %s6994_s21  ;;  %v12559_v22 = vld [vmem:[#allocation8_spill] sm:$0xff] }
 0x1cc   : > { %6959 = vset.pattern.permute.xlu1 %v6995_v34  ;;  %6960 = vset.pattern.permute.xlu2 %v6995_v34 }
 0x1cd   : > { %v7945_v35 = vpop.permute.xlu2 %1132  ;;  %v7947_v47 = vpop.permute.xlu1 %1111 }
 0x1ce   : > { %12554 = vst [vmem:[#allocation206_spill] sm:$0xff] %v7945_v35  ;;  %v12560_v35 = vld [vmem:[#allocation12_spill] sm:$0xff] }
 0x1cf   : > { %v7949_v1 = vpop.permute.xlu0 %1317 }
 0x1d3   : > { %1582 = vrot.lane.b32.xlu2 %v12555_v27, %s6994_s21  ;;  %1586 = vrot.lane.b32.xlu1 %v12556_v55, %s6994_s21 }
 0x1d5   : > { %v7955_v54 = vpop.permute.xlu2 %1207  ;;  %v7957_v50 = vpop.permute.xlu1 %1120 }
 0x1d6   : > { %12557 = vst [vmem:[#allocation207_spill] sm:$0xff] %v7955_v54 }
 0x1d7   : > { %12558 = vst [vmem:[#allocation208_spill] sm:$0xff] %v7957_v50  ;;  %v7959_v23 = vpop.permute.xlu0 %1326 }
 0x1db   : > { %1588 = vrot.lane.b32.xlu2 %v12559_v22, %s6994_s21  ;;  %1592 = vrot.lane.b32.xlu1 %v12560_v35, %s6994_s21  ;;  %v1461_v35 = vld [vmem:[%s11750_s1 + $0x38] sm:$0xff] }
 0x1dc   : > { %1519 = vmatpush.msra.mxu0 %v1461_v35 }
 0x1dd   : > { %v7965_v27 = vpop.permute.xlu2 %1219  ;;  %v7967_v13 = vpop.permute.xlu1 %1129 }
 0x1de   : > { %12561 = vst [vmem:[#allocation209_spill] sm:$0xff] %v7965_v27 }
 0x1df   : > { %12562 = vst [vmem:[#allocation210_spill] sm:$0xff] %v7967_v13  ;;  %v7969_v55 = vpop.permute.xlu0 %1335  ;;  %v1460_v13 = vld [vmem:[%s11750_s1 + $0x30] sm:$0xff] }
 0x1e0   : > { %12563 = vst [vmem:[#allocation211_spill] sm:$0xff] %v7969_v55  ;;  %1520 = vmatpush.msra.mxu0 %v1460_v13 }
 0x1e3   : > { %1594 = vrot.lane.b32.xlu2 %v12564_v6, %s6994_s21  ;;  %1598 = vrot.lane.b32.xlu1 %v12565_v40, %s6994_s21  ;;  %v1459_v6 = vld [vmem:[%s11750_s1 + $0x28] sm:$0xff]  ;;  %v12569_v40 = vld [vmem:[#allocation21_spill] sm:$0xff] }
 0x1e4   : > { %1521 = vmatpush.msra.mxu0 %v1459_v6  ;;  %v1455_v6 = vld [vmem:[%s11750_s1 + $0x8] sm:$0xff] }
 0x1e5   : > { %v7975_v50 = vpop.permute.xlu2 %1231  ;;  %v7977_v34 = vpop.permute.xlu1 %1203 }
 0x1e6   : > { %12566 = vst [vmem:[#allocation212_spill] sm:$0xff] %v7975_v50 }
 0x1e7   : > { %12567 = vst [vmem:[#allocation213_spill] sm:$0xff] %v7977_v34  ;;  %v7979_v22 = vpop.permute.xlu0 %1344 }
 0x1e8   : > { %12568 = vst [vmem:[#allocation214_spill] sm:$0xff] %v7979_v22  ;;  %v1458_v22 = vld [vmem:[%s11750_s1 + $0x20] sm:$0xff] }
 0x1e9   : > { %1522 = vmatpush.msra.mxu0 %v1458_v22  ;;  %v1454_v22 = vld [vmem:[%s11750_s1] sm:$0xff] }
 0x1eb   : > { %1600 = vrot.lane.b32.xlu2 %v7228_v57, %s6994_s21  ;;  %1604 = vrot.lane.b32.xlu1 %v12569_v40, %s6994_s21  ;;  %v1456_v57 = vld [vmem:[%s11750_s1 + $0x10] sm:$0xff] }
 0x1ec   : > { %1523 = vmatpush.msra.mxu0 %v1457_v28 }
 0x1ed   : > { %v7997_v35 = vpop.permute.xlu2 %1243  ;;  %v7999_v26 = vpop.permute.xlu1 %1215 }
 0x1ee   : > { %12570 = vst [vmem:[#allocation215_spill] sm:$0xff] %v7997_v35  ;;  %1524 = vmatpush.msra.mxu0 %v1456_v57  ;;  %v12575_v35 = vld [vmem:[#allocation53_spill] sm:$0xff] }
 0x1ef   : > { %12571 = vst [vmem:[#allocation216_spill] sm:$0xff] %v7999_v26  ;;  %v8001_v13 = vpop.permute.xlu0 %1353 }
 0x1f0   : > { %12572 = vst [vmem:[#allocation217_spill] sm:$0xff] %v8001_v13  ;;  %1525 = vmatpush.msra.mxu0 %v1455_v6 }
 0x1f2   : > { %1526 = vmatpush.msra.mxu0 %v1454_v22  ;;  %v12052_v22 = vmov 0.0  }
 0x1f3   : > { %1606 = vrot.lane.b32.xlu2 %v7246_v30, %s6994_s21  ;;  %v8027_v30 = vand.u32 127, %v380_v5  ;;  %s6997_s21 = smov 3  }
 0x1f5   : > { %v8017_v40 = vpop.permute.xlu2 %1255  ;;  %v8019_v28 = vpop.permute.xlu1 %1227  ;;  %vm590_vm0 = vcmp.eq.s32.totalorder %v8027_v30, %v7604_v18  ;;  %vm894_vm1 = vcmp.eq.s32.totalorder %v8027_v30, %v7755_v20  ;;  %vm1134_vm2 = vcmp.eq.s32.totalorder %v8027_v30, %v7909_v60  ;;  %vm895_vm3 = vcmp.eq.s32.totalorder %v8027_v30, %v7722_v17 }
 0x1f6   : > { %12573 = vst [vmem:[#allocation218_spill] sm:$0xff] %v8017_v40  ;;  %v6285_v5 = vsel %vm1134_vm2, 1.0, %v12052_v22  ;;  %v6270_v60 = vsel %vm895_vm3, 1.0, %v12052_v22  ;;  %vm591_vm4 = vcmp.eq.s32.totalorder %v8027_v30, %v7568_v37  ;;  %vm1135_vm5 = vcmp.eq.s32.totalorder %v8027_v30, %v7879_v39 }
 0x1f7   : > { %12574 = vst [vmem:[#allocation219_spill] sm:$0xff] %v8019_v28  ;;  %v1579_v13 = vpop.permute.xlu0 %1578  ;;  %v1182_v20 = vmul.f32 %v6285_v5, %v7499_v11  ;;  %v1023_v17 = vmul.f32 %v6270_v60, %v7541_v16  ;;  %v6254_v37 = vsel %vm591_vm4, 1.0, %v12052_v22  ;;  %vm896_vm8 = vcmp.eq.s32.totalorder %v8027_v30, %v7743_v29 }
 0x1f8   : > { %v8022_v57 = vadd.s32 %v1579_v13, %v12575_v35  ;;  %v6253_v35 = vsel %vm590_vm0, 1.0, %v12052_v22  ;;  %vm592_vm9 = vcmp.eq.s32.totalorder %v8027_v30, %v7628_v4  ;;  %vm1136_vm11 = vcmp.eq.s32.totalorder %v8027_v30, %v7824_v8 }
 0x1f9   : > { %v734_v18 = vmul.f32 %v6253_v35, %v7499_v11  ;;  %v1262_v35 = vmul.f32 %v7867_v56, %v1182_v20  ;;  %v1039_v20 = vmul.f32 %v1023_v17, %v7681_v49  ;;  %v6271_v29 = vsel %vm896_vm8, 1.0, %v12052_v22 }
 0x1fa   : > { %12576 = vst [vmem:[#allocation220_spill] sm:$0xff] %v8022_v57  ;;  %1628 = vperm.xlu1 %6959, %v8022_v57   ;;  %v6269_v57 = vsel %vm894_vm1, 1.0, %v12052_v22  ;;  %v1024_v8 = vmul.f32 %v6271_v29, %v7840_v14  ;;  %vm1360_vm12 = vcmp.eq.s32.totalorder %v8027_v30, %v7949_v1  ;;  %vm897_vm13 = vcmp.eq.s32.totalorder %v8027_v30, %v7773_v51 }
 0x1fb   : > { %v1022_v40 = vmul.f32 %v6269_v57, %v7809_v24  ;;  %vm1137_vm14 = vcmp.eq.s32.totalorder %v8027_v30, %v7923_v53  ;;  %vm593_vm15 = vcmp.eq.s32.totalorder %v8027_v30, %v7622_v62  ;;  %vm898_vm1 = vcmp.eq.s32.totalorder %v8027_v30, %v7737_v15 }
 0x1fc   : > { %v6288_v53 = vsel %vm1137_vm14, 1.0, %v12052_v22  ;;  %vm594_vm2 = vcmp.eq.s32.totalorder %v8027_v30, %v7586_v45  ;;  %vm1138_vm3 = vcmp.eq.s32.totalorder %v8027_v30, %v7895_v25  ;;  %vm900_vm8 = vcmp.eq.s32.totalorder %v8027_v30, %v7791_v59 }
 0x1fd   : > { %v1315_v33 = vpop.permute.xlu2 %1314  ;;  %v8025_v50 = vpop.permute.xlu1 %1239  ;;  %v6289_v25 = vsel %vm1138_vm3, 1.0, %v12052_v22  ;;  %v6275_v59 = vsel %vm900_vm8, 1.0, %v12052_v22 }
 0x1fe   : > { %12577 = vst [vmem:[#allocation221_spill] sm:$0xff] %v8025_v50  ;;  %v814_v50 = vmul.f32 %v7550_v61, %v734_v18  ;;  %vm1359_vm6 = vcmp.eq.s32.totalorder %v8027_v30, %v1315_v33  ;;  %v6286_v18 = vsel %vm1135_vm5, 1.0, %v12052_v22  ;;  %vm595_vm5 = vcmp.eq.s32.totalorder %v8027_v30, %v7640_v0 }
 0x205   : > { %v8035_v6 = vpop.permute.xlu2 %1323  ;;  %v8037_v13 = vpop.permute.xlu1 %1251 }
 0x206   : > { %12578 = vst [vmem:[#allocation222_spill] sm:$0xff] %v8037_v13  ;;  %v1038_v13 = vmul.f32 %v1022_v40, %v7550_v61  ;;  %v6302_v61 = vsel %vm1359_vm6, 1.0, %v12052_v22  ;;  %vm1362_vm4 = vcmp.eq.s32.totalorder %v8027_v30, %v8035_v6  ;;  %vm899_vm6 = vcmp.eq.s32.totalorder %v8027_v30, %v7761_v52  ;;  %v12581_v52 = vld [vmem:[#allocation52_spill] sm:$0xff] }
 0x207   : > { %v6274_v0 = vsel %vm899_vm6, 1.0, %v12052_v22 }
 0x208   : > { %v1054_v5 = vadd.f32 %v1038_v13, %v814_v50  ;;  %v1183_v50 = vmul.f32 %v6286_v18, %v7508_v9  ;;  %v1407_v13 = vmul.f32 %v6302_v61, %v7541_v16 }
 0x20a   : > { %v1278_v33 = vadd.f32 %v1262_v35, %v1054_v5  ;;  %v1263_v17 = vmul.f32 %v7977_v34, %v1183_v50  ;;  %v1423_v61 = vmul.f32 %v1407_v13, %v7977_v34  ;;  %v6303_v13 = vsel %vm1360_vm12, 1.0, %v12052_v22  ;;  %v12656_v34 = vld [vmem:[#allocation133_spill] sm:$0xff] }
 0x20d   : > { %v8052_v7 = vpop.permute.xlu2 %1332  ;;  %v1312_v55 = vpop.permute.xlu1 %1311 }
 0x20e   : > { %vm1358_vm7 = vcmp.eq.s32.totalorder %v8027_v30, %v1312_v55  ;;  %v735_v55 = vmul.f32 %v6254_v37, %v7508_v9  ;;  %v6255_v37 = vsel %vm592_vm9, 1.0, %v12052_v22  ;;  %vm1363_vm9 = vcmp.eq.s32.totalorder %v8027_v30, %v7959_v23 }
 0x20f   : > { %v6301_v40 = vsel %vm1358_vm7, 1.0, %v12052_v22  ;;  %v736_v18 = vmul.f32 %v6255_v37, %v7493_v46  ;;  %v6272_v37 = vsel %vm897_vm13, 1.0, %v12052_v22  ;;  %vm1139_vm7 = vcmp.eq.s32.totalorder %v8027_v30, %v7937_v10 }
 0x210   : > { %v1406_v57 = vmul.f32 %v6301_v40, %v7809_v24  ;;  %v815_v4 = vmul.f32 %v7681_v49, %v735_v55  ;;  %v1040_v55 = vmul.f32 %v1024_v8, %v7687_v36  ;;  %v1025_v8 = vmul.f32 %v6272_v37, %v7821_v2  ;;  %v12644_v49 = vld [vmem:[#allocation90_spill] sm:$0xff] }
 0x211   : > { %v6257_v37 = vsel %vm594_vm2, 1.0, %v12052_v22  ;;  %v1027_v10 = vmul.f32 %v6274_v0, %v7830_v42 }
 0x212   : > { %v1422_v39 = vmul.f32 %v1406_v57, %v7867_v56  ;;  %v6287_v57 = vsel %vm1136_vm11, 1.0, %v12052_v22  ;;  %v1055_v5 = vadd.f32 %v1039_v20, %v815_v4  ;;  %v6256_v4 = vsel %vm593_vm15, 1.0, %v12052_v22 }
 0x213   : > { %vm1140_vm11 = vcmp.eq.s32.totalorder %v8027_v30, %v7907_v44 }
 0x214   : > { %v1438_v60 = vadd.f32 %v1422_v39, %v1278_v33  ;;  %v1184_v39 = vmul.f32 %v6287_v57, %v7493_v46  ;;  %v1279_v33 = vadd.f32 %v1263_v17, %v1055_v5  ;;  %v1408_v17 = vmul.f32 %v6303_v13, %v7840_v14  ;;  %v12579_v13 = vld [vmem:[#allocation50_spill] sm:$0xff] }
 0x215   : > { %v8077_v40 = vpop.permute.xlu2 %1341  ;;  %v1321_v35 = vpop.permute.xlu1 %1320 }
 0x216   : > { %6317 = vmatmul.msk.f32.vlgmr.msra.gmra.mxu0 %vm1462_vm10, %v1438_v60  ;;  %v816_v60 = vmul.f32 %v7687_v36, %v736_v18  ;;  %v1439_v20 = vadd.f32 %v1423_v61, %v1279_v33  ;;  %v1264_v50 = vmul.f32 %v7955_v54, %v1184_v39  ;;  %vm1361_vm0 = vcmp.eq.s32.totalorder %v8027_v30, %v1321_v35 }
 0x217   : > { %v6304_v57 = vsel %vm1361_vm0, 1.0, %v12052_v22  ;;  %v1185_v35 = vmul.f32 %v6288_v53, %v7519_v3  ;;  %v1424_v5 = vmul.f32 %v1408_v17, %v7955_v54  ;;  %v737_v61 = vmul.f32 %v6256_v4, %v7519_v3  ;;  %v12642_v54 = vld [vmem:[#allocation180_spill] sm:$0xff] }
 0x218   : > { %v1056_v51 = vadd.f32 %v1040_v55, %v816_v60  ;;  %v1409_v18 = vmul.f32 %v6304_v57, %v7821_v2  ;;  %v1041_v33 = vmul.f32 %v1025_v8, %v7664_v32  ;;  %v6273_v55 = vsel %vm898_vm1, 1.0, %v12052_v22 }
 0x219   : > { %v817_v15 = vmul.f32 %v7664_v32, %v737_v61  ;;  %v1026_v45 = vmul.f32 %v6273_v55, %v7850_v19  ;;  %v6305_v17 = vsel %vm1362_vm4, 1.0, %v12052_v22  ;;  %v1186_v57 = vmul.f32 %v6289_v25, %v7503_v63  ;;  %v12583_v25 = vld [vmem:[#allocation134_spill] sm:$0xff] }
 0x21a   : > { %v1280_v62 = vadd.f32 %v1264_v50, %v1056_v51  ;;  %v1265_v50 = vmul.f32 %v7883_v12, %v1185_v35  ;;  %v1425_v53 = vmul.f32 %v1409_v18, %v7883_v12  ;;  %v1410_v35 = vmul.f32 %v6305_v17, %v7850_v19  ;;  %v12637_v32 = vld [vmem:[#allocation74_spill] sm:$0xff] }
 0x21b   : > { %v1057_v4 = vadd.f32 %v1041_v33, %v817_v15  ;;  %v1042_v8 = vmul.f32 %v1026_v45, %v7696_v21  ;;  %v6258_v61 = vsel %vm595_vm5, 1.0, %v12052_v22  ;;  %v6290_v15 = vsel %vm1139_vm7, 1.0, %v12052_v22 }
 0x21c   : > { %v1440_v39 = vadd.f32 %v1424_v5, %v1280_v62  ;;  %v738_v62 = vmul.f32 %v6257_v37, %v7503_v63  ;;  %v739_v37 = vmul.f32 %v6258_v61, %v7506_v38  ;;  %v1043_v17 = vmul.f32 %v1027_v10, %v12583_v25  ;;  %v12585_v61 = vld [vmem:[#allocation64_spill] sm:$0xff] }
 0x21d   : > { %v8100_v1 = vpop.permute.xlu2 %1350  ;;  %v8102_v29 = vpop.permute.xlu1 %1329  ;;  %v1281_v6 = vadd.f32 %v1265_v50, %v1057_v4  ;;  %v1426_v50 = vmul.f32 %v1410_v35, %v7999_v26  ;;  %v6306_v35 = vsel %vm1363_vm9, 1.0, %v12052_v22  ;;  %vm1141_vm0 = vcmp.eq.s32.totalorder %v8027_v30, %v7834_v43 }
 0x21e   : > { %6318 = vmatmul.msk.f32.gmra.mxu0 %vm1462_vm10, %v1439_v20  ;;  %v818_v55 = vmul.f32 %v7696_v21, %v738_v62  ;;  %v819_v62 = vmul.f32 %v12583_v25, %v739_v37  ;;  %vm1364_vm13 = vcmp.eq.s32.totalorder %v8027_v30, %v8102_v29  ;;  %v12588_v29 = vld [vmem:[#allocation156_spill] sm:$0xff]  ;;  %vm1365_vm1 = vcmp.eq.s32.totalorder %v8027_v30, %v8052_v7  ;;  %v12605_v25 = vld [vmem:[#allocation57_spill] sm:$0xff] }
 0x21f   : > { %v1441_v5 = vadd.f32 %v1425_v53, %v1281_v6  ;;  %v1187_v53 = vmul.f32 %v6290_v15, %v7506_v38  ;;  %v1411_v15 = vmul.f32 %v6306_v35, %v7830_v42  ;;  %vm901_vm14 = vcmp.eq.s32.totalorder %v8027_v30, %v12588_v29  ;;  %v12589_v37 = vld [vmem:[#allocation92_spill] sm:$0xff] }
 0x220   : > { %v1058_v45 = vadd.f32 %v1042_v8, %v818_v55  ;;  %v1059_v0 = vadd.f32 %v1043_v17, %v819_v62  ;;  %v1585_v17 = vpop.permute.xlu0 %1584  ;;  %v12590_v62 = vld [vmem:[#allocation139_spill] sm:$0xff]  ;;  %v6308_v7 = vsel %vm1365_vm1, 1.0, %v12052_v22  ;;  %vm1142_vm4 = vcmp.eq.s32.totalorder %v8027_v30, %v7947_v47 }
 0x221   : > { %v1267_v8 = vmul.f32 %v7965_v27, %v1187_v53  ;;  %vm903_vm5 = vcmp.eq.s32.totalorder %v8027_v30, %v7804_v58  ;;  %v12613_v58 = vld [vmem:[#allocation212_spill] sm:$0xff] }
 0x225   : > { %v1577_v60 = vpop.permute.xlu2 %1576  ;;  %v8122_v20 = vpop.permute.xlu1 %1338 }
 0x226   : > { %v8131_v51 = vadd.s32 %v1577_v60, %v12579_v13  ;;  %6319 = vmatmul.msk.f32.gmra.mxu0 %vm1462_vm10, %v1440_v39  ;;  %v1266_v60 = vmul.f32 %v7999_v26, %v1186_v57  ;;  %v12584_v57 = vld [vmem:[#allocation114_spill] sm:$0xff]  ;;  %vm1367_vm9 = vcmp.eq.s32.totalorder %v8027_v30, %v8122_v20  ;;  %v12623_v13 = vld [vmem:[#allocation68_spill] sm:$0xff]  ;;  %v12626_v26 = vld [vmem:[#allocation179_spill] sm:$0xff] }
 0x227   : > { %vm596_vm12 = vcmp.eq.s32.totalorder %v8027_v30, %v12584_v57 }
 0x228   : > { %12580 = vst [vmem:[#allocation223_spill] sm:$0xff] %v8131_v51  ;;  %1625 = vperm.xlu0 %6958, %v8131_v51   ;;  %v1282_v4 = vadd.f32 %v1266_v60, %v1058_v45  ;;  %v6259_v55 = vsel %vm596_vm12, 1.0, %v12052_v22  ;;  %v12587_v60 = vld [vmem:[#allocation101_spill] sm:$0xff]  ;;  %v6307_v45 = vsel %vm1364_vm13, 1.0, %v12052_v22  ;;  %vm1144_vm13 = vcmp.eq.s32.totalorder %v8027_v30, %v12626_v26 }
 0x229   : > { %v1028_v10 = vmul.f32 %v6275_v59, %v12587_v60  ;;  %v1412_v59 = vmul.f32 %v6307_v45, %v12587_v60 }
 0x22a   : > { %v1442_v6 = vadd.f32 %v1426_v50, %v1282_v4  ;;  %v1283_v50 = vadd.f32 %v1267_v8, %v1059_v0  ;;  %v1427_v4 = vmul.f32 %v1411_v15, %v7965_v27  ;;  %v6276_v8 = vsel %vm901_vm14, 1.0, %v12052_v22 }
 0x22b   : > { %v1044_v57 = vmul.f32 %v1028_v10, %v12590_v62  ;;  %vm1368_vm14 = vcmp.eq.s32.totalorder %v8027_v30, %v8077_v40 }
 0x22c   : > { %v1443_v35 = vadd.f32 %v1427_v4, %v1283_v50  ;;  %v12594_v50 = vld [vmem:[#allocation54_spill] sm:$0xff]  ;;  %v1029_v4 = vmul.f32 %v6276_v8, %v7863_v48  ;;  %v12598_v8 = vld [vmem:[#allocation87_spill] sm:$0xff] }
 0x22d   : > { %v1583_v18 = vpop.permute.xlu2 %1582  ;;  %v8152_v39 = vpop.permute.xlu1 %1347 }
 0x22e   : > { %v8155_v33 = vadd.s32 %v1583_v18, %v12581_v52  ;;  %6320 = vmatmul.msk.f32.gmra.mxu0 %vm1462_vm10, %v1441_v5  ;;  %v6291_v18 = vsel %vm1140_vm11, 1.0, %v12052_v22  ;;  %v12600_v52 = vld [vmem:[#allocation59_spill] sm:$0xff] }
 0x22f   : > { %v1188_v53 = vmul.f32 %v6291_v18, %v12589_v37 }
 0x230   : > { %12582 = vst [vmem:[#allocation224_spill] sm:$0xff] %v8155_v33  ;;  %1634 = vperm.xlu1 %6959, %v8155_v33  }
 0x231   : > { %v1268_v29 = vmul.f32 %v7897_v41, %v1188_v53  ;;  %v1428_v53 = vmul.f32 %v1412_v59, %v7897_v41  ;;  %v1413_v59 = vmul.f32 %v6308_v7, %v7863_v48  ;;  %v12602_v41 = vmov 0.0  }
 0x232   : > { %v6293_v7 = vsel %vm1142_vm4, 1.0, %v12602_v41  ;;  %v6295_v26 = vsel %vm1144_vm13, 1.0, %v12602_v41  ;;  %v6311_v40 = vsel %vm1368_vm14, 1.0, %v12602_v41 }
 0x235   : > { %v1589_v5 = vpop.permute.xlu2 %1588  ;;  %v8179_v23 = vpop.permute.xlu1 %1356 }
 0x236   : > { %v8184_v44 = vadd.s32 %v1589_v5, %v12585_v61  ;;  %6321 = vmatmul.msk.f32.gmra.mxu0 %vm1462_vm10, %v1442_v6  ;;  %v740_v6 = vmul.f32 %v6259_v55, %v12589_v37  ;;  %v12591_v5 = vld [vmem:[#allocation125_spill] sm:$0xff]  ;;  %v12592_v55 = vld [vmem:[#allocation70_spill] sm:$0xff] }
 0x237   : > { %vm597_vm15 = vcmp.eq.s32.totalorder %v8027_v30, %v12591_v5  ;;  %v6292_v5 = vsel %vm1141_vm0, 1.0, %v12052_v22 }
 0x238   : > { %12586 = vst [vmem:[#allocation114_spill] sm:$0xff] %v8184_v44  ;;  %1643 = vperm.xlu1 %6959, %v8184_v44   ;;  %v820_v0 = vmul.f32 %v12590_v62, %v740_v6  ;;  %v6260_v6 = vsel %vm597_vm15, 1.0, %v12052_v22  ;;  %v8234_v22 = vadd.s32 %v1585_v17, %v12600_v52 }
 0x23a   : > { %v1060_v43 = vadd.f32 %v1044_v57, %v820_v0  ;;  %v1189_v57 = vmul.f32 %v6292_v5, %v12598_v8  ;;  %v12599_v0 = vld [vmem:[#allocation145_spill] sm:$0xff] }
 0x23b   : > { %v1045_v61 = vmul.f32 %v1029_v4, %v12599_v0 }
 0x23c   : > { %v1269_v17 = vmul.f32 %v8019_v28, %v1189_v57  ;;  %v12608_v57 = vld [vmem:[#allocation211_spill] sm:$0xff] }
 0x23d   : > { %v1595_v18 = vpop.permute.xlu2 %1594  ;;  %v1581_v15 = vpop.permute.xlu1 %1580  ;;  %vm1366_vm6 = vcmp.eq.s32.totalorder %v8027_v30, %v12608_v57 }
 0x23e   : > { %v8210_v10 = vadd.s32 %v1595_v18, %v12592_v55  ;;  %v8213_v45 = vadd.s32 %v1581_v15, %v12594_v50  ;;  %6322 = vmatmul.msk.f32.gmra.mxu0 %vm1462_vm10, %v1443_v35  ;;  %v12596_v18 = vld [vmem:[#allocation127_spill] sm:$0xff]  ;;  %v12597_v15 = vld [vmem:[#allocation162_spill] sm:$0xff]  ;;  %v1284_v35 = vadd.f32 %v1268_v29, %v1060_v43  ;;  %v741_v55 = vmul.f32 %v6260_v6, %v12598_v8 }
 0x23f   : > { %vm598_vm2 = vcmp.eq.s32.totalorder %v8027_v30, %v12596_v18  ;;  %vm902_vm3 = vcmp.eq.s32.totalorder %v8027_v30, %v12597_v15  ;;  %12601 = vst [vmem:[#allocation127_spill] sm:$0xff] %v8234_v22  ;;  %v1591_v18 = vpop.permute.xlu0 %1590  ;;  %v12603_v15 = vld [vmem:[#allocation76_spill] sm:$0xff] }
 0x240   : > { %12593 = vst [vmem:[#allocation156_spill] sm:$0xff] %v8210_v10  ;;  %1652 = vperm.xlu1 %6959, %v8210_v10   ;;  %1631 = vperm.xlu2 %6960, %v8213_v45   ;;  %v1444_v62 = vadd.f32 %v1428_v53, %v1284_v35  ;;  %v6261_v50 = vsel %vm598_vm2, 1.0, %v12602_v41  ;;  %v6277_v29 = vsel %vm902_vm3, 1.0, %v12602_v41  ;;  %v821_v5 = vmul.f32 %v12599_v0, %v741_v55  ;;  %v12610_v0 = vld [vmem:[#allocation200_spill] sm:$0xff] }
 0x241   : > { %12595 = vst [vmem:[#allocation125_spill] sm:$0xff] %v8213_v45  ;;  %v1030_v53 = vmul.f32 %v6277_v29, %v7838_v31  ;;  %v1429_v35 = vmul.f32 %v1413_v59, %v8019_v28  ;;  %vm1143_vm7 = vcmp.eq.s32.totalorder %v8027_v30, %v12610_v0 }
 0x242   : > { %v1061_v55 = vadd.f32 %v1045_v61, %v821_v5  ;;  %v12611_v61 = vld [vmem:[#allocation61_spill] sm:$0xff] }
 0x244   : > { %v1285_v29 = vadd.f32 %v1269_v17, %v1061_v55  ;;  %v6309_v17 = vsel %vm1366_vm6, 1.0, %v12602_v41  ;;  %vm1370_vm6 = vcmp.eq.s32.totalorder %v8027_v30, %v8152_v39  ;;  %v12655_v39 = vld [vmem:[#allocation104_spill] sm:$0xff] }
 0x245   : > { %v1601_v43 = vpop.permute.xlu2 %1600  ;;  %v1587_v6 = vpop.permute.xlu1 %1586  ;;  %v1414_v27 = vmul.f32 %v6309_v17, %v7838_v31 }
 0x246   : > { %v8240_v4 = vadd.s32 %v1601_v43, %v12603_v15  ;;  %v8243_v47 = vadd.s32 %v1587_v6, %v12605_v25  ;;  %6323 = vmatmul.msk.f32.gmra.mxu0 %vm1462_vm10, %v1444_v62  ;;  %v12607_v43 = vld [vmem:[#allocation88_spill] sm:$0xff]  ;;  %v12609_v6 = vld [vmem:[#allocation137_spill] sm:$0xff]  ;;  %v1445_v5 = vadd.f32 %v1429_v35, %v1285_v29  ;;  %v12614_v25 = vld [vmem:[#allocation119_spill] sm:$0xff] }
 0x247   : > { %v742_v15 = vmul.f32 %v6261_v50, %v12607_v43  ;;  %v1190_v62 = vmul.f32 %v6293_v7, %v12607_v43  ;;  %v1046_v59 = vmul.f32 %v1030_v53, %v12609_v6  ;;  %v8264_v50 = vadd.s32 %v1591_v18, %v12611_v61  ;;  %v12617_v18 = vld [vmem:[#allocation65_spill] sm:$0xff]  ;;  %v12619_v61 = vld [vmem:[#allocation106_spill] sm:$0xff] }
 0x248   : > { %12604 = vst [vmem:[#allocation162_spill] sm:$0xff] %v8240_v4  ;;  %1661 = vperm.xlu1 %6959, %v8240_v4   ;;  %1637 = vperm.xlu2 %6960, %v8234_v22   ;;  %vm599_vm8 = vcmp.eq.s32.totalorder %v8027_v30, %v12614_v25  ;;  %v6278_v7 = vsel %vm903_vm5, 1.0, %v12602_v41  ;;  %v6294_v25 = vsel %vm1143_vm7, 1.0, %v12602_v41  ;;  %vm603_vm7 = vcmp.eq.s32.totalorder %v8027_v30, %v12656_v34 }
 0x249   : > { %12606 = vst [vmem:[#allocation225_spill] sm:$0xff] %v8243_v47  ;;  %1640 = vperm.xlu0 %6958, %v8243_v47   ;;  %v822_v52 = vmul.f32 %v12609_v6, %v742_v15  ;;  %v1270_v28 = vmul.f32 %v12613_v58, %v1190_v62  ;;  %v12615_v15 = vld [vmem:[#allocation80_spill] sm:$0xff]  ;;  %v1597_v62 = vpop.permute.xlu0 %1596  ;;  %v6262_v29 = vsel %vm599_vm8, 1.0, %v12602_v41  ;;  %v1031_v6 = vmul.f32 %v6278_v7, %v12619_v61  ;;  %v12622_v7 = vld [vmem:[#allocation142_spill] sm:$0xff] }
 0x24a   : > { %12612 = vst [vmem:[#allocation211_spill] sm:$0xff] %v8264_v50  ;;  %v8296_v21 = vadd.s32 %v1597_v62, %v12623_v13  ;;  %v12631_v13 = vld [vmem:[#allocation27_spill] sm:$0xff]  ;;  %v6266_v34 = vsel %vm603_vm7, 1.0, %v12602_v41 }
 0x24b   : > { %v1062_v35 = vadd.f32 %v1046_v59, %v822_v52  ;;  %v1430_v59 = vmul.f32 %v1414_v27, %v12613_v58  ;;  %v1047_v17 = vmul.f32 %v1031_v6, %v12622_v7  ;;  %v12628_v6 = vld [vmem:[#allocation71_spill] sm:$0xff] }
 0x24d   : > { %v1607_v55 = vpop.permute.xlu2 %1606  ;;  %v1593_v53 = vpop.permute.xlu1 %1592  ;;  %v1286_v20 = vadd.f32 %v1270_v28, %v1062_v35  ;;  %v12625_v35 = vld [vmem:[#allocation129_spill] sm:$0xff] }
 0x24e   : > { %v8274_v0 = vadd.s32 %v1607_v55, %v12615_v15  ;;  %v8277_v57 = vadd.s32 %v1593_v53, %v12617_v18  ;;  %6324 = vmatmul.msk.f32.gmra.mxu0 %vm1462_vm10, %v1445_v5  ;;  %v6310_v55 = vsel %vm1367_vm9, 1.0, %v12602_v41  ;;  %v12620_v5 = vld [vmem:[#allocation97_spill] sm:$0xff]  ;;  %v12621_v15 = vld [vmem:[#allocation160_spill] sm:$0xff]  ;;  %vm600_vm12 = vcmp.eq.s32.totalorder %v8027_v30, %v12625_v35 }
 0x24f   : > { %v1191_v52 = vmul.f32 %v6294_v25, %v12620_v5  ;;  %v743_v53 = vmul.f32 %v6262_v29, %v12620_v5  ;;  %vm904_vm11 = vcmp.eq.s32.totalorder %v8027_v30, %v12621_v15  ;;  %v1415_v18 = vmul.f32 %v6310_v55, %v12619_v61  ;;  %12624 = vst [vmem:[#allocation160_spill] sm:$0xff] %v8296_v21  ;;  %v12627_v15 = vld [vmem:[#allocation197_spill] sm:$0xff]  ;;  %v12749_v5 = vld [vmem:[#allocation38_spill] sm:$0xff]  ;;  %v12750_v61 = vld [vmem:[#allocation20_spill] sm:$0xff] }
 0x250   : > { %12616 = vst [vmem:[#allocation200_spill] sm:$0xff] %v8274_v0  ;;  %1670 = vperm.xlu1 %6959, %v8274_v0   ;;  %1646 = vperm.xlu2 %6960, %v8264_v50   ;;  %v1446_v28 = vadd.f32 %v1430_v59, %v1286_v20  ;;  %v6279_v29 = vsel %vm904_vm11, 1.0, %v12602_v41  ;;  %v12630_v20 = vld [vmem:[#allocation189_spill] sm:$0xff]  ;;  %v6263_v59 = vsel %vm600_vm12, 1.0, %v12602_v41  ;;  %vm1371_vm11 = vcmp.eq.s32.totalorder %v8027_v30, %v8100_v1 }
 0x251   : > { %12618 = vst [vmem:[#allocation119_spill] sm:$0xff] %v8277_v57  ;;  %1649 = vperm.xlu0 %6958, %v8277_v57   ;;  %v823_v25 = vmul.f32 %v12622_v7, %v743_v53  ;;  %v1271_v58 = vmul.f32 %v12627_v15, %v1191_v52  ;;  %v1032_v55 = vmul.f32 %v6279_v29, %v12630_v20  ;;  %v1603_v52 = vpop.permute.xlu0 %1602  ;;  %v12635_v7 = vld [vmem:[#allocation149_spill] sm:$0xff] }
 0x252   : > { %v1431_v35 = vmul.f32 %v1415_v18, %v12627_v15  ;;  %v12636_v15 = vld [vmem:[#allocation208_spill] sm:$0xff]  ;;  %v8330_v12 = vadd.s32 %v1603_v52, %v12637_v32  ;;  %v12664_v1 = vld [vmem:[#allocation33_spill] sm:$0xff] }
 0x253   : > { %v1063_v53 = vadd.f32 %v1047_v17, %v823_v25  ;;  %v12634_v25 = vld [vmem:[#allocation91_spill] sm:$0xff]  ;;  %vm1145_vm1 = vcmp.eq.s32.totalorder %v8027_v30, %v12636_v15 }
 0x254   : > { %v744_v29 = vmul.f32 %v6263_v59, %v12634_v25  ;;  %v1192_v18 = vmul.f32 %v6295_v26, %v12634_v25  ;;  %12638 = vst [vmem:[#allocation179_spill] sm:$0xff] %v8330_v12  ;;  %v12641_v26 = vld [vmem:[#allocation221_spill] sm:$0xff]  ;;  %v6296_v52 = vsel %vm1145_vm1, 1.0, %v12602_v41 }
 0x255   : > { %v1599_v27 = vpop.permute.xlu1 %1598  ;;  %v1287_v17 = vadd.f32 %v1271_v58, %v1063_v53  ;;  %v12639_v53 = vld [vmem:[#allocation77_spill] sm:$0xff] }
 0x256   : > { %v8308_v62 = vadd.s32 %v1599_v27, %v12628_v6  ;;  %6325 = vmatmul.msk.f32.gmra.mxu0 %vm1462_vm10, %v1446_v28  ;;  %v12632_v27 = vld [vmem:[#allocation131_spill] sm:$0xff]  ;;  %v1416_v6 = vmul.f32 %v6311_v40, %v12630_v20  ;;  %v1272_v15 = vmul.f32 %v12641_v26, %v1192_v18  ;;  %v12743_v20 = vld [vmem:[#allocation32_spill] sm:$0xff] }
 0x257   : > { %vm601_vm15 = vcmp.eq.s32.totalorder %v8027_v30, %v12632_v27  ;;  %v12633_v28 = vld [vmem:[#allocation167_spill] sm:$0xff]  ;;  %v1447_v36 = vadd.f32 %v1431_v35, %v1287_v17  ;;  %v12643_v17 = vld [vmem:[#allocation30_spill] sm:$0xff] }
 0x258   : > { %12629 = vst [vmem:[#allocation129_spill] sm:$0xff] %v8308_v62  ;;  %1745 = vperm.xlu1 %6959, %v12631_v13   ;;  %1655 = vperm.xlu2 %6960, %v8296_v21   ;;  %vm905_vm0 = vcmp.eq.s32.totalorder %v8027_v30, %v12633_v28  ;;  %v1048_v13 = vmul.f32 %v1032_v55, %v12635_v7  ;;  %v6264_v27 = vsel %vm601_vm15, 1.0, %v12602_v41 }
 0x259   : > { %1658 = vperm.xlu0 %6958, %v8308_v62   ;;  %v6280_v28 = vsel %vm905_vm0, 1.0, %v12602_v41  ;;  %v824_v55 = vmul.f32 %v12635_v7, %v744_v29  ;;  %v1432_v35 = vmul.f32 %v1416_v6, %v12641_v26  ;;  %v12646_v29 = vld [vmem:[#allocation214_spill] sm:$0xff]  ;;  %v12648_v7 = vld [vmem:[#allocation204_spill] sm:$0xff]  ;;  %v12650_v26 = vld [vmem:[#allocation123_spill] sm:$0xff] }
 0x25a   : > { %v1033_v40 = vmul.f32 %v6280_v28, %v12642_v54  ;;  %vm1369_vm3 = vcmp.eq.s32.totalorder %v8027_v30, %v12646_v29  ;;  %v12647_v28 = vld [vmem:[#allocation140_spill] sm:$0xff]  ;;  %vm1146_vm4 = vcmp.eq.s32.totalorder %v8027_v30, %v12648_v7  ;;  %vm602_vm5 = vcmp.eq.s32.totalorder %v8027_v30, %v12650_v26 }
 0x25b   : > { %v1064_v32 = vadd.f32 %v1048_v13, %v824_v55  ;;  %v6297_v7 = vsel %vm1146_vm4, 1.0, %v12602_v41  ;;  %v12653_v26 = vld [vmem:[#allocation24_spill] sm:$0xff] }
 0x25c   : > { %v1049_v6 = vmul.f32 %v1033_v40, %v12647_v28  ;;  %v12651_v40 = vld [vmem:[#allocation111_spill] sm:$0xff] }
 0x25d   : > { %v1605_v58 = vpop.permute.xlu1 %1604  ;;  %v1288_v18 = vadd.f32 %v1272_v15, %v1064_v32  ;;  %v6265_v15 = vsel %vm602_vm5, 1.0, %v12602_v41 }
 0x25e   : > { %v8335_v59 = vadd.s32 %v1605_v58, %v12639_v53  ;;  %6326 = vmatmul.msk.f32.gmra.mxu0 %vm1462_vm10, %v1447_v36  ;;  %v745_v58 = vmul.f32 %v6264_v27, %v12644_v49  ;;  %v12645_v53 = vld [vmem:[#allocation172_spill] sm:$0xff]  ;;  %v1193_v36 = vmul.f32 %v6296_v52, %v12644_v49  ;;  %v12649_v27 = vld [vmem:[#allocation215_spill] sm:$0xff]  ;;  %v6312_v52 = vsel %vm1369_vm3, 1.0, %v12602_v41 }
 0x25f   : > { %vm906_vm2 = vcmp.eq.s32.totalorder %v8027_v30, %v12645_v53  ;;  %vm1373_vm3 = vcmp.eq.s32.totalorder %v8027_v30, %v8179_v23 }
 0x260   : > { %12640 = vst [vmem:[#allocation131_spill] sm:$0xff] %v8335_v59  ;;  %1757 = vperm.xlu1 %6959, %v12643_v17   ;;  %1664 = vperm.xlu2 %6960, %v8330_v12   ;;  %v1448_v17 = vadd.f32 %v1432_v35, %v1288_v18  ;;  %v825_v13 = vmul.f32 %v12647_v28, %v745_v58  ;;  %v6281_v53 = vsel %vm906_vm2, 1.0, %v12602_v41  ;;  %v6313_v18 = vsel %vm1370_vm6, 1.0, %v12602_v41  ;;  %v12654_v28 = vld [vmem:[#allocation17_spill] sm:$0xff] }
 0x261   : > { %1667 = vperm.xlu0 %6958, %v8335_v59   ;;  %v1273_v55 = vmul.f32 %v12649_v27, %v1193_v36  ;;  %v1034_v35 = vmul.f32 %v6281_v53, %v12651_v40  ;;  %v1417_v58 = vmul.f32 %v6312_v52, %v12642_v54  ;;  %v12652_v36 = vld [vmem:[#allocation36_spill] sm:$0xff]  ;;  %v12657_v53 = vld [vmem:[#allocation165_spill] sm:$0xff]  ;;  %v12658_v52 = vld [vmem:[#allocation146_spill] sm:$0xff]  ;;  %v6316_v23 = vsel %vm1373_vm3, 1.0, %v12602_v41 }
 0x262   : > { %v1065_v32 = vadd.f32 %v1049_v6, %v825_v13  ;;  %v746_v13 = vmul.f32 %v6265_v15, %v12655_v39  ;;  %vm907_vm8 = vcmp.eq.s32.totalorder %v8027_v30, %v12657_v53  ;;  %v6314_v53 = vsel %vm1371_vm11, 1.0, %v12602_v41 }
 0x263   : > { %v1433_v6 = vmul.f32 %v1417_v58, %v12649_v27  ;;  %v6282_v15 = vsel %vm907_vm8, 1.0, %v12602_v41  ;;  %v12666_v27 = vld [vmem:[#allocation94_spill] sm:$0xff] }
 0x264   : > { %v1289_v29 = vadd.f32 %v1273_v55, %v1065_v32  ;;  %v1418_v55 = vmul.f32 %v6313_v18, %v12651_v40 }
 0x266   : > { %6327 = vmatmul.msk.f32.gmra.mxu0 %vm1462_vm10, %v1448_v17  ;;  %v1194_v17 = vmul.f32 %v6297_v7, %v12655_v39  ;;  %v1449_v32 = vadd.f32 %v1433_v6, %v1289_v29  ;;  %v826_v7 = vmul.f32 %v12658_v52, %v746_v13  ;;  %v12661_v6 = vld [vmem:[#allocation42_spill] sm:$0xff]  ;;  %v12663_v13 = vld [vmem:[#allocation193_spill] sm:$0xff]  ;;  %v12675_v39 = vld [vmem:[#allocation175_spill] sm:$0xff] }
 0x267   : > { %vm909_vm15 = vcmp.eq.s32.totalorder %v8027_v30, %v12675_v39 }
 0x268   : > { %1769 = vperm.xlu1 %6959, %v12652_v36   ;;  %1737 = vperm.xlu2 %6960, %v12653_v26   ;;  %v1050_v36 = vmul.f32 %v1034_v35, %v12658_v52  ;;  %v12659_v26 = vld [vmem:[#allocation182_spill] sm:$0xff]  ;;  %v6284_v39 = vsel %vm909_vm15, 1.0, %v12602_v41 }
 0x269   : > { %1741 = vperm.xlu0 %6958, %v12654_v28   ;;  %vm1147_vm9 = vcmp.eq.s32.totalorder %v8027_v30, %v12659_v26  ;;  %v12660_v28 = vld [vmem:[#allocation201_spill] sm:$0xff]  ;;  %v12662_v26 = vld [vmem:[#allocation23_spill] sm:$0xff] }
 0x26a   : > { %v1274_v58 = vmul.f32 %v12660_v28, %v1194_v17  ;;  %v1066_v35 = vadd.f32 %v1050_v36, %v826_v7  ;;  %v6298_v18 = vsel %vm1147_vm9, 1.0, %v12602_v41  ;;  %v1434_v29 = vmul.f32 %v1418_v55, %v12660_v28  ;;  %v12667_v7 = vld [vmem:[#allocation135_spill] sm:$0xff]  ;;  %v12669_v28 = vld [vmem:[#allocation153_spill] sm:$0xff] }
 0x26b   : > { %v1035_v17 = vmul.f32 %v6282_v15, %v12663_v13  ;;  %v747_v36 = vmul.f32 %v6266_v34, %v12666_v27  ;;  %vm604_vm13 = vcmp.eq.s32.totalorder %v8027_v30, %v12667_v7  ;;  %v1195_v55 = vmul.f32 %v6298_v18, %v12666_v27  ;;  %v12670_v34 = vld [vmem:[#allocation222_spill] sm:$0xff]  ;;  %v12671_v7 = vld [vmem:[#allocation184_spill] sm:$0xff] }
 0x26c   : > { %v1290_v52 = vadd.f32 %v1274_v58, %v1066_v35  ;;  %v1419_v15 = vmul.f32 %v6314_v53, %v12663_v13  ;;  %v12672_v53 = vld [vmem:[#allocation48_spill] sm:$0xff] }
 0x26d   : > { %v1051_v56 = vmul.f32 %v1035_v17, %v12669_v28  ;;  %v827_v58 = vmul.f32 %v12669_v28, %v747_v36  ;;  %v1275_v35 = vmul.f32 %v12670_v34, %v1195_v55  ;;  %v12674_v17 = vld [vmem:[#allocation93_spill] sm:$0xff]  ;;  %v12678_v28 = vld [vmem:[#allocation144_spill] sm:$0xff] }
 0x26e   : > { %6328 = vmatmul.msk.f32.gmra.mxu0 %vm1462_vm10, %v1449_v32  ;;  %v12665_v32 = vld [vmem:[#allocation171_spill] sm:$0xff]  ;;  %v12677_v55 = vld [vmem:[#allocation217_spill] sm:$0xff] }
 0x26f   : > { %vm908_vm12 = vcmp.eq.s32.totalorder %v8027_v30, %v12665_v32  ;;  %v6267_v32 = vsel %vm604_vm13, 1.0, %v12602_v41  ;;  %vm1372_vm0 = vcmp.eq.s32.totalorder %v8027_v30, %v12677_v55 }
 0x270   : > { %1781 = vperm.xlu1 %6959, %v12661_v6   ;;  %1749 = vperm.xlu2 %6960, %v12662_v26   ;;  %v12668_v6 = vld [vmem:[#allocation210_spill] sm:$0xff]  ;;  %v1450_v26 = vadd.f32 %v1434_v29, %v1290_v52  ;;  %v12673_v52 = vld [vmem:[#allocation29_spill] sm:$0xff]  ;;  %v1067_v29 = vadd.f32 %v1051_v56, %v827_v58  ;;  %v748_v13 = vmul.f32 %v6267_v32, %v12674_v17 }
 0x271   : > { %1753 = vperm.xlu0 %6958, %v12664_v1   ;;  %vm1148_vm14 = vcmp.eq.s32.totalorder %v8027_v30, %v12668_v6  ;;  %v6283_v1 = vsel %vm908_vm12, 1.0, %v12602_v41  ;;  %v1435_v6 = vmul.f32 %v1419_v15, %v12670_v34  ;;  %v12679_v34 = vld [vmem:[#allocation206_spill] sm:$0xff] }
 0x272   : > { %v1036_v18 = vmul.f32 %v6283_v1, %v12671_v7  ;;  %v6299_v27 = vsel %vm1148_vm14, 1.0, %v12602_v41  ;;  %v1291_v1 = vadd.f32 %v1275_v35, %v1067_v29  ;;  %vm1149_vm1 = vcmp.eq.s32.totalorder %v8027_v30, %v12679_v34  ;;  %v12680_v32 = vld [vmem:[#allocation218_spill] sm:$0xff] }
 0x273   : > { %v1196_v36 = vmul.f32 %v6299_v27, %v12674_v17  ;;  %v828_v56 = vmul.f32 %v12678_v28, %v748_v13  ;;  %v12682_v27 = vld [vmem:[#allocation220_spill] sm:$0xff]  ;;  %v6300_v13 = vsel %vm1149_vm1, 1.0, %v12602_v41 }
 0x274   : > { %v1052_v15 = vmul.f32 %v1036_v18, %v12678_v28  ;;  %v8437_v35 = vadd.s32 1, %v12682_v27  ;;  %v12684_v18 = vld [vmem:[#allocation116_spill] sm:$0xff] }
 0x275   : > { %v1276_v58 = vmul.f32 %v12680_v32, %v1196_v36  ;;  %v12685_v36 = vld [vmem:[#allocation35_spill] sm:$0xff] }
 0x276   : > { %6329 = vmatmul.msk.f32.gmra.mxu0 %vm1462_vm10, %v1450_v26  ;;  %v12676_v26 = vld [vmem:[#allocation39_spill] sm:$0xff]  ;;  %12683 = vst [vmem:[#allocation167_spill] sm:$0xff] %v8437_v35  ;;  %v1068_v34 = vadd.f32 %v1052_v15, %v828_v56 }
 0x278   : > { %1793 = vperm.xlu1 %6959, %v12672_v53   ;;  %1761 = vperm.xlu2 %6960, %v12673_v52   ;;  %v1451_v53 = vadd.f32 %v1435_v6, %v1291_v1  ;;  %v6315_v52 = vsel %vm1372_vm0, 1.0, %v12602_v41  ;;  %v1037_v6 = vmul.f32 %v6284_v39, %v12684_v18  ;;  %v12687_v1 = vld [vmem:[#allocation109_spill] sm:$0xff]  ;;  %v12688_v39 = vld [vmem:[#allocation150_spill] sm:$0xff] }
 0x279   : > { %1765 = vperm.xlu0 %6958, %v12676_v26   ;;  %v12681_v26 = vld [vmem:[#allocation126_spill] sm:$0xff]  ;;  %v1420_v29 = vmul.f32 %v6315_v52, %v12671_v7  ;;  %v1197_v28 = vmul.f32 %v6300_v13, %v12687_v1  ;;  %v1421_v52 = vmul.f32 %v6316_v23, %v12684_v18  ;;  %v8456_v7 = vadd.s32 1, %v8234_v22 }
 0x27a   : > { %vm605_vm2 = vcmp.eq.s32.totalorder %v8027_v30, %v12681_v26  ;;  %v1292_v26 = vadd.f32 %v1276_v58, %v1068_v34  ;;  %v1053_v17 = vmul.f32 %v1037_v6, %v12688_v39  ;;  %v12689_v58 = vld [vmem:[#allocation205_spill] sm:$0xff]  ;;  %v8476_v23 = vadd.s32 1, %v8213_v45 }
 0x27b   : > { %v6268_v55 = vsel %vm605_vm2, 1.0, %v12602_v41  ;;  %v1436_v15 = vmul.f32 %v1420_v29, %v12680_v32  ;;  %v1277_v34 = vmul.f32 %v12689_v58, %v1197_v28  ;;  %12690 = vst [vmem:[#allocation208_spill] sm:$0xff] %v8456_v7  ;;  %v1437_v13 = vmul.f32 %v1421_v52, %v12689_v58  ;;  %v12691_v29 = vld [vmem:[#allocation41_spill] sm:$0xff] }
 0x27c   : > { %v749_v56 = vmul.f32 %v6268_v55, %v12687_v1  ;;  %v12692_v6 = vld [vmem:[#allocation49_spill] sm:$0xff]  ;;  %v8464_v28 = vadd.s32 1, %v8264_v50  ;;  %12697 = vst [vmem:[#allocation123_spill] sm:$0xff] %v8476_v23  ;;  %v8489_v52 = vadd.s32 1, %v8330_v12  ;;  %v8563_v58 = vadd.s32 8, %v8213_v45 }
 0x27d   : > { %v8581_v45 = vadd.s32 8, %v8243_v47 }
 0x27e   : > { %6330 = vmatmul.msk.f32.gmra.mxu0 %vm1462_vm10, %v1451_v53  ;;  %v12686_v53 = vld [vmem:[#allocation45_spill] sm:$0xff]  ;;  %12693 = vst [vmem:[#allocation172_spill] sm:$0xff] %v8464_v28 }
 0x27f   : > { %12699 = vst [vmem:[#allocation165_spill] sm:$0xff] %v8489_v52 }
 0x280   : > { %1836 = vperm.xlu1 %6959, %v8437_v35   ;;  %1773 = vperm.xlu2 %6960, %v12685_v36   ;;  %v1452_v35 = vadd.f32 %v1436_v15, %v1292_v26  ;;  %v829_v36 = vmul.f32 %v12688_v39, %v749_v56  ;;  %v8484_v15 = vpop.permute.xlu1 %1628  ;;  %v8560_v39 = vadd.s32 8, %v12682_v27  ;;  %12717 = vst [vmem:[#allocation235_spill] sm:$0xff] %v8563_v58  ;;  %v8578_v27 = vadd.s32 8, %v8234_v22 }
 0x281   : > { %1777 = vperm.xlu0 %6958, %v12686_v53   ;;  %12723 = vst [vmem:[#allocation241_spill] sm:$0xff] %v8581_v45  ;;  %v8596_v22 = vadd.s32 8, %v8264_v50  ;;  %v8614_v50 = vadd.s32 8, %v8308_v62  ;;  %vm1673_vm8 = vcmp.eq.s32.totalorder %v8027_v30, %v8484_v15 }
 0x282   : > { %v1069_v53 = vadd.f32 %v1053_v17, %v829_v36  ;;  %v12695_v17 = vld [vmem:[#allocation47_spill] sm:$0xff]  ;;  %v8473_v36 = vadd.s32 1, %v8296_v21  ;;  %12716 = vst [vmem:[#allocation234_spill] sm:$0xff] %v8560_v39  ;;  %v8680_v43 = vadd.s32 1, %v8578_v27 }
 0x283   : > { %12722 = vst [vmem:[#allocation240_spill] sm:$0xff] %v8578_v27  ;;  %v8692_v31 = vadd.s32 1, %v8596_v22 }
 0x284   : > { %v1293_v55 = vadd.f32 %v1277_v34, %v1069_v53  ;;  %12696 = vst [vmem:[#allocation204_spill] sm:$0xff] %v8473_v36  ;;  %v8479_v53 = vadd.s32 1, %v8155_v33  ;;  %v8492_v34 = vadd.s32 1, %v8243_v47  ;;  %v8599_v47 = vadd.s32 8, %v8277_v57 }
 0x285   : > { %12726 = vst [vmem:[#allocation244_spill] sm:$0xff] %v8596_v22 }
 0x286   : > { %6331 = vmatmul.msk.f32.gmra.mxu0 %vm1462_vm10, %v1452_v35  ;;  %v1453_v26 = vadd.f32 %v1437_v13, %v1293_v55  ;;  %v8467_v35 = vadd.s32 1, %v8131_v51  ;;  %12698 = vst [vmem:[#allocation133_spill] sm:$0xff] %v8479_v53  ;;  %v8495_v13 = vadd.s32 1, %v8184_v44 }
 0x287   : > { %12700 = vst [vmem:[#allocation182_spill] sm:$0xff] %v8492_v34 }
 0x288   : > { %1845 = vperm.xlu1 %6959, %v8456_v7   ;;  %1785 = vperm.xlu2 %6960, %v12691_v29   ;;  %12694 = vst [vmem:[#allocation214_spill] sm:$0xff] %v8467_v35  ;;  %v8511_v7 = vadd.s32 1, %v8210_v10 }
 0x289   : > { %1789 = vperm.xlu0 %6958, %v12692_v6   ;;  %12701 = vst [vmem:[#allocation171_spill] sm:$0xff] %v8495_v13 }
 0x28a   : > { %12704 = vst [vmem:[#allocation175_spill] sm:$0xff] %v8511_v7 }
 0x28b   : > { %12727 = vst [vmem:[#allocation245_spill] sm:$0xff] %v8599_v47 }
 0x28c   : > { %12732 = vst [vmem:[#allocation250_spill] sm:$0xff] %v8614_v50 }
 0x28d   : > { %12761 = vst [vmem:[#allocation266_spill] sm:$0xff] %v8680_v43 }
 0x28e   : > { %6332 = vmatmul.msk.f32.gmra.mxu0 %vm1462_vm10, %v1453_v26  ;;  %12766 = vst [vmem:[#allocation269_spill] sm:$0xff] %v8692_v31 }
 0x290   : > { %1854 = vperm.xlu1 %6959, %v8464_v28   ;;  %1797 = vperm.xlu2 %6960, %v12695_v17   ;;  %v8508_v28 = vadd.s32 1, %v8277_v57  ;;  %v8545_v17 = vadd.s32 1, %v8274_v0  ;;  %v12733_v57 = vld [vmem:[#allocation22_spill] sm:$0xff] }
 0x291   : > { %1833 = vperm.xlu0 %6958, %v8467_v35  }
 0x292   : > { %12703 = vst [vmem:[#allocation210_spill] sm:$0xff] %v8508_v28 }
 0x293   : > { %12712 = vst [vmem:[#allocation230_spill] sm:$0xff] %v8545_v17 }
 0x298   : > { %1863 = vperm.xlu1 %6959, %v8473_v36   ;;  %1839 = vperm.xlu2 %6960, %v8476_v23   ;;  %v8505_v36 = vadd.s32 8, %v8131_v51  ;;  %v8527_v23 = vadd.s32 1, %v8240_v4  ;;  %v8542_v51 = vadd.s32 1, %v8335_v59 }
 0x299   : > { %1842 = vperm.xlu0 %6958, %v8479_v53   ;;  %v8524_v53 = vadd.s32 1, %v8308_v62  ;;  %v12739_v62 = vld [vmem:[#allocation26_spill] sm:$0xff] }
 0x29a   : > { %v8486_v56 = vpop.permute.xlu2 %1631  ;;  %12702 = vst [vmem:[#allocation135_spill] sm:$0xff] %v8505_v36  ;;  %v8536_v35 = vpop.permute.xlu0 %1625 }
 0x29b   : > { %12706 = vst [vmem:[#allocation206_spill] sm:$0xff] %v8524_v53  ;;  %vm1672_vm5 = vcmp.eq.s32.totalorder %v8027_v30, %v8536_v35  ;;  %vm1674_vm14 = vcmp.eq.s32.totalorder %v8027_v30, %v8486_v56 }
 0x29c   : > { %12707 = vst [vmem:[#allocation126_spill] sm:$0xff] %v8527_v23 }
 0x29d   : > { %12711 = vst [vmem:[#allocation229_spill] sm:$0xff] %v8542_v51 }
 0x2a0   : > { %1872 = vperm.xlu1 %6959, %v8489_v52   ;;  %1848 = vperm.xlu2 %6960, %v8492_v34   ;;  %v8521_v34 = vadd.s32 8, %v8155_v33  ;;  %v8539_v33 = vadd.s32 8, %v8184_v44  ;;  %v8557_v44 = vadd.s32 8, %v8210_v10  ;;  %v8575_v10 = vadd.s32 8, %v8240_v4 }
 0x2a1   : > { %1851 = vperm.xlu0 %6958, %v8495_v13   ;;  %v8593_v4 = vadd.s32 8, %v8274_v0  ;;  %v8611_v0 = vadd.s32 8, %v8296_v21  ;;  %v8629_v21 = vadd.s32 8, %v8335_v59 }
 0x2a2   : > { %v8500_v55 = vpop.permute.xlu2 %1637  ;;  %v8502_v26 = vpop.permute.xlu1 %1634  ;;  %12705 = vst [vmem:[#allocation217_spill] sm:$0xff] %v8521_v34 }
 0x2a3   : > { %12710 = vst [vmem:[#allocation228_spill] sm:$0xff] %v8539_v33  ;;  %vm1675_vm2 = vcmp.eq.s32.totalorder %v8027_v30, %v8502_v26 }
 0x2a4   : > { %12715 = vst [vmem:[#allocation233_spill] sm:$0xff] %v8557_v44 }
 0x2a5   : > { %12721 = vst [vmem:[#allocation239_spill] sm:$0xff] %v8575_v10 }
 0x2a6   : > { %12725 = vst [vmem:[#allocation243_spill] sm:$0xff] %v8593_v4 }
 0x2a7   : > { %12731 = vst [vmem:[#allocation249_spill] sm:$0xff] %v8611_v0 }
 0x2a8   : > { %1993 = vperm.xlu1 %6959, %v8505_v36   ;;  %1857 = vperm.xlu2 %6960, %v8508_v28   ;;  %12738 = vst [vmem:[#allocation255_spill] sm:$0xff] %v8629_v21 }
 0x2a9   : > { %1860 = vperm.xlu0 %6958, %v8511_v7  }
 0x2aa   : > { %v8516_v52 = vpop.permute.xlu2 %1646  ;;  %v8518_v13 = vpop.permute.xlu1 %1643 }
 0x2b0   : > { %2002 = vperm.xlu1 %6959, %v8521_v34   ;;  %1866 = vperm.xlu2 %6960, %v8524_v53  }
 0x2b1   : > { %1869 = vperm.xlu0 %6958, %v8527_v23  }
 0x2b2   : > { %v8532_v7 = vpop.permute.xlu2 %1655  ;;  %v8534_v28 = vpop.permute.xlu1 %1652 }
 0x2b3   : > { %12708 = vst [vmem:[#allocation226_spill] sm:$0xff] %v8532_v7  ;;  %v12744_v7 = vld [vmem:[#allocation19_spill] sm:$0xff] }
 0x2b4   : > { %12709 = vst [vmem:[#allocation227_spill] sm:$0xff] %v8534_v28 }
 0x2b8   : > { %2011 = vperm.xlu1 %6959, %v8539_v33   ;;  %1875 = vperm.xlu2 %6960, %v8542_v51  }
 0x2b9   : > { %1878 = vperm.xlu0 %6958, %v8545_v17  }
 0x2ba   : > { %v8550_v23 = vpop.permute.xlu2 %1664  ;;  %v8552_v53 = vpop.permute.xlu1 %1661 }
 0x2bb   : > { %12713 = vst [vmem:[#allocation231_spill] sm:$0xff] %v8550_v23  ;;  %v8554_v29 = vpop.permute.xlu0 %1640 }
 0x2bc   : > { %12714 = vst [vmem:[#allocation232_spill] sm:$0xff] %v8552_v53 }
 0x2c0   : > { %2020 = vperm.xlu1 %6959, %v8557_v44   ;;  %1996 = vperm.xlu2 %6960, %v8560_v39  }
 0x2c1   : > { %1999 = vperm.xlu0 %6958, %v8563_v58  }
 0x2c2   : > { %v8568_v17 = vpop.permute.xlu2 %1737  ;;  %v8570_v51 = vpop.permute.xlu1 %1670 }
 0x2c3   : > { %12718 = vst [vmem:[#allocation236_spill] sm:$0xff] %v8568_v17  ;;  %v8572_v6 = vpop.permute.xlu0 %1649 }
 0x2c4   : > { %12719 = vst [vmem:[#allocation237_spill] sm:$0xff] %v8570_v51 }
 0x2c5   : > { %12720 = vst [vmem:[#allocation238_spill] sm:$0xff] %v8572_v6  ;;  %v8695_v6 = vadd.s32 1, %v8505_v36  ;;  %v8713_v36 = vadd.s32 1, %v8521_v34  ;;  %v8731_v34 = vadd.s32 1, %v8539_v33  ;;  %v12781_v33 = vld [vmem:[#allocation51_spill] sm:$0xff] }
 0x2c7   : > { %12767 = vst [vmem:[#allocation270_spill] sm:$0xff] %v8695_v6 }
 0x2c8   : > { %2029 = vperm.xlu1 %6959, %v8575_v10   ;;  %2005 = vperm.xlu2 %6960, %v8578_v27   ;;  %v12768_v27 = vld [vmem:[#allocation43_spill] sm:$0xff]  ;;  %12773 = vst [vmem:[#allocation275_spill] sm:$0xff] %v8713_v36 }
 0x2c9   : > { %2008 = vperm.xlu0 %6958, %v8581_v45   ;;  %12777 = vst [vmem:[#allocation279_spill] sm:$0xff] %v8731_v34 }
 0x2ca   : > { %v8586_v32 = vpop.permute.xlu2 %1749  ;;  %v8588_v1 = vpop.permute.xlu1 %1745 }
 0x2cb   : > { %v8590_v18 = vpop.permute.xlu0 %1658 }
 0x2cc   : > { %12724 = vst [vmem:[#allocation242_spill] sm:$0xff] %v8590_v18 }
 0x2d0   : > { %2038 = vperm.xlu1 %6959, %v8593_v4   ;;  %2014 = vperm.xlu2 %6960, %v8596_v22   ;;  %v8710_v22 = vadd.s32 1, %v8563_v58  ;;  %v8728_v58 = vadd.s32 1, %v8581_v45  ;;  %v8746_v45 = vadd.s32 1, %v8557_v44  ;;  %v12786_v44 = vld [vmem:[#allocation55_spill] sm:$0xff] }
 0x2d1   : > { %2017 = vperm.xlu0 %6958, %v8599_v47  }
 0x2d2   : > { %v8604_v51 = vpop.permute.xlu2 %1761  ;;  %v8606_v23 = vpop.permute.xlu1 %1757  ;;  %12772 = vst [vmem:[#allocation274_spill] sm:$0xff] %v8710_v22 }
 0x2d3   : > { %12728 = vst [vmem:[#allocation246_spill] sm:$0xff] %v8604_v51  ;;  %v8608_v40 = vpop.permute.xlu0 %1667 }
 0x2d4   : > { %12729 = vst [vmem:[#allocation247_spill] sm:$0xff] %v8606_v23 }
 0x2d5   : > { %12730 = vst [vmem:[#allocation248_spill] sm:$0xff] %v8608_v40  ;;  %v8626_v40 = vadd.s32 8, %v8330_v12  ;;  %v12745_v12 = vld [vmem:[#allocation15_spill] sm:$0xff] }
 0x2d6   : > { %12776 = vst [vmem:[#allocation278_spill] sm:$0xff] %v8728_v58 }
 0x2d7   : > { %12737 = vst [vmem:[#allocation254_spill] sm:$0xff] %v8626_v40 }
 0x2d8   : > { %2113 = vperm.xlu1 %6959, %v12733_v57   ;;  %2023 = vperm.xlu2 %6960, %v8611_v0   ;;  %12780 = vst [vmem:[#allocation282_spill] sm:$0xff] %v8746_v45 }
 0x2d9   : > { %2026 = vperm.xlu0 %6958, %v8614_v50  }
 0x2da   : > { %v8619_v53 = vpop.permute.xlu2 %1773  ;;  %v8621_v49 = vpop.permute.xlu1 %1769 }
 0x2db   : > { %12734 = vst [vmem:[#allocation251_spill] sm:$0xff] %v8619_v53  ;;  %v8623_v54 = vpop.permute.xlu0 %1741 }
 0x2dc   : > { %12735 = vst [vmem:[#allocation252_spill] sm:$0xff] %v8621_v49 }
 0x2dd   : > { %12736 = vst [vmem:[#allocation253_spill] sm:$0xff] %v8623_v54 }
 0x2e0   : > { %2125 = vperm.xlu1 %6959, %v12739_v62   ;;  %2032 = vperm.xlu2 %6960, %v8626_v40  }
 0x2e1   : > { %2035 = vperm.xlu0 %6958, %v8629_v21  }
 0x2e2   : > { %v8634_v57 = vpop.permute.xlu2 %1785  ;;  %v8636_v18 = vpop.permute.xlu1 %1781 }
 0x2e3   : > { %12740 = vst [vmem:[#allocation256_spill] sm:$0xff] %v8634_v57  ;;  %v8638_v25 = vpop.permute.xlu0 %1753  ;;  %v12751_v57 = vld [vmem:[#allocation28_spill] sm:$0xff] }
 0x2e4   : > { %12741 = vst [vmem:[#allocation257_spill] sm:$0xff] %v8636_v18 }
 0x2e5   : > { %12742 = vst [vmem:[#allocation258_spill] sm:$0xff] %v8638_v25 }
 0x2e8   : > { %2137 = vperm.xlu1 %6959, %v12743_v20   ;;  %2105 = vperm.xlu2 %6960, %v12744_v7   ;;  %v12753_v7 = vld [vmem:[#allocation44_spill] sm:$0xff] }
 0x2e9   : > { %2109 = vperm.xlu0 %6958, %v12745_v12   ;;  %v12754_v12 = vld [vmem:[#allocation25_spill] sm:$0xff] }
 0x2ea   : > { %v8643_v59 = vpop.permute.xlu2 %1797  ;;  %v8645_v53 = vpop.permute.xlu1 %1793 }
 0x2eb   : > { %12746 = vst [vmem:[#allocation259_spill] sm:$0xff] %v8643_v59  ;;  %v8647_v62 = vpop.permute.xlu0 %1765  ;;  %v12755_v59 = vld [vmem:[#allocation34_spill] sm:$0xff] }
 0x2ec   : > { %12747 = vst [vmem:[#allocation260_spill] sm:$0xff] %v8645_v53 }
 0x2ed   : > { %12748 = vst [vmem:[#allocation261_spill] sm:$0xff] %v8647_v62 }
 0x2f0   : > { %2149 = vperm.xlu1 %6959, %v12749_v5   ;;  %2117 = vperm.xlu2 %6960, %v12750_v61   ;;  %v8668_v61 = vadd.s32 1, %v8560_v39  ;;  %v12763_v39 = vld [vmem:[#allocation46_spill] sm:$0xff] }
 0x2f1   : > { %2121 = vperm.xlu0 %6958, %v12751_v57   ;;  %v12758_v57 = vld [vmem:[#allocation31_spill] sm:$0xff] }
 0x2f2   : > { %v8652_v18 = vpop.permute.xlu2 %1839  ;;  %v8654_v28 = vpop.permute.xlu1 %1836  ;;  %12757 = vst [vmem:[#allocation264_spill] sm:$0xff] %v8668_v61 }
 0x2f3   : > { %v8656_v20 = vpop.permute.xlu0 %1777  ;;  %vm1881_vm7 = vcmp.eq.s32.totalorder %v8027_v30, %v8654_v28  ;;  %vm1882_vm13 = vcmp.eq.s32.totalorder %v8027_v30, %v8652_v18 }
 0x2f4   : > { %12752 = vst [vmem:[#allocation262_spill] sm:$0xff] %v8656_v20  ;;  %v12759_v20 = vld [vmem:[#allocation40_spill] sm:$0xff]  ;;  %v6350_v28 = vsel %vm1881_vm7, 1.0, %v12602_v41 }
 0x2f5   : > { %v1929_v15 = vmul.f32 %v6350_v28, %v7541_v16  ;;  %v12840_v28 = vld [vmem:[#allocation121_spill] sm:$0xff] }
 0x2f8   : > { %2161 = vperm.xlu1 %6959, %v12753_v7   ;;  %2129 = vperm.xlu2 %6960, %v12754_v12  }
 0x2f9   : > { %2133 = vperm.xlu0 %6958, %v12755_v59  }
 0x2fa   : > { %v8661_v53 = vpop.permute.xlu2 %1848  ;;  %v8663_v49 = vpop.permute.xlu1 %1845 }
 0x2fb   : > { %v8665_v5 = vpop.permute.xlu0 %1789 }
 0x2fc   : > { %12756 = vst [vmem:[#allocation263_spill] sm:$0xff] %v8665_v5  ;;  %v12762_v5 = vld [vmem:[#allocation37_spill] sm:$0xff] }
 0x300   : > { %2220 = vperm.xlu1 %6959, %v8668_v61   ;;  %2141 = vperm.xlu2 %6960, %v12758_v57  }
 0x301   : > { %2145 = vperm.xlu0 %6958, %v12759_v20  }
 0x302   : > { %v8673_v7 = vpop.permute.xlu2 %1857  ;;  %v8675_v12 = vpop.permute.xlu1 %1854 }
 0x303   : > { %12760 = vst [vmem:[#allocation265_spill] sm:$0xff] %v8673_v7  ;;  %v8677_v59 = vpop.permute.xlu0 %1833  ;;  %v12828_v7 = vld [vmem:[#allocation107_spill] sm:$0xff] }
 0x304   : > { %vm1880_vm4 = vcmp.eq.s32.totalorder %v8027_v30, %v8677_v59  ;;  %v6333_v59 = vsel %vm1672_vm5, 1.0, %v12602_v41  ;;  %vm1884_vm5 = vcmp.eq.s32.totalorder %v8027_v30, %v8663_v49 }
 0x305   : > { %v1720_v35 = vmul.f32 %v6333_v59, %v7499_v11  ;;  %v6334_v59 = vsel %vm1673_vm8, 1.0, %v12602_v41 }
 0x308   : > { %2229 = vperm.xlu1 %6959, %v8680_v43   ;;  %2153 = vperm.xlu2 %6960, %v12762_v5  }
 0x309   : > { %2157 = vperm.xlu0 %6958, %v12763_v39  }
 0x30a   : > { %v8685_v61 = vpop.permute.xlu2 %1866  ;;  %v8687_v57 = vpop.permute.xlu1 %1863 }
 0x30b   : > { %12764 = vst [vmem:[#allocation267_spill] sm:$0xff] %v8685_v61  ;;  %v8689_v20 = vpop.permute.xlu0 %1842  ;;  %v8707_v61 = vadd.s32 1, %v8611_v0  ;;  %v8725_v0 = vadd.s32 1, %v8626_v40  ;;  %v8743_v40 = vadd.s32 1, %v8599_v47  ;;  %v8761_v47 = vadd.s32 1, %v8575_v10  ;;  %v12791_v10 = vld [vmem:[#allocation66_spill] sm:$0xff] }
 0x30c   : > { %12765 = vst [vmem:[#allocation268_spill] sm:$0xff] %v8687_v57  ;;  %vm1883_vm1 = vcmp.eq.s32.totalorder %v8027_v30, %v8689_v20 }
 0x30d   : > { %12771 = vst [vmem:[#allocation273_spill] sm:$0xff] %v8707_v61 }
 0x30e   : > { %12775 = vst [vmem:[#allocation277_spill] sm:$0xff] %v8725_v0 }
 0x30f   : > { %12779 = vst [vmem:[#allocation281_spill] sm:$0xff] %v8743_v40 }
 0x310   : > { %2238 = vperm.xlu1 %6959, %v8692_v31   ;;  %2165 = vperm.xlu2 %6960, %v12768_v27   ;;  %12785 = vst [vmem:[#allocation286_spill] sm:$0xff] %v8761_v47 }
 0x311   : > { %2217 = vperm.xlu0 %6958, %v8695_v6  }
 0x312   : > { %v8700_v43 = vpop.permute.xlu2 %1875  ;;  %v8702_v39 = vpop.permute.xlu1 %1872 }
 0x313   : > { %12769 = vst [vmem:[#allocation271_spill] sm:$0xff] %v8700_v43  ;;  %v8704_v5 = vpop.permute.xlu0 %1851  ;;  %v8758_v43 = vadd.s32 1, %v8614_v50  ;;  %v8776_v50 = vadd.s32 1, %v8593_v4 }
 0x314   : > { %12770 = vst [vmem:[#allocation272_spill] sm:$0xff] %v8702_v39  ;;  %v12794_v39 = vld [vmem:[#allocation72_spill] sm:$0xff] }
 0x315   : > { %12784 = vst [vmem:[#allocation285_spill] sm:$0xff] %v8758_v43 }
 0x316   : > { %12790 = vst [vmem:[#allocation290_spill] sm:$0xff] %v8776_v50 }
 0x318   : > { %2247 = vperm.xlu1 %6959, %v8707_v61   ;;  %2223 = vperm.xlu2 %6960, %v8710_v22  }
 0x319   : > { %2226 = vperm.xlu0 %6958, %v8713_v36  }
 0x31a   : > { %v8718_v27 = vpop.permute.xlu2 %1996  ;;  %v8720_v31 = vpop.permute.xlu1 %1993 }
 0x31b   : > { %v8722_v6 = vpop.permute.xlu0 %1860  ;;  %vm2040_vm6 = vcmp.eq.s32.totalorder %v8027_v30, %v8720_v31  ;;  %vm2041_vm9 = vcmp.eq.s32.totalorder %v8027_v30, %v8718_v27 }
 0x31c   : > { %12774 = vst [vmem:[#allocation276_spill] sm:$0xff] %v8722_v6 }
 0x320   : > { %2256 = vperm.xlu1 %6959, %v8725_v0   ;;  %2232 = vperm.xlu2 %6960, %v8728_v58  }
 0x321   : > { %2235 = vperm.xlu0 %6958, %v8731_v34  }
 0x322   : > { %v8736_v61 = vpop.permute.xlu2 %2005  ;;  %v8738_v36 = vpop.permute.xlu1 %2002 }
 0x323   : > { %v8740_v22 = vpop.permute.xlu0 %1869  ;;  %vm2043_vm3 = vcmp.eq.s32.totalorder %v8027_v30, %v8738_v36  ;;  %v12844_v36 = vld [vmem:[#allocation128_spill] sm:$0xff]  ;;  %vm2044_vm7 = vcmp.eq.s32.totalorder %v8027_v30, %v8736_v61 }
 0x324   : > { %12778 = vst [vmem:[#allocation280_spill] sm:$0xff] %v8740_v22  ;;  %v12795_v22 = vld [vmem:[#allocation56_spill] sm:$0xff] }
 0x325   : > { %v12847_v61 = vld [vmem:[#allocation132_spill] sm:$0xff] }
 0x328   : > { %2499 = vperm.xlu1 %6959, %v12781_v33   ;;  %2241 = vperm.xlu2 %6960, %v8743_v40  }
 0x329   : > { %2244 = vperm.xlu0 %6958, %v8746_v45  }
 0x32a   : > { %v8751_v0 = vpop.permute.xlu2 %2014  ;;  %v8753_v34 = vpop.permute.xlu1 %2011 }
 0x32b   : > { %12782 = vst [vmem:[#allocation283_spill] sm:$0xff] %v8751_v0  ;;  %v8755_v58 = vpop.permute.xlu0 %1878 }
 0x32c   : > { %12783 = vst [vmem:[#allocation284_spill] sm:$0xff] %v8755_v58  ;;  %v8773_v58 = vadd.s32 1, %v8629_v21  ;;  %v12796_v21 = vld [vmem:[#allocation58_spill] sm:$0xff] }
 0x32e   : > { %12789 = vst [vmem:[#allocation289_spill] sm:$0xff] %v8773_v58 }
 0x330   : > { %2508 = vperm.xlu1 %6959, %v12786_v44   ;;  %2250 = vperm.xlu2 %6960, %v8758_v43  }
 0x331   : > { %2253 = vperm.xlu0 %6958, %v8761_v47  }
 0x332   : > { %v8766_v40 = vpop.permute.xlu2 %2023  ;;  %v8768_v45 = vpop.permute.xlu1 %2020 }
 0x333   : > { %12787 = vst [vmem:[#allocation287_spill] sm:$0xff] %v8766_v40  ;;  %v8770_v33 = vpop.permute.xlu0 %1999 }
 0x334   : > { %12788 = vst [vmem:[#allocation288_spill] sm:$0xff] %v8768_v45  ;;  %v12805_v45 = vld [vmem:[#allocation67_spill] sm:$0xff]  ;;  %vm2042_vm15 = vcmp.eq.s32.totalorder %v8027_v30, %v8770_v33  ;;  %v12841_v33 = vld [vmem:[#allocation124_spill] sm:$0xff] }
 0x338   : > { %2517 = vperm.xlu1 %6959, %v12791_v10   ;;  %2259 = vperm.xlu2 %6960, %v8773_v58   ;;  %v12799_v58 = vld [vmem:[#allocation78_spill] sm:$0xff] }
 0x339   : > { %2262 = vperm.xlu0 %6958, %v8776_v50   ;;  %v12800_v50 = vld [vmem:[#allocation62_spill] sm:$0xff] }
 0x33a   : > { %v8781_v43 = vpop.permute.xlu2 %2032  ;;  %v8783_v47 = vpop.permute.xlu1 %2029 }
 0x33b   : > { %12792 = vst [vmem:[#allocation291_spill] sm:$0xff] %v8781_v43  ;;  %v8785_v44 = vpop.permute.xlu0 %2008  ;;  %v12801_v43 = vld [vmem:[#allocation60_spill] sm:$0xff] }
 0x33c   : > { %12793 = vst [vmem:[#allocation292_spill] sm:$0xff] %v8783_v47 }
 0x340   : > { %2526 = vperm.xlu1 %6959, %v12794_v39   ;;  %2502 = vperm.xlu2 %6960, %v12795_v22   ;;  %v12803_v22 = vld [vmem:[#allocation82_spill] sm:$0xff] }
 0x341   : > { %2505 = vperm.xlu0 %6958, %v12796_v21   ;;  %v12804_v21 = vld [vmem:[#allocation63_spill] sm:$0xff] }
 0x342   : > { %v8790_v4 = vpop.permute.xlu2 %2105  ;;  %v8792_v40 = vpop.permute.xlu1 %2038 }
 0x343   : > { %12797 = vst [vmem:[#allocation293_spill] sm:$0xff] %v8792_v40  ;;  %v8794_v10 = vpop.permute.xlu0 %2017 }
 0x344   : > { %12798 = vst [vmem:[#allocation294_spill] sm:$0xff] %v8794_v10  ;;  %v12811_v10 = vld [vmem:[#allocation73_spill] sm:$0xff] }
 0x348   : > { %2535 = vperm.xlu1 %6959, %v12799_v58   ;;  %2511 = vperm.xlu2 %6960, %v12800_v50   ;;  %v12809_v50 = vld [vmem:[#allocation95_spill] sm:$0xff] }
 0x349   : > { %2514 = vperm.xlu0 %6958, %v12801_v43   ;;  %v12810_v43 = vld [vmem:[#allocation69_spill] sm:$0xff] }
 0x34a   : > { %v8799_v47 = vpop.permute.xlu2 %2117  ;;  %v8801_v57 = vpop.permute.xlu1 %2113 }
 0x34b   : > { %v8803_v39 = vpop.permute.xlu0 %2026 }
 0x34c   : > { %12802 = vst [vmem:[#allocation295_spill] sm:$0xff] %v8803_v39 }
 0x350   : > { %2544 = vperm.xlu1 %6959, %v12803_v22   ;;  %2520 = vperm.xlu2 %6960, %v12804_v21   ;;  %v6403_v21 = vld [vmem:[%s11750_s1 + $0x70] sm:$0xff] }
 0x351   : > { %2523 = vperm.xlu0 %6958, %v12805_v45   ;;  %v6404_v45 = vld [vmem:[%s11750_s1 + $0x78] sm:$0xff] }
 0x352   : > { %v8808_v40 = vpop.permute.xlu2 %2129  ;;  %v8810_v6 = vpop.permute.xlu1 %2125  ;;  %2425 = vmatpush.msra.mxu1 %v6404_v45  ;;  %v6401_v45 = vld [vmem:[%s11750_s1 + $0x60] sm:$0xff] }
 0x353   : > { %12806 = vst [vmem:[#allocation296_spill] sm:$0xff] %v8808_v40  ;;  %v8812_v58 = vpop.permute.xlu0 %2035  ;;  %v12836_v40 = vld [vmem:[#allocation117_spill] sm:$0xff] }
 0x354   : > { %12807 = vst [vmem:[#allocation297_spill] sm:$0xff] %v8810_v6  ;;  %2426 = vmatpush.msra.mxu1 %v6403_v21 }
 0x355   : > { %12808 = vst [vmem:[#allocation298_spill] sm:$0xff] %v8812_v58  ;;  %v12816_v58 = vld [vmem:[#allocation79_spill] sm:$0xff] }
 0x358   : > { %2633 = vperm.xlu1 %6959, %v12809_v50   ;;  %2529 = vperm.xlu2 %6960, %v12810_v43   ;;  %v12814_v43 = vld [vmem:[#allocation100_spill] sm:$0xff]  ;;  %v12815_v50 = vld [vmem:[#allocation75_spill] sm:$0xff] }
 0x359   : > { %2532 = vperm.xlu0 %6958, %v12811_v10   ;;  %v6402_v10 = vld [vmem:[%s11750_s1 + $0x68] sm:$0xff] }
 0x35a   : > { %v8817_v62 = vpop.permute.xlu2 %2141  ;;  %v8819_v39 = vpop.permute.xlu1 %2137  ;;  %2427 = vmatpush.msra.mxu1 %v6402_v10  ;;  %v6399_v10 = vld [vmem:[%s11750_s1 + $0x50] sm:$0xff] }
 0x35b   : > { %12812 = vst [vmem:[#allocation299_spill] sm:$0xff] %v8817_v62  ;;  %v8821_v22 = vpop.permute.xlu0 %2109 }
 0x35c   : > { %12813 = vst [vmem:[#allocation300_spill] sm:$0xff] %v8819_v39  ;;  %2428 = vmatpush.msra.mxu1 %v6401_v45 }
 0x360   : > { %2642 = vperm.xlu1 %6959, %v12814_v43   ;;  %2538 = vperm.xlu2 %6960, %v12815_v50   ;;  %v6400_v43 = vld [vmem:[%s11750_s1 + $0x58] sm:$0xff]  ;;  %v12821_v50 = vld [vmem:[#allocation98_spill] sm:$0xff] }
 0x361   : > { %2541 = vperm.xlu0 %6958, %v12816_v58   ;;  %2429 = vmatpush.msra.mxu1 %v6400_v43  ;;  %v12820_v58 = vld [vmem:[#allocation105_spill] sm:$0xff]  ;;  %v6397_v43 = vld [vmem:[%s11750_s1 + $0x40] sm:$0xff] }
 0x362   : > { %v8838_v62 = vpop.permute.xlu2 %2153  ;;  %v8840_v39 = vpop.permute.xlu1 %2149 }
 0x363   : > { %12817 = vst [vmem:[#allocation301_spill] sm:$0xff] %v8838_v62  ;;  %v8842_v21 = vpop.permute.xlu0 %2121  ;;  %2430 = vmatpush.msra.mxu1 %v6399_v10  ;;  %v6398_v62 = vld [vmem:[%s11750_s1 + $0x48] sm:$0xff] }
 0x364   : > { %12818 = vst [vmem:[#allocation302_spill] sm:$0xff] %v8840_v39  ;;  %v12822_v39 = vld [vmem:[#allocation102_spill] sm:$0xff] }
 0x365   : > { %12819 = vst [vmem:[#allocation303_spill] sm:$0xff] %v8842_v21  ;;  %2431 = vmatpush.msra.mxu1 %v6398_v62 }
 0x367   : > { %2432 = vmatpush.msra.mxu1 %v6397_v43 }
 0x368   : > { %2651 = vperm.xlu1 %6959, %v12820_v58   ;;  %2627 = vperm.xlu2 %6960, %v12821_v50   ;;  %v12826_v58 = vld [vmem:[#allocation110_spill] sm:$0xff]  ;;  %v12827_v50 = vld [vmem:[#allocation103_spill] sm:$0xff] }
 0x369   : > { %2630 = vperm.xlu0 %6958, %v12822_v39  }
 0x36a   : > { %v8859_v45 = vpop.permute.xlu2 %2165  ;;  %v8861_v8 = vpop.permute.xlu1 %2161 }
 0x36b   : > { %12823 = vst [vmem:[#allocation304_spill] sm:$0xff] %v8859_v45  ;;  %v8863_v10 = vpop.permute.xlu0 %2133  ;;  %v12830_v45 = vld [vmem:[#allocation115_spill] sm:$0xff] }
 0x36c   : > { %12824 = vst [vmem:[#allocation305_spill] sm:$0xff] %v8861_v8  ;;  %v12831_v8 = vld [vmem:[#allocation108_spill] sm:$0xff] }
 0x36d   : > { %12825 = vst [vmem:[#allocation306_spill] sm:$0xff] %v8863_v10  ;;  %v12832_v10 = vld [vmem:[#allocation112_spill] sm:$0xff] }
 0x370   : > { %2660 = vperm.xlu1 %6959, %v12826_v58   ;;  %2636 = vperm.xlu2 %6960, %v12827_v50  }
 0x371   : > { %2639 = vperm.xlu0 %6958, %v12828_v7   ;;  %v6349_v7 = vsel %vm1880_vm4, 1.0, %v12602_v41 }
 0x372   : > { %v8868_v48 = vpop.permute.xlu2 %2223  ;;  %v2221_v62 = vpop.permute.xlu1 %2220 }
 0x373   : > { %v8870_v39 = vpop.permute.xlu0 %2145  ;;  %vm2265_vm11 = vcmp.eq.s32.totalorder %v8027_v30, %v2221_v62  ;;  %v12839_v62 = vld [vmem:[#allocation118_spill] sm:$0xff]  ;;  %vm2266_vm0 = vcmp.eq.s32.totalorder %v8027_v30, %v8868_v48 }
 0x374   : > { %12829 = vst [vmem:[#allocation307_spill] sm:$0xff] %v8870_v39  ;;  %v12835_v39 = vld [vmem:[#allocation113_spill] sm:$0xff]  ;;  %v12842_v48 = vld [vmem:[#allocation122_spill] sm:$0xff] }
 0x378   : > { %2669 = vperm.xlu1 %6959, %v12830_v45   ;;  %2645 = vperm.xlu2 %6960, %v12831_v8   ;;  %v1928_v45 = vmul.f32 %v6349_v7, %v7809_v24  ;;  %v12834_v8 = vld [vmem:[#allocation147_spill] sm:$0xff] }
 0x379   : > { %2648 = vperm.xlu0 %6958, %v12832_v10   ;;  %v6365_v10 = vsel %vm2040_vm6, 1.0, %v12602_v41  ;;  %vm1676_vm6 = vcmp.eq.s32.totalorder %v8027_v30, %v8500_v55 }
 0x37a   : > { %v8877_v43 = vpop.permute.xlu2 %2232  ;;  %v8879_v58 = vpop.permute.xlu1 %2229  ;;  %v2088_v31 = vmul.f32 %v6365_v10, %v7499_v11 }
 0x37b   : > { %v8884_v50 = vpop.permute.xlu0 %2157  ;;  %vm2268_vm8 = vcmp.eq.s32.totalorder %v8027_v30, %v8879_v58  ;;  %v12848_v58 = vld [vmem:[#allocation152_spill] sm:$0xff] }
 0x37c   : > { %12833 = vst [vmem:[#allocation308_spill] sm:$0xff] %v8884_v50  ;;  %v1944_v50 = vmul.f32 %v1928_v45, %v8568_v17  ;;  %v2168_v45 = vmul.f32 %v8790_v4, %v2088_v31 }
 0x380   : > { %2774 = vperm.xlu1 %6959, %v12834_v8   ;;  %2654 = vperm.xlu2 %6960, %v12835_v39   ;;  %v1800_v8 = vmul.f32 %v8568_v17, %v1720_v35  ;;  %v6366_v35 = vsel %vm2041_vm9, 1.0, %v12602_v41  ;;  %v6382_v17 = vsel %vm2265_vm11, 1.0, %v12602_v41  ;;  %vm1885_vm9 = vcmp.eq.s32.totalorder %v8027_v30, %v8661_v53 }
 0x381   : > { %2657 = vperm.xlu0 %6958, %v12836_v40   ;;  %vm1677_vm11 = vcmp.eq.s32.totalorder %v8027_v30, %v8554_v29 }
 0x382   : > { %v8899_v0 = vpop.permute.xlu2 %2241  ;;  %v8901_v7 = vpop.permute.xlu1 %2238  ;;  %v1960_v40 = vadd.f32 %v1944_v50, %v1800_v8  ;;  %v1945_v8 = vmul.f32 %v1929_v15, %v8623_v54  ;;  %v2089_v50 = vmul.f32 %v6366_v35, %v7508_v9  ;;  %v6335_v15 = vsel %vm1674_vm14, 1.0, %v12602_v41 }
 0x383   : > { %12837 = vst [vmem:[#allocation309_spill] sm:$0xff] %v8899_v0  ;;  %v2218_v39 = vpop.permute.xlu0 %2217  ;;  %v1721_v0 = vmul.f32 %v6334_v59, %v7508_v9  ;;  %vm1886_vm14 = vcmp.eq.s32.totalorder %v8027_v30, %v8704_v5  ;;  %v12880_v9 = vld [vmem:[#allocation227_spill] sm:$0xff] }
 0x384   : > { %vm2264_vm12 = vcmp.eq.s32.totalorder %v8027_v30, %v2218_v39  ;;  %v12838_v39 = vld [vmem:[#allocation151_spill] sm:$0xff]  ;;  %v2184_v31 = vadd.f32 %v2168_v45, %v1960_v40  ;;  %v6351_v40 = vsel %vm1882_vm13, 1.0, %v12602_v41  ;;  %vm2269_vm13 = vcmp.eq.s32.totalorder %v8027_v30, %v8877_v43 }
 0x385   : > { %v6381_v10 = vsel %vm2264_vm12, 1.0, %v12602_v41  ;;  %v1801_v59 = vmul.f32 %v8623_v54, %v1721_v0  ;;  %v1930_v35 = vmul.f32 %v6351_v40, %v7840_v14  ;;  %v6383_v0 = vsel %vm2266_vm0, 1.0, %v12602_v41  ;;  %v12851_v43 = vld [vmem:[#allocation183_spill] sm:$0xff] }
 0x386   : > { %v2312_v11 = vmul.f32 %v6381_v10, %v7809_v24  ;;  %v2313_v10 = vmul.f32 %v6382_v17, %v7541_v16  ;;  %v2169_v17 = vmul.f32 %v8821_v22, %v2089_v50  ;;  %v1722_v50 = vmul.f32 %v6335_v15, %v7493_v46  ;;  %v12884_v16 = vld [vmem:[#allocation268_spill] sm:$0xff] }
 0x387   : > { %v1961_v56 = vadd.f32 %v1945_v8, %v1801_v59  ;;  %v1946_v8 = vmul.f32 %v1930_v35, %v8588_v1  ;;  %v2314_v40 = vmul.f32 %v6383_v0, %v7840_v14  ;;  %vm2045_vm12 = vcmp.eq.s32.totalorder %v8027_v30, %v8785_v44  ;;  %v12850_v44 = vld [vmem:[#allocation155_spill] sm:$0xff] }
 0x388   : > { %v2328_v27 = vmul.f32 %v2312_v11, %v8790_v4  ;;  %2783 = vperm.xlu1 %6959, %v12838_v39   ;;  %2663 = vperm.xlu2 %6960, %v12839_v62   ;;  %v1802_v15 = vmul.f32 %v8588_v1, %v1722_v50  ;;  %vm2046_vm0 = vcmp.eq.s32.totalorder %v8027_v30, %v8753_v34  ;;  %v12853_v34 = vld [vmem:[#allocation159_spill] sm:$0xff] }
 0x389   : > { %2666 = vperm.xlu0 %6958, %v12840_v28   ;;  %v12843_v28 = vld [vmem:[#allocation143_spill] sm:$0xff]  ;;  %v2330_v0 = vmul.f32 %v2314_v40, %v8801_v57 }
 0x38a   : > { %v8928_v24 = vpop.permute.xlu2 %2250  ;;  %v8930_v18 = vpop.permute.xlu1 %2247  ;;  %v2344_v11 = vadd.f32 %v2328_v27, %v2184_v31  ;;  %v2329_v27 = vmul.f32 %v2313_v10, %v8821_v22  ;;  %v6367_v31 = vsel %vm2042_vm15, 1.0, %v12602_v41  ;;  %vm1678_vm15 = vcmp.eq.s32.totalorder %v8027_v30, %v8518_v13 }
 0x38b   : > { %v2227_v45 = vpop.permute.xlu0 %2226  ;;  %v2090_v10 = vmul.f32 %v6367_v31, %v7493_v46  ;;  %v1962_v31 = vadd.f32 %v1946_v8, %v1802_v15  ;;  %v12877_v46 = vld [vmem:[#allocation157_spill] sm:$0xff] }
 0x38c   : > { %6405 = vmatmul.msk.f32.vlgmr.msra.gmra.mxu1 %vm1462_vm10, %v2344_v11  ;;  %v2185_v11 = vadd.f32 %v2169_v17, %v1961_v56  ;;  %v6352_v17 = vsel %vm1883_vm1, 1.0, %v12602_v41  ;;  %vm2267_vm4 = vcmp.eq.s32.totalorder %v8027_v30, %v2227_v45  ;;  %v12845_v45 = vld [vmem:[#allocation120_spill] sm:$0xff] }
 0x38d   : > { %v2170_v35 = vmul.f32 %v8801_v57, %v2090_v10  ;;  %v1931_v26 = vmul.f32 %v6352_v17, %v7821_v2  ;;  %v6384_v50 = vsel %vm2267_vm4, 1.0, %v12602_v41 }
 0x38e   : > { %v2345_v20 = vadd.f32 %v2329_v27, %v2185_v11  ;;  %v6336_v27 = vsel %vm1675_vm2, 1.0, %v12602_v41  ;;  %v6368_v11 = vsel %vm2043_vm3, 1.0, %v12602_v41  ;;  %v2315_v17 = vmul.f32 %v6384_v50, %v7821_v2  ;;  %v12868_v2 = vld [vmem:[#allocation238_spill] sm:$0xff] }
 0x38f   : > { %v1723_v10 = vmul.f32 %v6336_v27, %v7519_v3  ;;  %v1947_v8 = vmul.f32 %v1931_v26, %v8586_v32  ;;  %v2091_v40 = vmul.f32 %v6368_v11, %v7519_v3  ;;  %vm1887_vm2 = vcmp.eq.s32.totalorder %v8027_v30, %v8675_v12 }
 0x390   : > { %2792 = vperm.xlu1 %6959, %v12841_v33   ;;  %2672 = vperm.xlu2 %6960, %v12842_v48   ;;  %v12846_v48 = vld [vmem:[#allocation148_spill] sm:$0xff]  ;;  %v2331_v50 = vmul.f32 %v2315_v17, %v8799_v47  ;;  %vm1679_vm3 = vcmp.eq.s32.totalorder %v8027_v30, %v8516_v52 }
 0x391   : > { %2771 = vperm.xlu0 %6958, %v12843_v28   ;;  %v1803_v27 = vmul.f32 %v8586_v32, %v1723_v10  ;;  %v2171_v26 = vmul.f32 %v8799_v47, %v2091_v40  ;;  %v6385_v10 = vsel %vm2268_vm8, 1.0, %v12602_v41  ;;  %v12899_v28 = vld [vmem:[#allocation166_spill] sm:$0xff] }
 0x392   : > { %v8956_v59 = vpop.permute.xlu2 %2259  ;;  %v8958_v62 = vpop.permute.xlu1 %2256 }
 0x393   : > { %v8963_v56 = vpop.permute.xlu0 %2235  ;;  %v1963_v11 = vadd.f32 %v1947_v8, %v1803_v27 }
 0x394   : > { %6406 = vmatmul.msk.f32.gmra.mxu1 %vm1462_vm10, %v2345_v20  ;;  %v2186_v20 = vadd.f32 %v2170_v35, %v1962_v31  ;;  %v6353_v35 = vsel %vm1884_vm5, 1.0, %v12602_v41  ;;  %vm2270_vm1 = vcmp.eq.s32.totalorder %v8027_v30, %v8963_v56  ;;  %v12854_v56 = vld [vmem:[#allocation188_spill] sm:$0xff]  ;;  %vm2271_vm5 = vcmp.eq.s32.totalorder %v8027_v30, %v8901_v7 }
 0x395   : > { %v1932_v55 = vmul.f32 %v6353_v35, %v7850_v19  ;;  %v2316_v35 = vmul.f32 %v6385_v10, %v7850_v19  ;;  %v12862_v7 = vld [vmem:[#allocation192_spill] sm:$0xff] }
 0x396   : > { %v2346_v49 = vadd.f32 %v2330_v0, %v2186_v20  ;;  %v6337_v0 = vsel %vm1676_vm6, 1.0, %v12602_v41  ;;  %v6369_v20 = vsel %vm2044_vm7, 1.0, %v12602_v41  ;;  %vm1680_vm7 = vcmp.eq.s32.totalorder %v8027_v30, %v12868_v2 }
 0x397   : > { %v1724_v40 = vmul.f32 %v6337_v0, %v7503_v63  ;;  %v1948_v8 = vmul.f32 %v1932_v55, %v8638_v25  ;;  %v2092_v17 = vmul.f32 %v6369_v20, %v7503_v63  ;;  %v2332_v10 = vmul.f32 %v2316_v35, %v8842_v21 }
 0x398   : > { %2801 = vperm.xlu1 %6959, %v12844_v36   ;;  %2777 = vperm.xlu2 %6960, %v12845_v45   ;;  %v12849_v36 = vld [vmem:[#allocation154_spill] sm:$0xff] }
 0x399   : > { %2780 = vperm.xlu0 %6958, %v12846_v48   ;;  %v1804_v0 = vmul.f32 %v8638_v25, %v1724_v40  ;;  %v2172_v55 = vmul.f32 %v8842_v21, %v2092_v17  ;;  %v6386_v40 = vsel %vm2269_vm13, 1.0, %v12602_v41 }
 0x39a   : > { %v8985_v15 = vpop.permute.xlu2 %2502  ;;  %v8987_v33 = vpop.permute.xlu1 %2499 }
 0x39b   : > { %v8992_v31 = vpop.permute.xlu0 %2244  ;;  %v1964_v20 = vadd.f32 %v1948_v8, %v1804_v0 }
 0x39c   : > { %6407 = vmatmul.msk.f32.gmra.mxu1 %vm1462_vm10, %v2346_v49  ;;  %v2187_v49 = vadd.f32 %v2171_v26, %v1963_v11  ;;  %v6354_v26 = vsel %vm1885_vm9, 1.0, %v12602_v41 }
 0x39d   : > { %v1933_v29 = vmul.f32 %v6354_v26, %v7830_v42  ;;  %v2317_v26 = vmul.f32 %v6386_v40, %v7830_v42  ;;  %v12864_v42 = vld [vmem:[#allocation168_spill] sm:$0xff] }
 0x39e   : > { %v2347_v53 = vadd.f32 %v2331_v50, %v2187_v49  ;;  %v6338_v50 = vsel %vm1677_vm11, 1.0, %v12602_v41  ;;  %v6370_v49 = vsel %vm2045_vm12, 1.0, %v12602_v41  ;;  %vm1681_vm12 = vcmp.eq.s32.totalorder %v8027_v30, %v12880_v9  ;;  %v12883_v9 = vld [vmem:[#allocation106_spill] sm:$0xff] }
 0x39f   : > { %v1725_v17 = vmul.f32 %v6338_v50, %v7506_v38  ;;  %v1949_v8 = vmul.f32 %v1933_v29, %v8606_v23  ;;  %v2093_v35 = vmul.f32 %v6370_v49, %v7506_v38  ;;  %v2333_v40 = vmul.f32 %v2317_v26, %v8810_v6 }
 0x3a0   : > { %2810 = vperm.xlu1 %6959, %v12847_v61   ;;  %2786 = vperm.xlu2 %6960, %v12848_v58   ;;  %v12852_v61 = vld [vmem:[#allocation158_spill] sm:$0xff] }
 0x3a1   : > { %2789 = vperm.xlu0 %6958, %v12849_v36   ;;  %v1805_v50 = vmul.f32 %v8606_v23, %v1725_v17  ;;  %v2173_v29 = vmul.f32 %v8810_v6, %v2093_v35  ;;  %v6387_v17 = vsel %vm2270_vm1, 1.0, %v12602_v41 }
 0x3a2   : > { %v9015_v27 = vpop.permute.xlu2 %2511  ;;  %v9017_v3 = vpop.permute.xlu1 %2508 }
 0x3a3   : > { %v9022_v11 = vpop.permute.xlu0 %2253  ;;  %v1965_v49 = vadd.f32 %v1949_v8, %v1805_v50 }
 0x3a4   : > { %6408 = vmatmul.msk.f32.gmra.mxu1 %vm1462_vm10, %v2347_v53  ;;  %v2188_v53 = vadd.f32 %v2172_v55, %v1964_v20  ;;  %v6355_v55 = vsel %vm1886_vm14, 1.0, %v12602_v41  ;;  %vm2273_vm14 = vcmp.eq.s32.totalorder %v8027_v30, %v8992_v31  ;;  %v12886_v31 = vld [vmem:[#allocation199_spill] sm:$0xff] }
 0x3a5   : > { %v1934_v13 = vmul.f32 %v6355_v55, %v12587_v60  ;;  %v2318_v55 = vmul.f32 %v6387_v17, %v12587_v60  ;;  %v12859_v17 = vld [vmem:[#allocation185_spill] sm:$0xff] }
 0x3a6   : > { %v2348_v5 = vadd.f32 %v2332_v10, %v2188_v53  ;;  %v6339_v10 = vsel %vm1678_vm15, 1.0, %v12602_v41  ;;  %v6371_v53 = vsel %vm2046_vm0, 1.0, %v12602_v41  ;;  %v12860_v60 = vld [vmem:[#allocation265_spill] sm:$0xff]  ;;  %vm1890_vm15 = vcmp.eq.s32.totalorder %v8027_v30, %v12884_v16 }
 0x3a7   : > { %v1726_v35 = vmul.f32 %v6339_v10, %v12589_v37  ;;  %v1950_v8 = vmul.f32 %v1934_v13, %v8604_v51  ;;  %v2094_v26 = vmul.f32 %v6371_v53, %v12589_v37  ;;  %v12858_v13 = vld [vmem:[#allocation296_spill] sm:$0xff]  ;;  %vm1888_vm6 = vcmp.eq.s32.totalorder %v8027_v30, %v12860_v60 }
 0x3a8   : > { %2795 = vperm.xlu2 %6960, %v12850_v44   ;;  %2915 = vperm.xlu1 %6959, %v12851_v43  }
 0x3a9   : > { %2798 = vperm.xlu0 %6958, %v12852_v61   ;;  %v12855_v61 = vld [vmem:[#allocation163_spill] sm:$0xff]  ;;  %v1806_v10 = vmul.f32 %v8604_v51, %v1726_v35  ;;  %v2174_v53 = vmul.f32 %v12858_v13, %v2094_v26  ;;  %v6388_v35 = vsel %vm2271_vm5, 1.0, %v12602_v41 }
 0x3aa   : > { %v9045_v0 = vpop.permute.xlu2 %2520  ;;  %v9047_v63 = vpop.permute.xlu1 %2517  ;;  %v12863_v26 = vld [vmem:[#allocation87_spill] sm:$0xff] }
 0x3ab   : > { %v9052_v20 = vpop.permute.xlu0 %2262 }
 0x3ac   : > { %6409 = vmatmul.msk.f32.gmra.mxu1 %vm1462_vm10, %v2348_v5  ;;  %v2189_v5 = vadd.f32 %v2173_v29, %v1965_v49  ;;  %v6356_v29 = vsel %vm1887_vm2, 1.0, %v12602_v41  ;;  %vm2274_vm2 = vcmp.eq.s32.totalorder %v8027_v30, %v8930_v18  ;;  %v12897_v18 = vld [vmem:[#allocation203_spill] sm:$0xff] }
 0x3ad   : > { %v1935_v52 = vmul.f32 %v6356_v29, %v12859_v17  ;;  %v12865_v29 = vld [vmem:[#allocation261_spill] sm:$0xff] }
 0x3ae   : > { %v2349_v12 = vadd.f32 %v2333_v40, %v2189_v5  ;;  %v6340_v40 = vsel %vm1679_vm3, 1.0, %v12602_v41  ;;  %v1966_v5 = vadd.f32 %v1950_v8, %v1806_v10  ;;  %v2319_v10 = vmul.f32 %v6388_v35, %v12859_v17 }
 0x3af   : > { %v1727_v38 = vmul.f32 %v6340_v40, %v12863_v26  ;;  %v1951_v8 = vmul.f32 %v1935_v52, %v12865_v29  ;;  %v12871_v52 = vld [vmem:[#allocation306_spill] sm:$0xff] }
 0x3b0   : > { %2804 = vperm.xlu2 %6960, %v12853_v34   ;;  %2924 = vperm.xlu1 %6959, %v12854_v56   ;;  %v2334_v34 = vmul.f32 %v2318_v55, %v12858_v13  ;;  %v12888_v56 = vld [vmem:[#allocation161_spill] sm:$0xff] }
 0x3b1   : > { %2807 = vperm.xlu0 %6958, %v12855_v61   ;;  %v12857_v61 = vld [vmem:[#allocation283_spill] sm:$0xff]  ;;  %v1807_v40 = vmul.f32 %v12865_v29, %v1727_v38 }
 0x3b2   : > { %v9075_v50 = vpop.permute.xlu2 %2529  ;;  %v9077_v44 = vpop.permute.xlu1 %2526  ;;  %vm2047_vm4 = vcmp.eq.s32.totalorder %v8027_v30, %v12857_v61  ;;  %v12861_v61 = vld [vmem:[#allocation164_spill] sm:$0xff] }
 0x3b3   : > { %12856 = vst [vmem:[#allocation310_spill] sm:$0xff] %v9075_v50  ;;  %v9082_v49 = vpop.permute.xlu0 %2505  ;;  %v6372_v37 = vsel %vm2047_vm4, 1.0, %v12602_v41 }
 0x3b4   : > { %6410 = vmatmul.msk.f32.gmra.mxu1 %vm1462_vm10, %v2349_v12  ;;  %v2190_v12 = vadd.f32 %v2174_v53, %v1966_v5  ;;  %v2095_v55 = vmul.f32 %v6372_v37, %v12863_v26  ;;  %v6357_v53 = vsel %vm1888_vm6, 1.0, %v12602_v41  ;;  %v12870_v37 = vld [vmem:[#allocation309_spill] sm:$0xff]  ;;  %v2335_v26 = vmul.f32 %v2319_v10, %v12871_v52 }
 0x3b5   : > { %vm2272_vm9 = vcmp.eq.s32.totalorder %v8027_v30, %v12870_v37  ;;  %v12875_v37 = vld [vmem:[#allocation196_spill] sm:$0xff]  ;;  %vm2275_vm6 = vcmp.eq.s32.totalorder %v8027_v30, %v8928_v24  ;;  %v12908_v24 = vld [vmem:[#allocation2_spill] sm:$0xff] }
 0x3b6   : > { %v2350_v60 = vadd.f32 %v2334_v34, %v2190_v12  ;;  %v2175_v35 = vmul.f32 %v12871_v52, %v2095_v55  ;;  %v6341_v34 = vsel %vm1680_vm7, 1.0, %v12602_v41  ;;  %v12872_v12 = vld [vmem:[#allocation177_spill] sm:$0xff]  ;;  %v6389_v38 = vsel %vm2272_vm9, 1.0, %v12602_v41  ;;  %v12876_v55 = vld [vmem:[#allocation88_spill] sm:$0xff] }
 0x3b7   : > { %v1936_v2 = vmul.f32 %v6357_v53, %v12872_v12  ;;  %v1728_v58 = vmul.f32 %v6341_v34, %v12876_v55  ;;  %v12878_v53 = vld [vmem:[#allocation252_spill] sm:$0xff] }
 0x3b8   : > { %2813 = vperm.xlu2 %6960, %v12861_v61   ;;  %2933 = vperm.xlu1 %6959, %v12862_v7   ;;  %v1967_v61 = vadd.f32 %v1951_v8, %v1807_v40  ;;  %v12873_v7 = vld [vmem:[#allocation276_spill] sm:$0xff]  ;;  %v2320_v40 = vmul.f32 %v6389_v38, %v12872_v12 }
 0x3b9   : > { %2816 = vperm.xlu0 %6958, %v12864_v42   ;;  %v12869_v42 = vld [vmem:[#allocation294_spill] sm:$0xff]  ;;  %vm1889_vm11 = vcmp.eq.s32.totalorder %v8027_v30, %v12873_v7  ;;  %v1952_v8 = vmul.f32 %v1936_v2, %v12878_v53  ;;  %v1808_v34 = vmul.f32 %v12878_v53, %v1728_v58  ;;  %v6390_v58 = vsel %vm2273_vm14, 1.0, %v12602_v41 }
 0x3ba   : > { %v9105_v19 = vpop.permute.xlu2 %2538  ;;  %v9107_v36 = vpop.permute.xlu1 %2535  ;;  %vm2048_vm8 = vcmp.eq.s32.totalorder %v8027_v30, %v12869_v42  ;;  %v12874_v42 = vld [vmem:[#allocation187_spill] sm:$0xff] }
 0x3bb   : > { %12866 = vst [vmem:[#allocation283_spill] sm:$0xff] %v9105_v19  ;;  %v9112_v5 = vpop.permute.xlu0 %2514  ;;  %v6373_v17 = vsel %vm2048_vm8, 1.0, %v12602_v41  ;;  %v1968_v38 = vadd.f32 %v1952_v8, %v1808_v34  ;;  %v12889_v8 = vld [vmem:[#allocation251_spill] sm:$0xff]  ;;  %v2321_v34 = vmul.f32 %v6390_v58, %v12883_v9  ;;  %v12894_v58 = vld [vmem:[#allocation189_spill] sm:$0xff]  ;;  %v12901_v19 = vld [vmem:[#allocation242_spill] sm:$0xff] }
 0x3bc   : > { %12867 = vst [vmem:[#allocation265_spill] sm:$0xff] %v9107_v36  ;;  %6411 = vmatmul.msk.f32.gmra.mxu1 %vm1462_vm10, %v2350_v60  ;;  %v2191_v60 = vadd.f32 %v2175_v35, %v1967_v61  ;;  %v2096_v10 = vmul.f32 %v6373_v17, %v12876_v55  ;;  %v6358_v61 = vsel %vm1889_vm11, 1.0, %v12602_v41  ;;  %v12882_v17 = vld [vmem:[#allocation300_spill] sm:$0xff]  ;;  %vm1683_vm4 = vcmp.eq.s32.totalorder %v8027_v30, %v12901_v19 }
 0x3bd   : > { %v2336_v55 = vmul.f32 %v2320_v40, %v12882_v17  ;;  %vm2276_vm11 = vcmp.eq.s32.totalorder %v8027_v30, %v9022_v11  ;;  %v12918_v11 = vld [vmem:[#allocation9_spill] sm:$0xff] }
 0x3be   : > { %v2351_v7 = vadd.f32 %v2335_v26, %v2191_v60  ;;  %v2176_v2 = vmul.f32 %v12882_v17, %v2096_v10  ;;  %v6342_v26 = vsel %vm1681_vm12, 1.0, %v12602_v41  ;;  %v1937_v60 = vmul.f32 %v6358_v61, %v12883_v9  ;;  %v12887_v10 = vld [vmem:[#allocation97_spill] sm:$0xff] }
 0x3bf   : > { %v1729_v48 = vmul.f32 %v6342_v26, %v12887_v10 }
 0x3c0   : > { %2918 = vperm.xlu2 %6960, %v12874_v42   ;;  %2942 = vperm.xlu1 %6959, %v12875_v37   ;;  %v12881_v37 = vld [vmem:[#allocation288_spill] sm:$0xff]  ;;  %v1953_v61 = vmul.f32 %v1937_v60, %v12889_v8  ;;  %v12890_v42 = vld [vmem:[#allocation226_spill] sm:$0xff] }
 0x3c1   : > { %2921 = vperm.xlu0 %6958, %v12877_v46   ;;  %vm2049_vm13 = vcmp.eq.s32.totalorder %v8027_v30, %v12881_v37  ;;  %v12885_v37 = vld [vmem:[#allocation191_spill] sm:$0xff]  ;;  %vm1682_vm0 = vcmp.eq.s32.totalorder %v8027_v30, %v12890_v42  ;;  %v1809_v26 = vmul.f32 %v12889_v8, %v1729_v48  ;;  %v6391_v48 = vsel %vm2274_vm2, 1.0, %v12602_v41 }
 0x3c2   : > { %v9135_v14 = vpop.permute.xlu2 %2627  ;;  %v9137_v39 = vpop.permute.xlu1 %2544  ;;  %v6374_v12 = vsel %vm2049_vm13, 1.0, %v12602_v41 }
 0x3c3   : > { %12879 = vst [vmem:[#allocation238_spill] sm:$0xff] %v9137_v39  ;;  %v9142_v35 = vpop.permute.xlu0 %2523  ;;  %v2097_v40 = vmul.f32 %v6374_v12, %v12887_v10  ;;  %v12893_v12 = vld [vmem:[#allocation299_spill] sm:$0xff] }
 0x3c4   : > { %6412 = vmatmul.msk.f32.gmra.mxu1 %vm1462_vm10, %v2351_v7  ;;  %v2192_v7 = vadd.f32 %v2176_v2, %v1968_v38  ;;  %v6359_v2 = vsel %vm1890_vm15, 1.0, %v12602_v41  ;;  %v2337_v10 = vmul.f32 %v2321_v34, %v12893_v12  ;;  %vm2277_vm15 = vcmp.eq.s32.totalorder %v8027_v30, %v8958_v62  ;;  %v12929_v62 = vld [vmem:[#allocation3_spill] sm:$0xff] }
 0x3c5   : > { %v2177_v60 = vmul.f32 %v12893_v12, %v2097_v40  ;;  %v1938_v42 = vmul.f32 %v6359_v2, %v12894_v58  ;;  %v12898_v40 = vld [vmem:[#allocation91_spill] sm:$0xff]  ;;  %v12900_v2 = vld [vmem:[#allocation262_spill] sm:$0xff] }
 0x3c6   : > { %v2352_v16 = vadd.f32 %v2336_v55, %v2192_v7  ;;  %v6343_v55 = vsel %vm1682_vm0, 1.0, %v12602_v41  ;;  %v1969_v7 = vadd.f32 %v1953_v61, %v1809_v26  ;;  %v2322_v26 = vmul.f32 %v6391_v48, %v12894_v58  ;;  %v12905_v48 = vld [vmem:[#allocation180_spill] sm:$0xff] }
 0x3c7   : > { %v1954_v61 = vmul.f32 %v1938_v42, %v12900_v2 }
 0x3c8   : > { %2927 = vperm.xlu2 %6960, %v12885_v37   ;;  %2951 = vperm.xlu1 %6959, %v12886_v31   ;;  %v12892_v31 = vld [vmem:[#allocation287_spill] sm:$0xff]  ;;  %v1730_v37 = vmul.f32 %v6343_v55, %v12898_v40 }
 0x3c9   : > { %2930 = vperm.xlu0 %6958, %v12888_v56   ;;  %vm2050_vm1 = vcmp.eq.s32.totalorder %v8027_v30, %v12892_v31  ;;  %v12895_v56 = vld [vmem:[#allocation267_spill] sm:$0xff] }
 0x3ca   : > { %v9165_v45 = vpop.permute.xlu2 %2636  ;;  %v9167_v46 = vpop.permute.xlu1 %2633  ;;  %v6375_v9 = vsel %vm2050_vm1, 1.0, %v12602_v41  ;;  %vm1891_vm3 = vcmp.eq.s32.totalorder %v8027_v30, %v12895_v56  ;;  %v12896_v31 = vld [vmem:[#allocation195_spill] sm:$0xff]  ;;  %v1810_v55 = vmul.f32 %v12900_v2, %v1730_v37  ;;  %v6392_v37 = vsel %vm2275_vm6, 1.0, %v12602_v41 }
 0x3cb   : > { %v9172_v38 = vpop.permute.xlu0 %2532  ;;  %v2098_v34 = vmul.f32 %v6375_v9, %v12898_v40  ;;  %v12904_v9 = vld [vmem:[#allocation307_spill] sm:$0xff] }
 0x3cc   : > { %12891 = vst [vmem:[#allocation294_spill] sm:$0xff] %v9172_v38  ;;  %6413 = vmatmul.msk.f32.gmra.mxu1 %vm1462_vm10, %v2352_v16  ;;  %v2193_v16 = vadd.f32 %v2177_v60, %v1969_v7  ;;  %v6360_v60 = vsel %vm1891_vm3, 1.0, %v12602_v41  ;;  %v2338_v40 = vmul.f32 %v2322_v26, %v12904_v9  ;;  %vm2278_vm3 = vcmp.eq.s32.totalorder %v8027_v30, %v8956_v59  ;;  %v12941_v59 = vld [vmem:[#allocation16_spill] sm:$0xff] }
 0x3cd   : > { %v2178_v42 = vmul.f32 %v12904_v9, %v2098_v34  ;;  %v1939_v19 = vmul.f32 %v6360_v60, %v12905_v48  ;;  %v12910_v60 = vld [vmem:[#allocation169_spill] sm:$0xff]  ;;  %v12912_v9 = vld [vmem:[#allocation232_spill] sm:$0xff] }
 0x3ce   : > { %v2353_v56 = vadd.f32 %v2337_v10, %v2193_v16  ;;  %v6344_v10 = vsel %vm1683_vm4, 1.0, %v12602_v41  ;;  %v1970_v16 = vadd.f32 %v1954_v61, %v1810_v55  ;;  %v12911_v61 = vld [vmem:[#allocation257_spill] sm:$0xff]  ;;  %vm1684_vm8 = vcmp.eq.s32.totalorder %v8027_v30, %v12912_v9  ;;  %v12915_v9 = vld [vmem:[#allocation111_spill] sm:$0xff] }
 0x3cf   : > { %v1955_v26 = vmul.f32 %v1939_v19, %v12911_v61 }
 0x3d0   : > { %2936 = vperm.xlu2 %6960, %v12896_v31   ;;  %2960 = vperm.xlu1 %6959, %v12897_v18   ;;  %v12903_v18 = vld [vmem:[#allocation295_spill] sm:$0xff]  ;;  %v2194_v34 = vadd.f32 %v2178_v42, %v1970_v16 }
 0x3d1   : > { %2939 = vperm.xlu0 %6958, %v12899_v28   ;;  %vm2051_vm5 = vcmp.eq.s32.totalorder %v8027_v30, %v12903_v18  ;;  %v12906_v28 = vld [vmem:[#allocation280_spill] sm:$0xff]  ;;  %v12907_v18 = vld [vmem:[#allocation198_spill] sm:$0xff] }
 0x3d2   : > { %v9195_v43 = vpop.permute.xlu2 %2645  ;;  %v9197_v39 = vpop.permute.xlu1 %2642  ;;  %v6376_v58 = vsel %vm2051_vm5, 1.0, %v12602_v41  ;;  %vm1892_vm7 = vcmp.eq.s32.totalorder %v8027_v30, %v12906_v28 }
 0x3d3   : > { %v9202_v7 = vpop.permute.xlu0 %2541  ;;  %v6361_v42 = vsel %vm1892_vm7, 1.0, %v12602_v41  ;;  %vm2279_vm7 = vcmp.eq.s32.totalorder %v8027_v30, %v9052_v20  ;;  %v6491_v20 = vld [vmem:[%s11750_s1 + $0xb0] sm:$0xff] }
 0x3d4   : > { %12902 = vst [vmem:[#allocation309_spill] sm:$0xff] %v9202_v7  ;;  %6414 = vmatmul.msk.f32.gmra.mxu1 %vm1462_vm10, %v2353_v56  ;;  %v12909_v56 = vld [vmem:[#allocation90_spill] sm:$0xff]  ;;  %v2323_v7 = vmul.f32 %v6392_v37, %v12905_v48 }
 0x3d5   : > { %v1731_v31 = vmul.f32 %v6344_v10, %v12909_v56  ;;  %v2099_v55 = vmul.f32 %v6376_v58, %v12909_v56  ;;  %v12914_v58 = vld [vmem:[#allocation302_spill] sm:$0xff] }
 0x3d6   : > { %v2339_v56 = vmul.f32 %v2323_v7, %v12914_v58 }
 0x3d7   : > { %v1811_v10 = vmul.f32 %v12911_v61, %v1731_v31  ;;  %v2179_v19 = vmul.f32 %v12914_v58, %v2099_v55  ;;  %v6393_v31 = vsel %vm2276_vm11, 1.0, %v12602_v41  ;;  %v12919_v55 = vld [vmem:[#allocation104_spill] sm:$0xff] }
 0x3d8   : > { %2945 = vperm.xlu2 %6960, %v12907_v18   ;;  %3200 = vrot.lane.b32.xlu1 %v12908_v24, %s6997_s21  ;;  %v2354_v18 = vadd.f32 %v2338_v40, %v2194_v34  ;;  %v12913_v24 = vld [vmem:[#allocation292_spill] sm:$0xff]  ;;  %v6345_v40 = vsel %vm1684_vm8, 1.0, %v12602_v41  ;;  %v1940_v34 = vmul.f32 %v6361_v42, %v12915_v9  ;;  %v2324_v58 = vmul.f32 %v6393_v31, %v12915_v9  ;;  %v12927_v31 = vld [vmem:[#allocation193_spill] sm:$0xff] }
 0x3d9   : > { %2948 = vperm.xlu0 %6958, %v12910_v60   ;;  %vm2052_vm9 = vcmp.eq.s32.totalorder %v8027_v30, %v12913_v24  ;;  %v1971_v37 = vadd.f32 %v1955_v26, %v1811_v10  ;;  %v12916_v60 = vld [vmem:[#allocation272_spill] sm:$0xff]  ;;  %v12917_v24 = vld [vmem:[#allocation202_spill] sm:$0xff]  ;;  %v1732_v61 = vmul.f32 %v6345_v40, %v12919_v55  ;;  %v12920_v26 = vld [vmem:[#allocation173_spill] sm:$0xff]  ;;  %vm2674_vm8 = vcmp.eq.s32.totalorder %v8027_v30, %v9135_v14 }
 0x3da   : > { %v9226_v36 = vpop.permute.xlu2 %2654  ;;  %v9228_v28 = vpop.permute.xlu1 %2651  ;;  %v6377_v48 = vsel %vm2052_vm9, 1.0, %v12602_v41  ;;  %vm1893_vm12 = vcmp.eq.s32.totalorder %v8027_v30, %v12916_v60  ;;  %v12921_v42 = vld [vmem:[#allocation256_spill] sm:$0xff]  ;;  %vm2546_vm9 = vcmp.eq.s32.totalorder %v8027_v30, %v8987_v33 }
 0x3db   : > { %v9233_v16 = vpop.permute.xlu0 %2630  ;;  %v1956_v10 = vmul.f32 %v1940_v34, %v12921_v42  ;;  %v2100_v7 = vmul.f32 %v6377_v48, %v12919_v55  ;;  %v1812_v40 = vmul.f32 %v12921_v42, %v1732_v61  ;;  %v12926_v48 = vld [vmem:[#allocation301_spill] sm:$0xff]  ;;  %v6394_v61 = vsel %vm2277_vm15, 1.0, %v12602_v41 }
 0x3dc   : > { %6415 = vmatmul.msk.f32.gmra.mxu1 %vm1462_vm10, %v2354_v18  ;;  %v2195_v18 = vadd.f32 %v2179_v19, %v1971_v37  ;;  %v6362_v19 = vsel %vm1893_vm12, 1.0, %v12602_v41  ;;  %v2340_v55 = vmul.f32 %v2324_v58, %v12926_v48  ;;  %v12933_v58 = vld [vmem:[#allocation263_spill] sm:$0xff]  ;;  %vm2675_vm12 = vcmp.eq.s32.totalorder %v8027_v30, %v9233_v16 }
 0x3dd   : > { %v2180_v34 = vmul.f32 %v12926_v48, %v2100_v7  ;;  %v2325_v48 = vmul.f32 %v6394_v61, %v12927_v31  ;;  %v12939_v61 = vld [vmem:[#allocation184_spill] sm:$0xff] }
 0x3de   : > { %v2355_v60 = vadd.f32 %v2339_v56, %v2195_v18  ;;  %v1972_v18 = vadd.f32 %v1956_v10, %v1812_v40  ;;  %v12932_v10 = vld [vmem:[#allocation5_spill] sm:$0xff] }
 0x3e0   : > { %2954 = vperm.xlu2 %6960, %v12917_v24   ;;  %3206 = vrot.lane.b32.xlu1 %v12918_v11, %s6997_s21  ;;  %v12924_v24 = vld [vmem:[#allocation231_spill] sm:$0xff]  ;;  %v2196_v7 = vadd.f32 %v2180_v34, %v1972_v18 }
 0x3e1   : > { %2957 = vperm.xlu0 %6958, %v12920_v26   ;;  %vm1685_vm13 = vcmp.eq.s32.totalorder %v8027_v30, %v12924_v24  ;;  %v12925_v11 = vld [vmem:[#allocation291_spill] sm:$0xff]  ;;  %v1941_v24 = vmul.f32 %v6362_v19, %v12927_v31  ;;  %v12940_v31 = vld [vmem:[#allocation284_spill] sm:$0xff] }
 0x3e2   : > { %v9257_v2 = vpop.permute.xlu2 %2663  ;;  %v9259_v38 = vpop.permute.xlu1 %2660  ;;  %vm2053_vm14 = vcmp.eq.s32.totalorder %v8027_v30, %v12925_v11  ;;  %v6346_v56 = vsel %vm1685_vm13, 1.0, %v12602_v41  ;;  %v12928_v26 = vld [vmem:[#allocation271_spill] sm:$0xff]  ;;  %v12931_v11 = vld [vmem:[#allocation94_spill] sm:$0xff]  ;;  %vm1895_vm4 = vcmp.eq.s32.totalorder %v8027_v30, %v12940_v31  ;;  %vm2547_vm13 = vcmp.eq.s32.totalorder %v8027_v30, %v8985_v15 }
 0x3e3   : > { %12922 = vst [vmem:[#allocation276_spill] sm:$0xff] %v9257_v2  ;;  %v9264_v37 = vpop.permute.xlu0 %2639  ;;  %v6378_v9 = vsel %vm2053_vm14, 1.0, %v12602_v41  ;;  %vm1894_vm0 = vcmp.eq.s32.totalorder %v8027_v30, %v12928_v26  ;;  %v1733_v42 = vmul.f32 %v6346_v56, %v12931_v11  ;;  %v1957_v19 = vmul.f32 %v1941_v24, %v12933_v58 }
 0x3e4   : > { %12923 = vst [vmem:[#allocation227_spill] sm:$0xff] %v9259_v38  ;;  %6416 = vmatmul.msk.f32.gmra.mxu1 %vm1462_vm10, %v2355_v60  ;;  %v12930_v60 = vld [vmem:[#allocation12_spill] sm:$0xff]  ;;  %v2101_v40 = vmul.f32 %v6378_v9, %v12931_v11  ;;  %v6363_v34 = vsel %vm1894_vm0, 1.0, %v12602_v41  ;;  %v6422_v15 = vsel %vm2547_vm13, 1.0, %v12602_v41 }
 0x3e5   : > { %v12936_v38 = vld [vmem:[#allocation248_spill] sm:$0xff]  ;;  %v1813_v18 = vmul.f32 %v12933_v58, %v1733_v42  ;;  %v6395_v42 = vsel %vm2278_vm3, 1.0, %v12602_v41 }
 0x3e6   : > { %vm1686_vm1 = vcmp.eq.s32.totalorder %v8027_v30, %v12936_v38  ;;  %v12938_v9 = vld [vmem:[#allocation308_spill] sm:$0xff]  ;;  %v1942_v38 = vmul.f32 %v6363_v34, %v12939_v61 }
 0x3e7   : > { %v2181_v24 = vmul.f32 %v12938_v9, %v2101_v40  ;;  %v12942_v40 = vld [vmem:[#allocation4_spill] sm:$0xff] }
 0x3e8   : > { %3196 = vrot.lane.b32.xlu2 %v12929_v62, %s6997_s21  ;;  %3212 = vrot.lane.b32.xlu1 %v12930_v60, %s6997_s21  ;;  %v2356_v62 = vadd.f32 %v2340_v55, %v2196_v7  ;;  %v12937_v60 = vld [vmem:[#allocation298_spill] sm:$0xff]  ;;  %v6347_v55 = vsel %vm1686_vm1, 1.0, %v12602_v41  ;;  %v1973_v7 = vadd.f32 %v1957_v19, %v1813_v18  ;;  %vm2676_vm1 = vcmp.eq.s32.totalorder %v8027_v30, %v9167_v46 }
 0x3e9   : > { %3198 = vrot.lane.b32.xlu0 %v12932_v10, %s6997_s21  ;;  %vm2054_vm2 = vcmp.eq.s32.totalorder %v8027_v30, %v12937_v60  ;;  %v2341_v10 = vmul.f32 %v2325_v48, %v12938_v9  ;;  %v12943_v60 = vld [vmem:[#allocation93_spill] sm:$0xff]  ;;  %v12944_v19 = vld [vmem:[#allocation6_spill] sm:$0xff]  ;;  %v12945_v48 = vld [vmem:[#allocation260_spill] sm:$0xff]  ;;  %v2326_v9 = vmul.f32 %v6395_v42, %v12939_v61 }
 0x3ea   : > { %v9290_v2 = vpop.permute.xlu2 %2672  ;;  %v9292_v26 = vpop.permute.xlu1 %2669  ;;  %v6379_v11 = vsel %vm2054_vm2, 1.0, %v12602_v41  ;;  %v1958_v34 = vmul.f32 %v1942_v38, %v12945_v48  ;;  %v12952_v61 = vld [vmem:[#allocation8_spill] sm:$0xff]  ;;  %vm2548_vm2 = vcmp.eq.s32.totalorder %v8027_v30, %v9082_v49  ;;  %v12973_v49 = vld [vmem:[#allocation138_spill] sm:$0xff] }
 0x3eb   : > { %12934 = vst [vmem:[#allocation288_spill] sm:$0xff] %v9290_v2  ;;  %v9297_v56 = vpop.permute.xlu0 %2648  ;;  %v1734_v2 = vmul.f32 %v6347_v55, %v12943_v60  ;;  %v2102_v18 = vmul.f32 %v6379_v11, %v12943_v60  ;;  %v12949_v11 = vld [vmem:[#allocation305_spill] sm:$0xff] }
 0x3ec   : > { %12935 = vst [vmem:[#allocation268_spill] sm:$0xff] %v9292_v26  ;;  %6417 = vmatmul.msk.f32.gmra.mxu1 %vm1462_vm10, %v2356_v62  ;;  %v2197_v62 = vadd.f32 %v2181_v24, %v1973_v7  ;;  %v12946_v24 = vld [vmem:[#allocation237_spill] sm:$0xff]  ;;  %v6364_v7 = vsel %vm1895_vm4, 1.0, %v12602_v41  ;;  %v2342_v60 = vmul.f32 %v2326_v9, %v12949_v11  ;;  %v6490_v9 = vld [vmem:[%s11750_s1 + $0xa8] sm:$0xff]  ;;  %v6489_v26 = vld [vmem:[%s11750_s1 + $0xa0] sm:$0xff]  ;;  %vm2549_vm4 = vcmp.eq.s32.totalorder %v8027_v30, %v9017_v3 }
 0x3ed   : > { %vm1687_vm5 = vcmp.eq.s32.totalorder %v8027_v30, %v12946_v24  ;;  %v2182_v38 = vmul.f32 %v12949_v11, %v2102_v18  ;;  %v12950_v24 = vld [vmem:[#allocation116_spill] sm:$0xff]  ;;  %v6396_v18 = vsel %vm2279_vm7, 1.0, %v12602_v41  ;;  %v12955_v11 = vld [vmem:[#allocation259_spill] sm:$0xff] }
 0x3ee   : > { %v6348_v42 = vsel %vm1687_vm5, 1.0, %v12602_v41  ;;  %vm2677_vm5 = vcmp.eq.s32.totalorder %v8027_v30, %v9165_v45 }
 0x3ef   : > { %v6440_v3 = vsel %vm2677_vm5, 1.0, %v12602_v41 }
 0x3f0   : > { %3218 = vrot.lane.b32.xlu1 %v12941_v59, %s6997_s21  ;;  %3202 = vrot.lane.b32.xlu2 %v12942_v40, %s6997_s21  ;;  %v2357_v59 = vadd.f32 %v2341_v10, %v2197_v62  ;;  %v1814_v40 = vmul.f32 %v12945_v48, %v1734_v2  ;;  %v6492_v10 = vld [vmem:[%s11750_s1 + $0xb8] sm:$0xff]  ;;  %v1943_v2 = vmul.f32 %v6364_v7, %v12950_v24 }
 0x3f1   : > { %3204 = vrot.lane.b32.xlu0 %v12944_v19, %s6997_s21  ;;  %v12948_v19 = vld [vmem:[#allocation293_spill] sm:$0xff]  ;;  %3123 = vmatpush.msra.mxu2 %v6492_v10 }
 0x3f2   : > { %v9323_v58 = vpop.permute.xlu2 %2777  ;;  %v9325_v31 = vpop.permute.xlu1 %2774  ;;  %vm2055_vm6 = vcmp.eq.s32.totalorder %v8027_v30, %v12948_v19  ;;  %v1974_v62 = vadd.f32 %v1958_v34, %v1814_v40  ;;  %v12951_v19 = vld [vmem:[#allocation21_spill] sm:$0xff]  ;;  %v12954_v40 = vld [vmem:[#allocation7_spill] sm:$0xff]  ;;  %v1959_v48 = vmul.f32 %v1943_v2, %v12955_v11  ;;  %v12957_v2 = vld [vmem:[#allocation304_spill] sm:$0xff] }
 0x3f3   : > { %v9330_v55 = vpop.permute.xlu0 %2657  ;;  %3124 = vmatpush.msra.mxu2 %v6491_v20  ;;  %v12953_v34 = vld [vmem:[#allocation109_spill] sm:$0xff]  ;;  %vm2819_vm14 = vcmp.eq.s32.totalorder %v8027_v30, %v9325_v31  ;;  %vm2820_vm3 = vcmp.eq.s32.totalorder %v8027_v30, %v9323_v58 }
 0x3f4   : > { %12947 = vst [vmem:[#allocation226_spill] sm:$0xff] %v9330_v55  ;;  %6418 = vmatmul.msk.f32.gmra.mxu1 %vm1462_vm10, %v2357_v59  ;;  %v6380_v59 = vsel %vm2055_vm6, 1.0, %v12602_v41  ;;  %v2198_v10 = vadd.f32 %v2182_v38, %v1974_v62  ;;  %v1735_v7 = vmul.f32 %v6348_v42, %v12953_v34  ;;  %v6454_v16 = vsel %vm2819_vm14, 1.0, %v12602_v41 }
 0x3f5   : > { %3125 = vmatpush.msra.mxu2 %v6490_v9  ;;  %v2103_v20 = vmul.f32 %v6380_v59, %v12953_v34  ;;  %v12967_v34 = vld [vmem:[#allocation186_spill] sm:$0xff]  ;;  %v6455_v46 = vsel %vm2820_vm3, 1.0, %v12602_v41  ;;  %vm2679_vm14 = vcmp.eq.s32.totalorder %v8027_v30, %v9197_v39  ;;  %vm2552_vm3 = vcmp.eq.s32.totalorder %v8027_v30, %v9047_v63 }
 0x3f6   : > { %v1815_v9 = vmul.f32 %v12955_v11, %v1735_v7  ;;  %v12958_v7 = vld [vmem:[#allocation11_spill] sm:$0xff] }
 0x3f7   : > { %3126 = vmatpush.msra.mxu2 %v6489_v26  ;;  %v2183_v59 = vmul.f32 %v12957_v2, %v2103_v20  ;;  %v6486_v20 = vld [vmem:[%s11750_s1 + $0x88] sm:$0xff] }
 0x3f8   : > { %3224 = vrot.lane.b32.xlu1 %v12951_v19, %s6997_s21  ;;  %3208 = vrot.lane.b32.xlu2 %v12952_v61, %s6997_s21  ;;  %v2327_v19 = vmul.f32 %v6396_v18, %v12950_v24  ;;  %v2358_v61 = vadd.f32 %v2342_v60, %v2198_v10  ;;  %v6488_v18 = vld [vmem:[%s11750_s1 + $0x98] sm:$0xff]  ;;  %v6487_v10 = vld [vmem:[%s11750_s1 + $0x90] sm:$0xff] }
 0x3f9   : > { %3210 = vrot.lane.b32.xlu0 %v12954_v40, %s6997_s21  ;;  %3127 = vmatpush.msra.mxu2 %v6488_v18  ;;  %v1975_v40 = vadd.f32 %v1959_v48, %v1815_v9 }
 0x3fa   : > { %v9363_v38 = vpop.permute.xlu2 %2786  ;;  %v9365_v62 = vpop.permute.xlu1 %2783  ;;  %v2343_v60 = vmul.f32 %v2327_v19, %v12957_v2 }
 0x3fb   : > { %v9370_v42 = vpop.permute.xlu0 %2666  ;;  %3128 = vmatpush.msra.mxu2 %v6487_v10  ;;  %v2199_v26 = vadd.f32 %v2183_v59, %v1975_v40  ;;  %v6485_v59 = vld [vmem:[%s11750_s1 + $0x80] sm:$0xff]  ;;  %v12961_v10 = vld [vmem:[#allocation13_spill] sm:$0xff] }
 0x3fc   : > { %12956 = vst [vmem:[#allocation287_spill] sm:$0xff] %v9370_v42  ;;  %6419 = vmatmul.msk.f32.gmra.mxu1 %vm1462_vm10, %v2358_v61  ;;  %v12959_v61 = vld [vmem:[#allocation10_spill] sm:$0xff] }
 0x3fd   : > { %3129 = vmatpush.msra.mxu2 %v6486_v20  ;;  %v2359_v9 = vadd.f32 %v2343_v60, %v2199_v26  ;;  %v12960_v40 = vld [vmem:[#allocation14_spill] sm:$0xff]  ;;  %v6437_v26 = vsel %vm2674_vm8, 1.0, %v12602_v41 }
 0x3fe   : > { %v12964_v60 = vld [vmem:[#allocation18_spill] sm:$0xff]  ;;  %v2722_v24 = vmul.f32 %v6437_v26, %v12967_v34 }
 0x3ff   : > { %3130 = vmatpush.msra.mxu2 %v6485_v59 }
 0x400   : > { %3214 = vrot.lane.b32.xlu2 %v12958_v7, %s6997_s21 }
 0x401   : > { %3216 = vrot.lane.b32.xlu0 %v12959_v61, %s6997_s21 }
 0x402   : > { %v9389_v48 = vpop.permute.xlu2 %2795  ;;  %v9391_v19 = vpop.permute.xlu1 %2792 }
 0x403   : > { %v2772_v18 = vpop.permute.xlu0 %2771 }
 0x404   : > { %6420 = vmatmul.msk.f32.gmra.mxu1 %vm1462_vm10, %v2359_v9  ;;  %vm2818_vm11 = vcmp.eq.s32.totalorder %v8027_v30, %v2772_v18  ;;  %v12969_v18 = vld [vmem:[#allocation236_spill] sm:$0xff] }
 0x405   : > { %v6453_v14 = vsel %vm2818_vm11, 1.0, %v12602_v41  ;;  %v2738_v11 = vmul.f32 %v2722_v24, %v12969_v18  ;;  %vm2550_vm11 = vcmp.eq.s32.totalorder %v8027_v30, %v9015_v27 }
 0x406   : > { %v6425_v27 = vsel %vm2550_vm11, 1.0, %v12602_v41  ;;  %vm2682_vm11 = vcmp.eq.s32.totalorder %v8027_v30, %v9228_v28 }
 0x408   : > { %3220 = vrot.lane.b32.xlu2 %v12960_v40, %s6997_s21 }
 0x409   : > { %3222 = vrot.lane.b32.xlu0 %v12961_v10, %s6997_s21  ;;  %v6421_v10 = vsel %vm2546_vm9, 1.0, %v12602_v41  ;;  %vm2678_vm9 = vcmp.eq.s32.totalorder %v8027_v30, %v9264_v37 }
 0x40a   : > { %v9401_v7 = vpop.permute.xlu2 %2804  ;;  %v9403_v20 = vpop.permute.xlu1 %2801 }
 0x40b   : > { %12962 = vst [vmem:[#allocation267_spill] sm:$0xff] %v9401_v7  ;;  %v9405_v61 = vpop.permute.xlu0 %2780 }
 0x40c   : > { %12963 = vst [vmem:[#allocation242_spill] sm:$0xff] %v9403_v20  ;;  %vm2821_vm6 = vcmp.eq.s32.totalorder %v8027_v30, %v9405_v61 }
 0x410   : > { %3226 = vrot.lane.b32.xlu2 %v12964_v60, %s6997_s21  ;;  %v12968_v60 = vld [vmem:[#allocation99_spill] sm:$0xff] }
 0x411   : > { %v2594_v2 = vmul.f32 %v6421_v10, %v12968_v60  ;;  %v2866_v33 = vmul.f32 %v6453_v14, %v12968_v60  ;;  %v12970_v14 = vld [vmem:[#allocation213_spill] sm:$0xff] }
 0x412   : > { %v9415_v9 = vpop.permute.xlu2 %2813  ;;  %v9417_v59 = vpop.permute.xlu1 %2810 }
 0x413   : > { %12965 = vst [vmem:[#allocation295_spill] sm:$0xff] %v9415_v9  ;;  %v9419_v40 = vpop.permute.xlu0 %2789  ;;  %v6438_v9 = vsel %vm2675_vm12, 1.0, %v12602_v41  ;;  %v2610_v26 = vmul.f32 %v2594_v2, %v12969_v18  ;;  %v2882_v10 = vmul.f32 %v2866_v33, %v8790_v4  ;;  %v12971_v33 = vld [vmem:[#allocation136_spill] sm:$0xff]  ;;  %vm2822_vm12 = vcmp.eq.s32.totalorder %v8027_v30, %v9365_v62 }
 0x414   : > { %12966 = vst [vmem:[#allocation280_spill] sm:$0xff] %v9417_v59  ;;  %v2723_v60 = vmul.f32 %v6438_v9, %v12970_v14  ;;  %v2595_v18 = vmul.f32 %v6422_v15, %v12971_v33  ;;  %v2867_v20 = vmul.f32 %v6454_v16, %v12971_v33 }
 0x415   : > { %v2754_v24 = vadd.f32 %v2738_v11, %v2610_v26 }
 0x416   : > { %v2739_v8 = vmul.f32 %v2723_v60, %v8623_v54  ;;  %v2611_v9 = vmul.f32 %v2595_v18, %v8623_v54  ;;  %v2883_v26 = vmul.f32 %v2867_v20, %v8821_v22  ;;  %v6423_v18 = vsel %vm2548_vm2, 1.0, %v12602_v41 }
 0x417   : > { %v2596_v58 = vmul.f32 %v6423_v18, %v12973_v49  ;;  %vm2680_vm2 = vcmp.eq.s32.totalorder %v8027_v30, %v9195_v43  ;;  %v12981_v43 = vld [vmem:[#allocation54_spill] sm:$0xff] }
 0x418   : > { %v2755_v15 = vadd.f32 %v2739_v8, %v2611_v9 }
 0x41a   : > { %v2919_v59 = vpop.permute.xlu2 %2918  ;;  %v2916_v42 = vpop.permute.xlu1 %2915  ;;  %v2899_v60 = vadd.f32 %v2883_v26, %v2755_v15  ;;  %v6424_v15 = vsel %vm2549_vm4, 1.0, %v12602_v41  ;;  %vm2824_vm4 = vcmp.eq.s32.totalorder %v8027_v30, %v9419_v40  ;;  %v6427_v40 = vsel %vm2552_vm3, 1.0, %v12602_v41 }
 0x41b   : > { %v9436_v7 = vpop.permute.xlu0 %2798  ;;  %vm2963_vm15 = vcmp.eq.s32.totalorder %v8027_v30, %v2919_v59  ;;  %vm2962_vm0 = vcmp.eq.s32.totalorder %v8027_v30, %v2916_v42  ;;  %v2898_v42 = vadd.f32 %v2882_v10, %v2754_v24  ;;  %v6998_v10 = vmov 62   ;;  %v12972_v24 = vld [vmem:[#allocation207_spill] sm:$0xff] }
 0x41c   : > { %v6469_v31 = vsel %vm2962_vm0, 1.0, %v12602_v41  ;;  %v6470_v2 = vsel %vm2963_vm15, 1.0, %v12602_v41  ;;  %6961 = vset.pattern.permute.xlu0 %v6998_v10  ;;  %6963 = vset.pattern.permute.xlu2 %v6998_v10  ;;  %vm2551_vm15 = vcmp.eq.s32.totalorder %v8027_v30, %v9112_v5  ;;  %vm2823_vm0 = vcmp.eq.s32.totalorder %v8027_v30, %v9363_v38 }
 0x41d   : > { %v3010_v12 = vmul.f32 %v6469_v31, %v12967_v34  ;;  %v3011_v50 = vmul.f32 %v6470_v2, %v12970_v14  ;;  %6962 = vset.pattern.permute.xlu1 %v6998_v10  ;;  %v2612_v10 = vmul.f32 %v2596_v58, %v8588_v1  ;;  %v6426_v38 = vsel %vm2551_vm15, 1.0, %v12602_v41 }
 0x41e   : > { %vm2683_vm15 = vcmp.eq.s32.totalorder %v8027_v30, %v9226_v36 }
 0x41f   : > { %v3026_v59 = vmul.f32 %v3010_v12, %v8790_v4  ;;  %v3027_v12 = vmul.f32 %v3011_v50, %v8821_v22  ;;  %v6439_v50 = vsel %vm2676_vm1, 1.0, %v12602_v41 }
 0x420   : > { %v2724_v2 = vmul.f32 %v6439_v50, %v12972_v24 }
 0x421   : > { %v3042_v55 = vadd.f32 %v3026_v59, %v2898_v42  ;;  %v3043_v16 = vadd.f32 %v3027_v12, %v2899_v60  ;;  %v2868_v59 = vmul.f32 %v6455_v46, %v12973_v49  ;;  %v6456_v60 = vsel %vm2821_vm6, 1.0, %v12602_v41 }
 0x422   : > { %v9451_v17 = vpop.permute.xlu2 %2927  ;;  %v2925_v11 = vpop.permute.xlu1 %2924  ;;  %v2740_v42 = vmul.f32 %v2724_v2, %v8588_v1  ;;  %v12975_v2 = vld [vmem:[#allocation130_spill] sm:$0xff]  ;;  %vm2681_vm6 = vcmp.eq.s32.totalorder %v8027_v30, %v9297_v56  ;;  %v12984_v56 = vld [vmem:[#allocation57_spill] sm:$0xff] }
 0x423   : > { %v9455_v31 = vpop.permute.xlu0 %2807  ;;  %6493 = vmatmul.msk.f32.vlgmr.msra.gmra.mxu2 %vm1462_vm10, %v3042_v55  ;;  %v2884_v45 = vmul.f32 %v2868_v59, %v8801_v57  ;;  %vm2965_vm7 = vcmp.eq.s32.totalorder %v8027_v30, %v2925_v11  ;;  %v2597_v49 = vmul.f32 %v6424_v15, %v12975_v2  ;;  %v2869_v11 = vmul.f32 %v6456_v60, %v12975_v2 }
 0x424   : > { %v2756_v18 = vadd.f32 %v2740_v42, %v2612_v10  ;;  %v6472_v54 = vsel %vm2965_vm7, 1.0, %v12602_v41  ;;  %v6441_v10 = vsel %vm2678_vm9, 1.0, %v12602_v41  ;;  %vm2966_vm13 = vcmp.eq.s32.totalorder %v8027_v30, %v9451_v17 }
 0x425   : > { %vm2553_vm7 = vcmp.eq.s32.totalorder %v8027_v30, %v9045_v0 }
 0x426   : > { %v2900_v59 = vadd.f32 %v2884_v45, %v2756_v18  ;;  %v2613_v45 = vmul.f32 %v2597_v49, %v8586_v32 }
 0x42a   : > { %v9465_v20 = vpop.permute.xlu2 %2936  ;;  %v9467_v8 = vpop.permute.xlu1 %2933 }
 0x42b   : > { %v9470_v55 = vpop.permute.xlu0 %2816  ;;  %6494 = vmatmul.msk.f32.gmra.mxu2 %vm1462_vm10, %v3043_v16  ;;  %v12974_v16 = vld [vmem:[#allocation190_spill] sm:$0xff]  ;;  %vm2968_vm5 = vcmp.eq.s32.totalorder %v8027_v30, %v9467_v8  ;;  %vm2969_vm9 = vcmp.eq.s32.totalorder %v8027_v30, %v9465_v20  ;;  %v12986_v20 = vld [vmem:[#allocation145_spill] sm:$0xff] }
 0x42c   : > { %v2725_v50 = vmul.f32 %v6440_v3, %v12974_v16  ;;  %v3013_v42 = vmul.f32 %v6472_v54, %v12974_v16  ;;  %v6457_v54 = vsel %vm2822_vm12, 1.0, %v12602_v41  ;;  %vm2554_vm12 = vcmp.eq.s32.totalorder %v8027_v30, %v9142_v35  ;;  %v12988_v35 = vld [vmem:[#allocation53_spill] sm:$0xff] }
 0x42e   : > { %v2741_v3 = vmul.f32 %v2725_v50, %v8586_v32  ;;  %v12976_v50 = vld [vmem:[#allocation216_spill] sm:$0xff] }
 0x42f   : > { %v2726_v18 = vmul.f32 %v6441_v10, %v12976_v50 }
 0x430   : > { %v2757_v62 = vadd.f32 %v2741_v3, %v2613_v45 }
 0x432   : > { %v9485_v9 = vpop.permute.xlu2 %2945  ;;  %v9487_v26 = vpop.permute.xlu1 %2942 }
 0x433   : > { %v2922_v12 = vpop.permute.xlu0 %2921 }
 0x434   : > { %vm2964_vm8 = vcmp.eq.s32.totalorder %v8027_v30, %v2922_v12 }
 0x435   : > { %v6471_v61 = vsel %vm2964_vm8, 1.0, %v12602_v41  ;;  %vm2825_vm8 = vcmp.eq.s32.totalorder %v8027_v30, %v9391_v19  ;;  %v6428_v19 = vsel %vm2553_vm7, 1.0, %v12602_v41 }
 0x436   : > { %v3012_v46 = vmul.f32 %v6471_v61, %v12972_v24  ;;  %v2885_v61 = vmul.f32 %v2869_v11, %v8799_v47 }
 0x438   : > { %v3028_v58 = vmul.f32 %v3012_v46, %v8801_v57  ;;  %v3029_v46 = vmul.f32 %v3013_v42, %v8799_v47  ;;  %v2901_v11 = vadd.f32 %v2885_v61, %v2757_v62 }
 0x43a   : > { %v9511_v15 = vpop.permute.xlu2 %2954  ;;  %v9513_v12 = vpop.permute.xlu1 %2951  ;;  %v3044_v37 = vadd.f32 %v3028_v58, %v2900_v59  ;;  %v6473_v58 = vsel %vm2966_vm13, 1.0, %v12602_v41  ;;  %v12977_v59 = vld [vmem:[#allocation141_spill] sm:$0xff]  ;;  %v3045_v45 = vadd.f32 %v3029_v46, %v2901_v11  ;;  %vm2826_vm13 = vcmp.eq.s32.totalorder %v8027_v30, %v9389_v48 }
 0x43b   : > { %v2931_v60 = vpop.permute.xlu0 %2930  ;;  %v2598_v49 = vmul.f32 %v6425_v27, %v12977_v59  ;;  %v2870_v17 = vmul.f32 %v6457_v54, %v12977_v59  ;;  %v3014_v3 = vmul.f32 %v6473_v58, %v12976_v50  ;;  %v6442_v27 = vsel %vm2679_vm14, 1.0, %v12602_v41  ;;  %v12978_v54 = vld [vmem:[#allocation50_spill] sm:$0xff]  ;;  %v12979_v46 = vld [vmem:[#allocation209_spill] sm:$0xff] }
 0x43c   : > { %6495 = vmatmul.msk.f32.gmra.mxu2 %vm1462_vm10, %v3044_v37  ;;  %v2742_v37 = vmul.f32 %v2726_v18, %v8638_v25  ;;  %vm2967_vm1 = vcmp.eq.s32.totalorder %v8027_v30, %v2931_v60  ;;  %v6458_v18 = vsel %vm2823_vm0, 1.0, %v12602_v41  ;;  %v2727_v58 = vmul.f32 %v6442_v27, %v12979_v46 }
 0x43d   : > { %v2614_v5 = vmul.f32 %v2598_v49, %v8638_v25  ;;  %v2886_v62 = vmul.f32 %v2870_v17, %v8842_v21  ;;  %v12980_v49 = vld [vmem:[#allocation134_spill] sm:$0xff]  ;;  %v6429_v48 = vsel %vm2554_vm12, 1.0, %v12602_v41  ;;  %vm2555_vm0 = vcmp.eq.s32.totalorder %v8027_v30, %v9077_v44 }
 0x43e   : > { %v2599_v25 = vmul.f32 %v6426_v38, %v12980_v49  ;;  %v2871_v60 = vmul.f32 %v6458_v18, %v12980_v49  ;;  %v6459_v18 = vsel %vm2824_vm4, 1.0, %v12602_v41  ;;  %v12997_v44 = vld [vmem:[#allocation142_spill] sm:$0xff]  ;;  %v13168_v49 = vld [vmem:[#allocation147_spill] sm:$0xff] }
 0x43f   : > { %v2758_v11 = vadd.f32 %v2742_v37, %v2614_v5  ;;  %v6443_v5 = vsel %vm2680_vm2, 1.0, %v12602_v41  ;;  %vm2971_vm2 = vcmp.eq.s32.totalorder %v8027_v30, %v9487_v26 }
 0x440   : > { %v2887_v63 = vmul.f32 %v2871_v60, %v8810_v6 }
 0x441   : > { %v2902_v17 = vadd.f32 %v2886_v62, %v2758_v11  ;;  %v2615_v62 = vmul.f32 %v2599_v25, %v8606_v23  ;;  %v6475_v25 = vsel %vm2968_vm5, 1.0, %v12602_v41 }
 0x442   : > { %v3197_v42 = vpop.permute.xlu2 %3196  ;;  %v9536_v10 = vpop.permute.xlu1 %2960 }
 0x443   : > { %v9539_v39 = vpop.permute.xlu0 %2939  ;;  %v9542_v61 = vadd.s32 %v3197_v42, %v12978_v54  ;;  %v3030_v42 = vmul.f32 %v3014_v3, %v8842_v21  ;;  %v6474_v54 = vsel %vm2967_vm1, 1.0, %v12602_v41  ;;  %vm2827_vm1 = vcmp.eq.s32.totalorder %v8027_v30, %v9436_v7 }
 0x444   : > { %6496 = vmatmul.msk.f32.gmra.mxu2 %vm1462_vm10, %v3045_v45  ;;  %v2743_v45 = vmul.f32 %v2727_v58, %v8606_v23  ;;  %v3015_v37 = vmul.f32 %v6474_v54, %v12979_v46  ;;  %v12982_v58 = vld [vmem:[#allocation194_spill] sm:$0xff]  ;;  %vm2970_vm14 = vcmp.eq.s32.totalorder %v8027_v30, %v9539_v39 }
 0x445   : > { %3245 = vperm.xlu0 %6961, %v9542_v61   ;;  %v3046_v27 = vadd.f32 %v3030_v42, %v2902_v17  ;;  %v2728_v11 = vmul.f32 %v6443_v5, %v12982_v58  ;;  %v12983_v17 = vld [vmem:[#allocation139_spill] sm:$0xff]  ;;  %v6477_v39 = vsel %vm2970_vm14, 1.0, %v12602_v41  ;;  %vm2830_vm14 = vcmp.eq.s32.totalorder %v8027_v30, %v9455_v31  ;;  %v13164_v23 = vld [vmem:[#allocation102_spill] sm:$0xff] }
 0x446   : > { %v2759_v42 = vadd.f32 %v2743_v45, %v2615_v62  ;;  %v3031_v54 = vmul.f32 %v3015_v37, %v8810_v6  ;;  %v2600_v60 = vmul.f32 %v6427_v40, %v12983_v17  ;;  %v2872_v8 = vmul.f32 %v6459_v18, %v12983_v17 }
 0x447   : > { %v3016_v45 = vmul.f32 %v6475_v25, %v12982_v58  ;;  %v6460_v18 = vsel %vm2825_vm8, 1.0, %v12602_v41 }
 0x448   : > { %v2888_v0 = vmul.f32 %v2872_v8, %v12858_v13 }
 0x449   : > { %v3032_v25 = vmul.f32 %v3016_v45, %v12858_v13  ;;  %v13134_v13 = vld [vmem:[#allocation32_spill] sm:$0xff] }
 0x44a   : > { %v3201_v3 = vpop.permute.xlu1 %3200  ;;  %v3203_v8 = vpop.permute.xlu2 %3202 }
 0x44b   : > { %v9565_v38 = vpop.permute.xlu0 %2948  ;;  %v9568_v50 = vadd.s32 %v3201_v3, %v12981_v43  ;;  %v2903_v3 = vadd.f32 %v2887_v63, %v2759_v42  ;;  %v6444_v43 = vsel %vm2681_vm6, 1.0, %v12602_v41  ;;  %v2616_v63 = vmul.f32 %v2600_v60, %v8604_v51  ;;  %v12985_v42 = vld [vmem:[#allocation219_spill] sm:$0xff] }
 0x44c   : > { %6497 = vmatmul.msk.f32.gmra.mxu2 %vm1462_vm10, %v3046_v27  ;;  %v2744_v27 = vmul.f32 %v2728_v11, %v8604_v51  ;;  %v6476_v60 = vsel %vm2969_vm9, 1.0, %v12602_v41  ;;  %v12987_v51 = vld [vmem:[#allocation65_spill] sm:$0xff]  ;;  %vm2972_vm6 = vcmp.eq.s32.totalorder %v8027_v30, %v9485_v9 }
 0x44d   : > { %3251 = vperm.xlu2 %6963, %v9568_v50   ;;  %v3047_v5 = vadd.f32 %v3031_v54, %v2903_v3  ;;  %v2729_v54 = vmul.f32 %v6444_v43, %v12985_v42  ;;  %v2601_v3 = vmul.f32 %v6428_v19, %v12986_v20  ;;  %v3017_v28 = vmul.f32 %v6476_v60, %v12985_v42 }
 0x44e   : > { %v2760_v11 = vadd.f32 %v2744_v27, %v2616_v63  ;;  %v6445_v27 = vsel %vm2682_vm11, 1.0, %v12602_v41  ;;  %v6461_v60 = vsel %vm2826_vm13, 1.0, %v12602_v41  ;;  %v6479_v9 = vsel %vm2972_vm6, 1.0, %v12602_v41 }
 0x44f   : > { %vm2973_vm11 = vcmp.eq.s32.totalorder %v8027_v30, %v9565_v38 }
 0x452   : > { %v3207_v37 = vpop.permute.xlu1 %3206  ;;  %v3209_v36 = vpop.permute.xlu2 %3208 }
 0x453   : > { %v9592_v62 = vpop.permute.xlu0 %2957  ;;  %v9595_v40 = vadd.s32 %v3207_v37, %v12984_v56  ;;  %v2873_v37 = vmul.f32 %v6460_v18, %v12986_v20  ;;  %v2745_v56 = vmul.f32 %v2729_v54, %v12865_v29  ;;  %v12989_v54 = vld [vmem:[#allocation212_spill] sm:$0xff] }
 0x454   : > { %6498 = vmatmul.msk.f32.gmra.mxu2 %vm1462_vm10, %v3047_v5  ;;  %v2904_v5 = vadd.f32 %v2888_v0, %v2760_v11  ;;  %v2617_v0 = vmul.f32 %v2601_v3, %v12865_v29  ;;  %v3033_v3 = vmul.f32 %v3017_v28, %v12871_v52  ;;  %v12991_v28 = vld [vmem:[#allocation52_spill] sm:$0xff] }
 0x455   : > { %3260 = vperm.xlu0 %6961, %v9595_v40   ;;  %v2889_v18 = vmul.f32 %v2873_v37, %v12871_v52  ;;  %v12990_v37 = vld [vmem:[#allocation137_spill] sm:$0xff]  ;;  %v12993_v29 = vld [vmem:[#allocation300_spill] sm:$0xff] }
 0x456   : > { %v3048_v43 = vadd.f32 %v3032_v25, %v2904_v5  ;;  %v2730_v25 = vmul.f32 %v6445_v27, %v12989_v54  ;;  %v2602_v5 = vmul.f32 %v6429_v48, %v12990_v37  ;;  %v6446_v27 = vsel %vm2683_vm15, 1.0, %v12602_v41 }
 0x457   : > { %vm2974_vm15 = vcmp.eq.s32.totalorder %v8027_v30, %v9513_v12 }
 0x458   : > { %v6481_v12 = vsel %vm2974_vm15, 1.0, %v12602_v41 }
 0x45a   : > { %v3213_v45 = vpop.permute.xlu1 %3212 }
 0x45b   : > { %v3199_v63 = vpop.permute.xlu0 %3198  ;;  %v9620_v19 = vadd.s32 %v3213_v45, %v12987_v51  ;;  %v2761_v51 = vadd.f32 %v2745_v56, %v2617_v0  ;;  %v2874_v45 = vmul.f32 %v6461_v60, %v12990_v37  ;;  %v3018_v56 = vmul.f32 %v6477_v39, %v12989_v54 }
 0x45c   : > { %v9627_v11 = vadd.s32 %v3199_v63, %v12988_v35  ;;  %6499 = vmatmul.msk.f32.gmra.mxu2 %vm1462_vm10, %v3048_v43  ;;  %v2746_v63 = vmul.f32 %v2730_v25, %v12878_v53  ;;  %v9649_v0 = vadd.s32 %v3203_v8, %v12991_v28  ;;  %v2618_v37 = vmul.f32 %v2602_v5, %v12878_v53  ;;  %v12994_v25 = vld [vmem:[#allocation59_spill] sm:$0xff] }
 0x45d   : > { %3269 = vperm.xlu0 %6961, %v9620_v19   ;;  %v2905_v43 = vadd.f32 %v2889_v18, %v2761_v51  ;;  %v12992_v18 = vld [vmem:[#allocation71_spill] sm:$0xff]  ;;  %v2890_v42 = vmul.f32 %v2874_v45, %v12993_v29  ;;  %v6430_v8 = vsel %vm2555_vm0, 1.0, %v12602_v41  ;;  %v12996_v45 = vld [vmem:[#allocation226_spill] sm:$0xff]  ;;  %v3034_v26 = vmul.f32 %v3018_v56, %v12993_v29 }
 0x45e   : > { %3248 = vperm.xlu1 %6962, %v9627_v11   ;;  %v2762_v5 = vadd.f32 %v2746_v63, %v2618_v37  ;;  %vm2684_vm3 = vcmp.eq.s32.totalorder %v8027_v30, %v12996_v45  ;;  %v6478_v28 = vsel %vm2971_vm2, 1.0, %v12602_v41  ;;  %v12999_v37 = vld [vmem:[#allocation251_spill] sm:$0xff]  ;;  %v13001_v45 = vld [vmem:[#allocation64_spill] sm:$0xff] }
 0x45f   : > { %v3049_v48 = vadd.f32 %v3033_v3, %v2905_v43  ;;  %v12995_v3 = vld [vmem:[#allocation197_spill] sm:$0xff]  ;;  %v6462_v43 = vsel %vm2827_vm1, 1.0, %v12602_v41  ;;  %v9685_v53 = vadd.s32 %v3209_v36, %v13001_v45 }
 0x460   : > { %v2731_v39 = vmul.f32 %v6446_v27, %v12995_v3  ;;  %v2875_v27 = vmul.f32 %v6462_v43, %v12997_v44  ;;  %v3019_v56 = vmul.f32 %v6478_v28, %v12995_v3  ;;  %v13002_v43 = vld [vmem:[#allocation77_spill] sm:$0xff] }
 0x462   : > { %v3219_v35 = vpop.permute.xlu1 %3218  ;;  %v2747_v63 = vmul.f32 %v2731_v39, %v12999_v37  ;;  %v13003_v39 = vld [vmem:[#allocation299_spill] sm:$0xff] }
 0x463   : > { %v3205_v60 = vpop.permute.xlu0 %3204  ;;  %v9652_v51 = vadd.s32 %v3219_v35, %v12992_v18  ;;  %v2603_v35 = vmul.f32 %v6430_v8, %v12997_v44  ;;  %v6447_v18 = vsel %vm2684_vm3, 1.0, %v12602_v41  ;;  %v2891_v20 = vmul.f32 %v2875_v27, %v13003_v39  ;;  %v13006_v27 = vld [vmem:[#allocation227_spill] sm:$0xff] }
 0x464   : > { %v9659_v7 = vadd.s32 %v3205_v60, %v12994_v25  ;;  %6500 = vmatmul.msk.f32.gmra.mxu2 %vm1462_vm10, %v3049_v48  ;;  %v2906_v48 = vadd.f32 %v2890_v42, %v2762_v5  ;;  %v12998_v60 = vld [vmem:[#allocation310_spill] sm:$0xff]  ;;  %v3215_v5 = vpop.permute.xlu2 %3214  ;;  %vm2685_vm7 = vcmp.eq.s32.totalorder %v8027_v30, %v13006_v27  ;;  %vm2975_vm3 = vcmp.eq.s32.totalorder %v8027_v30, %v9511_v15  ;;  %v13035_v15 = vld [vmem:[#allocation153_spill] sm:$0xff] }
 0x465   : > { %3278 = vperm.xlu0 %6961, %v9652_v51   ;;  %vm2556_vm4 = vcmp.eq.s32.totalorder %v8027_v30, %v12998_v60  ;;  %v13000_v25 = vld [vmem:[#allocation242_spill] sm:$0xff]  ;;  %v2619_v44 = vmul.f32 %v2603_v35, %v12999_v37 }
 0x466   : > { %3254 = vperm.xlu1 %6962, %v9649_v0   ;;  %3257 = vperm.xlu2 %6963, %v9659_v7   ;;  %vm2828_vm5 = vcmp.eq.s32.totalorder %v8027_v30, %v13000_v25  ;;  %v3050_v8 = vadd.f32 %v3034_v26, %v2906_v48  ;;  %v13004_v25 = vld [vmem:[#allocation61_spill] sm:$0xff]  ;;  %v6431_v36 = vsel %vm2556_vm4, 1.0, %v12602_v41  ;;  %v13011_v27 = vld [vmem:[#allocation70_spill] sm:$0xff] }
 0x467   : > { %v6463_v28 = vsel %vm2828_vm5, 1.0, %v12602_v41  ;;  %v2763_v35 = vadd.f32 %v2747_v63, %v2619_v44  ;;  %v13007_v48 = vld [vmem:[#allocation149_spill] sm:$0xff]  ;;  %v6448_v44 = vsel %vm2685_vm7, 1.0, %v12602_v41  ;;  %v13009_v63 = vld [vmem:[#allocation262_spill] sm:$0xff]  ;;  %v9721_v37 = vadd.s32 %v3215_v5, %v13011_v27  ;;  %v13017_v27 = vld [vmem:[#allocation140_spill] sm:$0xff] }
 0x468   : > { %v2604_v60 = vmul.f32 %v6431_v36, %v13007_v48  ;;  %vm2976_vm7 = vcmp.eq.s32.totalorder %v8027_v30, %v9592_v62 }
 0x469   : > { %v2907_v45 = vadd.f32 %v2891_v20, %v2763_v35  ;;  %v13012_v20 = vld [vmem:[#allocation307_spill] sm:$0xff]  ;;  %v6483_v62 = vsel %vm2976_vm7, 1.0, %v12602_v41 }
 0x46a   : > { %v3225_v54 = vpop.permute.xlu1 %3224 }
 0x46b   : > { %v3211_v29 = vpop.permute.xlu0 %3210  ;;  %v9688_v42 = vadd.s32 %v3225_v54, %v13002_v43  ;;  %v13005_v54 = vld [vmem:[#allocation221_spill] sm:$0xff] }
 0x46c   : > { %v9695_v52 = vadd.s32 %v3211_v29, %v13004_v25  ;;  %6501 = vmatmul.msk.f32.gmra.mxu2 %vm1462_vm10, %v3050_v8  ;;  %v2732_v26 = vmul.f32 %v6447_v18, %v13005_v54  ;;  %v3035_v29 = vmul.f32 %v3019_v56, %v13003_v39  ;;  %v2876_v18 = vmul.f32 %v6463_v28, %v13007_v48  ;;  %v13008_v8 = vld [vmem:[#allocation294_spill] sm:$0xff]  ;;  %v13010_v25 = vld [vmem:[#allocation267_spill] sm:$0xff] }
 0x46d   : > { %3287 = vperm.xlu0 %6961, %v9688_v42   ;;  %vm2557_vm8 = vcmp.eq.s32.totalorder %v8027_v30, %v13008_v8  ;;  %vm2829_vm9 = vcmp.eq.s32.totalorder %v8027_v30, %v13010_v25  ;;  %v3020_v56 = vmul.f32 %v6479_v9, %v13005_v54  ;;  %v2620_v28 = vmul.f32 %v2604_v60, %v13009_v63  ;;  %v13013_v8 = vld [vmem:[#allocation68_spill] sm:$0xff]  ;;  %v13014_v9 = vld [vmem:[#allocation215_spill] sm:$0xff] }
 0x46e   : > { %3263 = vperm.xlu1 %6962, %v9685_v53   ;;  %3266 = vperm.xlu2 %6963, %v9695_v52   ;;  %v2748_v43 = vmul.f32 %v2732_v26, %v13009_v63  ;;  %v3051_v3 = vadd.f32 %v3035_v29, %v2907_v45  ;;  %v2892_v35 = vmul.f32 %v2876_v18, %v13012_v20  ;;  %v6432_v26 = vsel %vm2557_vm8, 1.0, %v12602_v41  ;;  %v13015_v29 = vld [vmem:[#allocation17_spill] sm:$0xff]  ;;  %v3221_v45 = vpop.permute.xlu2 %3220  ;;  %v13016_v60 = vld [vmem:[#allocation276_spill] sm:$0xff] }
 0x46f   : > { %v2733_v25 = vmul.f32 %v6448_v44, %v13014_v9  ;;  %v6464_v5 = vsel %vm2829_vm9, 1.0, %v12602_v41  ;;  %vm2686_vm12 = vcmp.eq.s32.totalorder %v8027_v30, %v13016_v60  ;;  %v3036_v38 = vmul.f32 %v3020_v56, %v13012_v20  ;;  %v13018_v63 = vld [vmem:[#allocation265_spill] sm:$0xff] }
 0x470   : > { %v2764_v18 = vadd.f32 %v2748_v43, %v2620_v28  ;;  %v2877_v44 = vmul.f32 %v6464_v5, %v13017_v27  ;;  %vm2558_vm13 = vcmp.eq.s32.totalorder %v8027_v30, %v13018_v63  ;;  %v13019_v60 = vld [vmem:[#allocation257_spill] sm:$0xff]  ;;  %v13020_v28 = vld [vmem:[#allocation76_spill] sm:$0xff]  ;;  %v13022_v63 = vld [vmem:[#allocation74_spill] sm:$0xff] }
 0x471   : > { %v2749_v43 = vmul.f32 %v2733_v25, %v13019_v60  ;;  %v9751_v54 = vadd.s32 %v3221_v45, %v13020_v28  ;;  %v6433_v31 = vsel %vm2558_vm13, 1.0, %v12602_v41  ;;  %v13023_v25 = vld [vmem:[#allocation201_spill] sm:$0xff]  ;;  %v6465_v45 = vsel %vm2830_vm14, 1.0, %v12602_v41  ;;  %v13025_v28 = vld [vmem:[#allocation146_spill] sm:$0xff] }
 0x473   : > { %v3217_v36 = vpop.permute.xlu0 %3216 }
 0x474   : > { %v9728_v48 = vadd.s32 %v3217_v36, %v13013_v8  ;;  %6502 = vmatmul.msk.f32.gmra.mxu2 %vm1462_vm10, %v3051_v3  ;;  %v6480_v3 = vsel %vm2973_vm11, 1.0, %v12602_v41  ;;  %v2605_v36 = vmul.f32 %v6432_v26, %v13017_v27  ;;  %v2908_v8 = vadd.f32 %v2892_v35, %v2764_v18  ;;  %v13021_v35 = vld [vmem:[#allocation302_spill] sm:$0xff] }
 0x475   : > { %3361 = vperm.xlu0 %6961, %v13015_v29   ;;  %v6449_v29 = vsel %vm2686_vm12, 1.0, %v12602_v41  ;;  %v3021_v56 = vmul.f32 %v6480_v3, %v13014_v9  ;;  %v2893_v18 = vmul.f32 %v2877_v44, %v13021_v35  ;;  %v13030_v9 = vld [vmem:[#allocation80_spill] sm:$0xff]  ;;  %vm2833_vm11 = vcmp.eq.s32.totalorder %v8027_v30, %v9470_v55  ;;  %v13053_v55 = vld [vmem:[#allocation205_spill] sm:$0xff] }
 0x476   : > { %3272 = vperm.xlu1 %6962, %v9721_v37   ;;  %3275 = vperm.xlu2 %6963, %v9728_v48   ;;  %v3052_v20 = vadd.f32 %v3036_v38, %v2908_v8  ;;  %v2621_v5 = vmul.f32 %v2605_v36, %v13019_v60  ;;  %v2734_v3 = vmul.f32 %v6449_v29, %v13023_v25  ;;  %v13024_v38 = vld [vmem:[#allocation33_spill] sm:$0xff]  ;;  %v3227_v44 = vpop.permute.xlu2 %3226  ;;  %v13027_v60 = vld [vmem:[#allocation283_spill] sm:$0xff] }
 0x477   : > { %v3037_v36 = vmul.f32 %v3021_v56, %v13021_v35  ;;  %v2878_v29 = vmul.f32 %v6465_v45, %v13025_v28  ;;  %vm2559_vm1 = vcmp.eq.s32.totalorder %v8027_v30, %v13027_v60  ;;  %v9780_v35 = vadd.s32 %v3227_v44, %v13030_v9  ;;  %v13031_v45 = vld [vmem:[#allocation301_spill] sm:$0xff] }
 0x478   : > { %v2765_v8 = vadd.f32 %v2749_v43, %v2621_v5  ;;  %v13028_v43 = vld [vmem:[#allocation256_spill] sm:$0xff]  ;;  %v6434_v60 = vsel %vm2559_vm1, 1.0, %v12602_v41  ;;  %vm2977_vm12 = vcmp.eq.s32.totalorder %v8027_v30, %v9536_v10 }
 0x479   : > { %v2750_v56 = vmul.f32 %v2734_v3, %v13028_v43  ;;  %v13029_v5 = vld [vmem:[#allocation280_spill] sm:$0xff]  ;;  %v6484_v10 = vsel %vm2977_vm12, 1.0, %v12602_v41 }
 0x47a   : > { %vm2831_vm2 = vcmp.eq.s32.totalorder %v8027_v30, %v13029_v5  ;;  %v13036_v5 = vld [vmem:[#allocation268_spill] sm:$0xff] }
 0x47b   : > { %v3223_v26 = vpop.permute.xlu0 %3222  ;;  %v6466_v3 = vsel %vm2831_vm2, 1.0, %v12602_v41  ;;  %vm2688_vm4 = vcmp.eq.s32.totalorder %v8027_v30, %v13036_v5  ;;  %v13041_v5 = vld [vmem:[#allocation308_spill] sm:$0xff] }
 0x47c   : > { %v9758_v27 = vadd.s32 %v3223_v26, %v13022_v63  ;;  %6503 = vmatmul.msk.f32.gmra.mxu2 %vm1462_vm10, %v3052_v20  ;;  %v2606_v20 = vmul.f32 %v6433_v31, %v13025_v28  ;;  %v13026_v26 = vld [vmem:[#allocation287_spill] sm:$0xff]  ;;  %v2909_v63 = vadd.f32 %v2893_v18, %v2765_v8  ;;  %v2894_v18 = vmul.f32 %v2878_v29, %v13031_v45  ;;  %v13049_v28 = vld [vmem:[#allocation238_spill] sm:$0xff] }
 0x47d   : > { %3373 = vperm.xlu0 %6961, %v13024_v38   ;;  %vm2687_vm0 = vcmp.eq.s32.totalorder %v8027_v30, %v13026_v26  ;;  %v3022_v38 = vmul.f32 %v6481_v12, %v13023_v25  ;;  %v13032_v8 = vld [vmem:[#allocation39_spill] sm:$0xff]  ;;  %v13033_v12 = vld [vmem:[#allocation222_spill] sm:$0xff]  ;;  %v6482_v29 = vsel %vm2975_vm3, 1.0, %v12602_v41  ;;  %v9808_v25 = vpop.f32.mrf.mxu1  ;;  %vm2561_vm9 = vcmp.eq.s32.totalorder %v8027_v30, %v13049_v28 }
 0x47e   : > { %3281 = vperm.xlu1 %6962, %v9751_v54   ;;  %3284 = vperm.xlu2 %6963, %v9758_v27   ;;  %v3053_v31 = vadd.f32 %v3037_v36, %v2909_v63  ;;  %v6450_v39 = vsel %vm2687_vm0, 1.0, %v12602_v41  ;;  %v2622_v26 = vmul.f32 %v2606_v20, %v13028_v43  ;;  %v13034_v20 = vld [vmem:[#allocation24_spill] sm:$0xff]  ;;  %v2607_v63 = vmul.f32 %v6434_v60, %v13035_v15 }
 0x47f   : > { %v2735_v36 = vmul.f32 %v6450_v39, %v13033_v12  ;;  %v3038_v44 = vmul.f32 %v3022_v38, %v13031_v45  ;;  %v13038_v39 = vld [vmem:[#allocation263_spill] sm:$0xff]  ;;  %v6451_v45 = vsel %vm2688_vm4, 1.0, %v12602_v41  ;;  %13040 = vst [vmem:[#allocation2_spill] sm:$0xff] %v9808_v25  ;;  %v6436_v28 = vsel %vm2561_vm9, 1.0, %v12602_v41 }
 0x480   : > { %v2766_v9 = vadd.f32 %v2750_v56, %v2622_v26  ;;  %v13039_v38 = vld [vmem:[#allocation295_spill] sm:$0xff]  ;;  %v3023_v26 = vmul.f32 %v6482_v29, %v13033_v12  ;;  %v2623_v60 = vmul.f32 %v2607_v63, %v13038_v39  ;;  %v13048_v12 = vld [vmem:[#allocation288_spill] sm:$0xff] }
 0x481   : > { %v2751_v56 = vmul.f32 %v2735_v36, %v13038_v39  ;;  %vm2832_vm6 = vcmp.eq.s32.totalorder %v8027_v30, %v13039_v38  ;;  %v13042_v36 = vld [vmem:[#allocation45_spill] sm:$0xff]  ;;  %v13045_v38 = vld [vmem:[#allocation27_spill] sm:$0xff]  ;;  %vm2689_vm8 = vcmp.eq.s32.totalorder %v8027_v30, %v13048_v12 }
 0x482   : > { %v2910_v43 = vadd.f32 %v2894_v18, %v2766_v9  ;;  %v6467_v9 = vsel %vm2832_vm6, 1.0, %v12602_v41 }
 0x483   : > { %v2767_v63 = vadd.f32 %v2751_v56, %v2623_v60 }
 0x484   : > { %6504 = vmatmul.msk.f32.gmra.mxu2 %vm1462_vm10, %v3053_v31  ;;  %v2879_v31 = vmul.f32 %v6466_v3, %v13035_v15 }
 0x485   : > { %3385 = vperm.xlu0 %6961, %v13032_v8   ;;  %v13037_v8 = vld [vmem:[#allocation309_spill] sm:$0xff] }
 0x486   : > { %3290 = vperm.xlu1 %6962, %v9780_v35   ;;  %3357 = vperm.xlu2 %6963, %v13034_v20   ;;  %vm2560_vm5 = vcmp.eq.s32.totalorder %v8027_v30, %v13037_v8  ;;  %v3054_v20 = vadd.f32 %v3038_v44, %v2910_v43  ;;  %v2895_v3 = vmul.f32 %v2879_v31, %v13041_v5  ;;  %v9817_v43 = vpop.f32.mrf.mxu0  ;;  %v13044_v44 = vld [vmem:[#allocation218_spill] sm:$0xff]  ;;  %v13046_v31 = vld [vmem:[#allocation23_spill] sm:$0xff] }
 0x487   : > { %v6435_v18 = vsel %vm2560_vm5, 1.0, %v12602_v41  ;;  %13043 = vst [vmem:[#allocation232_spill] sm:$0xff] %v9817_v43  ;;  %v2736_v29 = vmul.f32 %v6451_v45, %v13044_v44  ;;  %v3039_v8 = vmul.f32 %v3023_v26, %v13041_v5  ;;  %v13050_v45 = vld [vmem:[#allocation260_spill] sm:$0xff]  ;;  %v3024_v26 = vmul.f32 %v6483_v62, %v13044_v44  ;;  %v13056_v62 = vld [vmem:[#allocation29_spill] sm:$0xff] }
 0x488   : > { %v2911_v39 = vadd.f32 %v2895_v3, %v2767_v63  ;;  %v6468_v3 = vsel %vm2833_vm11, 1.0, %v12602_v41  ;;  %v9844_v63 = vpop.f32.mrf.mxu1 }
 0x489   : > { %v2752_v56 = vmul.f32 %v2736_v29, %v13050_v45  ;;  %13054 = vst [vmem:[#allocation292_spill] sm:$0xff] %v9844_v63  ;;  %v13061_v63 = vld [vmem:[#allocation36_spill] sm:$0xff] }
 0x48a   : > { %v3055_v60 = vadd.f32 %v3039_v8, %v2911_v39  ;;  %v13055_v8 = vld [vmem:[#allocation30_spill] sm:$0xff] }
 0x48c   : > { %6505 = vmatmul.msk.f32.gmra.mxu2 %vm1462_vm10, %v3054_v20  ;;  %v13047_v20 = vld [vmem:[#allocation144_spill] sm:$0xff] }
 0x48d   : > { %3397 = vperm.xlu0 %6961, %v13042_v36   ;;  %v2608_v15 = vmul.f32 %v6435_v18, %v13047_v20  ;;  %v2880_v36 = vmul.f32 %v6467_v9, %v13047_v20  ;;  %v13052_v9 = vld [vmem:[#allocation49_spill] sm:$0xff]  ;;  %v13059_v20 = vld [vmem:[#allocation259_spill] sm:$0xff] }
 0x48e   : > { %3365 = vperm.xlu1 %6962, %v13045_v38   ;;  %3369 = vperm.xlu2 %6963, %v13046_v31   ;;  %v6452_v38 = vsel %vm2689_vm8, 1.0, %v12602_v41  ;;  %v13051_v31 = vld [vmem:[#allocation305_spill] sm:$0xff] }
 0x48f   : > { %v2624_v18 = vmul.f32 %v2608_v15, %v13050_v45  ;;  %v2896_v12 = vmul.f32 %v2880_v36, %v13051_v31  ;;  %v2737_v29 = vmul.f32 %v6452_v38, %v13053_v55  ;;  %v3040_v15 = vmul.f32 %v3024_v26, %v13051_v31  ;;  %v9850_v36 = vpop.f32.mrf.mxu0  ;;  %v13060_v31 = vld [vmem:[#allocation304_spill] sm:$0xff] }
 0x490   : > { %13057 = vst [vmem:[#allocation272_spill] sm:$0xff] %v9850_v36  ;;  %v3436_v26 = vadd.s32 1, %v9542_v61 }
 0x491   : > { %v2768_v39 = vadd.f32 %v2752_v56, %v2624_v18  ;;  %v2753_v38 = vmul.f32 %v2737_v29, %v13059_v20  ;;  %v3025_v56 = vmul.f32 %v6484_v10, %v13053_v55  ;;  %v13066_v10 = vld [vmem:[#allocation41_spill] sm:$0xff] }
 0x494   : > { %6506 = vmatmul.msk.f32.gmra.mxu2 %vm1462_vm10, %v3055_v60  ;;  %v13058_v60 = vld [vmem:[#allocation150_spill] sm:$0xff] }
 0x495   : > { %3409 = vperm.xlu0 %6961, %v13052_v9   ;;  %v2609_v45 = vmul.f32 %v6436_v28, %v13058_v60  ;;  %v2881_v44 = vmul.f32 %v6468_v3, %v13058_v60  ;;  %v2912_v9 = vadd.f32 %v2896_v12, %v2768_v39  ;;  %v3041_v28 = vmul.f32 %v3025_v56, %v13060_v31  ;;  %v13062_v12 = vld [vmem:[#allocation35_spill] sm:$0xff]  ;;  %v9863_v3 = vpop.f32.mrf.mxu1 }
 0x496   : > { %3377 = vperm.xlu1 %6962, %v13055_v8   ;;  %3381 = vperm.xlu2 %6963, %v13056_v62   ;;  %13063 = vst [vmem:[#allocation9_spill] sm:$0xff] %v9863_v3 }
 0x497   : > { %v3056_v18 = vadd.f32 %v3040_v15, %v2912_v9  ;;  %v2625_v8 = vmul.f32 %v2609_v45, %v13059_v20  ;;  %v2897_v62 = vmul.f32 %v2881_v44, %v13060_v31  ;;  %v9865_v39 = vpop.f32.mrf.mxu0  ;;  %v3439_v45 = vadd.s32 1, %v9649_v0  ;;  %v13065_v44 = vld [vmem:[#allocation42_spill] sm:$0xff] }
 0x498   : > { %13064 = vst [vmem:[#allocation231_spill] sm:$0xff] %v9865_v39  ;;  %v3444_v31 = vadd.s32 1, %v9620_v19  ;;  %v3443_v20 = vadd.s32 1, %v9695_v52 }
 0x499   : > { %v2769_v5 = vadd.f32 %v2753_v38, %v2625_v8 }
 0x49b   : > { %v2913_v29 = vadd.f32 %v2897_v62, %v2769_v5  ;;  %v13070_v5 = vld [vmem:[#allocation48_spill] sm:$0xff]  ;;  %v3438_v62 = vadd.s32 1, %v9568_v50 }
 0x49c   : > { %6507 = vmatmul.msk.f32.gmra.mxu2 %vm1462_vm10, %v3056_v18  ;;  %v13071_v18 = vld [vmem:[#allocation47_spill] sm:$0xff] }
 0x49d   : > { %3453 = vperm.xlu0 %6961, %v3436_v26   ;;  %v3057_v15 = vadd.f32 %v3041_v28, %v2913_v29  ;;  %v9871_v9 = vpop.f32.mrf.mxu1  ;;  %v3445_v26 = vadd.s32 1, %v9721_v37  ;;  %v3437_v28 = vadd.s32 1, %v9627_v11 }
 0x49e   : > { %3389 = vperm.xlu1 %6962, %v13061_v63   ;;  %3393 = vperm.xlu2 %6963, %v13062_v12   ;;  %13067 = vst [vmem:[#allocation291_spill] sm:$0xff] %v9871_v9  ;;  %v3442_v63 = vadd.s32 1, %v9685_v53 }
 0x49f   : > { %v9874_v38 = vpop.f32.mrf.mxu0 }
 0x4a0   : > { %13068 = vst [vmem:[#allocation271_spill] sm:$0xff] %v9874_v38 }
 0x4a4   : > { %6508 = vmatmul.msk.f32.gmra.mxu2 %vm1462_vm10, %v3057_v15 }
 0x4a5   : > { %3462 = vperm.xlu0 %6961, %v3439_v45   ;;  %v9881_v8 = vpop.f32.mrf.mxu1  ;;  %v3448_v45 = vadd.s32 1, %v9751_v54 }
 0x4a6   : > { %3401 = vperm.xlu1 %6962, %v13065_v44   ;;  %3405 = vperm.xlu2 %6963, %v13066_v10   ;;  %v9876_v56 = vpop.f32.mrf.mxu2  ;;  %13072 = vst [vmem:[#allocation12_spill] sm:$0xff] %v9881_v8  ;;  %v3441_v44 = vadd.s32 1, %v9595_v40  ;;  %v3440_v10 = vadd.s32 1, %v9659_v7  ;;  %v3446_v8 = vadd.s32 1, %v9728_v48 }
 0x4a7   : > { %13069 = vst [vmem:[#allocation3_spill] sm:$0xff] %v9876_v56  ;;  %v9885_v12 = vpop.f32.mrf.mxu0  ;;  %v9889_v15 = vpop.permute.xlu2 %3251 }
 0x4a8   : > { %13073 = vst [vmem:[#allocation5_spill] sm:$0xff] %v9885_v12  ;;  %vm3294_vm12 = vcmp.eq.s32.totalorder %v8027_v30, %v9889_v15 }
 0x4ad   : > { %3471 = vperm.xlu0 %6961, %v3442_v63   ;;  %v9894_v63 = vpop.f32.mrf.mxu1 }
 0x4ae   : > { %3413 = vperm.xlu1 %6962, %v13070_v5   ;;  %3417 = vperm.xlu2 %6963, %v13071_v18   ;;  %v9887_v29 = vpop.f32.mrf.mxu2  ;;  %13075 = vst [vmem:[#allocation298_spill] sm:$0xff] %v9894_v63  ;;  %v9918_v63 = vadd.s32 8, %v9568_v50  ;;  %v9934_v50 = vadd.s32 8, %v9595_v40  ;;  %v9950_v40 = vadd.s32 8, %v9620_v19 }
 0x4af   : > { %13074 = vst [vmem:[#allocation248_spill] sm:$0xff] %v9887_v29 }
 0x4b5   : > { %3480 = vperm.xlu0 %6961, %v3445_v26   ;;  %v9900_v26 = vpop.f32.mrf.mxu0 }
 0x4b6   : > { %3456 = vperm.xlu1 %6962, %v3437_v28   ;;  %3459 = vperm.xlu2 %6963, %v3438_v62   ;;  %13077 = vst [vmem:[#allocation16_spill] sm:$0xff] %v9900_v26  ;;  %v3451_v28 = vadd.s32 1, %v9780_v35  ;;  %v3447_v26 = vadd.s32 1, %v9652_v51 }
 0x4b7   : > { %v9896_v5 = vpop.permute.xlu0 %3245 }
 0x4b8   : > { %vm3292_vm14 = vcmp.eq.s32.totalorder %v8027_v30, %v9896_v5  ;;  %v13196_v5 = vld [vmem:[#allocation83_spill] sm:$0xff] }
 0x4bd   : > { %3489 = vperm.xlu0 %6961, %v3448_v45   ;;  %v9915_v55 = vpop.f32.mrf.mxu0 }
 0x4be   : > { %3465 = vperm.xlu1 %6962, %v3440_v10   ;;  %3468 = vperm.xlu2 %6963, %v3441_v44   ;;  %v9911_v10 = vpop.f32.mrf.mxu1  ;;  %13081 = vst [vmem:[#allocation293_spill] sm:$0xff] %v9915_v55 }
 0x4bf   : > { %v9898_v18 = vpop.f32.mrf.mxu2  ;;  %13079 = vst [vmem:[#allocation6_spill] sm:$0xff] %v9911_v10 }
 0x4c0   : > { %13076 = vst [vmem:[#allocation284_spill] sm:$0xff] %v9898_v18  ;;  %v9902_v62 = vpop.permute.xlu2 %3257  ;;  %v9956_v18 = vadd.s32 8, %v9627_v11  ;;  %v9973_v11 = vadd.s32 8, %v9659_v7 }
 0x4c5   : > { %3498 = vperm.xlu0 %6961, %v3451_v28   ;;  %v9936_v12 = vpop.f32.mrf.mxu0 }
 0x4c6   : > { %3474 = vperm.xlu1 %6962, %v3443_v20   ;;  %3477 = vperm.xlu2 %6963, %v3444_v31   ;;  %v9931_v55 = vpop.f32.mrf.mxu1  ;;  %13086 = vst [vmem:[#allocation10_spill] sm:$0xff] %v9936_v12  ;;  %v9953_v12 = vadd.s32 8, %v9542_v61  ;;  %v9970_v61 = vadd.s32 8, %v9652_v51 }
 0x4c7   : > { %v9907_v45 = vpop.f32.mrf.mxu2  ;;  %v9909_v44 = vpop.permute.xlu0 %3260  ;;  %13085 = vst [vmem:[#allocation11_spill] sm:$0xff] %v9931_v55 }
 0x4c8   : > { %13078 = vst [vmem:[#allocation4_spill] sm:$0xff] %v9907_v45  ;;  %v9913_v60 = vpop.permute.xlu2 %3266  ;;  %v3450_v45 = vadd.s32 1, %v9688_v42 }
 0x4c9   : > { %13080 = vst [vmem:[#allocation237_spill] sm:$0xff] %v9913_v60 }
 0x4ca   : > { %13093 = vst [vmem:[#allocation207_spill] sm:$0xff] %v9970_v61 }
 0x4cd   : > { %3619 = vperm.xlu0 %6961, %v9918_v63  }
 0x4ce   : > { %3483 = vperm.xlu1 %6962, %v3446_v8   ;;  %3486 = vperm.xlu2 %6963, %v3447_v26   ;;  %v3449_v8 = vadd.s32 1, %v9758_v27  ;;  %v2458_v38 = vpop.f32.mrf.mxu1 }
 0x4cf   : > { %v9923_v20 = vpop.f32.mrf.mxu2  ;;  %v9925_v31 = vpop.permute.xlu0 %3269 }
 0x4d0   : > { %13082 = vst [vmem:[#allocation21_spill] sm:$0xff] %v9923_v20  ;;  %v9927_v28 = vpop.permute.xlu2 %3275  ;;  %v9929_v10 = vpop.permute.xlu1 %3248 }
 0x4d1   : > { %13083 = vst [vmem:[#allocation8_spill] sm:$0xff] %v9925_v31  ;;  %vm3293_vm2 = vcmp.eq.s32.totalorder %v8027_v30, %v9929_v10 }
 0x4d2   : > { %13084 = vst [vmem:[#allocation7_spill] sm:$0xff] %v9927_v28  ;;  %v9997_v28 = vadd.s32 8, %v9695_v52 }
 0x4d5   : > { %3628 = vperm.xlu0 %6961, %v9934_v50  }
 0x4d6   : > { %3492 = vperm.xlu1 %6962, %v3449_v8   ;;  %3495 = vperm.xlu2 %6963, %v3450_v45   ;;  %v1552_v45 = vpop.f32.mrf.mxu0  ;;  %v9979_v3 = vpop.f32.mrf.mxu1 }
 0x4d7   : > { %v9941_v26 = vpop.f32.mrf.mxu2  ;;  %v9943_v20 = vpop.permute.xlu0 %3278  ;;  %13094 = vst [vmem:[#allocation190_spill] sm:$0xff] %v9979_v3  ;;  %v10000_v3 = vadd.s32 8, %v9685_v53  ;;  %v10014_v53 = vadd.s32 8, %v9728_v48  ;;  %v10033_v48 = vadd.s32 8, %v9758_v27 }
 0x4d8   : > { %13087 = vst [vmem:[#allocation14_spill] sm:$0xff] %v9941_v26  ;;  %v9945_v9 = vpop.permute.xlu2 %3284  ;;  %v9947_v55 = vpop.permute.xlu1 %3254 }
 0x4d9   : > { %13088 = vst [vmem:[#allocation13_spill] sm:$0xff] %v9943_v20  ;;  %v9976_v20 = vadd.s32 8, %v9649_v0  ;;  %v9994_v0 = vadd.s32 8, %v9688_v42 }
 0x4da   : > { %13089 = vst [vmem:[#allocation18_spill] sm:$0xff] %v9945_v9 }
 0x4db   : > { %13098 = vst [vmem:[#allocation57_spill] sm:$0xff] %v9994_v0 }
 0x4dc   : > { %13102 = vst [vmem:[#allocation71_spill] sm:$0xff] %v10014_v53 }
 0x4dd   : > { %3637 = vperm.xlu0 %6961, %v9950_v40   ;;  %13109 = vst [vmem:[#allocation77_spill] sm:$0xff] %v10033_v48 }
 0x4de   : > { %3613 = vperm.xlu1 %6962, %v9953_v12   ;;  %3616 = vperm.xlu2 %6963, %v9956_v18   ;;  %v9991_v7 = vpop.f32.mrf.mxu0  ;;  %v2464_v52 = vpop.f32.mrf.mxu1 }
 0x4df   : > { %v9961_v8 = vpop.f32.mrf.mxu2  ;;  %v9963_v9 = vpop.permute.xlu0 %3287  ;;  %13097 = vst [vmem:[#allocation54_spill] sm:$0xff] %v9991_v7 }
 0x4e0   : > { %13090 = vst [vmem:[#allocation186_spill] sm:$0xff] %v9961_v8  ;;  %v9965_v19 = vpop.permute.xlu2 %3357  ;;  %v9967_v26 = vpop.permute.xlu1 %3263 }
 0x4e1   : > { %13091 = vst [vmem:[#allocation213_spill] sm:$0xff] %v9963_v9 }
 0x4e2   : > { %13092 = vst [vmem:[#allocation136_spill] sm:$0xff] %v9967_v26 }
 0x4e5   : > { %3646 = vperm.xlu0 %6961, %v9970_v61  }
 0x4e6   : > { %3622 = vperm.xlu1 %6962, %v9976_v20   ;;  %3625 = vperm.xlu2 %6963, %v9973_v11   ;;  %v1558_v56 = vpop.f32.mrf.mxu0 }
 0x4e7   : > { %v9983_v9 = vpop.f32.mrf.mxu2  ;;  %v9985_v8 = vpop.permute.xlu0 %3361  ;;  %v2492_v43 = vmul.f32 %v2464_v52, %v1558_v56  ;;  %v13118_v56 = vld [vmem:[#allocation19_spill] sm:$0xff] }
 0x4e8   : > { %13095 = vst [vmem:[#allocation130_spill] sm:$0xff] %v9983_v9  ;;  %v9987_v51 = vpop.permute.xlu2 %3369  ;;  %v9989_v39 = vpop.permute.xlu1 %3272  ;;  %v2490_v9 = vmul.f32 %v2458_v38, %v1552_v45  ;;  %v10017_v38 = vadd.s32 8, %v9721_v37  ;;  %v13103_v45 = vld [vmem:[#allocation15_spill] sm:$0xff]  ;;  %v10036_v37 = vadd.s32 8, %v9751_v54  ;;  %v10052_v54 = vadd.s32 8, %v9780_v35 }
 0x4e9   : > { %13096 = vst [vmem:[#allocation50_spill] sm:$0xff] %v9989_v39 }
 0x4ea   : > { %13110 = vst [vmem:[#allocation61_spill] sm:$0xff] %v10036_v37 }
 0x4eb   : > { %13116 = vst [vmem:[#allocation68_spill] sm:$0xff] %v10052_v54 }
 0x4ed   : > { %3655 = vperm.xlu0 %6961, %v9994_v0   ;;  %v10030_v0 = vpop.f32.mrf.mxu1 }
 0x4ee   : > { %3631 = vperm.xlu1 %6962, %v10000_v3   ;;  %3634 = vperm.xlu2 %6963, %v9997_v28   ;;  %13108 = vst [vmem:[#allocation64_spill] sm:$0xff] %v10030_v0  ;;  %v10039_v25 = vpop.f32.mrf.mxu0 }
 0x4ef   : > { %v3156_v29 = vpop.f32.mrf.mxu2  ;;  %v10005_v39 = vpop.permute.xlu0 %3373  ;;  %13112 = vst [vmem:[#allocation227_spill] sm:$0xff] %v10039_v25 }
 0x4f0   : > { %v10007_v7 = vmul.f32 %v3156_v29, %v2490_v9  ;;  %v10009_v42 = vpop.permute.xlu2 %3381  ;;  %v10011_v36 = vpop.permute.xlu1 %3281 }
 0x4f1   : > { %13100 = vst [vmem:[#allocation53_spill] sm:$0xff] %v10009_v42 }
 0x4f2   : > { %13099 = vst [vmem:[#allocation65_spill] sm:$0xff] %v10007_v7 }
 0x4f3   : > { %13101 = vst [vmem:[#allocation52_spill] sm:$0xff] %v10011_v36 }
 0x4f5   : > { %3729 = vperm.xlu0 %6961, %v13103_v45   ;;  %v13111_v45 = vld [vmem:[#allocation28_spill] sm:$0xff]  ;;  %v2470_v25 = vpop.f32.mrf.mxu1 }
 0x4f6   : > { %3640 = vperm.xlu1 %6962, %v10017_v38   ;;  %3643 = vperm.xlu2 %6963, %v10014_v53  }
 0x4f7   : > { %v10022_v9 = vpop.f32.mrf.mxu2  ;;  %v10024_v29 = vpop.permute.xlu0 %3385 }
 0x4f8   : > { %13104 = vst [vmem:[#allocation59_spill] sm:$0xff] %v10022_v9  ;;  %v10026_v7 = vpop.permute.xlu2 %3393  ;;  %v10028_v36 = vpop.permute.xlu1 %3290 }
 0x4f9   : > { %13105 = vst [vmem:[#allocation226_spill] sm:$0xff] %v10024_v29 }
 0x4fa   : > { %13106 = vst [vmem:[#allocation310_spill] sm:$0xff] %v10026_v7 }
 0x4fb   : > { %13107 = vst [vmem:[#allocation242_spill] sm:$0xff] %v10028_v36 }
 0x4fd   : > { %3741 = vperm.xlu0 %6961, %v13111_v45   ;;  %v13117_v45 = vld [vmem:[#allocation34_spill] sm:$0xff] }
 0x4fe   : > { %3649 = vperm.xlu1 %6962, %v10036_v37   ;;  %3652 = vperm.xlu2 %6963, %v10033_v48   ;;  %v13140_v37 = vld [vmem:[#allocation38_spill] sm:$0xff] }
 0x4ff   : > { %v3162_v9 = vpop.f32.mrf.mxu2  ;;  %v10043_v7 = vpop.permute.xlu0 %3397 }
 0x500   : > { %13113 = vst [vmem:[#allocation294_spill] sm:$0xff] %v10043_v7  ;;  %v10045_v36 = vmul.f32 %v3162_v9, %v2492_v43  ;;  %v10047_v0 = vpop.permute.xlu2 %3405  ;;  %v10049_v27 = vpop.permute.xlu1 %3365  ;;  %v13123_v7 = vld [vmem:[#allocation22_spill] sm:$0xff] }
 0x501   : > { %13115 = vst [vmem:[#allocation70_spill] sm:$0xff] %v10047_v0  ;;  %v13122_v0 = vld [vmem:[#allocation40_spill] sm:$0xff] }
 0x502   : > { %13114 = vst [vmem:[#allocation267_spill] sm:$0xff] %v10045_v36  ;;  %v1564_v36 = vpop.f32.mrf.mxu0 }
 0x503   : > { %v2494_v35 = vmul.f32 %v2470_v25, %v1564_v36  ;;  %v13129_v25 = vld [vmem:[#allocation26_spill] sm:$0xff]  ;;  %v13130_v36 = vld [vmem:[#allocation25_spill] sm:$0xff] }
 0x505   : > { %3753 = vperm.xlu0 %6961, %v13117_v45   ;;  %v13124_v45 = vld [vmem:[#allocation20_spill] sm:$0xff] }
 0x506   : > { %3658 = vperm.xlu1 %6962, %v10052_v54   ;;  %3725 = vperm.xlu2 %6963, %v13118_v56  }
 0x507   : > { %v10057_v52 = vpop.f32.mrf.mxu2  ;;  %v10059_v48 = vpop.permute.xlu0 %3409 }
 0x508   : > { %13119 = vst [vmem:[#allocation17_spill] sm:$0xff] %v10057_v52  ;;  %v10061_v43 = vpop.permute.xlu2 %3417  ;;  %v10063_v9 = vpop.permute.xlu1 %3377 }
 0x509   : > { %13120 = vst [vmem:[#allocation276_spill] sm:$0xff] %v10059_v48 }
 0x50a   : > { %13121 = vst [vmem:[#allocation265_spill] sm:$0xff] %v10061_v43  ;;  %v10076_v43 = vpop.f32.mrf.mxu1  ;;  %v10078_v17 = vpop.f32.mrf.mxu0 }
 0x50b   : > { %13127 = vst [vmem:[#allocation33_spill] sm:$0xff] %v10076_v43  ;;  %v13133_v43 = vld [vmem:[#allocation135_spill] sm:$0xff] }
 0x50c   : > { %13128 = vst [vmem:[#allocation287_spill] sm:$0xff] %v10078_v17 }
 0x50d   : > { %3765 = vperm.xlu0 %6961, %v13122_v0   ;;  %v3820_v0 = vadd.s32 1, %v9953_v12  ;;  %v13135_v12 = vld [vmem:[#allocation31_spill] sm:$0xff] }
 0x50e   : > { %3733 = vperm.xlu1 %6962, %v13123_v7   ;;  %3737 = vperm.xlu2 %6963, %v13124_v45  }
 0x50f   : > { %v3168_v58 = vpop.f32.mrf.mxu2  ;;  %v10068_v54 = vpop.permute.xlu0 %3453 }
 0x510   : > { %v10070_v56 = vmul.f32 %v3168_v58, %v2494_v35  ;;  %v10072_v52 = vpop.permute.xlu2 %3459  ;;  %v10074_v48 = vpop.permute.xlu1 %3389  ;;  %vm3500_vm13 = vcmp.eq.s32.totalorder %v8027_v30, %v10068_v54  ;;  %v13195_v54 = vld [vmem:[#allocation170_spill] sm:$0xff] }
 0x511   : > { %13126 = vst [vmem:[#allocation74_spill] sm:$0xff] %v10074_v48  ;;  %vm3502_vm7 = vcmp.eq.s32.totalorder %v8027_v30, %v10072_v52 }
 0x512   : > { %13125 = vst [vmem:[#allocation76_spill] sm:$0xff] %v10070_v56  ;;  %v2476_v56 = vpop.f32.mrf.mxu1  ;;  %v1570_v48 = vpop.f32.mrf.mxu0  ;;  %v6527_v52 = vsel %vm3502_vm7, 1.0, %v12602_v41 }
 0x513   : > { %v2496_v17 = vmul.f32 %v2476_v56, %v1570_v48 }
 0x515   : > { %3837 = vperm.xlu0 %6961, %v3820_v0  }
 0x516   : > { %3745 = vperm.xlu1 %6962, %v13129_v25   ;;  %3749 = vperm.xlu2 %6963, %v13130_v36  }
 0x517   : > { %v10083_v7 = vpop.f32.mrf.mxu2  ;;  %v10085_v45 = vpop.permute.xlu0 %3462 }
 0x518   : > { %13131 = vst [vmem:[#allocation283_spill] sm:$0xff] %v10083_v7  ;;  %v10087_v58 = vpop.permute.xlu2 %3468  ;;  %v10089_v35 = vpop.permute.xlu1 %3401 }
 0x519   : > { %13132 = vst [vmem:[#allocation280_spill] sm:$0xff] %v10089_v35  ;;  %v3821_v35 = vadd.s32 1, %v9956_v18 }
 0x51d   : > { %4391 = vperm.xlu0 %6961, %v13133_v43   ;;  %v13141_v43 = vld [vmem:[#allocation37_spill] sm:$0xff] }
 0x51e   : > { %3757 = vperm.xlu1 %6962, %v13134_v13   ;;  %3761 = vperm.xlu2 %6963, %v13135_v12   ;;  %v13144_v12 = vld [vmem:[#allocation183_spill] sm:$0xff] }
 0x51f   : > { %v3174_v0 = vpop.f32.mrf.mxu2  ;;  %v10094_v25 = vpop.permute.xlu0 %3471 }
 0x520   : > { %13136 = vst [vmem:[#allocation80_spill] sm:$0xff] %v10094_v25  ;;  %v10096_v36 = vmul.f32 %v3174_v0, %v2496_v17  ;;  %v10098_v7 = vpop.permute.xlu2 %3477  ;;  %v10100_v31 = vpop.permute.xlu1 %3413  ;;  %v13145_v17 = vld [vmem:[#allocation223_spill] sm:$0xff]  ;;  %v13146_v0 = vld [vmem:[#allocation214_spill] sm:$0xff] }
 0x521   : > { %13138 = vst [vmem:[#allocation24_spill] sm:$0xff] %v10098_v7  ;;  %v13159_v7 = vld [vmem:[#allocation167_spill] sm:$0xff] }
 0x522   : > { %13137 = vst [vmem:[#allocation39_spill] sm:$0xff] %v10096_v36 }
 0x523   : > { %13139 = vst [vmem:[#allocation268_spill] sm:$0xff] %v10100_v31  ;;  %v13151_v31 = vld [vmem:[#allocation98_spill] sm:$0xff] }
 0x525   : > { %3840 = vperm.xlu0 %6961, %v3821_v35  }
 0x526   : > { %3769 = vperm.xlu1 %6962, %v13140_v37   ;;  %3773 = vperm.xlu2 %6963, %v13141_v43   ;;  %v13149_v37 = vld [vmem:[#allocation234_spill] sm:$0xff]  ;;  %v13150_v43 = vld [vmem:[#allocation51_spill] sm:$0xff] }
 0x527   : > { %v10105_v48 = vpop.permute.xlu0 %3480 }
 0x528   : > { %13142 = vst [vmem:[#allocation309_spill] sm:$0xff] %v10105_v48  ;;  %v10107_v13 = vpop.permute.xlu2 %3486  ;;  %v10109_v56 = vpop.permute.xlu1 %3456 }
 0x529   : > { %13143 = vst [vmem:[#allocation295_spill] sm:$0xff] %v10107_v13  ;;  %vm3501_vm1 = vcmp.eq.s32.totalorder %v8027_v30, %v10109_v56 }
 0x52d   : > { %5233 = vperm.xlu0 %6961, %v13144_v12  }
 0x52e   : > { %4119 = vperm.xlu1 %6962, %v13145_v17   ;;  %4247 = vperm.xlu2 %6963, %v13146_v0   ;;  %v3822_v17 = vadd.s32 1, %v9918_v63  ;;  %v13154_v0 = vld [vmem:[#allocation270_spill] sm:$0xff] }
 0x52f   : > { %v10114_v36 = vpop.permute.xlu0 %3489 }
 0x530   : > { %13147 = vst [vmem:[#allocation45_spill] sm:$0xff] %v10114_v36  ;;  %v10116_v18 = vpop.permute.xlu2 %3495  ;;  %v10118_v35 = vpop.permute.xlu1 %3465 }
 0x531   : > { %13148 = vst [vmem:[#allocation27_spill] sm:$0xff] %v10116_v18  ;;  %v13155_v18 = vld [vmem:[#allocation143_spill] sm:$0xff] }
 0x535   : > { %4394 = vperm.xlu0 %6961, %v13149_v37  }
 0x536   : > { %4817 = vperm.xlu1 %6962, %v13150_v43   ;;  %4945 = vperm.xlu2 %6963, %v13151_v31   ;;  %v13157_v31 = vld [vmem:[#allocation187_spill] sm:$0xff] }
 0x537   : > { %v10123_v13 = vpop.permute.xlu0 %3498 }
 0x538   : > { %13152 = vst [vmem:[#allocation23_spill] sm:$0xff] %v10123_v13  ;;  %v10125_v48 = vpop.permute.xlu2 %3616  ;;  %v10127_v12 = vpop.permute.xlu1 %3474  ;;  %v13158_v13 = vld [vmem:[#allocation220_spill] sm:$0xff] }
 0x539   : > { %13153 = vst [vmem:[#allocation288_spill] sm:$0xff] %v10127_v12  ;;  %v13186_v12 = vld [vmem:[#allocation133_spill] sm:$0xff]  ;;  %vm3661_vm3 = vcmp.eq.s32.totalorder %v8027_v30, %v10125_v48 }
 0x53a   : > { %v6542_v48 = vsel %vm3661_vm3, 1.0, %v12602_v41 }
 0x53d   : > { %3843 = vperm.xlu0 %6961, %v3822_v17  }
 0x53e   : > { %4535 = vperm.xlu1 %6962, %v13154_v0   ;;  %5089 = vperm.xlu2 %6963, %v13155_v18   ;;  %v13162_v0 = vld [vmem:[#allocation235_spill] sm:$0xff]  ;;  %v13163_v18 = vld [vmem:[#allocation56_spill] sm:$0xff] }
 0x53f   : > { %v10132_v36 = vpop.permute.xlu0 %3619 }
 0x540   : > { %v10134_v37 = vpop.permute.xlu2 %3625  ;;  %v10136_v43 = vpop.permute.xlu1 %3483 }
 0x541   : > { %13156 = vst [vmem:[#allocation238_spill] sm:$0xff] %v10136_v43 }
 0x545   : > { %5236 = vperm.xlu0 %6961, %v13157_v31  }
 0x546   : > { %4122 = vperm.xlu1 %6962, %v13158_v13   ;;  %4250 = vperm.xlu2 %6963, %v13159_v7   ;;  %v3823_v13 = vadd.s32 1, %v9976_v20  ;;  %v13167_v7 = vld [vmem:[#allocation264_spill] sm:$0xff] }
 0x547   : > { %v10141_v29 = vpop.permute.xlu0 %3628 }
 0x548   : > { %v10143_v63 = vpop.permute.xlu2 %3634  ;;  %v10145_v17 = vpop.permute.xlu1 %3492 }
 0x549   : > { %13160 = vst [vmem:[#allocation49_spill] sm:$0xff] %v10143_v63 }
 0x54a   : > { %13161 = vst [vmem:[#allocation30_spill] sm:$0xff] %v10145_v17 }
 0x54d   : > { %4397 = vperm.xlu0 %6961, %v13162_v0  }
 0x54e   : > { %4820 = vperm.xlu1 %6962, %v13163_v18   ;;  %4948 = vperm.xlu2 %6963, %v13164_v23   ;;  %v13171_v18 = vld [vmem:[#allocation157_spill] sm:$0xff] }
 0x54f   : > { %v10150_v46 = vpop.permute.xlu0 %3637  ;;  %v13172_v23 = vld [vmem:[#allocation125_spill] sm:$0xff] }
 0x550   : > { %13165 = vst [vmem:[#allocation29_spill] sm:$0xff] %v10150_v46  ;;  %v10152_v43 = vpop.permute.xlu2 %3643  ;;  %v3614_v31 = vpop.permute.xlu1 %3613  ;;  %v13173_v46 = vld [vmem:[#allocation123_spill] sm:$0xff] }
 0x551   : > { %13166 = vst [vmem:[#allocation36_spill] sm:$0xff] %v10152_v43  ;;  %vm3660_vm15 = vcmp.eq.s32.totalorder %v8027_v30, %v3614_v31 }
 0x555   : > { %3846 = vperm.xlu0 %6961, %v3823_v13  }
 0x556   : > { %4538 = vperm.xlu1 %6962, %v13167_v7   ;;  %5092 = vperm.xlu2 %6963, %v13168_v49   ;;  %v6580_v49 = vld [vmem:[%s11750_s1 + $0xf8] sm:$0xff]  ;;  %v6579_v7 = vld [vmem:[%s11750_s1 + $0xf0] sm:$0xff] }
 0x557   : > { %v10157_v6 = vpop.permute.xlu0 %3646  ;;  %4045 = vmatpush.msra.mxu3 %v6580_v49 }
 0x558   : > { %13169 = vst [vmem:[#allocation35_spill] sm:$0xff] %v10157_v6  ;;  %v10159_v17 = vpop.permute.xlu2 %3652  ;;  %v10161_v0 = vpop.permute.xlu1 %3622 }
 0x559   : > { %13170 = vst [vmem:[#allocation42_spill] sm:$0xff] %v10159_v17  ;;  %4046 = vmatpush.msra.mxu3 %v6579_v7  ;;  %v6577_v17 = vld [vmem:[%s11750_s1 + $0xe0] sm:$0xff]  ;;  %v6576_v7 = vld [vmem:[%s11750_s1 + $0xd8] sm:$0xff] }
 0x55d   : > { %5239 = vperm.xlu0 %6961, %v13171_v18   ;;  %v6578_v18 = vld [vmem:[%s11750_s1 + $0xe8] sm:$0xff] }
 0x55e   : > { %4125 = vperm.xlu1 %6962, %v13172_v23   ;;  %4253 = vperm.xlu2 %6963, %v13173_v46   ;;  %v13176_v46 = vld [vmem:[#allocation217_spill] sm:$0xff]  ;;  %v13177_v23 = vld [vmem:[#allocation58_spill] sm:$0xff] }
 0x55f   : > { %v10166_v43 = vpop.permute.xlu0 %3655  ;;  %4047 = vmatpush.msra.mxu3 %v6578_v18  ;;  %v3824_v18 = vadd.s32 1, %v9973_v11 }
 0x560   : > { %13174 = vst [vmem:[#allocation41_spill] sm:$0xff] %v10166_v43  ;;  %v10168_v20 = vpop.permute.xlu2 %3725  ;;  %v10170_v13 = vpop.permute.xlu1 %3631  ;;  %v13178_v43 = vld [vmem:[#allocation95_spill] sm:$0xff] }
 0x561   : > { %13175 = vst [vmem:[#allocation48_spill] sm:$0xff] %v10170_v13  ;;  %4048 = vmatpush.msra.mxu3 %v6577_v17  ;;  %v6574_v17 = vld [vmem:[%s11750_s1 + $0xc8] sm:$0xff] }
 0x563   : > { %4049 = vmatpush.msra.mxu3 %v6576_v7  ;;  %v6573_v7 = vld [vmem:[%s11750_s1 + $0xc0] sm:$0xff] }
 0x565   : > { %4400 = vperm.xlu0 %6961, %v13176_v46   ;;  %v13180_v46 = vld [vmem:[#allocation274_spill] sm:$0xff] }
 0x566   : > { %4823 = vperm.xlu1 %6962, %v13177_v23   ;;  %4951 = vperm.xlu2 %6963, %v13178_v43   ;;  %v6575_v43 = vld [vmem:[%s11750_s1 + $0xd0] sm:$0xff] }
 0x567   : > { %v10187_v6 = vpop.permute.xlu0 %3729  ;;  %4050 = vmatpush.msra.mxu3 %v6575_v43  ;;  %v13181_v23 = vld [vmem:[#allocation120_spill] sm:$0xff] }
 0x568   : > { %v10189_v49 = vpop.permute.xlu2 %3737  ;;  %v10191_v63 = vpop.permute.xlu1 %3640  ;;  %v13185_v43 = vld [vmem:[#allocation224_spill] sm:$0xff] }
 0x569   : > { %13179 = vst [vmem:[#allocation47_spill] sm:$0xff] %v10191_v63  ;;  %4051 = vmatpush.msra.mxu3 %v6574_v17  ;;  %v13190_v17 = vld [vmem:[#allocation240_spill] sm:$0xff] }
 0x56b   : > { %4052 = vmatpush.msra.mxu3 %v6573_v7  ;;  %v13192_v7 = vld [vmem:[#allocation103_spill] sm:$0xff] }
 0x56d   : > { %3849 = vperm.xlu0 %6961, %v3824_v18   ;;  %v13184_v18 = vld [vmem:[#allocation188_spill] sm:$0xff] }
 0x56e   : > { %4541 = vperm.xlu1 %6962, %v13180_v46   ;;  %5095 = vperm.xlu2 %6963, %v13181_v23  }
 0x56f   : > { %v10208_v63 = vpop.permute.xlu0 %3741 }
 0x570   : > { %v10210_v11 = vpop.permute.xlu2 %3749  ;;  %v10212_v60 = vpop.permute.xlu1 %3649 }
 0x571   : > { %13182 = vst [vmem:[#allocation15_spill] sm:$0xff] %v10210_v11  ;;  %v13191_v11 = vld [vmem:[#allocation55_spill] sm:$0xff] }
 0x572   : > { %13183 = vst [vmem:[#allocation28_spill] sm:$0xff] %v10212_v60 }
 0x575   : > { %5242 = vperm.xlu0 %6961, %v13184_v18   ;;  %v6525_v18 = vsel %vm3500_vm13, 1.0, %v12602_v41  ;;  %vm3662_vm13 = vcmp.eq.s32.totalorder %v8027_v30, %v10132_v36  ;;  %v6511_v36 = vsel %vm3294_vm12, 1.0, %v12602_v41 }
 0x576   : > { %4128 = vperm.xlu1 %6962, %v13185_v43   ;;  %4256 = vperm.xlu2 %6963, %v13186_v12   ;;  %v3548_v60 = vmul.f32 %v6525_v18, %v13195_v54  ;;  %v13198_v18 = vld [vmem:[#allocation148_spill] sm:$0xff] }
 0x577   : > { %v10217_v46 = vpop.permute.xlu0 %3753 }
 0x578   : > { %13187 = vst [vmem:[#allocation34_spill] sm:$0xff] %v10217_v46  ;;  %v10219_v23 = vpop.permute.xlu2 %3761  ;;  %v10221_v61 = vpop.permute.xlu1 %3658  ;;  %v3564_v31 = vmul.f32 %v3548_v60, %v9965_v19  ;;  %v13197_v46 = vld [vmem:[#allocation275_spill] sm:$0xff] }
 0x579   : > { %13188 = vst [vmem:[#allocation19_spill] sm:$0xff] %v10219_v23 }
 0x57a   : > { %13189 = vst [vmem:[#allocation40_spill] sm:$0xff] %v10221_v61 }
 0x57d   : > { %4403 = vperm.xlu0 %6961, %v13190_v17   ;;  %v6509_v17 = vsel %vm3292_vm14, 1.0, %v12602_v41 }
 0x57e   : > { %4826 = vperm.xlu1 %6962, %v13191_v11   ;;  %4954 = vperm.xlu2 %6963, %v13192_v7   ;;  %v6541_v11 = vsel %vm3660_vm15, 1.0, %v12602_v41  ;;  %v3825_v7 = vadd.s32 1, %v9934_v50  ;;  %v3340_v23 = vmul.f32 %v6509_v17, %v13196_v5  ;;  %v6755_v50 = vld [vmem:[%s11750_s1 + $0x170] sm:$0xff] }
 0x57f   : > { %v10229_v43 = vpop.permute.xlu0 %3765 }
 0x580   : > { %13193 = vst [vmem:[#allocation22_spill] sm:$0xff] %v10229_v43  ;;  %v10234_v12 = vpop.permute.xlu2 %3773  ;;  %v10236_v61 = vpop.permute.xlu1 %3733  ;;  %v6756_v43 = vld [vmem:[%s11750_s1 + $0x178] sm:$0xff] }
 0x581   : > { %13194 = vst [vmem:[#allocation20_spill] sm:$0xff] %v10234_v12  ;;  %v3708_v12 = vmul.f32 %v6541_v11, %v13196_v5  ;;  %5441 = vmatpush.msrb.mxu1 %v6756_v43  ;;  %v6668_v43 = vld [vmem:[%s11750_s1 + $0x138] sm:$0xff]  ;;  %v6754_v11 = vld [vmem:[%s11750_s1 + $0x168] sm:$0xff]  ;;  %v6753_v5 = vld [vmem:[%s11750_s1 + $0x160] sm:$0xff] }
 0x582   : > { %4743 = vmatpush.msrb.mxu0 %v6668_v43  ;;  %v13202_v43 = vld [vmem:[#allocation208_spill] sm:$0xff] }
 0x583   : > { %v3788_v60 = vmul.f32 %v10168_v20, %v3708_v12  ;;  %5442 = vmatpush.msrb.mxu1 %v6755_v50  ;;  %v6667_v12 = vld [vmem:[%s11750_s1 + $0x130] sm:$0xff] }
 0x584   : > { %4744 = vmatpush.msrb.mxu0 %v6667_v12 }
 0x585   : > { %3852 = vperm.xlu0 %6961, %v3825_v7   ;;  %v3420_v7 = vmul.f32 %v9965_v19, %v3340_v23  ;;  %5443 = vmatpush.msrb.mxu1 %v6754_v11  ;;  %v6526_v11 = vsel %vm3501_vm1, 1.0, %v12602_v41 }
 0x586   : > { %4544 = vperm.xlu1 %6962, %v13197_v46   ;;  %5098 = vperm.xlu2 %6963, %v13198_v18  }
 0x587   : > { %v3838_v42 = vpop.permute.xlu0 %3837  ;;  %v3580_v23 = vadd.f32 %v3564_v31, %v3420_v7  ;;  %v13200_v31 = vld [vmem:[#allocation191_spill] sm:$0xff]  ;;  %5444 = vmatpush.msrb.mxu1 %v6753_v5  ;;  %v6752_v7 = vld [vmem:[%s11750_s1 + $0x158] sm:$0xff] }
 0x588   : > { %vm3884_vm0 = vcmp.eq.s32.totalorder %v8027_v30, %v3838_v42  ;;  %v10255_v59 = vpop.permute.xlu2 %4247  ;;  %v10257_v17 = vpop.permute.xlu1 %3745 }
 0x589   : > { %13199 = vst [vmem:[#allocation26_spill] sm:$0xff] %v10257_v17  ;;  %v6557_v46 = vsel %vm3884_vm0, 1.0, %v12602_v41  ;;  %v3804_v50 = vadd.f32 %v3788_v60, %v3580_v23  ;;  %5445 = vmatpush.msrb.mxu1 %v6752_v7  ;;  %v6665_v23 = vld [vmem:[%s11750_s1 + $0x120] sm:$0xff]  ;;  %v6663_v7 = vld [vmem:[%s11750_s1 + $0x110] sm:$0xff]  ;;  %vm4294_vm8 = vcmp.eq.s32.totalorder %v8027_v30, %v10255_v59 }
 0x58a   : > { %v3932_v42 = vmul.f32 %v6557_v46, %v13195_v54  ;;  %v6666_v54 = vld [vmem:[%s11750_s1 + $0x128] sm:$0xff]  ;;  %v13220_v17 = vld [vmem:[#allocation60_spill] sm:$0xff] }
 0x58b   : > { %v13201_v46 = vld [vmem:[#allocation127_spill] sm:$0xff]  ;;  %4745 = vmatpush.msrb.mxu0 %v6666_v54  ;;  %v6510_v54 = vsel %vm3293_vm2, 1.0, %v12602_v41 }
 0x58c   : > { %v3948_v18 = vmul.f32 %v3932_v42, %v10168_v20  ;;  %v6751_v42 = vld [vmem:[%s11750_s1 + $0x150] sm:$0xff] }
 0x58d   : > { %5245 = vperm.xlu0 %6961, %v13200_v31   ;;  %4746 = vmatpush.msrb.mxu0 %v6665_v23  ;;  %v13204_v31 = vld [vmem:[#allocation96_spill] sm:$0xff] }
 0x58e   : > { %4131 = vperm.xlu1 %6962, %v13201_v46   ;;  %4259 = vperm.xlu2 %6963, %v13202_v43   ;;  %v3964_v56 = vadd.f32 %v3948_v18, %v3804_v50  ;;  %v6664_v18 = vld [vmem:[%s11750_s1 + $0x118] sm:$0xff]  ;;  %v6750_v50 = vld [vmem:[%s11750_s1 + $0x148] sm:$0xff]  ;;  %v3549_v10 = vmul.f32 %v6526_v11, %v13204_v31  ;;  %v6749_v46 = vld [vmem:[%s11750_s1 + $0x140] sm:$0xff] }
 0x58f   : > { %v10287_v60 = vpop.permute.xlu0 %4391  ;;  %5446 = vmatpush.msrb.mxu1 %v6751_v42  ;;  %4747 = vmatpush.msrb.mxu0 %v6664_v18  ;;  %v13205_v43 = vld [vmem:[#allocation241_spill] sm:$0xff]  ;;  %v13206_v11 = vld [vmem:[#allocation86_spill] sm:$0xff] }
 0x590   : > { %v4946_v12 = vpop.permute.xlu2 %4945  ;;  %v10299_v5 = vpop.permute.xlu1 %3757  ;;  %6581 = vmatmul.msk.f32.vlgmr.msra.gmra.mxu3 %vm1462_vm10, %v3964_v56  ;;  %v6662_v56 = vld [vmem:[%s11750_s1 + $0x108] sm:$0xff]  ;;  %v3341_v23 = vmul.f32 %v6510_v54, %v13206_v11  ;;  %v3565_v42 = vmul.f32 %v3549_v10, %v9985_v8  ;;  %v3709_v18 = vmul.f32 %v6542_v48, %v13206_v11  ;;  %vm4438_vm14 = vcmp.eq.s32.totalorder %v8027_v30, %v10287_v60 }
 0x591   : > { %13203 = vst [vmem:[#allocation25_spill] sm:$0xff] %v10299_v5  ;;  %5447 = vmatpush.msrb.mxu1 %v6750_v50  ;;  %4748 = vmatpush.msrb.mxu0 %v6663_v7  ;;  %v13207_v50 = vld [vmem:[#allocation62_spill] sm:$0xff]  ;;  %v13208_v5 = vld [vmem:[#allocation107_spill] sm:$0xff]  ;;  %vm4992_vm5 = vcmp.eq.s32.totalorder %v8027_v30, %v4946_v12  ;;  %v6543_v60 = vsel %vm3662_vm13, 1.0, %v12602_v41 }
 0x592   : > { %v6661_v7 = vld [vmem:[%s11750_s1 + $0x100] sm:$0xff]  ;;  %v3789_v10 = vmul.f32 %v10187_v6, %v3709_v18 }
 0x593   : > { %5448 = vmatpush.msrb.mxu1 %v6749_v46  ;;  %4749 = vmatpush.msrb.mxu0 %v6662_v56  ;;  %v3826_v56 = vadd.s32 1, %v10000_v3  ;;  %v13212_v3 = vld [vmem:[#allocation161_spill] sm:$0xff]  ;;  %v13214_v12 = vld [vmem:[#allocation182_spill] sm:$0xff] }
 0x595   : > { %4406 = vperm.xlu0 %6961, %v13205_v43   ;;  %v3421_v43 = vmul.f32 %v9985_v8, %v3341_v23  ;;  %4750 = vmatpush.msrb.mxu0 %v6661_v7  ;;  %v13210_v23 = vld [vmem:[#allocation266_spill] sm:$0xff]  ;;  %v6613_v7 = vsel %vm4294_vm8, 1.0, %v12602_v41  ;;  %vm3295_vm8 = vcmp.eq.s32.totalorder %v8027_v30, %v9947_v55 }
 0x596   : > { %4829 = vperm.xlu1 %6962, %v13207_v50   ;;  %4957 = vperm.xlu2 %6963, %v13208_v5  }
 0x597   : > { %v3841_v21 = vpop.permute.xlu0 %3840  ;;  %v3581_v5 = vadd.f32 %v3565_v42, %v3421_v43  ;;  %v13213_v42 = vld [vmem:[#allocation225_spill] sm:$0xff] }
 0x598   : > { %vm3885_vm4 = vcmp.eq.s32.totalorder %v8027_v30, %v3841_v21  ;;  %v5090_v54 = vpop.permute.xlu2 %5089  ;;  %v10331_v13 = vpop.permute.xlu1 %3769  ;;  %v13211_v21 = vld [vmem:[#allocation151_spill] sm:$0xff] }
 0x599   : > { %13209 = vst [vmem:[#allocation135_spill] sm:$0xff] %v10331_v13  ;;  %v6558_v48 = vsel %vm3885_vm4, 1.0, %v12602_v41  ;;  %v3805_v50 = vadd.f32 %v3789_v10, %v3581_v5  ;;  %vm5136_vm9 = vcmp.eq.s32.totalorder %v8027_v30, %v5090_v54  ;;  %vm3503_vm4 = vcmp.eq.s32.totalorder %v8027_v30, %v10085_v45 }
 0x59a   : > { %v3933_v46 = vmul.f32 %v6558_v48, %v13204_v31  ;;  %v6701_v31 = vsel %vm4992_vm5, 1.0, %v12602_v41  ;;  %v13215_v48 = vld [vmem:[#allocation99_spill] sm:$0xff]  ;;  %v6528_v45 = vsel %vm3503_vm4, 1.0, %v12602_v41 }
 0x59b   : > { %v5040_v10 = vmul.f32 %v6701_v31, %v8790_v4 }
 0x59c   : > { %v3949_v11 = vmul.f32 %v3933_v46, %v10187_v6  ;;  %v13216_v46 = vld [vmem:[#allocation178_spill] sm:$0xff] }
 0x59d   : > { %3855 = vperm.xlu0 %6961, %v3826_v56   ;;  %v3550_v56 = vmul.f32 %v6527_v52, %v13216_v46  ;;  %v13218_v52 = vld [vmem:[#allocation228_spill] sm:$0xff] }
 0x59e   : > { %4547 = vperm.xlu1 %6962, %v13210_v23   ;;  %5101 = vperm.xlu2 %6963, %v13211_v21   ;;  %v3965_v26 = vadd.f32 %v3949_v11, %v3805_v50  ;;  %v4342_v50 = vmul.f32 %v6613_v7, %v12967_v34  ;;  %v13217_v23 = vld [vmem:[#allocation236_spill] sm:$0xff] }
 0x59f   : > { %v5234_v13 = vpop.permute.xlu0 %5233  ;;  %v3566_v7 = vmul.f32 %v3550_v56, %v10049_v27 }
 0x5a0   : > { %v10340_v25 = vpop.permute.xlu2 %4250  ;;  %v4120_v18 = vpop.permute.xlu1 %4119  ;;  %6582 = vmatmul.msk.f32.gmra.mxu3 %vm1462_vm10, %v3965_v26  ;;  %vm5280_vm11 = vcmp.eq.s32.totalorder %v8027_v30, %v5234_v13  ;;  %v6717_v13 = vsel %vm5136_vm9, 1.0, %v12602_v41  ;;  %vm3663_vm9 = vcmp.eq.s32.totalorder %v8027_v30, %v10161_v0  ;;  %v6512_v0 = vsel %vm3295_vm8, 1.0, %v12602_v41 }
 0x5a1   : > { %vm4166_vm6 = vcmp.eq.s32.totalorder %v8027_v30, %v4120_v18  ;;  %v6733_v15 = vsel %vm5280_vm11, 1.0, %v12602_v41  ;;  %v5184_v21 = vmul.f32 %v6717_v13, %v13217_v23  ;;  %vm4295_vm5 = vcmp.eq.s32.totalorder %v8027_v30, %v10340_v25 }
 0x5a2   : > { %v6597_v26 = vsel %vm4166_vm6, 1.0, %v12602_v41  ;;  %v5328_v31 = vmul.f32 %v6733_v15, %v8790_v4  ;;  %v4358_v4 = vmul.f32 %v4342_v50, %v9965_v19 }
 0x5a3   : > { %v4214_v5 = vmul.f32 %v6597_v26, %v13215_v48  ;;  %v5056_v26 = vmul.f32 %v5040_v10, %v9965_v19  ;;  %v5200_v15 = vmul.f32 %v5184_v21, %v10168_v20 }
 0x5a5   : > { %5248 = vperm.xlu0 %6961, %v13212_v3   ;;  %v6629_v3 = vsel %vm4438_vm14, 1.0, %v12602_v41 }
 0x5a6   : > { %4134 = vperm.xlu1 %6962, %v13213_v42   ;;  %4262 = vperm.xlu2 %6963, %v13214_v12   ;;  %v4230_v42 = vmul.f32 %v4214_v5, %v9965_v19  ;;  %v4486_v10 = vmul.f32 %v6629_v3, %v13215_v48 }
 0x5a7   : > { %v10359_v59 = vpop.permute.xlu0 %4394 }
 0x5a8   : > { %v10367_v43 = vpop.permute.xlu2 %4948  ;;  %v4818_v54 = vpop.permute.xlu1 %4817  ;;  %vm4439_vm11 = vcmp.eq.s32.totalorder %v8027_v30, %v10359_v59  ;;  %v6544_v59 = vsel %vm3663_vm9, 1.0, %v12602_v41 }
 0x5a9   : > { %vm4864_vm15 = vcmp.eq.s32.totalorder %v8027_v30, %v4818_v54  ;;  %v13219_v54 = vld [vmem:[#allocation81_spill] sm:$0xff]  ;;  %vm4993_vm2 = vcmp.eq.s32.totalorder %v8027_v30, %v10367_v43  ;;  %v13226_v43 = vld [vmem:[#allocation171_spill] sm:$0xff] }
 0x5aa   : > { %v6685_v11 = vsel %vm4864_vm15, 1.0, %v12602_v41  ;;  %v3342_v53 = vmul.f32 %v6511_v36, %v13219_v54  ;;  %v3710_v13 = vmul.f32 %v6543_v60, %v13219_v54  ;;  %v5344_v36 = vmul.f32 %v5328_v31, %v10168_v20 }
 0x5ab   : > { %v4912_v18 = vmul.f32 %v6685_v11, %v13217_v23  ;;  %v13221_v11 = vld [vmem:[#allocation100_spill] sm:$0xff] }
 0x5ad   : > { %v4928_v12 = vmul.f32 %v4912_v18, %v9965_v19  ;;  %4409 = vperm.xlu0 %6961, %v13218_v52   ;;  %v3422_v18 = vmul.f32 %v10049_v27, %v3342_v53  ;;  %v4374_v52 = vadd.f32 %v4358_v4, %v4230_v42  ;;  %v4502_v53 = vmul.f32 %v4486_v10, %v10168_v20 }
 0x5ae   : > { %4832 = vperm.xlu1 %6962, %v13220_v17   ;;  %4960 = vperm.xlu2 %6963, %v13221_v11   ;;  %v3790_v17 = vmul.f32 %v10236_v61, %v3710_v13 }
 0x5af   : > { %v5072_v5 = vadd.f32 %v5056_v26, %v4928_v12  ;;  %v3844_v23 = vpop.permute.xlu0 %3843  ;;  %v3582_v48 = vadd.f32 %v3566_v7, %v3422_v18  ;;  %v3827_v26 = vadd.s32 1, %v9997_v28  ;;  %v4518_v13 = vadd.f32 %v4502_v53, %v4374_v52  ;;  %v13222_v7 = vld [vmem:[#allocation278_spill] sm:$0xff]  ;;  %v13224_v28 = vld [vmem:[#allocation192_spill] sm:$0xff]  ;;  %v13228_v53 = vld [vmem:[#allocation253_spill] sm:$0xff] }
 0x5b0   : > { %vm3886_vm0 = vcmp.eq.s32.totalorder %v8027_v30, %v3844_v23  ;;  %v5093_v56 = vpop.permute.xlu2 %5092  ;;  %v4536_v60 = vpop.permute.xlu1 %4535  ;;  %v13225_v18 = vld [vmem:[#allocation114_spill] sm:$0xff] }
 0x5b1   : > { %v5216_v54 = vadd.f32 %v5200_v15, %v5072_v5  ;;  %v6559_v19 = vsel %vm3886_vm0, 1.0, %v12602_v41  ;;  %vm4582_vm1 = vcmp.eq.s32.totalorder %v8027_v30, %v4536_v60  ;;  %v3806_v42 = vadd.f32 %v3790_v17, %v3582_v48 }
 0x5b2   : > { %v3934_v50 = vmul.f32 %v6559_v19, %v13216_v46  ;;  %v6645_v21 = vsel %vm4582_vm1, 1.0, %v12602_v41  ;;  %v13223_v46 = vld [vmem:[#allocation152_spill] sm:$0xff]  ;;  %vm5137_vm6 = vcmp.eq.s32.totalorder %v8027_v30, %v5093_v56  ;;  %v13227_v19 = vld [vmem:[#allocation174_spill] sm:$0xff]  ;;  %vm3504_vm1 = vcmp.eq.s32.totalorder %v8027_v30, %v10118_v35 }
 0x5b3   : > { %v4630_v3 = vmul.f32 %v6645_v21, %v12967_v34  ;;  %v5360_v31 = vadd.f32 %v5344_v36, %v5216_v54  ;;  %v6614_v36 = vsel %vm4295_vm5, 1.0, %v12602_v41  ;;  %v6718_v56 = vsel %vm5137_vm6, 1.0, %v12602_v41 }
 0x5b4   : > { %v3950_v12 = vmul.f32 %v3934_v50, %v10236_v61  ;;  %v3551_v48 = vmul.f32 %v6528_v45, %v13227_v19  ;;  %v4343_v21 = vmul.f32 %v6614_v36, %v12970_v14  ;;  %vm3296_vm5 = vcmp.eq.s32.totalorder %v8027_v30, %v9902_v62 }
 0x5b5   : > { %v4646_v11 = vmul.f32 %v4630_v3, %v10168_v20  ;;  %6757 = vmatmul.msk.f32.vlgmr.msrb.gmra.mxu1 %vm1462_vm10, %v5360_v31  ;;  %3858 = vperm.xlu0 %6961, %v3827_v26   ;;  %v6702_v20 = vsel %vm4993_vm2, 1.0, %v12602_v41  ;;  %v5185_v3 = vmul.f32 %v6718_v56, %v13228_v53  ;;  %v6630_v26 = vsel %vm4439_vm11, 1.0, %v12602_v41 }
 0x5b6   : > { %4550 = vperm.xlu1 %6962, %v13222_v7   ;;  %5104 = vperm.xlu2 %6963, %v13223_v46   ;;  %v3966_v4 = vadd.f32 %v3950_v12, %v3806_v42  ;;  %v5041_v52 = vmul.f32 %v6702_v20, %v8821_v22  ;;  %v13229_v7 = vld [vmem:[#allocation244_spill] sm:$0xff]  ;;  %v13230_v46 = vld [vmem:[#allocation89_spill] sm:$0xff]  ;;  %v4487_v20 = vmul.f32 %v6630_v26, %v12971_v33  ;;  %v6529_v35 = vsel %vm3504_vm1, 1.0, %v12602_v41 }
 0x5b7   : > { %v4662_v10 = vadd.f32 %v4646_v11, %v4518_v13  ;;  %v5237_v15 = vpop.permute.xlu0 %5236  ;;  %vm3664_vm6 = vcmp.eq.s32.totalorder %v8027_v30, %v10134_v37  ;;  %v6513_v37 = vsel %vm3296_vm5, 1.0, %v12602_v41 }
 0x5b8   : > { %v10410_v34 = vpop.permute.xlu2 %4253  ;;  %v4123_v5 = vpop.permute.xlu1 %4122  ;;  %6583 = vmatmul.msk.f32.gmra.mxu3 %vm1462_vm10, %v3966_v4  ;;  %vm5281_vm7 = vcmp.eq.s32.totalorder %v8027_v30, %v5237_v15  ;;  %v5057_v42 = vmul.f32 %v5041_v52, %v9985_v8  ;;  %v3343_v4 = vmul.f32 %v6512_v0, %v13230_v46  ;;  %v3711_v15 = vmul.f32 %v6544_v59, %v13230_v46 }
 0x5b9   : > { %6669 = vmatmul.msk.f32.vlgmr.msrb.gmra.mxu0 %vm1462_vm10, %v4662_v10  ;;  %vm4167_vm3 = vcmp.eq.s32.totalorder %v8027_v30, %v4123_v5  ;;  %v6734_v55 = vsel %vm5281_vm7, 1.0, %v12602_v41  ;;  %v3567_v10 = vmul.f32 %v3551_v48, %v9987_v51  ;;  %v13231_v5 = vld [vmem:[#allocation66_spill] sm:$0xff]  ;;  %vm4296_vm2 = vcmp.eq.s32.totalorder %v8027_v30, %v10410_v34 }
 0x5ba   : > { %v6598_v23 = vsel %vm4167_vm3, 1.0, %v12602_v41  ;;  %v5329_v12 = vmul.f32 %v6734_v55, %v8821_v22  ;;  %v4359_v22 = vmul.f32 %v4343_v21, %v9985_v8  ;;  %v3423_v45 = vmul.f32 %v9987_v51, %v3343_v4 }
 0x5bb   : > { %v4215_v54 = vmul.f32 %v6598_v23, %v12971_v33  ;;  %v5201_v23 = vmul.f32 %v5185_v3, %v10187_v6  ;;  %v3791_v52 = vmul.f32 %v10189_v49, %v3711_v15  ;;  %v6615_v15 = vsel %vm4296_vm2, 1.0, %v12602_v41 }
 0x5bc   : > { %v5345_v36 = vmul.f32 %v5329_v12, %v10187_v6  ;;  %vm3297_vm2 = vcmp.eq.s32.totalorder %v8027_v30, %v9909_v44 }
 0x5bd   : > { %5251 = vperm.xlu0 %6961, %v13224_v28   ;;  %v4231_v13 = vmul.f32 %v4215_v54, %v9985_v8  ;;  %v13232_v28 = vld [vmem:[#allocation108_spill] sm:$0xff] }
 0x5be   : > { %4137 = vperm.xlu1 %6962, %v13225_v18   ;;  %4265 = vperm.xlu2 %6963, %v13226_v43  }
 0x5bf   : > { %v10431_v25 = vpop.permute.xlu0 %4397  ;;  %v4375_v55 = vadd.f32 %v4359_v22, %v4231_v13 }
 0x5c0   : > { %v10439_v60 = vpop.permute.xlu2 %4951  ;;  %v4821_v17 = vpop.permute.xlu1 %4820  ;;  %vm4440_vm7 = vcmp.eq.s32.totalorder %v8027_v30, %v10431_v25  ;;  %v6545_v25 = vsel %vm3664_vm6, 1.0, %v12602_v41 }
 0x5c1   : > { %vm4865_vm12 = vcmp.eq.s32.totalorder %v8027_v30, %v4821_v17  ;;  %vm4994_vm15 = vcmp.eq.s32.totalorder %v8027_v30, %v10439_v60  ;;  %v13237_v60 = vld [vmem:[#allocation172_spill] sm:$0xff] }
 0x5c2   : > { %v6686_v50 = vsel %vm4865_vm12, 1.0, %v12602_v41 }
 0x5c3   : > { %v4913_v31 = vmul.f32 %v6686_v50, %v13228_v53  ;;  %v4503_v50 = vmul.f32 %v4487_v20, %v10187_v6  ;;  %v3828_v53 = vadd.s32 1, %v9950_v40  ;;  %v6703_v40 = vsel %vm4994_vm15, 1.0, %v12602_v41 }
 0x5c4   : > { %v5042_v20 = vmul.f32 %v6703_v40, %v8801_v57 }
 0x5c5   : > { %v4929_v11 = vmul.f32 %v4913_v31, %v9985_v8  ;;  %4412 = vperm.xlu0 %6961, %v13229_v7   ;;  %v3583_v8 = vadd.f32 %v3567_v10, %v3423_v45  ;;  %v4519_v12 = vadd.f32 %v4503_v50, %v4375_v55  ;;  %v13236_v10 = vld [vmem:[#allocation211_spill] sm:$0xff]  ;;  %v6631_v55 = vsel %vm4440_vm7, 1.0, %v12602_v41  ;;  %v13241_v50 = vld [vmem:[#allocation84_spill] sm:$0xff] }
 0x5c6   : > { %4835 = vperm.xlu1 %6962, %v13231_v5   ;;  %4963 = vperm.xlu2 %6963, %v13232_v28  }
 0x5c7   : > { %v5073_v18 = vadd.f32 %v5057_v42, %v4929_v11  ;;  %v3847_v43 = vpop.permute.xlu0 %3846  ;;  %v3807_v31 = vadd.f32 %v3791_v52, %v3583_v8  ;;  %v13233_v42 = vld [vmem:[#allocation279_spill] sm:$0xff] }
 0x5c8   : > { %vm3887_vm13 = vcmp.eq.s32.totalorder %v8027_v30, %v3847_v43  ;;  %v5096_v56 = vpop.permute.xlu2 %5095  ;;  %v4539_v17 = vpop.permute.xlu1 %4538  ;;  %v13239_v43 = vld [vmem:[#allocation181_spill] sm:$0xff] }
 0x5c9   : > { %v6560_v54 = vsel %vm3887_vm13, 1.0, %v12602_v41  ;;  %vm4583_vm14 = vcmp.eq.s32.totalorder %v8027_v30, %v4539_v17  ;;  %v5217_v33 = vadd.f32 %v5201_v23, %v5073_v18  ;;  %vm5138_vm3 = vcmp.eq.s32.totalorder %v8027_v30, %v5096_v56  ;;  %v13238_v23 = vld [vmem:[#allocation138_spill] sm:$0xff] }
 0x5ca   : > { %v3935_v0 = vmul.f32 %v6560_v54, %v13227_v19  ;;  %v6646_v48 = vsel %vm4583_vm14, 1.0, %v12602_v41  ;;  %v13234_v19 = vld [vmem:[#allocation154_spill] sm:$0xff]  ;;  %v6719_v5 = vsel %vm5138_vm3, 1.0, %v12602_v41  ;;  %v3552_v45 = vmul.f32 %v6529_v35, %v13239_v43 }
 0x5cb   : > { %v4631_v59 = vmul.f32 %v6646_v48, %v12970_v14  ;;  %v5361_v21 = vadd.f32 %v5345_v36, %v5217_v33  ;;  %v4344_v56 = vmul.f32 %v6615_v15, %v12972_v24  ;;  %v5186_v17 = vmul.f32 %v6719_v5, %v8588_v1  ;;  %v13240_v48 = vld [vmem:[#allocation245_spill] sm:$0xff] }
 0x5cc   : > { %v3951_v3 = vmul.f32 %v3935_v0, %v10189_v49  ;;  %v5058_v33 = vmul.f32 %v5042_v20, %v10049_v27  ;;  %vm3505_vm14 = vcmp.eq.s32.totalorder %v8027_v30, %v10087_v58  ;;  %vm3665_vm3 = vcmp.eq.s32.totalorder %v8027_v30, %v10141_v29 }
 0x5cd   : > { %v4647_v26 = vmul.f32 %v4631_v59, %v10187_v6  ;;  %6758 = vmatmul.msk.f32.gmra.mxu1 %vm1462_vm10, %v5361_v21  ;;  %3861 = vperm.xlu0 %6961, %v3828_v53   ;;  %v13235_v6 = vld [vmem:[#allocation195_spill] sm:$0xff]  ;;  %v3344_v59 = vmul.f32 %v6513_v37, %v13241_v50  ;;  %v3568_v21 = vmul.f32 %v3552_v45, %v10005_v39  ;;  %v13244_v37 = vld [vmem:[#allocation124_spill] sm:$0xff]  ;;  %v6530_v58 = vsel %vm3505_vm14, 1.0, %v12602_v41 }
 0x5ce   : > { %4553 = vperm.xlu1 %6962, %v13233_v42   ;;  %5107 = vperm.xlu2 %6963, %v13234_v19   ;;  %v3967_v13 = vadd.f32 %v3951_v3, %v3807_v31  ;;  %v3712_v53 = vmul.f32 %v6545_v25, %v13241_v50  ;;  %v13242_v3 = vld [vmem:[#allocation112_spill] sm:$0xff]  ;;  %v4488_v31 = vmul.f32 %v6631_v55, %v13238_v23  ;;  %v6514_v29 = vsel %vm3297_vm2, 1.0, %v12602_v41 }
 0x5cf   : > { %v5240_v11 = vpop.permute.xlu0 %5239  ;;  %v4663_v7 = vadd.f32 %v4647_v26, %v4519_v12  ;;  %v5202_v26 = vmul.f32 %v5186_v17, %v10236_v61  ;;  %v3424_v19 = vmul.f32 %v10005_v39, %v3344_v59  ;;  %v13249_v50 = vld [vmem:[#allocation176_spill] sm:$0xff] }
 0x5d0   : > { %v10482_v14 = vpop.permute.xlu2 %4256  ;;  %v4126_v46 = vpop.permute.xlu1 %4125  ;;  %6584 = vmatmul.msk.f32.gmra.mxu3 %vm1462_vm10, %v3967_v13  ;;  %vm5282_vm4 = vcmp.eq.s32.totalorder %v8027_v30, %v5240_v11  ;;  %v4504_v35 = vmul.f32 %v4488_v31, %v10236_v61  ;;  %v3553_v59 = vmul.f32 %v6530_v58, %v13249_v50  ;;  %v13257_v58 = vld [vmem:[#allocation281_spill] sm:$0xff] }
 0x5d1   : > { %6670 = vmatmul.msk.f32.gmra.mxu0 %vm1462_vm10, %v4663_v7  ;;  %vm4168_vm0 = vcmp.eq.s32.totalorder %v8027_v30, %v4126_v46  ;;  %v6735_v62 = vsel %vm5282_vm4, 1.0, %v12602_v41  ;;  %v3792_v46 = vmul.f32 %v10208_v63, %v3712_v53  ;;  %vm4297_vm15 = vcmp.eq.s32.totalorder %v8027_v30, %v10482_v14 }
 0x5d2   : > { %v6599_v4 = vsel %vm4168_vm0, 1.0, %v12602_v41  ;;  %v5330_v54 = vmul.f32 %v6735_v62, %v8801_v57  ;;  %v4360_v57 = vmul.f32 %v4344_v56, %v10049_v27  ;;  %v6616_v55 = vsel %vm4297_vm15, 1.0, %v12602_v41 }
 0x5d3   : > { %v4216_v18 = vmul.f32 %v6599_v4, %v13238_v23  ;;  %v3584_v4 = vadd.f32 %v3568_v21, %v3424_v19  ;;  %v4345_v53 = vmul.f32 %v6616_v55, %v12974_v16  ;;  %v13250_v19 = vld [vmem:[#allocation233_spill] sm:$0xff] }
 0x5d4   : > { %v5346_v13 = vmul.f32 %v5330_v54, %v10236_v61 }
 0x5d5   : > { %5254 = vperm.xlu0 %6961, %v13235_v6   ;;  %v4232_v8 = vmul.f32 %v4216_v18, %v10049_v27  ;;  %v3808_v62 = vadd.f32 %v3792_v46, %v3584_v4 }
 0x5d6   : > { %4140 = vperm.xlu1 %6962, %v13236_v10   ;;  %4268 = vperm.xlu2 %6963, %v13237_v60  }
 0x5d7   : > { %v10503_v34 = vpop.permute.xlu0 %4400  ;;  %v4376_v6 = vadd.f32 %v4360_v57, %v4232_v8 }
 0x5d8   : > { %v10511_v28 = vpop.permute.xlu2 %4954  ;;  %v4824_v22 = vpop.permute.xlu1 %4823  ;;  %vm4441_vm4 = vcmp.eq.s32.totalorder %v8027_v30, %v10503_v34  ;;  %v6546_v34 = vsel %vm3665_vm3, 1.0, %v12602_v41 }
 0x5d9   : > { %vm4866_vm8 = vcmp.eq.s32.totalorder %v8027_v30, %v4824_v22  ;;  %v3829_v22 = vadd.s32 1, %v10017_v38  ;;  %v4520_v18 = vadd.f32 %v4504_v35, %v4376_v6  ;;  %vm4995_vm12 = vcmp.eq.s32.totalorder %v8027_v30, %v10511_v28  ;;  %v13248_v28 = vld [vmem:[#allocation119_spill] sm:$0xff]  ;;  %v13252_v6 = vld [vmem:[#allocation105_spill] sm:$0xff] }
 0x5da   : > { %v6687_v36 = vsel %vm4866_vm8, 1.0, %v12602_v41  ;;  %v6704_v38 = vsel %vm4995_vm12, 1.0, %v12602_v41  ;;  %v6632_v57 = vsel %vm4441_vm4, 1.0, %v12602_v41 }
 0x5db   : > { %v4914_v52 = vmul.f32 %v6687_v36, %v8588_v1  ;;  %v13243_v1 = vld [vmem:[#allocation63_spill] sm:$0xff] }
 0x5dd   : > { %v4930_v0 = vmul.f32 %v4914_v52, %v10049_v27  ;;  %4415 = vperm.xlu0 %6961, %v13240_v48   ;;  %v13247_v52 = vld [vmem:[#allocation210_spill] sm:$0xff] }
 0x5de   : > { %4966 = vperm.xlu2 %6963, %v13242_v3   ;;  %4838 = vperm.xlu1 %6962, %v13243_v1  }
 0x5df   : > { %v5074_v12 = vadd.f32 %v5058_v33, %v4930_v0  ;;  %v3850_v42 = vpop.permute.xlu0 %3849  ;;  %v5043_v0 = vmul.f32 %v6704_v38, %v8799_v47 }
 0x5e0   : > { %vm3888_vm9 = vcmp.eq.s32.totalorder %v8027_v30, %v3850_v42  ;;  %v5099_v11 = vpop.permute.xlu2 %5098  ;;  %v4542_v7 = vpop.permute.xlu1 %4541 }
 0x5e1   : > { %v6561_v40 = vsel %vm3888_vm9, 1.0, %v12602_v41  ;;  %vm4584_vm11 = vcmp.eq.s32.totalorder %v8027_v30, %v4542_v7  ;;  %v5218_v27 = vadd.f32 %v5202_v26, %v5074_v12  ;;  %vm5139_vm0 = vcmp.eq.s32.totalorder %v8027_v30, %v5099_v11 }
 0x5e2   : > { %v3936_v10 = vmul.f32 %v6561_v40, %v13239_v43  ;;  %v6647_v60 = vsel %vm4584_vm11, 1.0, %v12602_v41  ;;  %v13245_v43 = vld [vmem:[#allocation269_spill] sm:$0xff]  ;;  %v6720_v54 = vsel %vm5139_vm0, 1.0, %v12602_v41  ;;  %v5059_v26 = vmul.f32 %v5043_v0, %v9987_v51 }
 0x5e3   : > { %v4632_v15 = vmul.f32 %v6647_v60, %v12972_v24  ;;  %v5362_v5 = vadd.f32 %v5346_v13, %v5218_v27  ;;  %v5187_v3 = vmul.f32 %v6720_v54, %v8586_v32  ;;  %v13251_v13 = vld [vmem:[#allocation85_spill] sm:$0xff]  ;;  %v3569_v7 = vmul.f32 %v3553_v59, %v10063_v9  ;;  %v13262_v59 = vld [vmem:[#allocation136_spill] sm:$0xff] }
 0x5e4   : > { %v3952_v20 = vmul.f32 %v3936_v10, %v10208_v63  ;;  %v3345_v11 = vmul.f32 %v6514_v29, %v13251_v13  ;;  %v3713_v46 = vmul.f32 %v6546_v34, %v13251_v13  ;;  %v4489_v40 = vmul.f32 %v6632_v57, %v12975_v2  ;;  %v13263_v34 = vld [vmem:[#allocation48_spill] sm:$0xff] }
 0x5e5   : > { %v4648_v23 = vmul.f32 %v4632_v15, %v10236_v61  ;;  %6759 = vmatmul.msk.f32.gmra.mxu1 %vm1462_vm10, %v5362_v5  ;;  %3864 = vperm.xlu0 %6961, %v3829_v22   ;;  %v13246_v61 = vld [vmem:[#allocation166_spill] sm:$0xff]  ;;  %v5203_v27 = vmul.f32 %v5187_v3, %v10189_v49  ;;  %vm3298_vm15 = vcmp.eq.s32.totalorder %v8027_v30, %v13262_v59 }
 0x5e6   : > { %5110 = vperm.xlu2 %6963, %v13244_v37   ;;  %4556 = vperm.xlu1 %6962, %v13245_v43   ;;  %v3968_v45 = vadd.f32 %v3952_v20, %v3808_v62  ;;  %v3425_v60 = vmul.f32 %v10063_v9, %v3345_v11  ;;  %v13254_v22 = vld [vmem:[#allocation26_spill] sm:$0xff]  ;;  %v4505_v43 = vmul.f32 %v4489_v40, %v10189_v49  ;;  %v6515_v13 = vsel %vm3298_vm15, 1.0, %v12602_v41  ;;  %v13266_v11 = vld [vmem:[#allocation101_spill] sm:$0xff] }
 0x5e7   : > { %v5243_v36 = vpop.permute.xlu0 %5242  ;;  %v4664_v25 = vadd.f32 %v4648_v23, %v4520_v18  ;;  %v3793_v20 = vmul.f32 %v13254_v22, %v3713_v46  ;;  %vm3666_vm0 = vcmp.eq.s32.totalorder %v8027_v30, %v13263_v34 }
 0x5e8   : > { %v10554_v24 = vpop.permute.xlu2 %4259  ;;  %v4129_v56 = vpop.permute.xlu1 %4128  ;;  %6585 = vmatmul.msk.f32.gmra.mxu3 %vm1462_vm10, %v3968_v45  ;;  %vm5283_vm1 = vcmp.eq.s32.totalorder %v8027_v30, %v5243_v36 }
 0x5e9   : > { %6671 = vmatmul.msk.f32.gmra.mxu0 %vm1462_vm10, %v4664_v25  ;;  %vm4169_vm13 = vcmp.eq.s32.totalorder %v8027_v30, %v4129_v56  ;;  %v6736_v44 = vsel %vm5283_vm1, 1.0, %v12602_v41  ;;  %v13255_v25 = vld [vmem:[#allocation71_spill] sm:$0xff]  ;;  %vm4298_vm12 = vcmp.eq.s32.totalorder %v8027_v30, %v10554_v24 }
 0x5ea   : > { %v6600_v17 = vsel %vm4169_vm13, 1.0, %v12602_v41  ;;  %v5331_v31 = vmul.f32 %v6736_v44, %v8799_v47  ;;  %v4361_v47 = vmul.f32 %v4345_v53, %v9987_v51  ;;  %v3830_v56 = vadd.s32 1, %v13255_v25  ;;  %v13259_v44 = vld [vmem:[#allocation196_spill] sm:$0xff] }
 0x5eb   : > { %v4217_v48 = vmul.f32 %v6600_v17, %v12975_v2  ;;  %v6617_v53 = vsel %vm4298_vm12, 1.0, %v12602_v41 }
 0x5ec   : > { %v5347_v35 = vmul.f32 %v5331_v31, %v10189_v49  ;;  %v13264_v31 = vld [vmem:[#allocation303_spill] sm:$0xff] }
 0x5ed   : > { %5257 = vperm.xlu0 %6961, %v13246_v61   ;;  %v4233_v12 = vmul.f32 %v4217_v48, %v9987_v51 }
 0x5ee   : > { %4271 = vperm.xlu2 %6963, %v13247_v52   ;;  %4143 = vperm.xlu1 %6962, %v13248_v28   ;;  %v13256_v28 = vld [vmem:[#allocation155_spill] sm:$0xff] }
 0x5ef   : > { %v10575_v14 = vpop.permute.xlu0 %4403  ;;  %v4377_v62 = vadd.f32 %v4361_v47, %v4233_v12  ;;  %v13268_v47 = vld [vmem:[#allocation258_spill] sm:$0xff] }
 0x5f0   : > { %v10583_v33 = vpop.permute.xlu2 %4957  ;;  %v4827_v8 = vpop.permute.xlu1 %4826  ;;  %vm4442_vm1 = vcmp.eq.s32.totalorder %v8027_v30, %v10575_v14  ;;  %v6547_v14 = vsel %vm3666_vm0, 1.0, %v12602_v41 }
 0x5f1   : > { %vm4867_vm5 = vcmp.eq.s32.totalorder %v8027_v30, %v4827_v8  ;;  %v4521_v52 = vadd.f32 %v4505_v43, %v4377_v62  ;;  %vm4996_vm8 = vcmp.eq.s32.totalorder %v8027_v30, %v10583_v33  ;;  %v13261_v33 = vld [vmem:[#allocation156_spill] sm:$0xff] }
 0x5f2   : > { %v6688_v21 = vsel %vm4867_vm5, 1.0, %v12602_v41  ;;  %v6705_v48 = vsel %vm4996_vm8, 1.0, %v12602_v41 }
 0x5f3   : > { %v4915_v1 = vmul.f32 %v6688_v21, %v8586_v32  ;;  %v13253_v32 = vld [vmem:[#allocation67_spill] sm:$0xff] }
 0x5f5   : > { %v4931_v42 = vmul.f32 %v4915_v1, %v9987_v51  ;;  %4418 = vperm.xlu0 %6961, %v13250_v19   ;;  %v3585_v51 = vadd.f32 %v3569_v7, %v3425_v60 }
 0x5f6   : > { %4969 = vperm.xlu2 %6963, %v13252_v6   ;;  %4841 = vperm.xlu1 %6962, %v13253_v32   ;;  %v13267_v6 = vld [vmem:[#allocation216_spill] sm:$0xff] }
 0x5f7   : > { %v5075_v4 = vadd.f32 %v5059_v26, %v4931_v42  ;;  %v3853_v10 = vpop.permute.xlu0 %3852  ;;  %v3809_v38 = vadd.f32 %v3793_v20, %v3585_v51  ;;  %v5044_v26 = vmul.f32 %v6705_v48, %v13264_v31  ;;  %v13265_v42 = vld [vmem:[#allocation141_spill] sm:$0xff]  ;;  %v4346_v32 = vmul.f32 %v6617_v53, %v13267_v6  ;;  %v13270_v20 = vld [vmem:[#allocation92_spill] sm:$0xff] }
 0x5f8   : > { %vm3889_vm6 = vcmp.eq.s32.totalorder %v8027_v30, %v3853_v10  ;;  %v5102_v15 = vpop.permute.xlu2 %5101  ;;  %v4545_v5 = vpop.permute.xlu1 %4544  ;;  %v3346_v62 = vmul.f32 %v6515_v13, %v13270_v20  ;;  %v3714_v51 = vmul.f32 %v6547_v14, %v13270_v20  ;;  %v13279_v13 = vld [vmem:[#allocation198_spill] sm:$0xff]  ;;  %v13282_v14 = vld [vmem:[#allocation237_spill] sm:$0xff] }
 0x5f9   : > { %v6562_v23 = vsel %vm3889_vm6, 1.0, %v12602_v41  ;;  %vm4585_vm7 = vcmp.eq.s32.totalorder %v8027_v30, %v4545_v5  ;;  %v5219_v2 = vadd.f32 %v5203_v27, %v5075_v4  ;;  %vm5140_vm13 = vcmp.eq.s32.totalorder %v8027_v30, %v5102_v15  ;;  %v13269_v5 = vld [vmem:[#allocation249_spill] sm:$0xff] }
 0x5fa   : > { %v3937_v18 = vmul.f32 %v6562_v23, %v13249_v50  ;;  %v6648_v37 = vsel %vm4585_vm7, 1.0, %v12602_v41  ;;  %v13260_v50 = vld [vmem:[#allocation175_spill] sm:$0xff]  ;;  %v6721_v3 = vsel %vm5140_vm13, 1.0, %v12602_v41  ;;  %v6633_v4 = vsel %vm4442_vm1, 1.0, %v12602_v41  ;;  %v13271_v23 = vld [vmem:[#allocation53_spill] sm:$0xff] }
 0x5fb   : > { %v4633_v45 = vmul.f32 %v6648_v37, %v12974_v16  ;;  %v5363_v36 = vadd.f32 %v5347_v35, %v5219_v2  ;;  %v5188_v40 = vmul.f32 %v6721_v3, %v13268_v47  ;;  %v5060_v60 = vmul.f32 %v5044_v26, %v10005_v39  ;;  %v13273_v37 = vld [vmem:[#allocation72_spill] sm:$0xff]  ;;  %v13276_v3 = vld [vmem:[#allocation158_spill] sm:$0xff] }
 0x5fc   : > { %v3953_v61 = vmul.f32 %v3937_v18, %v13254_v22  ;;  %v13272_v18 = vld [vmem:[#allocation113_spill] sm:$0xff]  ;;  %v4362_v43 = vmul.f32 %v4346_v32, %v10005_v39  ;;  %vm3299_vm12 = vcmp.eq.s32.totalorder %v8027_v30, %v13282_v14 }
 0x5fd   : > { %v4649_v17 = vmul.f32 %v4633_v45, %v10189_v49  ;;  %6760 = vmatmul.msk.f32.gmra.mxu1 %vm1462_vm10, %v5363_v36  ;;  %3867 = vperm.xlu0 %6961, %v3830_v56   ;;  %v13258_v49 = vld [vmem:[#allocation80_spill] sm:$0xff]  ;;  %v4490_v45 = vmul.f32 %v6633_v4, %v13265_v42  ;;  %v5204_v36 = vmul.f32 %v5188_v40, %v10208_v63  ;;  %v13283_v32 = vld [vmem:[#allocation49_spill] sm:$0xff]  ;;  %v6516_v20 = vsel %vm3299_vm12, 1.0, %v12602_v41 }
 0x5fe   : > { %5113 = vperm.xlu2 %6963, %v13256_v28   ;;  %4559 = vperm.xlu1 %6962, %v13257_v58   ;;  %v3969_v55 = vadd.f32 %v3953_v61, %v3809_v38  ;;  %vm3506_vm11 = vcmp.eq.s32.totalorder %v8027_v30, %v13258_v49  ;;  %v3426_v61 = vmul.f32 %v13271_v23, %v3346_v62  ;;  %v13274_v28 = vld [vmem:[#allocation15_spill] sm:$0xff]  ;;  %v13286_v62 = vld [vmem:[#allocation185_spill] sm:$0xff] }
 0x5ff   : > { %v5246_v54 = vpop.permute.xlu0 %5245  ;;  %v4665_v8 = vadd.f32 %v4649_v17, %v4521_v52  ;;  %v6531_v21 = vsel %vm3506_vm11, 1.0, %v12602_v41  ;;  %v3794_v58 = vmul.f32 %v13274_v28, %v3714_v51  ;;  %vm3667_vm13 = vcmp.eq.s32.totalorder %v8027_v30, %v13283_v32 }
 0x600   : > { %v10626_v16 = vpop.permute.xlu2 %4262  ;;  %v4132_v0 = vpop.permute.xlu1 %4131  ;;  %6586 = vmatmul.msk.f32.gmra.mxu3 %vm1462_vm10, %v3969_v55  ;;  %vm5284_vm14 = vcmp.eq.s32.totalorder %v8027_v30, %v5246_v54  ;;  %v3554_v7 = vmul.f32 %v6531_v21, %v13266_v11 }
 0x601   : > { %6672 = vmatmul.msk.f32.gmra.mxu0 %vm1462_vm10, %v4665_v8  ;;  %vm4170_vm9 = vcmp.eq.s32.totalorder %v8027_v30, %v4132_v0  ;;  %v6737_v12 = vsel %vm5284_vm14, 1.0, %v12602_v41  ;;  %vm4299_vm8 = vcmp.eq.s32.totalorder %v8027_v30, %v10626_v16 }
 0x602   : > { %v6601_v29 = vsel %vm4170_vm9, 1.0, %v12602_v41  ;;  %v5332_v10 = vmul.f32 %v6737_v12, %v13264_v31  ;;  %v3570_v2 = vmul.f32 %v3554_v7, %v13271_v23 }
 0x603   : > { %v4218_v19 = vmul.f32 %v6601_v29, %v13265_v42 }
 0x604   : > { %v5348_v38 = vmul.f32 %v5332_v10, %v10208_v63  ;;  %v3586_v8 = vadd.f32 %v3570_v2, %v3426_v61  ;;  %v13284_v10 = vld [vmem:[#allocation297_spill] sm:$0xff] }
 0x605   : > { %5260 = vperm.xlu0 %6961, %v13259_v44   ;;  %v4234_v35 = vmul.f32 %v4218_v19, %v10005_v39  ;;  %v4506_v44 = vmul.f32 %v4490_v45, %v10208_v63 }
 0x606   : > { %4274 = vperm.xlu2 %6963, %v13260_v50   ;;  %4146 = vperm.xlu1 %6962, %v13261_v33   ;;  %v13275_v50 = vld [vmem:[#allocation207_spill] sm:$0xff]  ;;  %v3810_v21 = vadd.f32 %v3794_v58, %v3586_v8 }
 0x607   : > { %v10647_v24 = vpop.permute.xlu0 %4406  ;;  %v4378_v55 = vadd.f32 %v4362_v43, %v4234_v35  ;;  %v3831_v33 = vadd.s32 1, %v13275_v50  ;;  %v13288_v43 = vld [vmem:[#allocation247_spill] sm:$0xff] }
 0x608   : > { %v10655_v1 = vpop.permute.xlu2 %4960  ;;  %v4830_v57 = vpop.permute.xlu1 %4829  ;;  %vm4443_vm14 = vcmp.eq.s32.totalorder %v8027_v30, %v10647_v24  ;;  %v6548_v24 = vsel %vm3667_vm13, 1.0, %v12602_v41  ;;  %v13290_v58 = vld [vmem:[#allocation87_spill] sm:$0xff] }
 0x609   : > { %vm4868_vm2 = vcmp.eq.s32.totalorder %v8027_v30, %v4830_v57  ;;  %v4522_v53 = vadd.f32 %v4506_v44, %v4378_v55  ;;  %v13277_v57 = vld [vmem:[#allocation282_spill] sm:$0xff]  ;;  %vm4997_vm5 = vcmp.eq.s32.totalorder %v8027_v30, %v10655_v1  ;;  %v13281_v1 = vld [vmem:[#allocation160_spill] sm:$0xff]  ;;  %v3347_v55 = vmul.f32 %v6516_v20, %v13290_v58 }
 0x60a   : > { %v6689_v46 = vsel %vm4868_vm2, 1.0, %v12602_v41  ;;  %v3715_v8 = vmul.f32 %v6548_v24, %v13290_v58  ;;  %v13298_v20 = vld [vmem:[#allocation24_spill] sm:$0xff]  ;;  %v13301_v24 = vld [vmem:[#allocation129_spill] sm:$0xff] }
 0x60b   : > { %v4916_v27 = vmul.f32 %v6689_v46, %v13268_v47  ;;  %v13280_v46 = vld [vmem:[#allocation204_spill] sm:$0xff]  ;;  %v6618_v47 = vsel %vm4299_vm8, 1.0, %v12602_v41 }
 0x60d   : > { %v4932_v15 = vmul.f32 %v4916_v27, %v10005_v39  ;;  %4421 = vperm.xlu0 %6961, %v13269_v5  }
 0x60e   : > { %4972 = vperm.xlu2 %6963, %v13272_v18   ;;  %4844 = vperm.xlu1 %6962, %v13273_v37   ;;  %v13287_v18 = vld [vmem:[#allocation209_spill] sm:$0xff] }
 0x60f   : > { %v5076_v25 = vadd.f32 %v5060_v60, %v4932_v15  ;;  %v3856_v56 = vpop.permute.xlu0 %3855  ;;  %v13285_v15 = vld [vmem:[#allocation134_spill] sm:$0xff]  ;;  %v4347_v37 = vmul.f32 %v6618_v47, %v13287_v18 }
 0x610   : > { %vm3890_vm3 = vcmp.eq.s32.totalorder %v8027_v30, %v3856_v56  ;;  %v5105_v17 = vpop.permute.xlu2 %5104  ;;  %v4548_v52 = vpop.permute.xlu1 %4547 }
 0x611   : > { %v6563_v54 = vsel %vm3890_vm3, 1.0, %v12602_v41  ;;  %vm4586_vm4 = vcmp.eq.s32.totalorder %v8027_v30, %v4548_v52  ;;  %v5220_v39 = vadd.f32 %v5204_v36, %v5076_v25  ;;  %vm5141_vm9 = vcmp.eq.s32.totalorder %v8027_v30, %v5105_v17  ;;  %v13289_v52 = vld [vmem:[#allocation250_spill] sm:$0xff] }
 0x612   : > { %v3938_v0 = vmul.f32 %v6563_v54, %v13266_v11  ;;  %v6649_v49 = vsel %vm4586_vm4, 1.0, %v12602_v41  ;;  %v6706_v11 = vsel %vm4997_vm5, 1.0, %v12602_v41  ;;  %v6722_v40 = vsel %vm5141_vm9, 1.0, %v12602_v41  ;;  %v13291_v54 = vld [vmem:[#allocation226_spill] sm:$0xff] }
 0x613   : > { %v4634_v48 = vmul.f32 %v6649_v49, %v13267_v6  ;;  %v5364_v29 = vadd.f32 %v5348_v38, %v5220_v39  ;;  %v5045_v60 = vmul.f32 %v6706_v11, %v13284_v10  ;;  %v5189_v45 = vmul.f32 %v6722_v40, %v13288_v43  ;;  %v13293_v49 = vld [vmem:[#allocation69_spill] sm:$0xff]  ;;  %v13296_v40 = vld [vmem:[#allocation128_spill] sm:$0xff] }
 0x614   : > { %v3954_v59 = vmul.f32 %v3938_v0, %v13274_v28  ;;  %v6634_v25 = vsel %vm4443_vm14, 1.0, %v12602_v41  ;;  %v13292_v0 = vld [vmem:[#allocation117_spill] sm:$0xff]  ;;  %v4363_v44 = vmul.f32 %v4347_v37, %v10063_v9  ;;  %vm3508_vm4 = vcmp.eq.s32.totalorder %v8027_v30, %v13298_v20 }
 0x615   : > { %v4650_v34 = vmul.f32 %v4634_v48, %v10208_v63  ;;  %6761 = vmatmul.msk.f32.gmra.mxu1 %vm1462_vm10, %v5364_v29  ;;  %3870 = vperm.xlu0 %6961, %v3831_v33   ;;  %v13278_v63 = vld [vmem:[#allocation288_spill] sm:$0xff]  ;;  %v5061_v61 = vmul.f32 %v5045_v60, %v10063_v9  ;;  %v4491_v48 = vmul.f32 %v6634_v25, %v13285_v15  ;;  %v6533_v37 = vsel %vm3508_vm4, 1.0, %v12602_v41 }
 0x616   : > { %5116 = vperm.xlu2 %6963, %v13276_v3   ;;  %4562 = vperm.xlu1 %6962, %v13277_v57   ;;  %v3970_v31 = vadd.f32 %v3954_v59, %v3810_v21  ;;  %vm3507_vm7 = vcmp.eq.s32.totalorder %v8027_v30, %v13278_v63  ;;  %v5205_v29 = vmul.f32 %v5189_v45, %v13254_v22  ;;  %v13294_v3 = vld [vmem:[#allocation34_spill] sm:$0xff] }
 0x617   : > { %v5249_v26 = vpop.permute.xlu0 %5248  ;;  %v4666_v12 = vadd.f32 %v4650_v34, %v4522_v53  ;;  %v6532_v6 = vsel %vm3507_vm7, 1.0, %v12602_v41  ;;  %v3427_v59 = vmul.f32 %v13291_v54, %v3347_v55  ;;  %v3795_v57 = vmul.f32 %v13294_v3, %v3715_v8 }
 0x618   : > { %v10698_v42 = vpop.permute.xlu2 %4265  ;;  %v4135_v19 = vpop.permute.xlu1 %4134  ;;  %6587 = vmatmul.msk.f32.gmra.mxu3 %vm1462_vm10, %v3970_v31  ;;  %vm5285_vm11 = vcmp.eq.s32.totalorder %v8027_v30, %v5249_v26  ;;  %v3555_v2 = vmul.f32 %v6532_v6, %v13286_v62 }
 0x619   : > { %6673 = vmatmul.msk.f32.gmra.mxu0 %vm1462_vm10, %v4666_v12  ;;  %vm4171_vm6 = vcmp.eq.s32.totalorder %v8027_v30, %v4135_v19  ;;  %v6738_v35 = vsel %vm5285_vm11, 1.0, %v12602_v41  ;;  %vm4300_vm5 = vcmp.eq.s32.totalorder %v8027_v30, %v10698_v42 }
 0x61a   : > { %v6602_v7 = vsel %vm4171_vm6, 1.0, %v12602_v41  ;;  %v5333_v56 = vmul.f32 %v6738_v35, %v13284_v10  ;;  %v3571_v39 = vmul.f32 %v3555_v2, %v13291_v54  ;;  %v6619_v45 = vsel %vm4300_vm5, 1.0, %v12602_v41 }
 0x61b   : > { %v4219_v5 = vmul.f32 %v6602_v7, %v13285_v15 }
 0x61c   : > { %v5349_v21 = vmul.f32 %v5333_v56, %v13254_v22  ;;  %v3587_v12 = vadd.f32 %v3571_v39, %v3427_v59  ;;  %v13306_v39 = vld [vmem:[#allocation177_spill] sm:$0xff] }
 0x61d   : > { %5263 = vperm.xlu0 %6961, %v13279_v13   ;;  %v4235_v38 = vmul.f32 %v4219_v5, %v10063_v9  ;;  %v4507_v13 = vmul.f32 %v4491_v48, %v13254_v22  ;;  %v3556_v8 = vmul.f32 %v6533_v37, %v13306_v39  ;;  %v13308_v48 = vld [vmem:[#allocation246_spill] sm:$0xff]  ;;  %v13315_v37 = vld [vmem:[#allocation77_spill] sm:$0xff] }
 0x61e   : > { %4277 = vperm.xlu2 %6963, %v13280_v46   ;;  %4149 = vperm.xlu1 %6962, %v13281_v1   ;;  %v13295_v46 = vld [vmem:[#allocation61_spill] sm:$0xff]  ;;  %v3811_v6 = vadd.f32 %v3795_v57, %v3587_v12  ;;  %v13309_v57 = vld [vmem:[#allocation239_spill] sm:$0xff]  ;;  %v13311_v12 = vld [vmem:[#allocation74_spill] sm:$0xff] }
 0x61f   : > { %v10719_v16 = vpop.permute.xlu0 %4409  ;;  %v4379_v31 = vadd.f32 %v4363_v44, %v4235_v38  ;;  %v3832_v1 = vadd.s32 1, %v13295_v46 }
 0x620   : > { %v10727_v27 = vpop.permute.xlu2 %4963  ;;  %v4833_v4 = vpop.permute.xlu1 %4832  ;;  %vm4444_vm11 = vcmp.eq.s32.totalorder %v8027_v30, %v10719_v16 }
 0x621   : > { %vm4869_vm15 = vcmp.eq.s32.totalorder %v8027_v30, %v4833_v4  ;;  %v4523_v47 = vadd.f32 %v4507_v13, %v4379_v31  ;;  %v13297_v4 = vld [vmem:[#allocation273_spill] sm:$0xff]  ;;  %vm4998_vm2 = vcmp.eq.s32.totalorder %v8027_v30, %v10727_v27  ;;  %v13300_v27 = vld [vmem:[#allocation206_spill] sm:$0xff]  ;;  %v10821_v31 = vpop.f32.mrf.mxu0 }
 0x622   : > { %v6690_v51 = vsel %vm4869_vm15, 1.0, %v12602_v41  ;;  %v6707_v2 = vsel %vm4998_vm2, 1.0, %v12602_v41  ;;  %v13312_v13 = vld [vmem:[#allocation110_spill] sm:$0xff] }
 0x623   : > { %v4917_v36 = vmul.f32 %v6690_v51, %v13288_v43  ;;  %v13303_v43 = vld [vmem:[#allocation29_spill] sm:$0xff] }
 0x624   : > { %vm3668_vm9 = vcmp.eq.s32.totalorder %v8027_v30, %v13303_v43  ;;  %v3833_v43 = vadd.s32 1, %v13315_v37  ;;  %v13332_v37 = vld [vmem:[#allocation106_spill] sm:$0xff] }
 0x625   : > { %v4933_v17 = vmul.f32 %v4917_v36, %v10063_v9  ;;  %4424 = vperm.xlu0 %6961, %v13289_v52   ;;  %v13305_v52 = vld [vmem:[#allocation139_spill] sm:$0xff]  ;;  %v6549_v16 = vsel %vm3668_vm9, 1.0, %v12602_v41  ;;  %vm5534_vm9 = vcmask 130048  }
 0x626   : > { %4975 = vperm.xlu2 %6963, %v13292_v0   ;;  %4847 = vperm.xlu1 %6962, %v13293_v49   ;;  %v13307_v49 = vld [vmem:[#allocation194_spill] sm:$0xff] }
 0x627   : > { %v5077_v50 = vadd.f32 %v5061_v61, %v4933_v17  ;;  %v3859_v33 = vpop.permute.xlu0 %3858  ;;  %v13304_v61 = vld [vmem:[#allocation296_spill] sm:$0xff]  ;;  %v4348_v44 = vmul.f32 %v6619_v45, %v13307_v49 }
 0x628   : > { %vm3891_vm0 = vcmp.eq.s32.totalorder %v8027_v30, %v3859_v33  ;;  %v5108_v34 = vpop.permute.xlu2 %5107  ;;  %v4551_v53 = vpop.permute.xlu1 %4550  ;;  %v5046_v38 = vmul.f32 %v6707_v2, %v13304_v61  ;;  %v6635_v33 = vsel %vm4444_vm11, 1.0, %v12602_v41 }
 0x629   : > { %v6564_v26 = vsel %vm3891_vm0, 1.0, %v12602_v41  ;;  %vm4587_vm1 = vcmp.eq.s32.totalorder %v8027_v30, %v4551_v53  ;;  %v5221_v9 = vadd.f32 %v5205_v29, %v5077_v50  ;;  %vm5142_vm6 = vcmp.eq.s32.totalorder %v8027_v30, %v5108_v34 }
 0x62a   : > { %v3939_v19 = vmul.f32 %v6564_v26, %v13286_v62  ;;  %v6650_v63 = vsel %vm4587_vm1, 1.0, %v12602_v41  ;;  %v13299_v62 = vld [vmem:[#allocation169_spill] sm:$0xff]  ;;  %v6723_v36 = vsel %vm5142_vm6, 1.0, %v12602_v41  ;;  %v13310_v26 = vld [vmem:[#allocation88_spill] sm:$0xff]  ;;  %v4364_v46 = vmul.f32 %v4348_v44, %v13271_v23  ;;  %v13320_v44 = vld [vmem:[#allocation3_spill] sm:$0xff] }
 0x62b   : > { %v4635_v11 = vmul.f32 %v6650_v63, %v13287_v18  ;;  %v5365_v7 = vadd.f32 %v5349_v21, %v5221_v9  ;;  %v13302_v18 = vld [vmem:[#allocation8_spill] sm:$0xff]  ;;  %v5190_v29 = vmul.f32 %v6723_v36, %v13308_v48  ;;  %v5062_v21 = vmul.f32 %v5046_v38, %v13271_v23 }
 0x62c   : > { %v3955_v14 = vmul.f32 %v3939_v19, %v13294_v3  ;;  %vm3300_vm8 = vcmp.eq.s32.totalorder %v8027_v30, %v13302_v18  ;;  %v3572_v19 = vmul.f32 %v3556_v8, %v13311_v12  ;;  %v3716_v63 = vmul.f32 %v6549_v16, %v13310_v26  ;;  %v13316_v38 = vld [vmem:[#allocation232_spill] sm:$0xff] }
 0x62d   : > { %v4651_v32 = vmul.f32 %v4635_v11, %v13254_v22  ;;  %6762 = vmatmul.msk.f32.gmra.mxu1 %vm1462_vm10, %v5365_v7  ;;  %3873 = vperm.xlu0 %6961, %v3832_v1   ;;  %v6883_v22 = vld [vmem:[%s11751_s2] sm:$0xff]  ;;  %v6517_v55 = vsel %vm3300_vm8, 1.0, %v12602_v41  ;;  %v13313_v11 = vld [vmem:[#allocation73_spill] sm:$0xff]  ;;  %v10828_v7 = vpop.f32.mrf.mxu1  ;;  %v4492_v1 = vmul.f32 %v6635_v33, %v13305_v52  ;;  %v13322_v33 = vld [vmem:[#allocation292_spill] sm:$0xff] }
 0x62e   : > { %5119 = vperm.xlu2 %6963, %v13296_v40   ;;  %4565 = vperm.xlu1 %6962, %v13297_v4   ;;  %v3971_v10 = vadd.f32 %v3955_v14, %v3811_v6  ;;  %v3348_v9 = vmul.f32 %v6517_v55, %v13310_v26  ;;  %v5206_v14 = vmul.f32 %v5190_v29, %v13274_v28  ;;  %v13318_v55 = vld [vmem:[#allocation159_spill] sm:$0xff]  ;;  %v13324_v26 = vld [vmem:[#allocation50_spill] sm:$0xff] }
 0x62f   : > { %v5252_v60 = vpop.permute.xlu0 %5251  ;;  %v4667_v35 = vadd.f32 %v4651_v32, %v4523_v47  ;;  %5566 = vmatpush.bf16.msrb.mxu2 %v6883_v22  ;;  %vm3301_vm0 = vcmp.eq.s32.totalorder %v8027_v30, %v13324_v26 }
 0x630   : > { %v10770_v15 = vpop.permute.xlu2 %4268  ;;  %v4138_v5 = vpop.permute.xlu1 %4137  ;;  %6588 = vmatmul.msk.f32.gmra.mxu3 %vm1462_vm10, %v3971_v10  ;;  %vm5286_vm7 = vcmp.eq.s32.totalorder %v8027_v30, %v5252_v60  ;;  %v3428_v47 = vmul.f32 %v13311_v12, %v3348_v9  ;;  %v13314_v60 = vld [vmem:[#allocation25_spill] sm:$0xff] }
 0x631   : > { %6674 = vmatmul.msk.f32.gmra.mxu0 %vm1462_vm10, %v4667_v35  ;;  %vm4172_vm3 = vcmp.eq.s32.totalorder %v8027_v30, %v4138_v5  ;;  %v6739_v17 = vsel %vm5286_vm7, 1.0, %v12602_v41  ;;  %v3796_v35 = vmul.f32 %v13314_v60, %v3716_v63  ;;  %v13325_v9 = vld [vmem:[#allocation309_spill] sm:$0xff] }
 0x632   : > { %v6603_v51 = vsel %vm4172_vm3, 1.0, %v12602_v41  ;;  %v5334_v59 = vmul.f32 %v6739_v17, %v13304_v61  ;;  %v3588_v20 = vadd.f32 %v3572_v19, %v3428_v47  ;;  %v13317_v17 = vld [vmem:[#allocation2_spill] sm:$0xff]  ;;  %vm3509_vm2 = vcmp.eq.s32.totalorder %v8027_v30, %v13325_v9 }
 0x633   : > { %v4220_v58 = vmul.f32 %v6603_v51, %v13305_v52  ;;  %v2482_v52 = vmul.f32 %v13317_v17, %v13316_v38  ;;  %vm4301_vm3 = vcmp.eq.s32.totalorder %v8027_v30, %v10770_v15 }
 0x634   : > { %v5350_v40 = vmul.f32 %v5334_v59, %v13274_v28  ;;  %v3812_v36 = vadd.f32 %v3796_v35, %v3588_v20  ;;  %v6620_v47 = vsel %vm4301_vm3, 1.0, %v12602_v41 }
 0x635   : > { %5266 = vperm.xlu0 %6961, %v13299_v62   ;;  %v4236_v34 = vmul.f32 %v4220_v58, %v13271_v23  ;;  %v4054_v62 = vpop.f32.mrf.mxu3 }
 0x636   : > { %4280 = vperm.xlu2 %6963, %v13300_v27   ;;  %4152 = vperm.xlu1 %6962, %v13301_v24   ;;  %v4508_v27 = vmul.f32 %v4492_v1, %v13274_v28  ;;  %v4752_v58 = vpop.f32.mrf.mxu0  ;;  %v13327_v1 = vld [vmem:[#allocation126_spill] sm:$0xff] }
 0x637   : > { %v10794_v42 = vpop.permute.xlu0 %4412  ;;  %v4380_v5 = vadd.f32 %v4364_v46, %v4236_v34 }
 0x638   : > { %v10802_v25 = vpop.permute.xlu2 %4966  ;;  %v4836_v56 = vpop.permute.xlu1 %4835  ;;  %vm4445_vm7 = vcmp.eq.s32.totalorder %v8027_v30, %v10794_v42  ;;  %v13338_v42 = vld [vmem:[#allocation118_spill] sm:$0xff] }
 0x639   : > { %vm4870_vm12 = vcmp.eq.s32.totalorder %v8027_v30, %v4836_v56  ;;  %v4524_v61 = vadd.f32 %v4508_v27, %v4380_v5  ;;  %vm4999_vm15 = vcmp.eq.s32.totalorder %v8027_v30, %v10802_v25  ;;  %v13326_v25 = vld [vmem:[#allocation46_spill] sm:$0xff]  ;;  %v13331_v27 = vld [vmem:[#allocation145_spill] sm:$0xff] }
 0x63a   : > { %v6691_v0 = vsel %vm4870_vm12, 1.0, %v12602_v41 }
 0x63b   : > { %v4918_v50 = vmul.f32 %v6691_v0, %v13308_v48  ;;  %v5450_v0 = vpop.f32.mrf.mxu1  ;;  %v3180_v48 = vmul.f32 %v13320_v44, %v2482_v52 }
 0x63d   : > { %v4934_v53 = vmul.f32 %v4918_v50, %v13271_v23  ;;  %4427 = vperm.xlu0 %6961, %v13309_v57   ;;  %v13321_v50 = vld [vmem:[#allocation272_spill] sm:$0xff]  ;;  %v4057_v34 = vpop.f32.mrf.mxu3 }
 0x63e   : > { %4978 = vperm.xlu2 %6963, %v13312_v13   ;;  %4850 = vperm.xlu1 %6962, %v13313_v11   ;;  %v2483_v59 = vmul.f32 %v13322_v33, %v13321_v50  ;;  %v6708_v13 = vsel %vm4999_vm15, 1.0, %v12602_v41  ;;  %v6518_v11 = vsel %vm3301_vm0, 1.0, %v12602_v41  ;;  %v13339_v33 = vld [vmem:[#allocation78_spill] sm:$0xff] }
 0x63f   : > { %v5078_v6 = vadd.f32 %v5062_v21, %v4934_v53  ;;  %v3862_v32 = vpop.permute.xlu0 %3861  ;;  %v4102_v21 = vmul.f32 %v4054_v62, %v3180_v48  ;;  %v13323_v53 = vld [vmem:[#allocation248_spill] sm:$0xff]  ;;  %v13337_v48 = vld [vmem:[#allocation310_spill] sm:$0xff] }
 0x640   : > { %vm3892_vm13 = vcmp.eq.s32.totalorder %v8027_v30, %v3862_v32  ;;  %v10836_v4 = vpop.permute.xlu2 %5110  ;;  %v4554_v10 = vpop.permute.xlu1 %4553  ;;  %v3181_v57 = vmul.f32 %v13323_v53, %v2483_v59  ;;  %v13329_v32 = vld [vmem:[#allocation47_spill] sm:$0xff] }
 0x641   : > { %v6565_v23 = vsel %vm3892_vm13, 1.0, %v12602_v41  ;;  %vm4588_vm14 = vcmp.eq.s32.totalorder %v8027_v30, %v4554_v10  ;;  %v5222_v22 = vadd.f32 %v5206_v14, %v5078_v6  ;;  %v4800_v19 = vmul.f32 %v4752_v58, %v4102_v21  ;;  %v13328_v14 = vld [vmem:[#allocation162_spill] sm:$0xff] }
 0x642   : > { %v3940_v2 = vmul.f32 %v6565_v23, %v13306_v39  ;;  %v6651_v51 = vsel %vm4588_vm14, 1.0, %v12602_v41  ;;  %v13319_v39 = vld [vmem:[#allocation285_spill] sm:$0xff]  ;;  %v4103_v63 = vmul.f32 %v4057_v34, %v3181_v57  ;;  %vm5143_vm4 = vcmp.eq.s32.totalorder %v8027_v30, %v10836_v4  ;;  %v13330_v23 = vld [vmem:[#allocation306_spill] sm:$0xff] }
 0x643   : > { %v4636_v24 = vmul.f32 %v6651_v51, %v13307_v49  ;;  %v5366_v18 = vadd.f32 %v5350_v40, %v5222_v22  ;;  %v6534_v6 = vsel %vm3509_vm2, 1.0, %v12602_v41  ;;  %vm3669_vm6 = vcmp.eq.s32.totalorder %v8027_v30, %v13329_v32 }
 0x644   : > { %v3956_v45 = vmul.f32 %v3940_v2, %v13314_v60  ;;  %v5498_v5 = vmul.f32 %v5450_v0, %v4800_v19  ;;  %v5047_v22 = vmul.f32 %v6708_v13, %v13330_v23  ;;  %v6724_v20 = vsel %vm5143_vm4, 1.0, %v12602_v41  ;;  %v13340_v13 = vld [vmem:[#allocation19_spill] sm:$0xff] }
 0x645   : > { %v4652_v56 = vmul.f32 %v4636_v24, %v13274_v28  ;;  %6763 = vmatmul.msk.f32.gmra.mxu1 %vm1462_vm10, %v5366_v18  ;;  %3876 = vperm.xlu0 %6961, %v3833_v43   ;;  %v3557_v43 = vmul.f32 %v6534_v6, %v13332_v37  ;;  %v6550_v4 = vsel %vm3669_vm6, 1.0, %v12602_v41  ;;  %v6636_v58 = vsel %vm4445_vm7, 1.0, %v12602_v41 }
 0x646   : > { %5122 = vperm.xlu2 %6963, %v13318_v55   ;;  %4568 = vperm.xlu1 %6962, %v13319_v39   ;;  %v3972_v8 = vadd.f32 %v3956_v45, %v3812_v36  ;;  %v13333_v36 = vld [vmem:[#allocation219_spill] sm:$0xff]  ;;  %v5063_v39 = vmul.f32 %v5047_v22, %v13291_v54  ;;  %v4493_v21 = vmul.f32 %v6636_v58, %v13331_v27 }
 0x647   : > { %v5255_v16 = vpop.permute.xlu0 %5254  ;;  %v4668_v49 = vadd.f32 %v4652_v56, %v4524_v61  ;;  %v4349_v56 = vmul.f32 %v6620_v47, %v13333_v36  ;;  %v13334_v61 = vld [vmem:[#allocation261_spill] sm:$0xff] }
 0x648   : > { %v10854_v29 = vpop.permute.xlu2 %4271  ;;  %v4141_v28 = vpop.permute.xlu1 %4140  ;;  %6589 = vmatmul.msk.f32.gmra.mxu3 %vm1462_vm10, %v3972_v8  ;;  %vm5287_vm5 = vcmp.eq.s32.totalorder %v8027_v30, %v5255_v16  ;;  %v5191_v38 = vmul.f32 %v6724_v20, %v13334_v61  ;;  %v13335_v16 = vld [vmem:[#allocation165_spill] sm:$0xff]  ;;  %v4509_v6 = vmul.f32 %v4493_v21, %v13294_v3  ;;  %v13342_v20 = vld [vmem:[#allocation163_spill] sm:$0xff]  ;;  %v13354_v21 = vld [vmem:[#allocation252_spill] sm:$0xff] }
 0x649   : > { %6675 = vmatmul.msk.f32.gmra.mxu0 %vm1462_vm10, %v4668_v49  ;;  %vm4173_vm1 = vcmp.eq.s32.totalorder %v8027_v30, %v4141_v28  ;;  %v6740_v51 = vsel %vm5287_vm5, 1.0, %v12602_v41  ;;  %v13336_v49 = vld [vmem:[#allocation97_spill] sm:$0xff]  ;;  %v3573_v28 = vmul.f32 %v3557_v43, %v13337_v48  ;;  %v4365_v59 = vmul.f32 %v4349_v56, %v13291_v54  ;;  %v13345_v43 = vld [vmem:[#allocation132_spill] sm:$0xff]  ;;  %v13348_v56 = vld [vmem:[#allocation7_spill] sm:$0xff] }
 0x64a   : > { %v6604_v46 = vsel %vm4173_vm1, 1.0, %v12602_v41  ;;  %v5453_v40 = vpop.f32.mrf.mxu1  ;;  %v5335_v55 = vmul.f32 %v6740_v51, %v13330_v23  ;;  %v3349_v44 = vmul.f32 %v6518_v11, %v13336_v49  ;;  %v3717_v50 = vmul.f32 %v6550_v4, %v13336_v49  ;;  %v13341_v23 = vld [vmem:[#allocation121_spill] sm:$0xff] }
 0x64b   : > { %v4221_v24 = vmul.f32 %v6604_v46, %v13331_v27  ;;  %v5207_v34 = vmul.f32 %v5191_v38, %v13294_v3  ;;  %vm4302_vm0 = vcmp.eq.s32.totalorder %v8027_v30, %v10854_v29  ;;  %vm3302_vm3 = vcmp.eq.s32.totalorder %v8027_v30, %v13348_v56  ;;  %v13349_v38 = vld [vmem:[#allocation36_spill] sm:$0xff] }
 0x64c   : > { %v3429_v26 = vmul.f32 %v13337_v48, %v3349_v44  ;;  %v5351_v9 = vmul.f32 %v5335_v55, %v13294_v3  ;;  %vm3670_vm4 = vcmp.eq.s32.totalorder %v8027_v30, %v13349_v38  ;;  %v6519_v44 = vsel %vm3302_vm3, 1.0, %v12602_v41  ;;  %v13361_v38 = vld [vmem:[#allocation57_spill] sm:$0xff] }
 0x64d   : > { %3777 = vperm.xlu0 %6961, %v13326_v25   ;;  %v4237_v8 = vmul.f32 %v4221_v24, %v13291_v54  ;;  %v3797_v25 = vmul.f32 %v13340_v13, %v3717_v50 }
 0x64e   : > { %4283 = vperm.xlu2 %6963, %v13327_v1   ;;  %4155 = vperm.xlu1 %6962, %v13328_v14   ;;  %v4755_v15 = vpop.f32.mrf.mxu0  ;;  %v3589_v1 = vadd.f32 %v3573_v28, %v3429_v26  ;;  %v13352_v28 = vld [vmem:[#allocation189_spill] sm:$0xff] }
 0x64f   : > { %v4801_v10 = vmul.f32 %v4755_v15, %v4103_v63  ;;  %v10883_v35 = vpop.permute.xlu0 %4415  ;;  %v4381_v11 = vadd.f32 %v4365_v59, %v4237_v8 }
 0x650   : > { %v10892_v62 = vpop.permute.xlu2 %4969  ;;  %v4839_v2 = vpop.permute.xlu1 %4838  ;;  %vm4446_vm5 = vcmp.eq.s32.totalorder %v8027_v30, %v10883_v35  ;;  %v6551_v35 = vsel %vm3670_vm4, 1.0, %v12602_v41 }
 0x651   : > { %v5499_v18 = vmul.f32 %v5453_v40, %v4801_v10  ;;  %vm4871_vm8 = vcmp.eq.s32.totalorder %v8027_v30, %v4839_v2  ;;  %v3813_v10 = vadd.f32 %v3797_v25, %v3589_v1  ;;  %v4525_v22 = vadd.f32 %v4509_v6, %v4381_v11  ;;  %v13343_v2 = vld [vmem:[#allocation286_spill] sm:$0xff]  ;;  %v13355_v25 = vld [vmem:[#allocation131_spill] sm:$0xff] }
 0x652   : > { %v6692_v45 = vsel %vm4871_vm8, 1.0, %v12602_v41  ;;  %vm5000_vm13 = vcmp.eq.s32.totalorder %v8027_v30, %v10892_v62  ;;  %v13347_v62 = vld [vmem:[#allocation199_spill] sm:$0xff]  ;;  %v13359_v6 = vld [vmem:[#allocation254_spill] sm:$0xff] }
 0x653   : > { %v5514_v17 = vpack.c.bf16 %v5499_v18, %v5498_v5  ;;  %v4919_v52 = vmul.f32 %v6692_v45, %v13334_v61  ;;  %v6709_v4 = vsel %vm5000_vm13, 1.0, %v12602_v41  ;;  %v13356_v11 = vld [vmem:[#allocation91_spill] sm:$0xff] }
 0x655   : > { %v4935_v0 = vmul.f32 %v4919_v52, %v13291_v54  ;;  %6777 = vmatmul.msk.bf16.vlgmr.msrb.gmra.mxu2 %vm5534_vm9, %v5514_v17  ;;  %4286 = vperm.xlu0 %6961, %v13335_v16   ;;  %v6621_v17 = vsel %vm4302_vm0, 1.0, %v12602_v41  ;;  %v13351_v16 = vld [vmem:[#allocation137_spill] sm:$0xff] }
 0x656   : > { %4981 = vperm.xlu2 %6963, %v13338_v42   ;;  %4853 = vperm.xlu1 %6962, %v13339_v33   ;;  %v13353_v33 = vld [vmem:[#allocation212_spill] sm:$0xff] }
 0x657   : > { %v5079_v53 = vadd.f32 %v5063_v39, %v4935_v0  ;;  %v3865_v57 = vpop.permute.xlu0 %3864  ;;  %v13350_v39 = vld [vmem:[#allocation300_spill] sm:$0xff]  ;;  %v4350_v59 = vmul.f32 %v6621_v17, %v13353_v33  ;;  %v3834_v17 = vadd.s32 1, %v13361_v38 }
 0x658   : > { %vm3893_vm11 = vcmp.eq.s32.totalorder %v8027_v30, %v3865_v57  ;;  %v5114_v19 = vpop.permute.xlu2 %5113  ;;  %v4557_v63 = vpop.permute.xlu1 %4556  ;;  %v5048_v8 = vmul.f32 %v6709_v4, %v13350_v39  ;;  %v6637_v57 = vsel %vm4446_vm5, 1.0, %v12602_v41 }
 0x659   : > { %v6566_v46 = vsel %vm3893_vm11, 1.0, %v12602_v41  ;;  %vm4589_vm12 = vcmp.eq.s32.totalorder %v8027_v30, %v4557_v63  ;;  %v5223_v54 = vadd.f32 %v5207_v34, %v5079_v53  ;;  %vm5144_vm1 = vcmp.eq.s32.totalorder %v8027_v30, %v5114_v19 }
 0x65a   : > { %v3941_v14 = vmul.f32 %v6566_v46, %v13332_v37  ;;  %v6652_v15 = vsel %vm4589_vm12, 1.0, %v12602_v41  ;;  %v6725_v52 = vsel %vm5144_vm1, 1.0, %v12602_v41  ;;  %v3350_v46 = vmul.f32 %v6519_v44, %v13356_v11 }
 0x65b   : > { %v4637_v32 = vmul.f32 %v6652_v15, %v13333_v36  ;;  %v5367_v47 = vadd.f32 %v5351_v9, %v5223_v54  ;;  %v13346_v36 = vld [vmem:[#allocation179_spill] sm:$0xff]  ;;  %v5192_v34 = vmul.f32 %v6725_v52, %v13354_v21  ;;  %v5064_v9 = vmul.f32 %v5048_v8, %v13311_v12  ;;  %v13357_v54 = vld [vmem:[#allocation294_spill] sm:$0xff] }
 0x65c   : > { %v3957_v40 = vmul.f32 %v3941_v14, %v13340_v13  ;;  %v3718_v14 = vmul.f32 %v6551_v35, %v13356_v11  ;;  %v13358_v15 = vld [vmem:[#allocation75_spill] sm:$0xff] }
 0x65d   : > { %v4653_v5 = vmul.f32 %v4637_v32, %v13294_v3  ;;  %6764 = vmatmul.msk.f32.gmra.mxu1 %vm1462_vm10, %v5367_v47  ;;  %4984 = vperm.xlu0 %6961, %v13341_v23   ;;  %v13344_v3 = vld [vmem:[#allocation238_spill] sm:$0xff]  ;;  %v4366_v32 = vmul.f32 %v4350_v59, %v13311_v12  ;;  %v4494_v47 = vmul.f32 %v6637_v57, %v13351_v16  ;;  %v13362_v8 = vld [vmem:[#allocation79_spill] sm:$0xff]  ;;  %v13366_v59 = vld [vmem:[#allocation284_spill] sm:$0xff] }
 0x65e   : > { %5125 = vperm.xlu2 %6963, %v13342_v20   ;;  %4571 = vperm.xlu1 %6962, %v13343_v2   ;;  %v3973_v51 = vadd.f32 %v3957_v40, %v3813_v10  ;;  %vm3510_vm15 = vcmp.eq.s32.totalorder %v8027_v30, %v13344_v3  ;;  %v5208_v40 = vmul.f32 %v5192_v34, %v13314_v60  ;;  %v13368_v57 = vld [vmem:[#allocation291_spill] sm:$0xff] }
 0x65f   : > { %v5258_v27 = vpop.permute.xlu0 %5257  ;;  %v4669_v24 = vadd.f32 %v4653_v5, %v4525_v22  ;;  %v6535_v61 = vsel %vm3510_vm15, 1.0, %v12602_v41  ;;  %v3430_v23 = vmul.f32 %v13357_v54, %v3350_v46  ;;  %v13370_v11 = vld [vmem:[#allocation295_spill] sm:$0xff] }
 0x660   : > { %v10942_v18 = vpop.permute.xlu2 %4274  ;;  %v4144_v37 = vpop.permute.xlu1 %4143  ;;  %6590 = vmatmul.msk.f32.gmra.mxu3 %vm1462_vm10, %v3973_v51  ;;  %vm5288_vm2 = vcmp.eq.s32.totalorder %v8027_v30, %v5258_v27  ;;  %v3558_v50 = vmul.f32 %v6535_v61, %v13352_v28  ;;  %v13360_v51 = vld [vmem:[#allocation22_spill] sm:$0xff]  ;;  %vm3511_vm13 = vcmp.eq.s32.totalorder %v8027_v30, %v13370_v11 }
 0x661   : > { %6676 = vmatmul.msk.f32.gmra.mxu0 %vm1462_vm10, %v4669_v24  ;;  %vm4174_vm14 = vcmp.eq.s32.totalorder %v8027_v30, %v4144_v37  ;;  %v6741_v0 = vsel %vm5288_vm2, 1.0, %v12602_v41  ;;  %v3798_v27 = vmul.f32 %v13360_v51, %v3718_v14 }
 0x662   : > { %v6605_v45 = vsel %vm4174_vm14, 1.0, %v12602_v41  ;;  %v5336_v26 = vmul.f32 %v6741_v0, %v13350_v39  ;;  %v3574_v1 = vmul.f32 %v3558_v50, %v13357_v54  ;;  %v13363_v0 = vld [vmem:[#allocation231_spill] sm:$0xff]  ;;  %vm4303_vm14 = vcmp.eq.s32.totalorder %v8027_v30, %v10942_v18 }
 0x663   : > { %v4222_v49 = vmul.f32 %v6605_v45, %v13351_v16  ;;  %v13364_v16 = vld [vmem:[#allocation9_spill] sm:$0xff] }
 0x664   : > { %v5352_v22 = vmul.f32 %v5336_v26, %v13314_v60  ;;  %v3590_v3 = vadd.f32 %v3574_v1, %v3430_v23 }
 0x665   : > { %5128 = vperm.xlu0 %6961, %v13345_v43   ;;  %v4238_v19 = vmul.f32 %v4222_v49, %v13311_v12  ;;  %v4060_v43 = vpop.f32.mrf.mxu3  ;;  %v2484_v49 = vmul.f32 %v13364_v16, %v13363_v0 }
 0x666   : > { %4158 = vperm.xlu2 %6963, %v13346_v36   ;;  %5269 = vperm.xlu1 %6962, %v13347_v62   ;;  %v4510_v36 = vmul.f32 %v4494_v47, %v13314_v60  ;;  %v3814_v52 = vadd.f32 %v3798_v27, %v3590_v3  ;;  %v4758_v44 = vpop.f32.mrf.mxu0  ;;  %v13374_v47 = vld [vmem:[#allocation44_spill] sm:$0xff] }
 0x667   : > { %v10963_v29 = vpop.permute.xlu0 %4418  ;;  %v4382_v24 = vadd.f32 %v4366_v32, %v4238_v19  ;;  %v13373_v32 = vld [vmem:[#allocation202_spill] sm:$0xff] }
 0x668   : > { %v10971_v58 = vpop.permute.xlu2 %4972  ;;  %v4842_v55 = vpop.permute.xlu1 %4841  ;;  %vm4447_vm3 = vcmp.eq.s32.totalorder %v8027_v30, %v10963_v29  ;;  %v13384_v29 = vld [vmem:[#allocation255_spill] sm:$0xff] }
 0x669   : > { %vm4872_vm6 = vcmp.eq.s32.totalorder %v8027_v30, %v4842_v55  ;;  %v4526_v55 = vadd.f32 %v4510_v36, %v4382_v24  ;;  %vm5001_vm11 = vcmp.eq.s32.totalorder %v8027_v30, %v10971_v58  ;;  %v13372_v58 = vld [vmem:[#allocation13_spill] sm:$0xff]  ;;  %v13376_v24 = vld [vmem:[#allocation299_spill] sm:$0xff] }
 0x66a   : > { %v6693_v42 = vsel %vm4872_vm6, 1.0, %v12602_v41  ;;  %v6710_v14 = vsel %vm5001_vm11, 1.0, %v12602_v41  ;;  %vm3303_vm0 = vcmp.eq.s32.totalorder %v8027_v30, %v13372_v58 }
 0x66b   : > { %v4920_v53 = vmul.f32 %v6693_v42, %v13354_v21  ;;  %v5456_v42 = vpop.f32.mrf.mxu1  ;;  %v3182_v21 = vmul.f32 %v13366_v59, %v2484_v49  ;;  %v6638_v49 = vsel %vm4447_vm3, 1.0, %v12602_v41 }
 0x66d   : > { %v4936_v63 = vmul.f32 %v4920_v53, %v13311_v12  ;;  %4161 = vperm.xlu0 %6961, %v13355_v25   ;;  %v13367_v53 = vld [vmem:[#allocation271_spill] sm:$0xff]  ;;  %v4063_v19 = vpop.f32.mrf.mxu3 }
 0x66e   : > { %4856 = vperm.xlu2 %6963, %v13358_v15   ;;  %4430 = vperm.xlu1 %6962, %v13359_v6   ;;  %v2485_v26 = vmul.f32 %v13368_v57, %v13367_v53  ;;  %v13371_v15 = vld [vmem:[#allocation289_spill] sm:$0xff] }
 0x66f   : > { %v5080_v10 = vadd.f32 %v5064_v9, %v4936_v63  ;;  %v3868_v5 = vpop.permute.xlu0 %3867  ;;  %v4104_v9 = vmul.f32 %v4060_v43, %v3182_v21  ;;  %v13369_v63 = vld [vmem:[#allocation4_spill] sm:$0xff]  ;;  %v13385_v57 = vld [vmem:[#allocation229_spill] sm:$0xff] }
 0x670   : > { %vm3894_vm7 = vcmp.eq.s32.totalorder %v8027_v30, %v3868_v5  ;;  %v11001_v20 = vpop.permute.xlu2 %5116  ;;  %v4560_v2 = vpop.permute.xlu1 %4559  ;;  %v3183_v25 = vmul.f32 %v13369_v63, %v2485_v26  ;;  %v6622_v5 = vsel %vm4303_vm14, 1.0, %v12602_v41  ;;  %v13383_v21 = vld [vmem:[#allocation280_spill] sm:$0xff] }
 0x671   : > { %v5224_v37 = vadd.f32 %v5208_v40, %v5080_v10  ;;  %v6567_v12 = vsel %vm3894_vm7, 1.0, %v12602_v41  ;;  %vm4590_vm8 = vcmp.eq.s32.totalorder %v8027_v30, %v4560_v2  ;;  %v4802_v46 = vmul.f32 %v4758_v44, %v4104_v9  ;;  %v13375_v10 = vld [vmem:[#allocation35_spill] sm:$0xff] }
 0x672   : > { %v3942_v4 = vmul.f32 %v6567_v12, %v13352_v28  ;;  %v6653_v45 = vsel %vm4590_vm8, 1.0, %v12602_v41  ;;  %v13365_v28 = vld [vmem:[#allocation277_spill] sm:$0xff]  ;;  %v4105_v1 = vmul.f32 %v4063_v19, %v3183_v25  ;;  %vm5145_vm15 = vcmp.eq.s32.totalorder %v8027_v30, %v11001_v20 }
 0x673   : > { %v4638_v62 = vmul.f32 %v6653_v45, %v13353_v33  ;;  %v5368_v56 = vadd.f32 %v5352_v22, %v5224_v37  ;;  %v6536_v40 = vsel %vm3511_vm13, 1.0, %v12602_v41  ;;  %vm3671_vm2 = vcmp.eq.s32.totalorder %v8027_v30, %v13375_v10  ;;  %v13377_v45 = vld [vmem:[#allocation142_spill] sm:$0xff] }
 0x674   : > { %v3958_v61 = vmul.f32 %v3942_v4, %v13360_v51  ;;  %v5500_v27 = vmul.f32 %v5456_v42, %v4802_v46  ;;  %v5049_v37 = vmul.f32 %v6710_v14, %v13376_v24  ;;  %v6726_v12 = vsel %vm5145_vm15, 1.0, %v12602_v41 }
 0x675   : > { %v4654_v39 = vmul.f32 %v4638_v62, %v13314_v60  ;;  %6765 = vmatmul.msk.f32.gmra.mxu1 %vm1462_vm10, %v5368_v56  ;;  %4859 = vperm.xlu0 %6961, %v13362_v8   ;;  %v6520_v56 = vsel %vm3303_vm0, 1.0, %v12602_v41  ;;  %v6552_v38 = vsel %vm3671_vm2, 1.0, %v12602_v41  ;;  %v4495_v9 = vmul.f32 %v6638_v49, %v13377_v45 }
 0x676   : > { %4574 = vperm.xlu2 %6963, %v13365_v28   ;;  %3879 = vperm.xlu1 %6962, %v3834_v17   ;;  %v3974_v50 = vadd.f32 %v3958_v61, %v3814_v52  ;;  %v13378_v61 = vld [vmem:[#allocation180_spill] sm:$0xff]  ;;  %v13379_v52 = vld [vmem:[#allocation197_spill] sm:$0xff]  ;;  %v5065_v28 = vmul.f32 %v5049_v37, %v13337_v48 }
 0x677   : > { %v4670_v35 = vadd.f32 %v4654_v39, %v4526_v55  ;;  %v5261_v33 = vpop.permute.xlu0 %5260  ;;  %v3559_v20 = vmul.f32 %v6536_v40, %v13378_v61  ;;  %v4351_v55 = vmul.f32 %v6622_v5, %v13379_v52  ;;  %v13380_v39 = vld [vmem:[#allocation251_spill] sm:$0xff]  ;;  %v4511_v10 = vmul.f32 %v4495_v9, %v13340_v13 }
 0x678   : > { %v11019_v34 = vpop.permute.xlu2 %4277  ;;  %v4147_v60 = vpop.permute.xlu1 %4146  ;;  %6591 = vmatmul.msk.f32.gmra.mxu3 %vm1462_vm10, %v3974_v50  ;;  %vm5289_vm1 = vcmp.eq.s32.totalorder %v8027_v30, %v5261_v33  ;;  %v5193_v8 = vmul.f32 %v6726_v12, %v13380_v39  ;;  %v13382_v33 = vld [vmem:[#allocation90_spill] sm:$0xff] }
 0x679   : > { %6677 = vmatmul.msk.f32.gmra.mxu0 %vm1462_vm10, %v4670_v35  ;;  %vm4175_vm12 = vcmp.eq.s32.totalorder %v8027_v30, %v4147_v60  ;;  %v6742_v4 = vsel %vm5289_vm1, 1.0, %v12602_v41  ;;  %v13381_v35 = vld [vmem:[#allocation173_spill] sm:$0xff]  ;;  %v3351_v59 = vmul.f32 %v6520_v56, %v13382_v33  ;;  %v3575_v60 = vmul.f32 %v3559_v20, %v13383_v21 }
 0x67a   : > { %v6606_v6 = vsel %vm4175_vm12, 1.0, %v12602_v41  ;;  %v5459_v23 = vpop.f32.mrf.mxu1  ;;  %v5337_v44 = vmul.f32 %v6742_v4, %v13376_v24  ;;  %v3719_v53 = vmul.f32 %v6552_v38, %v13382_v33  ;;  %v4367_v26 = vmul.f32 %v4351_v55, %v13337_v48  ;;  %v13388_v4 = vld [vmem:[#allocation243_spill] sm:$0xff]  ;;  %v13391_v38 = vld [vmem:[#allocation290_spill] sm:$0xff]  ;;  %v13397_v33 = vld [vmem:[#allocation149_spill] sm:$0xff] }
 0x67b   : > { %v4223_v36 = vmul.f32 %v6606_v6, %v13377_v45  ;;  %v5209_v19 = vmul.f32 %v5193_v8, %v13340_v13  ;;  %v3431_v11 = vmul.f32 %v13383_v21, %v3351_v59  ;;  %v13389_v45 = vld [vmem:[#allocation115_spill] sm:$0xff]  ;;  %vm4304_vm12 = vcmp.eq.s32.totalorder %v8027_v30, %v11019_v34 }
 0x67c   : > { %v5353_v46 = vmul.f32 %v5337_v44, %v13340_v13  ;;  %v13392_v55 = vld [vmem:[#allocation43_spill] sm:$0xff] }
 0x67d   : > { %4577 = vperm.xlu0 %6961, %v13371_v15   ;;  %v4239_v50 = vmul.f32 %v4223_v36, %v13337_v48  ;;  %v13386_v15 = vld [vmem:[#allocation135_spill] sm:$0xff] }
 0x67e   : > { %5272 = vperm.xlu2 %6963, %v13373_v32   ;;  %3781 = vperm.xlu1 %6962, %v13374_v47   ;;  %v4761_v18 = vpop.f32.mrf.mxu0  ;;  %v3799_v58 = vmul.f32 %v13386_v15, %v3719_v53  ;;  %v3591_v47 = vadd.f32 %v3575_v60, %v3431_v11  ;;  %v13398_v53 = vld [vmem:[#allocation111_spill] sm:$0xff] }
 0x67f   : > { %v4803_v22 = vmul.f32 %v4761_v18, %v4105_v1  ;;  %v11047_v2 = vpop.permute.xlu0 %4421  ;;  %v4383_v6 = vadd.f32 %v4367_v26, %v4239_v50  ;;  %v13396_v50 = vld [vmem:[#allocation307_spill] sm:$0xff]  ;;  %v13399_v26 = vld [vmem:[#allocation221_spill] sm:$0xff] }
 0x680   : > { %v11056_v3 = vpop.permute.xlu2 %4975  ;;  %v4845_v43 = vpop.permute.xlu1 %4844  ;;  %v3815_v37 = vadd.f32 %v3799_v58, %v3591_v47  ;;  %vm4448_vm1 = vcmp.eq.s32.totalorder %v8027_v30, %v11047_v2 }
 0x681   : > { %v5501_v62 = vmul.f32 %v5459_v23, %v4803_v22  ;;  %vm4873_vm4 = vcmp.eq.s32.totalorder %v8027_v30, %v4845_v43  ;;  %v4527_v12 = vadd.f32 %v4511_v10, %v4383_v6  ;;  %vm5002_vm7 = vcmp.eq.s32.totalorder %v8027_v30, %v11056_v3  ;;  %v13393_v3 = vld [vmem:[#allocation164_spill] sm:$0xff] }
 0x682   : > { %v6694_v17 = vsel %vm4873_vm4, 1.0, %v12602_v41  ;;  %v6639_v11 = vsel %vm4448_vm1, 1.0, %v12602_v41  ;;  %v13401_v6 = vld [vmem:[#allocation104_spill] sm:$0xff] }
 0x683   : > { %v4921_v0 = vmul.f32 %v6694_v17, %v13380_v39  ;;  %v5515_v16 = vpack.c.bf16 %v5501_v62, %v5500_v27  ;;  %v13387_v27 = vld [vmem:[#allocation68_spill] sm:$0xff]  ;;  %v6711_v17 = vsel %vm5002_vm7, 1.0, %v12602_v41 }
 0x684   : > { %v3835_v24 = vadd.s32 1, %v13387_v27  ;;  %v13394_v39 = vld [vmem:[#allocation52_spill] sm:$0xff] }
 0x685   : > { %v4937_v42 = vmul.f32 %v4921_v0, %v13337_v48  ;;  %6778 = vmatmul.msk.bf16.gmra.mxu2 %vm5534_vm9, %v5515_v16  ;;  %5275 = vperm.xlu0 %6961, %v13381_v35   ;;  %vm3304_vm15 = vcmp.eq.s32.totalorder %v8027_v30, %v13394_v39  ;;  %v13395_v0 = vld [vmem:[#allocation28_spill] sm:$0xff]  ;;  %v6623_v16 = vsel %vm4304_vm12, 1.0, %v12602_v41 }
 0x686   : > { %4433 = vperm.xlu2 %6963, %v13384_v29   ;;  %4289 = vperm.xlu1 %6962, %v13385_v57   ;;  %vm3672_vm0 = vcmp.eq.s32.totalorder %v8027_v30, %v13395_v0  ;;  %v6521_v60 = vsel %vm3304_vm15, 1.0, %v12602_v41  ;;  %v4352_v9 = vmul.f32 %v6623_v16, %v13399_v26  ;;  %v13404_v10 = vld [vmem:[#allocation200_spill] sm:$0xff] }
 0x687   : > { %v5081_v63 = vadd.f32 %v5065_v28, %v4937_v42  ;;  %v3871_v25 = vpop.permute.xlu0 %3870  ;;  %v5050_v42 = vmul.f32 %v6711_v17, %v13396_v50  ;;  %v6553_v2 = vsel %vm3672_vm0, 1.0, %v12602_v41 }
 0x688   : > { %vm3895_vm5 = vcmp.eq.s32.totalorder %v8027_v30, %v3871_v25  ;;  %v5120_v1 = vpop.permute.xlu2 %5119  ;;  %v4563_v14 = vpop.permute.xlu1 %4562 }
 0x689   : > { %v5225_v32 = vadd.f32 %v5209_v19, %v5081_v63  ;;  %v6568_v48 = vsel %vm3895_vm5, 1.0, %v12602_v41  ;;  %vm4591_vm6 = vcmp.eq.s32.totalorder %v8027_v30, %v4563_v14  ;;  %vm5146_vm13 = vcmp.eq.s32.totalorder %v8027_v30, %v5120_v1  ;;  %v13400_v19 = vld [vmem:[#allocation262_spill] sm:$0xff] }
 0x68a   : > { %v3943_v18 = vmul.f32 %v6568_v48, %v13378_v61  ;;  %v6654_v40 = vsel %vm4591_vm6, 1.0, %v12602_v41  ;;  %v6727_v49 = vsel %vm5146_vm13, 1.0, %v12602_v41  ;;  %v5066_v1 = vmul.f32 %v5050_v42, %v13357_v54  ;;  %v13402_v48 = vld [vmem:[#allocation70_spill] sm:$0xff] }
 0x68b   : > { %v4639_v5 = vmul.f32 %v6654_v40, %v13379_v52  ;;  %v5369_v23 = vadd.f32 %v5353_v46, %v5225_v32  ;;  %v5194_v63 = vmul.f32 %v6727_v49, %v13400_v19  ;;  %v3352_v32 = vmul.f32 %v6521_v60, %v13401_v6  ;;  %v13403_v40 = vld [vmem:[#allocation230_spill] sm:$0xff]  ;;  %v13406_v49 = vld [vmem:[#allocation5_spill] sm:$0xff] }
 0x68c   : > { %v3959_v22 = vmul.f32 %v3943_v18, %v13386_v15  ;;  %v3720_v18 = vmul.f32 %v6553_v2, %v13401_v6 }
 0x68d   : > { %v4655_v43 = vmul.f32 %v4639_v5, %v13340_v13  ;;  %6766 = vmatmul.msk.f32.gmra.mxu1 %vm1462_vm10, %v5369_v23  ;;  %4436 = vperm.xlu0 %6961, %v13388_v4   ;;  %v13390_v13 = vld [vmem:[#allocation45_spill] sm:$0xff]  ;;  %v4368_v5 = vmul.f32 %v4352_v9, %v13357_v54  ;;  %v4496_v23 = vmul.f32 %v6639_v11, %v13397_v33 }
 0x68e   : > { %3882 = vperm.xlu2 %6963, %v3835_v24   ;;  %4987 = vperm.xlu1 %6962, %v13389_v45   ;;  %v3975_v36 = vadd.f32 %v3959_v22, %v3815_v37  ;;  %vm3512_vm11 = vcmp.eq.s32.totalorder %v8027_v30, %v13390_v13  ;;  %v5210_v22 = vmul.f32 %v5194_v63, %v13360_v51  ;;  %v13405_v45 = vld [vmem:[#allocation20_spill] sm:$0xff]  ;;  %v4066_v13 = vpop.f32.mrf.mxu3 }
 0x68f   : > { %v4671_v62 = vadd.f32 %v4655_v43, %v4527_v12  ;;  %v5264_v56 = vpop.permute.xlu0 %5263  ;;  %v6537_v8 = vsel %vm3512_vm11, 1.0, %v12602_v41  ;;  %v3432_v37 = vmul.f32 %v13402_v48, %v3352_v32 }
 0x690   : > { %v11110_v61 = vpop.permute.xlu2 %4280  ;;  %v4150_v20 = vpop.permute.xlu1 %4149  ;;  %6592 = vmatmul.msk.f32.gmra.mxu3 %vm1462_vm10, %v3975_v36  ;;  %vm5290_vm14 = vcmp.eq.s32.totalorder %v8027_v30, %v5264_v56  ;;  %v3560_v29 = vmul.f32 %v6537_v8, %v13398_v53  ;;  %v3800_v36 = vmul.f32 %v13405_v45, %v3720_v18  ;;  %v13415_v18 = vld [vmem:[#allocation168_spill] sm:$0xff] }
 0x691   : > { %6678 = vmatmul.msk.f32.gmra.mxu0 %vm1462_vm10, %v4671_v62  ;;  %vm4176_vm8 = vcmp.eq.s32.totalorder %v8027_v30, %v4150_v20  ;;  %v6743_v35 = vsel %vm5290_vm14, 1.0, %v12602_v41  ;;  %vm4305_vm7 = vcmp.eq.s32.totalorder %v8027_v30, %v11110_v61 }
 0x692   : > { %v6607_v52 = vsel %vm4176_vm8, 1.0, %v12602_v41  ;;  %v5338_v46 = vmul.f32 %v6743_v35, %v13396_v50  ;;  %v3576_v47 = vmul.f32 %v3560_v29, %v13402_v48  ;;  %v13408_v35 = vld [vmem:[#allocation122_spill] sm:$0xff]  ;;  %v5462_v60 = vpop.f32.mrf.mxu1  ;;  %v6624_v61 = vsel %vm4305_vm7, 1.0, %v12602_v41 }
 0x693   : > { %v4224_v59 = vmul.f32 %v6607_v52, %v13397_v33  ;;  %v4512_v52 = vmul.f32 %v4496_v23, %v13360_v51  ;;  %v13409_v33 = vld [vmem:[#allocation82_spill] sm:$0xff] }
 0x694   : > { %v5354_v12 = vmul.f32 %v5338_v46, %v13360_v51  ;;  %v3592_v20 = vadd.f32 %v3576_v47, %v3432_v37  ;;  %v13413_v46 = vld [vmem:[#allocation14_spill] sm:$0xff]  ;;  %v13414_v47 = vld [vmem:[#allocation203_spill] sm:$0xff] }
 0x695   : > { %4580 = vperm.xlu0 %6961, %v13391_v38   ;;  %v4240_v14 = vmul.f32 %v4224_v59, %v13357_v54 }
 0x696   : > { %3785 = vperm.xlu2 %6963, %v13392_v55   ;;  %5131 = vperm.xlu1 %6962, %v13393_v3   ;;  %v3816_v8 = vadd.f32 %v3800_v36, %v3592_v20  ;;  %v4764_v42 = vpop.f32.mrf.mxu0  ;;  %v4069_v11 = vpop.f32.mrf.mxu3  ;;  %v13419_v20 = vld [vmem:[#allocation215_spill] sm:$0xff] }
 0x697   : > { %v11131_v34 = vpop.permute.xlu0 %4424  ;;  %v4384_v62 = vadd.f32 %v4368_v5, %v4240_v14 }
 0x698   : > { %v11139_v44 = vpop.permute.xlu2 %4978  ;;  %v4848_v28 = vpop.permute.xlu1 %4847  ;;  %vm4449_vm13 = vcmp.eq.s32.totalorder %v8027_v30, %v11131_v34 }
 0x699   : > { %vm4874_vm2 = vcmp.eq.s32.totalorder %v8027_v30, %v4848_v28  ;;  %v4528_v0 = vadd.f32 %v4512_v52, %v4384_v62  ;;  %v13407_v28 = vld [vmem:[#allocation12_spill] sm:$0xff]  ;;  %vm5003_vm5 = vcmp.eq.s32.totalorder %v8027_v30, %v11139_v44 }
 0x69a   : > { %v6695_v57 = vsel %vm4874_vm2, 1.0, %v12602_v41  ;;  %v2486_v50 = vmul.f32 %v13407_v28, %v13406_v49  ;;  %v6712_v6 = vsel %vm5003_vm5, 1.0, %v12602_v41 }
 0x69b   : > { %v4922_v25 = vmul.f32 %v6695_v57, %v13400_v19  ;;  %v13410_v57 = vld [vmem:[#allocation21_spill] sm:$0xff]  ;;  %v13412_v19 = vld [vmem:[#allocation298_spill] sm:$0xff] }
 0x69c   : > { %v3184_v2 = vmul.f32 %v13410_v57, %v2486_v50 }
 0x69d   : > { %v4938_v58 = vmul.f32 %v4922_v25, %v13357_v54 }
 0x69e   : > { %4292 = vperm.xlu2 %6963, %v13403_v40   ;;  %4164 = vperm.xlu1 %6962, %v13404_v10   ;;  %v4106_v25 = vmul.f32 %v4066_v13, %v3184_v2  ;;  %v13416_v10 = vld [vmem:[#allocation30_spill] sm:$0xff]  ;;  %v4353_v13 = vmul.f32 %v6624_v61, %v13419_v20 }
 0x69f   : > { %v5082_v27 = vadd.f32 %v5066_v1, %v4938_v58  ;;  %v3874_v24 = vpop.permute.xlu0 %3873  ;;  %vm3513_vm11 = vcmp.eq.s32.totalorder %v8027_v30, %v13416_v10 }
 0x6a0   : > { %vm3896_vm3 = vcmp.eq.s32.totalorder %v8027_v30, %v3874_v24  ;;  %v5123_v43 = vpop.permute.xlu2 %5122  ;;  %v4566_v4 = vpop.permute.xlu1 %4565  ;;  %v4804_v14 = vmul.f32 %v4764_v42, %v4106_v25  ;;  %v4369_v50 = vmul.f32 %v4353_v13, %v13383_v21  ;;  %v13426_v13 = vld [vmem:[#allocation146_spill] sm:$0xff] }
 0x6a1   : > { %v5226_v56 = vadd.f32 %v5210_v22, %v5082_v27  ;;  %v6569_v54 = vsel %vm3896_vm3, 1.0, %v12602_v41  ;;  %vm4592_vm4 = vcmp.eq.s32.totalorder %v8027_v30, %v4566_v4  ;;  %vm5147_vm8 = vcmp.eq.s32.totalorder %v8027_v30, %v5123_v43  ;;  %v13418_v4 = vld [vmem:[#allocation140_spill] sm:$0xff] }
 0x6a2   : > { %v3944_v38 = vmul.f32 %v6569_v54, %v13398_v53  ;;  %v6655_v17 = vsel %vm4592_vm4, 1.0, %v12602_v41  ;;  %v5502_v22 = vmul.f32 %v5462_v60, %v4804_v14  ;;  %v6728_v27 = vsel %vm5147_vm8, 1.0, %v12602_v41  ;;  %v13422_v60 = vld [vmem:[#allocation193_spill] sm:$0xff] }
 0x6a3   : > { %v4640_v55 = vmul.f32 %v6655_v17, %v13399_v26  ;;  %v5370_v3 = vadd.f32 %v5354_v12, %v5226_v56  ;;  %v13417_v12 = vld [vmem:[#allocation302_spill] sm:$0xff] }
 0x6a4   : > { %v3960_v39 = vmul.f32 %v3944_v38, %v13405_v45  ;;  %v5051_v43 = vmul.f32 %v6712_v6, %v13417_v12  ;;  %v13420_v38 = vld [vmem:[#allocation257_spill] sm:$0xff] }
 0x6a5   : > { %v4656_v16 = vmul.f32 %v4640_v55, %v13360_v51  ;;  %6767 = vmatmul.msk.f32.gmra.mxu1 %vm1462_vm10, %v5370_v3  ;;  %v13411_v51 = vld [vmem:[#allocation16_spill] sm:$0xff]  ;;  %v5195_v17 = vmul.f32 %v6728_v27, %v13420_v38  ;;  %v13421_v3 = vld [vmem:[#allocation18_spill] sm:$0xff] }
 0x6a6   : > { %4990 = vperm.xlu2 %6963, %v13408_v35   ;;  %4862 = vperm.xlu1 %6962, %v13409_v33   ;;  %v3976_v59 = vadd.f32 %v3960_v39, %v3816_v8  ;;  %v2487_v63 = vmul.f32 %v13412_v19, %v13411_v51  ;;  %vm3305_vm15 = vcmp.eq.s32.totalorder %v8027_v30, %v13421_v3  ;;  %v6538_v39 = vsel %vm3513_vm11, 1.0, %v12602_v41 }
 0x6a7   : > { %v4672_v53 = vadd.f32 %v4656_v16, %v4528_v0  ;;  %v5267_v29 = vpop.permute.xlu0 %5266  ;;  %v6640_v8 = vsel %vm4449_vm13, 1.0, %v12602_v41  ;;  %v5067_v0 = vmul.f32 %v5051_v43, %v13383_v21  ;;  %v5211_v35 = vmul.f32 %v5195_v17, %v13386_v15  ;;  %v13427_v17 = vld [vmem:[#allocation201_spill] sm:$0xff] }
 0x6a8   : > { %v11183_v26 = vpop.permute.xlu2 %4283  ;;  %v4153_v9 = vpop.permute.xlu1 %4152  ;;  %6593 = vmatmul.msk.f32.gmra.mxu3 %vm1462_vm10, %v3976_v59  ;;  %v3185_v1 = vmul.f32 %v13413_v46, %v2487_v63  ;;  %vm5291_vm12 = vcmp.eq.s32.totalorder %v8027_v30, %v5267_v29  ;;  %v4497_v42 = vmul.f32 %v6640_v8, %v13418_v4  ;;  %v6522_v34 = vsel %vm3305_vm15, 1.0, %v12602_v41  ;;  %v13423_v29 = vld [vmem:[#allocation42_spill] sm:$0xff] }
 0x6a9   : > { %6679 = vmatmul.msk.f32.gmra.mxu0 %vm1462_vm10, %v4672_v53  ;;  %vm4177_vm6 = vcmp.eq.s32.totalorder %v8027_v30, %v4153_v9  ;;  %v6744_v56 = vsel %vm5291_vm12, 1.0, %v12602_v41  ;;  %v3561_v53 = vmul.f32 %v6538_v39, %v13422_v60  ;;  %vm3673_vm0 = vcmp.eq.s32.totalorder %v8027_v30, %v13423_v29 }
 0x6aa   : > { %v4107_v58 = vmul.f32 %v4069_v11, %v3185_v1  ;;  %v6608_v32 = vsel %vm4177_vm6, 1.0, %v12602_v41  ;;  %v5465_v44 = vpop.f32.mrf.mxu1  ;;  %v5339_v16 = vmul.f32 %v6744_v56, %v13417_v12  ;;  %v6554_v63 = vsel %vm3673_vm0, 1.0, %v12602_v41  ;;  %v13424_v1 = vld [vmem:[#allocation94_spill] sm:$0xff] }
 0x6ab   : > { %v4225_v36 = vmul.f32 %v6608_v32, %v13418_v4  ;;  %v4513_v25 = vmul.f32 %v4497_v42, %v13386_v15  ;;  %v3353_v14 = vmul.f32 %v6522_v34, %v13424_v1  ;;  %v3721_v10 = vmul.f32 %v6554_v63, %v13424_v1  ;;  %v13429_v34 = vld [vmem:[#allocation301_spill] sm:$0xff]  ;;  %v13432_v1 = vld [vmem:[#allocation10_spill] sm:$0xff] }
 0x6ac   : > { %v5355_v9 = vmul.f32 %v5339_v16, %v13386_v15  ;;  %vm4306_vm4 = vcmp.eq.s32.totalorder %v8027_v30, %v11183_v26 }
 0x6ad   : > { %v4241_v49 = vmul.f32 %v4225_v36, %v13383_v21  ;;  %v6625_v56 = vsel %vm4306_vm4, 1.0, %v12602_v41 }
 0x6ae   : > { %5278 = vperm.xlu2 %6963, %v13414_v47   ;;  %5134 = vperm.xlu1 %6962, %v13415_v18   ;;  %v4767_v40 = vpop.f32.mrf.mxu0 }
 0x6af   : > { %v4805_v5 = vmul.f32 %v4767_v40, %v4107_v58  ;;  %v11203_v23 = vpop.permute.xlu0 %4427  ;;  %v4385_v51 = vadd.f32 %v4369_v50, %v4241_v49  ;;  %v13425_v58 = vld [vmem:[#allocation276_spill] sm:$0xff]  ;;  %v4072_v50 = vpop.f32.mrf.mxu3 }
 0x6b0   : > { %v11209_v24 = vpop.permute.xlu2 %4981  ;;  %v4851_v37 = vpop.permute.xlu1 %4850  ;;  %v3577_v6 = vmul.f32 %v3561_v53, %v13425_v58  ;;  %v3433_v40 = vmul.f32 %v13425_v58, %v3353_v14  ;;  %vm4450_vm5 = vcmp.eq.s32.totalorder %v8027_v30, %v11203_v23  ;;  %v13433_v14 = vld [vmem:[#allocation11_spill] sm:$0xff] }
 0x6b1   : > { %v5503_v62 = vmul.f32 %v5465_v44, %v4805_v5  ;;  %vm4875_vm14 = vcmp.eq.s32.totalorder %v8027_v30, %v4851_v37  ;;  %v4529_v47 = vadd.f32 %v4513_v25, %v4385_v51  ;;  %vm5004_vm7 = vcmp.eq.s32.totalorder %v8027_v30, %v11209_v24  ;;  %v13428_v24 = vld [vmem:[#allocation256_spill] sm:$0xff] }
 0x6b2   : > { %v6696_v54 = vsel %vm4875_vm14, 1.0, %v12602_v41  ;;  %v3593_v61 = vadd.f32 %v3577_v6, %v3433_v40  ;;  %v6713_v49 = vsel %vm5004_vm7, 1.0, %v12602_v41  ;;  %v2489_v6 = vmul.f32 %v13433_v14, %v13432_v1  ;;  %v13434_v40 = vld [vmem:[#allocation186_spill] sm:$0xff] }
 0x6b3   : > { %v4923_v52 = vmul.f32 %v6696_v54, %v13420_v38  ;;  %v5516_v55 = vpack.c.bf16 %v5503_v62, %v5502_v22 }
 0x6b5   : > { %v4939_v28 = vmul.f32 %v4923_v52, %v13383_v21  ;;  %6779 = vmatmul.msk.bf16.gmra.mxu2 %vm5534_vm9, %v5516_v55  ;;  %v4354_v52 = vmul.f32 %v6625_v56, %v13427_v17  ;;  %v6641_v55 = vsel %vm4450_vm5, 1.0, %v12602_v41 }
 0x6b6   : > { %v4498_v39 = vmul.f32 %v6641_v55, %v13426_v13 }
 0x6b7   : > { %v5083_v33 = vadd.f32 %v5067_v0, %v4939_v28  ;;  %v3877_v59 = vpop.permute.xlu0 %3876  ;;  %v4370_v3 = vmul.f32 %v4354_v52, %v13402_v48 }
 0x6b8   : > { %v11241_v57 = vpop.permute.xlu2 %5125  ;;  %v4569_v2 = vpop.permute.xlu1 %4568  ;;  %vm3897_vm2 = vcmp.eq.s32.totalorder %v8027_v30, %v3877_v59 }
 0x6b9   : > { %v5227_v21 = vadd.f32 %v5211_v35, %v5083_v33  ;;  %vm4593_vm1 = vcmp.eq.s32.totalorder %v8027_v30, %v4569_v2  ;;  %v6570_v32 = vsel %vm3897_vm2, 1.0, %v12602_v41  ;;  %vm5148_vm8 = vcmp.eq.s32.totalorder %v8027_v30, %v11241_v57  ;;  %v13430_v2 = vld [vmem:[#allocation293_spill] sm:$0xff] }
 0x6ba   : > { %v6656_v19 = vsel %vm4593_vm1, 1.0, %v12602_v41  ;;  %v3945_v22 = vmul.f32 %v6570_v32, %v13422_v60  ;;  %v4514_v33 = vmul.f32 %v4498_v39, %v13405_v45  ;;  %v5052_v60 = vmul.f32 %v6713_v49, %v13429_v34 }
 0x6bb   : > { %v4641_v11 = vmul.f32 %v6656_v19, %v13419_v20  ;;  %v5371_v46 = vadd.f32 %v5355_v9, %v5227_v21  ;;  %v6729_v53 = vsel %vm5148_vm8, 1.0, %v12602_v41  ;;  %v13431_v9 = vld [vmem:[#allocation6_spill] sm:$0xff] }
 0x6bc   : > { %v2488_v51 = vmul.f32 %v13431_v9, %v13430_v2  ;;  %v5196_v63 = vmul.f32 %v6729_v53, %v13428_v24  ;;  %v5068_v32 = vmul.f32 %v5052_v60, %v13402_v48 }
 0x6bd   : > { %v4657_v18 = vmul.f32 %v4641_v11, %v13386_v15  ;;  %6768 = vmatmul.msk.f32.gmra.mxu1 %vm1462_vm10, %v5371_v46 }
 0x6bf   : > { %v4673_v44 = vadd.f32 %v4657_v18, %v4529_v47  ;;  %v11257_v5 = vpop.permute.xlu0 %3777 }
 0x6c0   : > { %v11260_v27 = vpop.permute.xlu2 %4158  ;;  %v4156_v37 = vpop.permute.xlu1 %4155  ;;  %v3801_v12 = vmul.f32 %v11257_v5, %v3721_v10  ;;  %v3961_v43 = vmul.f32 %v3945_v22, %v11257_v5  ;;  %v3186_v10 = vmul.f32 %v13434_v40, %v2488_v51 }
 0x6c1   : > { %6680 = vmatmul.msk.f32.gmra.mxu0 %vm1462_vm10, %v4673_v44  ;;  %vm4178_vm3 = vcmp.eq.s32.totalorder %v8027_v30, %v4156_v37  ;;  %vm4179_vm0 = vcmp.eq.s32.totalorder %v8027_v30, %v11260_v27  ;;  %v4075_v37 = vpop.f32.mrf.mxu3  ;;  %v6885_v27 = vld [vmem:[%s11753_s4 + $0x8] sm:$0xff] }
 0x6c2   : > { %v3817_v15 = vadd.f32 %v3801_v12, %v3593_v61  ;;  %v6609_v36 = vsel %vm4178_vm3, 1.0, %v12602_v41  ;;  %v5468_v47 = vpop.f32.mrf.mxu1  ;;  %v4108_v56 = vmul.f32 %v4072_v50, %v3186_v10  ;;  %v6610_v55 = vsel %vm4179_vm0, 1.0, %v12602_v41  ;;  %5683 = vmatpush.bf16.msrb.mxu3 %v6885_v27  ;;  %v13441_v10 = vld [vmem:[#allocation213_spill] sm:$0xff] }
 0x6c3   : > { %v4226_v38 = vmul.f32 %v6609_v36, %v13426_v13  ;;  %v13437_v13 = vld [vmem:[#allocation263_spill] sm:$0xff] }
 0x6c4   : > { %v3977_v4 = vadd.f32 %v3961_v43, %v3817_v15  ;;  %v13435_v15 = vld [vmem:[#allocation308_spill] sm:$0xff] }
 0x6c5   : > { %v4242_v26 = vmul.f32 %v4226_v38, %v13402_v48 }
 0x6c6   : > { %6594 = vmatmul.msk.f32.gmra.mxu3 %vm1462_vm10, %v3977_v4  ;;  %v4770_v21 = vpop.f32.mrf.mxu0  ;;  %v13436_v4 = vld [vmem:[#allocation130_spill] sm:$0xff] }
 0x6c7   : > { %v4287_v62 = vpop.permute.xlu0 %4286  ;;  %v4386_v28 = vadd.f32 %v4370_v3, %v4242_v26  ;;  %v3187_v36 = vmul.f32 %v13436_v4, %v2489_v6  ;;  %v4806_v26 = vmul.f32 %v4770_v21, %v4108_v56  ;;  %v13438_v3 = vld [vmem:[#allocation222_spill] sm:$0xff]  ;;  %v13440_v21 = vld [vmem:[#allocation27_spill] sm:$0xff]  ;;  %v13444_v4 = vld [vmem:[#allocation41_spill] sm:$0xff] }
 0x6c8   : > { %v4857_v54 = vpop.permute.xlu2 %4856  ;;  %v4854_v20 = vpop.permute.xlu1 %4853  ;;  %vm4307_vm14 = vcmp.eq.s32.totalorder %v8027_v30, %v4287_v62  ;;  %vm3514_vm5 = vcmp.eq.s32.totalorder %v8027_v30, %v13440_v21  ;;  %vm3674_vm8 = vcmp.eq.s32.totalorder %v8027_v30, %v13444_v4 }
 0x6c9   : > { %vm4876_vm6 = vcmp.eq.s32.totalorder %v8027_v30, %v4854_v20  ;;  %v4530_v29 = vadd.f32 %v4514_v33, %v4386_v28  ;;  %vm4877_vm13 = vcmp.eq.s32.totalorder %v8027_v30, %v4857_v54  ;;  %v5212_v54 = vmul.f32 %v5196_v63, %v13405_v45 }
 0x6ca   : > { %v6697_v8 = vsel %vm4876_vm6, 1.0, %v12602_v41  ;;  %v6698_v44 = vsel %vm4877_vm13, 1.0, %v12602_v41  ;;  %v4109_v52 = vmul.f32 %v4075_v37, %v3187_v36  ;;  %vm3306_vm6 = vcmp.eq.s32.totalorder %v8027_v30, %v13441_v10  ;;  %v13442_v37 = vld [vmem:[#allocation23_spill] sm:$0xff]  ;;  %v13453_v10 = vld [vmem:[#allocation218_spill] sm:$0xff] }
 0x6cb   : > { %v4924_v42 = vmul.f32 %v6697_v8, %v13428_v24  ;;  %v4925_v38 = vmul.f32 %v6698_v44, %v13437_v13  ;;  %vm3515_vm7 = vcmp.eq.s32.totalorder %v8027_v30, %v13442_v37  ;;  %v6523_v56 = vsel %vm3306_vm6, 1.0, %v12602_v41 }
 0x6cd   : > { %v4940_v19 = vmul.f32 %v4924_v42, %v13402_v48  ;;  %v6626_v48 = vsel %vm4307_vm14, 1.0, %v12602_v41  ;;  %v13439_v42 = vld [vmem:[#allocation153_spill] sm:$0xff]  ;;  %v4941_v33 = vmul.f32 %v4925_v38, %v13425_v58 }
 0x6ce   : > { %v4355_v39 = vmul.f32 %v6626_v48, %v13438_v3 }
 0x6cf   : > { %v4985_v23 = vpop.permute.xlu0 %4984  ;;  %v5084_v12 = vadd.f32 %v5068_v32, %v4940_v19 }
 0x6d0   : > { %v11283_v0 = vpop.permute.xlu2 %4574  ;;  %v4572_v16 = vpop.permute.xlu1 %4571  ;;  %vm5005_vm12 = vcmp.eq.s32.totalorder %v8027_v30, %v4985_v23  ;;  %v4371_v2 = vmul.f32 %v4355_v39, %v13425_v58 }
 0x6d1   : > { %vm4594_vm11 = vcmp.eq.s32.totalorder %v8027_v30, %v4572_v16  ;;  %v6714_v25 = vsel %vm5005_vm12, 1.0, %v12602_v41  ;;  %vm4595_vm3 = vcmp.eq.s32.totalorder %v8027_v30, %v11283_v0  ;;  %v5228_v23 = vadd.f32 %v5212_v54, %v5084_v12 }
 0x6d2   : > { %v6657_v35 = vsel %vm4594_vm11, 1.0, %v12602_v41  ;;  %v5053_v43 = vmul.f32 %v6714_v25, %v13435_v15  ;;  %v6658_v53 = vsel %vm4595_vm3, 1.0, %v12602_v41  ;;  %v6884_v25 = vld [vmem:[%s11753_s4] sm:$0xff]  ;;  %v6540_v54 = vsel %vm3515_vm7, 1.0, %v12602_v41 }
 0x6d3   : > { %v4642_v59 = vmul.f32 %v6657_v35, %v13427_v17  ;;  %v4227_v35 = vmul.f32 %v6610_v55, %v13439_v42  ;;  %5684 = vmatpush.bf16.msrb.mxu3 %v6884_v25  ;;  %v13449_v55 = vld [vmem:[#allocation116_spill] sm:$0xff] }
 0x6d4   : > { %v5069_v8 = vmul.f32 %v5053_v43, %v13425_v58  ;;  %v13452_v25 = vld [vmem:[#allocation144_spill] sm:$0xff] }
 0x6d5   : > { %v4658_v57 = vmul.f32 %v4642_v59, %v13405_v45 }
 0x6d6   : > { %v5085_v9 = vadd.f32 %v5069_v8, %v4941_v33  ;;  %v13450_v33 = vld [vmem:[#allocation109_spill] sm:$0xff] }
 0x6d7   : > { %v4674_v11 = vadd.f32 %v4658_v57, %v4530_v29  ;;  %v5129_v46 = vpop.permute.xlu0 %5128 }
 0x6d8   : > { %vm5149_vm15 = vcmp.eq.s32.totalorder %v8027_v30, %v5129_v46  ;;  %v5273_v18 = vpop.permute.xlu2 %5272  ;;  %v5270_v22 = vpop.permute.xlu1 %5269  ;;  %v4643_v46 = vmul.f32 %v6658_v53, %v13438_v3 }
 0x6d9   : > { %v6730_v61 = vsel %vm5149_vm15, 1.0, %v12602_v41  ;;  %6681 = vmatmul.msk.f32.gmra.mxu0 %vm1462_vm10, %v4674_v11  ;;  %vm5292_vm1 = vcmp.eq.s32.totalorder %v8027_v30, %v5270_v22  ;;  %vm5293_vm2 = vcmp.eq.s32.totalorder %v8027_v30, %v5273_v18  ;;  %v4243_v11 = vmul.f32 %v4227_v35, %v13425_v58  ;;  %v11368_v58 = vpop.f32.mrf.mxu2 }
 0x6da   : > { %v6745_v20 = vsel %vm5292_vm1, 1.0, %v12602_v41  ;;  %v5197_v17 = vmul.f32 %v6730_v61, %v13437_v13  ;;  %v6746_v28 = vsel %vm5293_vm2, 1.0, %v12602_v41  ;;  %v6539_v18 = vsel %vm3514_vm5, 1.0, %v12602_v41  ;;  %v13446_v13 = vld [vmem:[#allocation93_spill] sm:$0xff] }
 0x6db   : > { %v5340_v62 = vmul.f32 %v6745_v20, %v13429_v34  ;;  %v5471_v34 = vpop.f32.mrf.mxu1  ;;  %v5341_v51 = vmul.f32 %v6746_v28, %v13435_v15  ;;  %v4387_v6 = vadd.f32 %v4371_v2, %v4243_v11  ;;  %v4659_v44 = vmul.f32 %v4643_v46, %v11257_v5  ;;  %v13443_v15 = vld [vmem:[#allocation184_spill] sm:$0xff] }
 0x6dc   : > { %v5213_v59 = vmul.f32 %v5197_v17, %v11257_v5  ;;  %v3562_v43 = vmul.f32 %v6539_v18, %v13443_v15  ;;  %v6555_v20 = vsel %vm3674_vm8, 1.0, %v12602_v41  ;;  %v3354_v38 = vmul.f32 %v6523_v56, %v13446_v13  ;;  %v13447_v17 = vld [vmem:[#allocation268_spill] sm:$0xff] }
 0x6dd   : > { %v5356_v16 = vmul.f32 %v5340_v62, %v13405_v45  ;;  %v5504_v45 = vmul.f32 %v5468_v47, %v4806_v26  ;;  %v5357_v32 = vmul.f32 %v5341_v51, %v11257_v5  ;;  %v3563_v26 = vmul.f32 %v6540_v54, %v13449_v55 }
 0x6de   : > { %v4773_v49 = vpop.f32.mrf.mxu0  ;;  %v5229_v1 = vadd.f32 %v5213_v59, %v5085_v9  ;;  %v3578_v62 = vmul.f32 %v3562_v43, %v13447_v17  ;;  %vm5652_vm5 = vcmask 261120  }
 0x6df   : > { %v4807_v50 = vmul.f32 %v4773_v49, %v4109_v52  ;;  %v11336_v24 = vpop.permute.xlu0 %4161  ;;  %v5372_v0 = vadd.f32 %v5356_v16, %v5228_v23  ;;  %v13448_v52 = vld [vmem:[#allocation40_spill] sm:$0xff]  ;;  %v3434_v23 = vmul.f32 %v13447_v17, %v3354_v38  ;;  %v3722_v16 = vmul.f32 %v6555_v20, %v13446_v13  ;;  %v4078_v20 = vpop.f32.mrf.mxu3 }
 0x6e0   : > { %v11344_v60 = vpop.permute.xlu2 %4433  ;;  %v4431_v57 = vpop.permute.xlu1 %4430  ;;  %v5373_v61 = vadd.f32 %v5357_v32, %v5229_v1  ;;  %vm3675_vm13 = vcmp.eq.s32.totalorder %v8027_v30, %v13448_v52  ;;  %vm4180_vm14 = vcmp.eq.s32.totalorder %v8027_v30, %v11336_v24 }
 0x6e1   : > { %v5505_v29 = vmul.f32 %v5471_v34, %v4807_v50  ;;  %vm4451_vm4 = vcmp.eq.s32.totalorder %v8027_v30, %v4431_v57  ;;  %6769 = vmatmul.msk.f32.gmra.mxu1 %vm1462_vm10, %v5372_v0  ;;  %v5568_v49 = vpop.f32.mrf.mxu2  ;;  %v6556_v28 = vsel %vm3675_vm13, 1.0, %v12602_v41  ;;  %v3594_v27 = vadd.f32 %v3578_v62, %v3434_v23  ;;  %v13451_v0 = vld [vmem:[#allocation265_spill] sm:$0xff] }
 0x6e2   : > { %v6642_v19 = vsel %vm4451_vm4, 1.0, %v12602_v41  ;;  %v3579_v34 = vmul.f32 %v3563_v26, %v13451_v0  ;;  %v3723_v53 = vmul.f32 %v6556_v28, %v13450_v33  ;;  %v6611_v9 = vsel %vm4180_vm14, 1.0, %v12602_v41  ;;  %v13454_v23 = vld [vmem:[#allocation305_spill] sm:$0xff] }
 0x6e3   : > { %v5517_v63 = vpack.c.bf16 %v5505_v29, %v5504_v45  ;;  %v4499_v14 = vmul.f32 %v6642_v19, %v13439_v42  ;;  %vm4452_vm0 = vcmp.eq.s32.totalorder %v8027_v30, %v11344_v60  ;;  %v4228_v11 = vmul.f32 %v6611_v9, %v13452_v25  ;;  %v11422_v60 = vld [vmem:[%s11752_s3] ss:$0 sm:$0xff] }
 0x6e4   : > { %v6643_v1 = vsel %vm4452_vm0, 1.0, %v12602_v41  ;;  %v5569_v4 = vadd.f32 %v11422_v60, %v5568_v49  ;;  %v13455_v49 = vld [vmem:[#allocation260_spill] sm:$0xff] }
 0x6e5   : > { %6780 = vmatmul.msk.bf16.gmra.mxu2 %vm5534_vm9, %v5517_v63  ;;  %v4515_v47 = vmul.f32 %v4499_v14, %v11257_v5  ;;  %v13445_v5 = vld [vmem:[#allocation242_spill] sm:$0xff] }
 0x6e6   : > { %vm3307_vm12 = vcmp.eq.s32.totalorder %v8027_v30, %v13445_v5 }
 0x6e7   : > { %v11364_v40 = vpop.permute.xlu0 %4859  ;;  %v4531_v22 = vadd.f32 %v4515_v47, %v4387_v6  ;;  %v6524_v8 = vsel %vm3307_vm12, 1.0, %v12602_v41 }
 0x6e8   : > { %v3883_v48 = vpop.permute.xlu2 %3882  ;;  %v3880_v12 = vpop.permute.xlu1 %3879  ;;  %v3355_v59 = vmul.f32 %v6524_v8, %v13450_v33  ;;  %vm4878_vm3 = vcmp.eq.s32.totalorder %v8027_v30, %v11364_v40  ;;  %v13457_v33 = vld [vmem:[#allocation190_spill] sm:$0xff] }
 0x6e9   : > { %6770 = vmatmul.msk.f32.gmra.mxu1 %vm1462_vm10, %v5373_v61  ;;  %v4675_v36 = vadd.f32 %v4659_v44, %v4531_v22  ;;  %vm3898_vm11 = vcmp.eq.s32.totalorder %v8027_v30, %v3880_v12  ;;  %vm3899_vm15 = vcmp.eq.s32.totalorder %v8027_v30, %v3883_v48  ;;  %v5570_v14 = vpop.f32.mrf.mxu2  ;;  %v4500_v22 = vmul.f32 %v6643_v1, %v13452_v25 }
 0x6ea   : > { %v6571_v3 = vsel %vm3898_vm11, 1.0, %v12602_v41  ;;  %v3435_v2 = vmul.f32 %v13451_v0, %v3355_v59  ;;  %v6572_v24 = vsel %vm3899_vm15, 1.0, %v12602_v41  ;;  %v5571_v37 = vadd.f32 %v11422_v60, %v5570_v14 }
 0x6eb   : > { %6682 = vmatmul.msk.f32.gmra.mxu0 %vm1462_vm10, %v4675_v36  ;;  %v3946_v42 = vmul.f32 %v6571_v3, %v13443_v15  ;;  %v3947_v6 = vmul.f32 %v6572_v24, %v13449_v55  ;;  %v4244_v48 = vmul.f32 %v4228_v11, %v13447_v17  ;;  %v5608_v55 = vmax.f32 %v5569_v4, 0.0 }
 0x6ec   : > { %v3595_v19 = vadd.f32 %v3579_v34, %v3435_v2  ;;  %v5609_v54 = vmax.f32 %v5571_v37, 0.0  ;;  %v6699_v3 = vsel %vm4878_vm3, 1.0, %v12602_v41  ;;  %v13458_v2 = vld [vmem:[#allocation59_spill] sm:$0xff] }
 0x6ed   : > { %v4926_v28 = vmul.f32 %v6699_v3, %v13455_v49 }
 0x6ef   : > { %v4578_v39 = vpop.permute.xlu0 %4577 }
 0x6f0   : > { %v11394_v50 = vpop.permute.xlu1 %3781  ;;  %v11402_v45 = vpop.permute.xlu2 %3785  ;;  %vm4596_vm1 = vcmp.eq.s32.totalorder %v8027_v30, %v4578_v39  ;;  %v5624_v39 = vpack.c.bf16 %v5609_v54, %v5608_v55 }
 0x6f1   : > { %v3802_v35 = vmul.f32 %v11394_v50, %v3722_v16  ;;  %v3962_v57 = vmul.f32 %v3946_v42, %v11394_v50  ;;  %v3803_v21 = vmul.f32 %v11402_v45, %v3723_v53  ;;  %v6659_v47 = vsel %vm4596_vm1, 1.0, %v12602_v41 }
 0x6f2   : > { %v3963_v61 = vmul.f32 %v3947_v6, %v11402_v45  ;;  %v4644_v12 = vmul.f32 %v6659_v47, %v13453_v10  ;;  %v4516_v36 = vmul.f32 %v4500_v22, %v11394_v50 }
 0x6f3   : > { %v3818_v29 = vadd.f32 %v3802_v35, %v3594_v27  ;;  %v3819_v32 = vadd.f32 %v3803_v21, %v3595_v19  ;;  %v5474_v27 = vpop.f32.mrf.mxu1  ;;  %v13456_v35 = vld [vmem:[#allocation54_spill] sm:$0xff]  ;;  %v4942_v19 = vmul.f32 %v4926_v28, %v13447_v17 }
 0x6f4   : > { %v4660_v62 = vmul.f32 %v4644_v12, %v11394_v50  ;;  %v2491_v59 = vmul.f32 %v13457_v33, %v13456_v35 }
 0x6f5   : > { %v3978_v51 = vadd.f32 %v3962_v57, %v3818_v29  ;;  %v3979_v43 = vadd.f32 %v3963_v61, %v3819_v32  ;;  %v4081_v29 = vpop.f32.mrf.mxu3 }
 0x6f6   : > { %v4776_v8 = vpop.f32.mrf.mxu0  ;;  %v3189_v9 = vmul.f32 %v13458_v2, %v2491_v59  ;;  %v13462_v59 = vld [vmem:[#allocation259_spill] sm:$0xff] }
 0x6f7   : > { %6595 = vmatmul.msk.f32.gmra.mxu3 %vm1462_vm10, %v3978_v51  ;;  %v5276_v63 = vpop.permute.xlu0 %5275  ;;  %v13459_v51 = vld [vmem:[#allocation65_spill] sm:$0xff] }
 0x6f8   : > { %v4290_v46 = vpop.permute.xlu1 %4289  ;;  %vm5294_vm6 = vcmp.eq.s32.totalorder %v8027_v30, %v5276_v63  ;;  %v4293_v40 = vpop.permute.xlu2 %4292  ;;  %v4110_v21 = vmul.f32 %v4078_v20, %v13459_v51 }
 0x6f9   : > { %vm4308_vm2 = vcmp.eq.s32.totalorder %v8027_v30, %v4290_v46  ;;  %v6747_v34 = vsel %vm5294_vm6, 1.0, %v12602_v41  ;;  %vm4309_vm8 = vcmp.eq.s32.totalorder %v8027_v30, %v4293_v40  ;;  %v4111_v46 = vmul.f32 %v4081_v29, %v3189_v9 }
 0x6fa   : > { %v6627_v18 = vsel %vm4308_vm2, 1.0, %v12602_v41  ;;  %v5342_v63 = vmul.f32 %v6747_v34, %v13454_v23  ;;  %v4808_v1 = vmul.f32 %v4776_v8, %v4110_v21  ;;  %v6628_v47 = vsel %vm4309_vm8, 1.0, %v12602_v41 }
 0x6fb   : > { %v4356_v44 = vmul.f32 %v6627_v18, %v13453_v10 }
 0x6fc   : > { %v5358_v10 = vmul.f32 %v5342_v63, %v11394_v50  ;;  %v5506_v37 = vmul.f32 %v5474_v27, %v4808_v1 }
 0x6fd   : > { %v4372_v15 = vmul.f32 %v4356_v44, %v13447_v17 }
 0x6ff   : > { %v4388_v56 = vadd.f32 %v4372_v15, %v4244_v48  ;;  %6596 = vmatmul.msk.f32.gmra.mxu3 %vm1462_vm10, %v3979_v43  ;;  %v4437_v38 = vpop.permute.xlu0 %4436 }
 0x700   : > { %v4988_v5 = vpop.permute.xlu1 %4987  ;;  %vm4453_vm11 = vcmp.eq.s32.totalorder %v8027_v30, %v4437_v38  ;;  %v4991_v12 = vpop.permute.xlu2 %4990 }
 0x701   : > { %v4532_v13 = vadd.f32 %v4516_v36, %v4388_v56  ;;  %vm5006_vm4 = vcmp.eq.s32.totalorder %v8027_v30, %v4988_v5  ;;  %v6644_v48 = vsel %vm4453_vm11, 1.0, %v12602_v41  ;;  %v13460_v36 = vld [vmem:[#allocation205_spill] sm:$0xff]  ;;  %vm5007_vm14 = vcmp.eq.s32.totalorder %v8027_v30, %v4991_v12 }
 0x702   : > { %v6715_v52 = vsel %vm5006_vm4, 1.0, %v12602_v41  ;;  %v4357_v56 = vmul.f32 %v6628_v47, %v13460_v36  ;;  %v6716_v33 = vsel %vm5007_vm14, 1.0, %v12602_v41  ;;  %v13465_v47 = vld [vmem:[#allocation64_spill] sm:$0xff] }
 0x703   : > { %v4676_v26 = vadd.f32 %v4660_v62, %v4532_v13  ;;  %v5054_v16 = vmul.f32 %v6715_v52, %v13454_v23  ;;  %v13461_v62 = vld [vmem:[#allocation150_spill] sm:$0xff] }
 0x704   : > { %v4501_v52 = vmul.f32 %v6644_v48, %v13461_v62  ;;  %v4373_v3 = vmul.f32 %v4357_v56, %v13451_v0 }
 0x705   : > { %6683 = vmatmul.msk.f32.gmra.mxu0 %vm1462_vm10, %v4676_v26  ;;  %v5070_v57 = vmul.f32 %v5054_v16, %v13447_v17 }
 0x706   : > { %v4517_v23 = vmul.f32 %v4501_v52, %v11402_v45  ;;  %v13468_v52 = vld [vmem:[#allocation287_spill] sm:$0xff] }
 0x707   : > { %6793 = vmatmul.msk.bf16.vlgmr.msrb.gmra.mxu3 %vm5652_vm5, %v5624_v39  ;;  %v4581_v25 = vpop.permute.xlu0 %4580  ;;  %v5086_v14 = vadd.f32 %v5070_v57, %v4942_v19 }
 0x708   : > { %v5573_v42 = vpop.f32.mrf.mxu2  ;;  %v5132_v53 = vpop.permute.xlu1 %5131  ;;  %vm4597_vm12 = vcmp.eq.s32.totalorder %v8027_v30, %v4581_v25 }
 0x709   : > { %vm5150_vm7 = vcmp.eq.s32.totalorder %v8027_v30, %v5132_v53  ;;  %v5574_v17 = vadd.f32 %v11422_v60, %v5573_v42  ;;  %v6660_v54 = vsel %vm4597_vm12, 1.0, %v12602_v41  ;;  %v5279_v27 = vpop.permute.xlu2 %5278  ;;  %v13463_v53 = vld [vmem:[#allocation304_spill] sm:$0xff] }
 0x70a   : > { %v6731_v24 = vsel %vm5150_vm7, 1.0, %v12602_v41  ;;  %v5477_v61 = vpop.f32.mrf.mxu1  ;;  %v4645_v39 = vmul.f32 %v6660_v54, %v13460_v36  ;;  %vm5295_vm0 = vcmp.eq.s32.totalorder %v8027_v30, %v5279_v27  ;;  %v5055_v29 = vmul.f32 %v6716_v33, %v13463_v53 }
 0x70b   : > { %v5198_v11 = vmul.f32 %v6731_v24, %v13455_v49  ;;  %v5610_v20 = vmax.f32 %v5574_v17, 0.0  ;;  %v6748_v57 = vsel %vm5295_vm0, 1.0, %v12602_v41 }
 0x70c   : > { %v4661_v49 = vmul.f32 %v4645_v39, %v11402_v45  ;;  %v5071_v21 = vmul.f32 %v5055_v29, %v13451_v0  ;;  %v5343_v24 = vmul.f32 %v6748_v57, %v13463_v53  ;;  %v13470_v39 = vld [vmem:[#allocation283_spill] sm:$0xff]  ;;  %v6811_v57 = vld [vmem:[%s11755_s6 + $0x10] sm:$0xf] }
 0x70d   : > { %v5214_v6 = vmul.f32 %v5198_v11, %v11394_v50 }
 0x70e   : > { %v4779_v32 = vpop.f32.mrf.mxu0  ;;  %v5359_v11 = vmul.f32 %v5343_v24, %v11402_v45  ;;  %v6813_v24 = vld [vmem:[%s11755_s6 + $0x18] sm:$0xf0] }
 0x70f   : > { %v4809_v18 = vmul.f32 %v4779_v32, %v4111_v46  ;;  %v5230_v44 = vadd.f32 %v5214_v6, %v5086_v14  ;;  %v4084_v14 = vpop.f32.mrf.mxu3 }
 0x710   : > { %v5575_v22 = vpop.f32.mrf.mxu2  ;;  %v4165_v4 = vpop.permute.xlu1 %4164 }
 0x711   : > { %v5507_v15 = vmul.f32 %v5477_v61, %v4809_v18  ;;  %v5576_v43 = vadd.f32 %v11422_v60, %v5575_v22  ;;  %vm4181_vm13 = vcmp.eq.s32.totalorder %v8027_v30, %v4165_v4  ;;  %v5374_v5 = vadd.f32 %v5358_v10, %v5230_v44  ;;  %v13466_v18 = vld [vmem:[#allocation17_spill] sm:$0xff]  ;;  %v13467_v44 = vld [vmem:[#allocation267_spill] sm:$0xff] }
 0x712   : > { %v6612_v38 = vsel %vm4181_vm13, 1.0, %v12602_v41  ;;  %v4112_v61 = vmul.f32 %v4084_v14, %v13467_v44 }
 0x713   : > { %v5518_v50 = vpack.c.bf16 %v5507_v15, %v5506_v37  ;;  %v5611_v13 = vmax.f32 %v5576_v43, 0.0  ;;  %v4229_v55 = vmul.f32 %v6612_v38, %v13461_v62  ;;  %6771 = vmatmul.msk.f32.gmra.mxu1 %vm1462_vm10, %v5374_v5 }
 0x715   : > { %6781 = vmatmul.msk.bf16.gmra.mxu2 %vm5534_vm9, %v5518_v50  ;;  %v5625_v26 = vpack.c.bf16 %v5611_v13, %v5610_v20  ;;  %v4245_v8 = vmul.f32 %v4229_v55, %v13451_v0  ;;  %v13469_v55 = vld [vmem:[#allocation33_spill] sm:$0xff] }
 0x717   : > { %v4389_v16 = vadd.f32 %v4373_v3, %v4245_v8  ;;  %6794 = vmatmul.msk.bf16.gmra.mxu3 %vm5652_vm5, %v5625_v26  ;;  %v4087_v17 = vpop.f32.mrf.mxu3  ;;  %v2495_v26 = vmul.f32 %v13469_v55, %v13468_v52  ;;  %v13472_v55 = vld [vmem:[#allocation39_spill] sm:$0xff] }
 0x718   : > { %v4863_v40 = vpop.permute.xlu1 %4862 }
 0x719   : > { %v4533_v28 = vadd.f32 %v4517_v23, %v4389_v16  ;;  %vm4879_vm15 = vcmp.eq.s32.totalorder %v8027_v30, %v4863_v40  ;;  %v3193_v8 = vmul.f32 %v13470_v39, %v2495_v26  ;;  %v13471_v23 = vld [vmem:[#allocation76_spill] sm:$0xff] }
 0x71a   : > { %v6700_v42 = vsel %vm4879_vm15, 1.0, %v12602_v41 }
 0x71b   : > { %v4677_v35 = vadd.f32 %v4661_v49, %v4533_v28  ;;  %v4927_v34 = vmul.f32 %v6700_v42, %v13462_v59 }
 0x71d   : > { %6684 = vmatmul.msk.f32.gmra.mxu0 %vm1462_vm10, %v4677_v35  ;;  %v4943_v9 = vmul.f32 %v4927_v34, %v13451_v0 }
 0x71f   : > { %v5087_v63 = vadd.f32 %v5071_v21, %v4943_v9  ;;  %v6888_v9 = vld [vmem:[%s11755_s6 + $0x14] sm:$0xf] }
 0x720   : > { %v5135_v2 = vpop.permute.xlu1 %5134 }
 0x721   : > { %vm5151_vm1 = vcmp.eq.s32.totalorder %v8027_v30, %v5135_v2  ;;  %v6889_v2 = vld [vmem:[%s11755_s6 + $0x14] sm:$0xf0] }
 0x722   : > { %v6732_v51 = vsel %vm5151_vm1, 1.0, %v12602_v41  ;;  %v5480_v30 = vpop.f32.mrf.mxu1  ;;  %v13464_v41 = vld [vmem:[#allocation227_spill] sm:$0xff]  ;;  %v6812_v21 = vor.u32 %v6889_v2, %v6811_v57 }
 0x723   : > { %v5199_v19 = vmul.f32 %v6732_v51, %v13462_v59  ;;  %v2493_v0 = vmul.f32 %v13465_v47, %v13464_v41 }
 0x724   : > { %5810 = vmatpush.bf16.msra.mxu0 %v6812_v21 }
 0x725   : > { %v5215_v25 = vmul.f32 %v5199_v19, %v11402_v45  ;;  %v3191_v10 = vmul.f32 %v13466_v18, %v2493_v0  ;;  %v6816_v19 = vor.u32 %v6888_v9, %v6813_v24  ;;  %v6897_v24 = vld [vmem:[%s11757_s8 + $0x38] sm:$0xff] }
 0x726   : > { %v4782_v6 = vpop.f32.mrf.mxu0  ;;  %6058 = vmatpush.bf16.msra.mxu2 %v6897_v24 }
 0x727   : > { %v5231_v46 = vadd.f32 %v5215_v25, %v5087_v63  ;;  %v4113_v22 = vmul.f32 %v4087_v17, %v3191_v10  ;;  %v4810_v37 = vmul.f32 %v4782_v6, %v4112_v61  ;;  %5859 = vmatpush.bf16.msra.mxu1 %v6816_v19  ;;  %v11542_v17 = vld [vmem:[%s11754_s5] ss:$0 sm:$0xff]  ;;  %v6896_v19 = vld [vmem:[%s11757_s8 + $0x30] sm:$0xff] }
 0x729   : > { %v5375_v1 = vadd.f32 %v5359_v11, %v5231_v46  ;;  %v5508_v4 = vmul.f32 %v5480_v30, %v4810_v37  ;;  %v6803_v11 = vld [vmem:[%s11755_s6] sm:$0xf]  ;;  %v6887_v46 = vld [vmem:[%s11755_s6 + $0x4] sm:$0xf0]  ;;  %v6805_v30 = vld [vmem:[%s11755_s6 + $0x8] sm:$0xf0] }
 0x72a   : > { %v6804_v6 = vor.u32 %v6887_v46, %v6803_v11  ;;  %6059 = vmatpush.bf16.msra.mxu2 %v6896_v19  ;;  %v6893_v46 = vld [vmem:[%s11757_s8 + $0x18] sm:$0xff] }
 0x72b   : > { %6772 = vmatmul.msk.f32.gmra.mxu1 %vm1462_vm10, %v5375_v1  ;;  %v4090_v13 = vpop.f32.mrf.mxu3  ;;  %v6886_v1 = vld [vmem:[%s11755_s6 + $0x4] sm:$0xf] }
 0x72c   : > { %v4114_v16 = vmul.f32 %v4090_v13, %v13471_v23  ;;  %5811 = vmatpush.bf16.msra.mxu0 %v6804_v6 }
 0x738   : > { %v5578_v32 = vpop.f32.mrf.mxu2 }
 0x739   : > { %v5579_v45 = vadd.f32 %v11422_v60, %v5578_v32  ;;  %v6808_v32 = vor.u32 %v6886_v1, %v6805_v30  ;;  %v6892_v1 = vld [vmem:[%s11757_s8 + $0x10] sm:$0xff] }
 0x73a   : > { %v5483_v15 = vpop.f32.mrf.mxu1 }
 0x73b   : > { %v5612_v54 = vmax.f32 %v5579_v45, 0.0  ;;  %5860 = vmatpush.bf16.msra.mxu1 %v6808_v32 }
 0x73e   : > { %v4785_v48 = vpop.f32.mrf.mxu0 }
 0x73f   : > { %v4811_v12 = vmul.f32 %v4785_v48, %v4113_v22 }
 0x740   : > { %v5580_v43 = vpop.f32.mrf.mxu2 }
 0x741   : > { %v5509_v36 = vmul.f32 %v5483_v15, %v4811_v12  ;;  %v5581_v56 = vadd.f32 %v11422_v60, %v5580_v43 }
 0x743   : > { %v5519_v5 = vpack.c.bf16 %v5509_v36, %v5508_v4  ;;  %v5613_v20 = vmax.f32 %v5581_v56, 0.0  ;;  %v2497_v56 = vmul.f32 %v10828_v7, %v10821_v31 }
 0x745   : > { %6782 = vmatmul.msk.bf16.gmra.mxu2 %vm5534_vm9, %v5519_v5  ;;  %v5626_v50 = vpack.c.bf16 %v5613_v20, %v5612_v54  ;;  %v3195_v13 = vmul.f32 %v11368_v58, %v2497_v56 }
 0x747   : > { %6795 = vmatmul.msk.bf16.gmra.mxu3 %vm5652_vm5, %v5626_v50 }
 0x749   : > { %v4093_v3 = vpop.f32.mrf.mxu3 }
 0x74a   : > { %v4115_v40 = vmul.f32 %v4093_v3, %v3193_v8 }
 0x756   : > { %v4788_v38 = vpop.f32.mrf.mxu0 }
 0x757   : > { %v4812_v27 = vmul.f32 %v4788_v38, %v4114_v16 }
 0x75e   : > { %v5486_v62 = vpop.f32.mrf.mxu1 }
 0x75f   : > { %v5510_v33 = vmul.f32 %v5486_v62, %v4812_v27 }
 0x766   : > { %v5489_v35 = vpop.f32.mrf.mxu1 }
 0x768   : > { %v5583_v49 = vpop.f32.mrf.mxu2  ;;  %v4791_v28 = vpop.f32.mrf.mxu0 }
 0x769   : > { %v4813_v42 = vmul.f32 %v4791_v28, %v4115_v40  ;;  %v5584_v53 = vadd.f32 %v11422_v60, %v5583_v49 }
 0x76b   : > { %v5511_v59 = vmul.f32 %v5489_v35, %v4813_v42  ;;  %v5614_v63 = vmax.f32 %v5584_v53, 0.0 }
 0x76d   : > { %v5520_v34 = vpack.c.bf16 %v5511_v59, %v5510_v33 }
 0x76f   : > { %6783 = vmatmul.msk.bf16.gmra.mxu2 %vm5534_vm9, %v5520_v34 }
 0x770   : > { %v5585_v29 = vpop.f32.mrf.mxu2 }
 0x771   : > { %v5586_v51 = vadd.f32 %v11422_v60, %v5585_v29 }
 0x773   : > { %v5615_v25 = vmax.f32 %v5586_v51, 0.0 }
 0x775   : > { %v5627_v14 = vpack.c.bf16 %v5615_v25, %v5614_v63  ;;  %v6895_v63 = vld [vmem:[%s11757_s8 + $0x28] sm:$0xff]  ;;  %v6894_v25 = vld [vmem:[%s11757_s8 + $0x20] sm:$0xff] }
 0x776   : > { %6060 = vmatpush.bf16.msra.mxu2 %v6895_v63 }
 0x777   : > { %6796 = vmatmul.msk.bf16.gmra.mxu3 %vm5652_vm5, %v5627_v14 }
 0x77a   : > { %v4096_v41 = vpop.f32.mrf.mxu3  ;;  %6061 = vmatpush.bf16.msra.mxu2 %v6894_v25 }
 0x77b   : > { %v4116_v26 = vmul.f32 %v4096_v41, %v13472_v55  ;;  %v6891_v41 = vld [vmem:[%s11757_s8 + $0x8] sm:$0xff] }
 0x77e   : > { %6062 = vmatpush.bf16.msra.mxu2 %v6893_v46 }
 0x782   : > { %v4099_v47 = vpop.f32.mrf.mxu3  ;;  %v4794_v12 = vpop.f32.mrf.mxu0  ;;  %6063 = vmatpush.bf16.msra.mxu2 %v6892_v1 }
 0x783   : > { %v4117_v3 = vmul.f32 %v4099_v47, %v3195_v13  ;;  %v4814_v23 = vmul.f32 %v4794_v12, %v4116_v26  ;;  %v5754_v12 = vld [vmem:[%s11756_s7] sm:$0x3] }
 0x786   : > { %6064 = vmatpush.bf16.msra.mxu2 %v6891_v41 }
 0x78a   : > { %v5686_v0 = vpop.f32.mrf.mxu3 }
 0x78b   : > { %v5687_v18 = vadd.f32 %v11542_v17, %v5686_v0 }
 0x78d   : > { %v5726_v61 = vmax.f32 %v5687_v18, 0.0 }
 0x790   : > { %v5492_v4 = vpop.f32.mrf.mxu1 }
 0x791   : > { %v5512_v40 = vmul.f32 %v5492_v4, %v4814_v23 }
 0x792   : > { %v5688_v10 = vpop.f32.mrf.mxu3 }
 0x793   : > { %v5689_v44 = vadd.f32 %v11542_v17, %v5688_v10 }
 0x795   : > { %v5727_v22 = vmax.f32 %v5689_v44, 0.0  ;;  %v6890_v44 = vld [vmem:[%s11757_s8] sm:$0xff] }
 0x796   : > { %6065 = vmatpush.bf16.msra.mxu2 %v6890_v44 }
 0x797   : > { %v5742_v37 = vpack.c.bf16 %v5727_v22, %v5726_v61 }
 0x798   : > { %v5588_v48 = vpop.f32.mrf.mxu2 }
 0x799   : > { %6817 = vmatmul.msk.bf16.vlgmr.msra.gmra.mxu0 %vm5652_vm5, %v5742_v37  ;;  %6825 = vmatmul.msk.bf16.vlgmr.msra.gmra.mxu1 %vm5652_vm5, %v5742_v37  ;;  %v5589_v15 = vadd.f32 %v11422_v60, %v5588_v48 }
 0x79a   : > { %v5691_v45 = vpop.f32.mrf.mxu3  ;;  %v4797_v62 = vpop.f32.mrf.mxu0 }
 0x79b   : > { %v5692_v54 = vadd.f32 %v11542_v17, %v5691_v45  ;;  %v5616_v5 = vmax.f32 %v5589_v15, 0.0  ;;  %v4815_v31 = vmul.f32 %v4797_v62, %v4117_v3 }
 0x79d   : > { %v5728_v39 = vmax.f32 %v5692_v54, 0.0  ;;  %v6899_v54 = vld [vmem:[%s11757_s8 + $0x48] sm:$0xff] }
 0x79e   : > { %6113 = vmatpush.bf16.msra.mxu3 %v6899_v54 }
 0x7a0   : > { %v5590_v43 = vpop.f32.mrf.mxu2 }
 0x7a1   : > { %v5591_v36 = vadd.f32 %v11422_v60, %v5590_v43  ;;  %v11601_v43 = vperm.slane %v5754_v12, 0 }
 0x7a2   : > { %v5693_v50 = vpop.f32.mrf.mxu3 }
 0x7a3   : > { %v5617_v20 = vmax.f32 %v5591_v36, 0.0  ;;  %v5694_v38 = vadd.f32 %v11542_v17, %v5693_v50  ;;  %v6898_v50 = vld [vmem:[%s11757_s8 + $0x40] sm:$0xff] }
 0x7a4   : > { %6114 = vmatpush.bf16.msra.mxu3 %v6898_v50 }
 0x7a5   : > { %v5628_v52 = vpack.c.bf16 %v5617_v20, %v5616_v5  ;;  %v5729_v8 = vmax.f32 %v5694_v38, 0.0 }
 0x7a7   : > { %6797 = vmatmul.msk.bf16.gmra.mxu3 %vm5652_vm5, %v5628_v52  ;;  %v5743_v7 = vpack.c.bf16 %v5729_v8, %v5728_v39 }
 0x7a8   : > { %v5495_v16 = vpop.f32.mrf.mxu1 }
 0x7a9   : > { %v5513_v49 = vmul.f32 %v5495_v16, %v4815_v31  ;;  %6818 = vmatmul.msk.bf16.gmra.mxu0 %vm5652_vm5, %v5743_v7  ;;  %6826 = vmatmul.msk.bf16.gmra.mxu1 %vm5652_vm5, %v5743_v7 }
 0x7ab   : > { %v5521_v58 = vpack.c.bf16 %v5513_v49, %v5512_v40 }
 0x7ad   : > { %6784 = vmatmul.msk.bf16.gmra.mxu2 %vm5534_vm9, %v5521_v58 }
 0x7c8   : > { %v5593_v28 = vpop.f32.mrf.mxu2 }
 0x7c9   : > { %v5594_v42 = vadd.f32 %v11422_v60, %v5593_v28 }
 0x7ca   : > { %v5696_v27 = vpop.f32.mrf.mxu3 }
 0x7cb   : > { %v5697_v33 = vadd.f32 %v11542_v17, %v5696_v27  ;;  %v5618_v53 = vmax.f32 %v5594_v42, 0.0 }
 0x7cd   : > { %v5730_v2 = vmax.f32 %v5697_v33, 0.0 }
 0x7d0   : > { %v5595_v35 = vpop.f32.mrf.mxu2 }
 0x7d1   : > { %v5596_v59 = vadd.f32 %v11422_v60, %v5595_v35 }
 0x7d2   : > { %v5698_v34 = vpop.f32.mrf.mxu3 }
 0x7d3   : > { %v5619_v29 = vmax.f32 %v5596_v59, 0.0  ;;  %v5699_v57 = vadd.f32 %v11542_v17, %v5698_v34 }
 0x7d5   : > { %v5629_v9 = vpack.c.bf16 %v5619_v29, %v5618_v53  ;;  %v5731_v51 = vmax.f32 %v5699_v57, 0.0  ;;  %v11620_v29 = vperm.slane %v5754_v12, 1 }
 0x7d7   : > { %v5744_v21 = vpack.c.bf16 %v5731_v51, %v5730_v2  ;;  %6798 = vmatmul.msk.bf16.gmra.mxu3 %vm5652_vm5, %v5629_v9 }
 0x7d9   : > { %6819 = vmatmul.msk.bf16.gmra.mxu0 %vm5652_vm5, %v5744_v21  ;;  %6827 = vmatmul.msk.bf16.gmra.mxu1 %vm5652_vm5, %v5744_v21 }
 0x7f2   : > { %v5598_v11 = vpop.f32.mrf.mxu2 }
 0x7f3   : > { %v5599_v14 = vadd.f32 %v11422_v60, %v5598_v11 }
 0x7f5   : > { %v5620_v47 = vmax.f32 %v5599_v14, 0.0 }
 0x7fa   : > { %v5701_v6 = vpop.f32.mrf.mxu3  ;;  %v5600_v30 = vpop.f32.mrf.mxu2 }
 0x7fb   : > { %v5601_v32 = vadd.f32 %v11422_v60, %v5600_v30  ;;  %v5702_v10 = vadd.f32 %v11542_v17, %v5701_v6 }
 0x7fd   : > { %v5621_v0 = vmax.f32 %v5601_v32, 0.0  ;;  %v5732_v37 = vmax.f32 %v5702_v10, 0.0 }
 0x7ff   : > { %v5630_v18 = vpack.c.bf16 %v5621_v0, %v5620_v47 }
 0x801   : > { %6799 = vmatmul.msk.bf16.gmra.mxu3 %vm5652_vm5, %v5630_v18 }
 0x802   : > { %v5703_v61 = vpop.f32.mrf.mxu3 }
 0x803   : > { %v5704_v22 = vadd.f32 %v11542_v17, %v5703_v61 }
 0x805   : > { %v5733_v48 = vmax.f32 %v5704_v22, 0.0 }
 0x807   : > { %v5745_v45 = vpack.c.bf16 %v5733_v48, %v5732_v37 }
 0x809   : > { %6820 = vmatmul.msk.bf16.gmra.mxu0 %vm5652_vm5, %v5745_v45  ;;  %6828 = vmatmul.msk.bf16.gmra.mxu1 %vm5652_vm5, %v5745_v45 }
 0x816   : > { %v5813_v15 = vpop.f32.mrf.mxu0  ;;  %v5862_v7 = vpop.f32.mrf.mxu1 }
 0x817   : > { %v5814_v4 = vadd.f32 %v5813_v15, %v11601_v43  ;;  %v5863_v9 = vadd.f32 %v5862_v7, %v11620_v29 }
 0x819   : > { %v5902_v5 = vmax.f32 %v5814_v4, 0.0  ;;  %v5903_v21 = vmax.f32 %v5863_v9, 0.0 }
 0x81e   : > { %v5815_v36 = vpop.f32.mrf.mxu0  ;;  %v5864_v34 = vpop.f32.mrf.mxu1 }
 0x81f   : > { %v5816_v56 = vadd.f32 %v5815_v36, %v11601_v43  ;;  %v5865_v57 = vadd.f32 %v5864_v34, %v11620_v29 }
 0x821   : > { %v5904_v20 = vmax.f32 %v5816_v56, 0.0  ;;  %v5905_v51 = vmax.f32 %v5865_v57, 0.0 }
 0x823   : > { %v5934_v13 = vpack.c.bf16 %v5904_v20, %v5902_v5  ;;  %v5935_v24 = vpack.c.bf16 %v5905_v51, %v5903_v21 }
 0x825   : > { %6066 = vmatmul.bf16.vlgmr.msra.gmra.mxu2 %v5934_v13 }
 0x826   : > { %v5818_v38 = vpop.f32.mrf.mxu0  ;;  %v5867_v2 = vpop.f32.mrf.mxu1 }
 0x827   : > { %v5819_v52 = vadd.f32 %v5818_v38, %v11601_v43  ;;  %v5868_v25 = vadd.f32 %v5867_v2, %v11620_v29 }
 0x829   : > { %v5906_v8 = vmax.f32 %v5819_v52, 0.0  ;;  %v5907_v14 = vmax.f32 %v5868_v25, 0.0 }
 0x82a   : > { %v5706_v62 = vpop.f32.mrf.mxu3 }
 0x82b   : > { %v5707_v3 = vadd.f32 %v11542_v17, %v5706_v62 }
 0x82d   : > { %v5734_v49 = vmax.f32 %v5707_v3, 0.0 }
 0x82e   : > { %v5820_v55 = vpop.f32.mrf.mxu0  ;;  %v5869_v19 = vpop.f32.mrf.mxu1 }
 0x82f   : > { %v5821_v26 = vadd.f32 %v5820_v55, %v11601_v43 }
 0x830   : > { %v5603_v39 = vpop.f32.mrf.mxu2 }
 0x831   : > { %v5908_v23 = vmax.f32 %v5821_v26, 0.0  ;;  %v5604_v27 = vadd.f32 %v11422_v60, %v5603_v39 }
 0x832   : > { %v5708_v31 = vpop.f32.mrf.mxu3 }
 0x833   : > { %v5709_v16 = vadd.f32 %v11542_v17, %v5708_v31  ;;  %v5936_v40 = vpack.c.bf16 %v5908_v23, %v5906_v8  ;;  %v5622_v33 = vmax.f32 %v5604_v27, 0.0 }
 0x835   : > { %v5735_v58 = vmax.f32 %v5709_v16, 0.0  ;;  %6071 = vmatmul.bf16.gmra.mxu2 %v5936_v40 }
 0x837   : > { %v5746_v28 = vpack.c.bf16 %v5735_v58, %v5734_v49 }
 0x838   : > { %v5605_v42 = vpop.f32.mrf.mxu2 }
 0x839   : > { %6821 = vmatmul.msk.bf16.gmra.mxu0 %vm5652_vm5, %v5746_v28  ;;  %6829 = vmatmul.msk.bf16.gmra.mxu1 %vm5652_vm5, %v5746_v28  ;;  %v5606_v35 = vadd.f32 %v11422_v60, %v5605_v42  ;;  %v5870_v60 = vadd.f32 %v5869_v19, %v11620_v29 }
 0x83b   : > { %v5623_v59 = vmax.f32 %v5606_v35, 0.0  ;;  %v5909_v46 = vmax.f32 %v5870_v60, 0.0 }
 0x83d   : > { %v5631_v53 = vpack.c.bf16 %v5623_v59, %v5622_v33  ;;  %v5937_v30 = vpack.c.bf16 %v5909_v46, %v5907_v14 }
 0x83f   : > { %6800 = vmatmul.msk.bf16.gmra.mxu3 %vm5652_vm5, %v5631_v53 }
 0x84f   : > { %6873 = vmatmul.msk.bf16.vlgmr.msra.gmra.mxu3 %vm5652_vm5, %v5935_v24 }
 0x856   : > { %v5823_v63 = vpop.f32.mrf.mxu0  ;;  %v5872_v11 = vpop.f32.mrf.mxu1 }
 0x857   : > { %v5824_v6 = vadd.f32 %v5823_v63, %v11601_v43  ;;  %v5873_v15 = vadd.f32 %v5872_v11, %v11620_v29 }
 0x859   : > { %v5910_v47 = vmax.f32 %v5824_v6, 0.0  ;;  %v5911_v36 = vmax.f32 %v5873_v15, 0.0 }
 0x85a   : > { %v5711_v1 = vpop.f32.mrf.mxu3 }
 0x85b   : > { %v5712_v0 = vadd.f32 %v11542_v17, %v5711_v1  ;;  %v11656_v1 = vld [vmem:[%s11758_s9] ss:$0 sm:$0xff] }
 0x85d   : > { %v5736_v37 = vmax.f32 %v5712_v0, 0.0 }
 0x85e   : > { %v5825_v32 = vpop.f32.mrf.mxu0  ;;  %v5874_v61 = vpop.f32.mrf.mxu1 }
 0x85f   : > { %v5826_v41 = vadd.f32 %v5825_v32, %v11601_v43  ;;  %6874 = vmatmul.msk.bf16.gmra.mxu3 %vm5652_vm5, %v5937_v30  ;;  %v5875_v45 = vadd.f32 %v5874_v61, %v11620_v29 }
 0x861   : > { %v5912_v18 = vmax.f32 %v5826_v41, 0.0  ;;  %v5913_v4 = vmax.f32 %v5875_v45, 0.0 }
 0x862   : > { %v5713_v10 = vpop.f32.mrf.mxu3 }
 0x863   : > { %v5938_v44 = vpack.c.bf16 %v5912_v18, %v5910_v47  ;;  %v5714_v22 = vadd.f32 %v11542_v17, %v5713_v10  ;;  %v5939_v56 = vpack.c.bf16 %v5913_v4, %v5911_v36  ;;  %v6969_v36 = vld [vmem:[%s7070_s19 + $0x10] sm:$0xff] }
 0x865   : > { %v5737_v48 = vmax.f32 %v5714_v22, 0.0  ;;  %6076 = vmatmul.bf16.gmra.mxu2 %v5938_v44 }
 0x867   : > { %v5747_v12 = vpack.c.bf16 %v5737_v48, %v5736_v37  ;;  %v6968_v37 = vld [vmem:[%s7070_s19 + $0x8] sm:$0xff] }
 0x869   : > { %6822 = vmatmul.msk.bf16.gmra.mxu0 %vm5652_vm5, %v5747_v12  ;;  %6830 = vmatmul.msk.bf16.gmra.mxu1 %vm5652_vm5, %v5747_v12 }
 0x86f   : > { %6875 = vmatmul.msk.bf16.gmra.mxu3 %vm5652_vm5, %v5939_v56 }
 0x884   : > { %v5716_v54 = vpop.f32.mrf.mxu3 }
 0x885   : > { %v5717_v50 = vadd.f32 %v11542_v17, %v5716_v54 }
 0x886   : > { %v5828_v5 = vpop.f32.mrf.mxu0  ;;  %v5877_v20 = vpop.f32.mrf.mxu1 }
 0x887   : > { %v5829_v13 = vadd.f32 %v5828_v5, %v11601_v43  ;;  %v5878_v38 = vadd.f32 %v5877_v20, %v11620_v29  ;;  %v5738_v8 = vmax.f32 %v5717_v50, 0.0 }
 0x889   : > { %v5914_v31 = vmax.f32 %v5829_v13, 0.0  ;;  %v5915_v7 = vmax.f32 %v5878_v38, 0.0 }
 0x88c   : > { %v5718_v62 = vpop.f32.mrf.mxu3 }
 0x88d   : > { %v5719_v52 = vadd.f32 %v11542_v17, %v5718_v62 }
 0x88e   : > { %v5830_v55 = vpop.f32.mrf.mxu0  ;;  %v5879_v26 = vpop.f32.mrf.mxu1 }
 0x88f   : > { %v5831_v3 = vadd.f32 %v5830_v55, %v11601_v43  ;;  %v5880_v39 = vadd.f32 %v5879_v26, %v11620_v29  ;;  %v5739_v23 = vmax.f32 %v5719_v52, 0.0  ;;  %v6970_v55 = vld [vmem:[%s7070_s19 + $0x18] sm:$0xff] }
 0x891   : > { %v5916_v16 = vmax.f32 %v5831_v3, 0.0  ;;  %v5917_v40 = vmax.f32 %v5880_v39, 0.0  ;;  %v5748_v49 = vpack.c.bf16 %v5739_v23, %v5738_v8 }
 0x893   : > { %v5940_v58 = vpack.c.bf16 %v5916_v16, %v5914_v31  ;;  %v5941_v28 = vpack.c.bf16 %v5917_v40, %v5915_v7  ;;  %6823 = vmatmul.msk.bf16.gmra.mxu0 %vm5652_vm5, %v5748_v49  ;;  %6831 = vmatmul.msk.bf16.gmra.mxu1 %vm5652_vm5, %v5748_v49 }
 0x895   : > { %6081 = vmatmul.bf16.gmra.mxu2 %v5940_v58  ;;  %6876 = vmatmul.msk.bf16.gmra.mxu3 %vm5652_vm5, %v5941_v28 }
 0x8a8   : > { %v6067_v63 = vpop.f32.mrf.mxu2 }
 0x8a9   : > { %v6068_v41 = vadd.f32 %v11656_v1, %v6067_v63 }
 0x8b0   : > { %v6069_v32 = vpop.f32.mrf.mxu2 }
 0x8b1   : > { %v6070_v10 = vadd.f32 %v11656_v1, %v6069_v32 }
 0x8b6   : > { %v5833_v27 = vpop.f32.mrf.mxu0  ;;  %v5882_v42 = vpop.f32.mrf.mxu1 }
 0x8b7   : > { %v5834_v35 = vadd.f32 %v5833_v27, %v11601_v43  ;;  %v5883_v33 = vadd.f32 %v5882_v42, %v11620_v29 }
 0x8b8   : > { %v6072_v44 = vpop.f32.mrf.mxu2 }
 0x8b9   : > { %v5918_v2 = vmax.f32 %v5834_v35, 0.0  ;;  %v5919_v9 = vmax.f32 %v5883_v33, 0.0  ;;  %v6073_v45 = vadd.f32 %v11656_v1, %v6072_v44  ;;  %v6971_v35 = vld [vmem:[%s7070_s19 + $0x20] sm:$0xff] }
 0x8be   : > { %v5835_v59 = vpop.f32.mrf.mxu0  ;;  %v5884_v34 = vpop.f32.mrf.mxu1 }
 0x8bf   : > { %v5836_v53 = vadd.f32 %v5835_v59, %v11601_v43  ;;  %v5885_v57 = vadd.f32 %v5884_v34, %v11620_v29 }
 0x8c0   : > { %v6074_v4 = vpop.f32.mrf.mxu2 }
 0x8c1   : > { %v5920_v51 = vmax.f32 %v5836_v53, 0.0  ;;  %v5921_v21 = vmax.f32 %v5885_v57, 0.0  ;;  %v6075_v20 = vadd.f32 %v11656_v1, %v6074_v4 }
 0x8c2   : > { %v5721_v60 = vpop.f32.mrf.mxu3 }
 0x8c3   : > { %v5942_v24 = vpack.c.bf16 %v5920_v51, %v5918_v2  ;;  %v5943_v19 = vpack.c.bf16 %v5921_v21, %v5919_v9  ;;  %v5722_v25 = vadd.f32 %v11542_v17, %v5721_v60  ;;  %v6972_v2 = vld [vmem:[%s7070_s19 + $0x28] sm:$0xff] }
 0x8c5   : > { %6086 = vmatmul.bf16.gmra.mxu2 %v5942_v24  ;;  %6877 = vmatmul.msk.bf16.gmra.mxu3 %vm5652_vm5, %v5943_v19  ;;  %v5740_v14 = vmax.f32 %v5722_v25, 0.0 }
 0x8ca   : > { %v5723_v11 = vpop.f32.mrf.mxu3 }
 0x8cb   : > { %v5724_v46 = vadd.f32 %v11542_v17, %v5723_v11  ;;  %v6967_v17 = vld [vmem:[%s7070_s19] sm:$0xff] }
 0x8cd   : > { %v5741_v6 = vmax.f32 %v5724_v46, 0.0 }
 0x8cf   : > { %v5749_v30 = vpack.c.bf16 %v5741_v6, %v5740_v14 }
 0x8d1   : > { %6824 = vmatmul.msk.bf16.gmra.mxu0 %vm5652_vm5, %v5749_v30  ;;  %6832 = vmatmul.msk.bf16.gmra.mxu1 %vm5652_vm5, %v5749_v30 }
 0x8d2   : > { %v6116_v47 = vpop.f32.mrf.mxu3 }
 0x8d3   : > { %v6117_v0 = vadd.f32 %v6116_v47, %v6068_v41 }
 0x8d5   : > { %v6156_v18 = vadd.f32 %v6967_v17, %v6117_v0  ;;  %v6973_v17 = vld [vmem:[%s7070_s19 + $0x30] sm:$0xff] }
 0x8d7   : > { %6172 = vst.msk [vmem:[%s11666_s27] sm:$0xff] %vm1462_vm10, %v6156_v18 }
 0x8da   : > { %v6118_v61 = vpop.f32.mrf.mxu3 }
 0x8db   : > { %v6119_v22 = vadd.f32 %v6118_v61, %v6070_v10 }
 0x8dd   : > { %v6157_v48 = vadd.f32 %v6968_v37, %v6119_v22 }
 0x8df   : > { %6173 = vst.msk [vmem:[%s11666_s27 + $0x8] sm:$0xff] %vm1462_vm10, %v6157_v48 }
 0x8e2   : > { %v6121_v12 = vpop.f32.mrf.mxu3 }
 0x8e3   : > { %v6122_v15 = vadd.f32 %v6121_v12, %v6073_v45  ;;  %v6974_v45 = vld [vmem:[%s7070_s19 + $0x38] sm:$0xff] }
 0x8e5   : > { %v6158_v56 = vadd.f32 %v6969_v36, %v6122_v15 }
 0x8e6   : > { %v5838_v54 = vpop.f32.mrf.mxu0  ;;  %v5887_v5 = vpop.f32.mrf.mxu1 }
 0x8e7   : > { %6174 = vst.msk [vmem:[%s11666_s27 + $0x10] sm:$0xff] %vm1462_vm10, %v6158_v56  ;;  %v5839_v38 = vadd.f32 %v5838_v54, %v11601_v43  ;;  %v5888_v62 = vadd.f32 %v5887_v5, %v11620_v29  ;;  %v6975_v54 = vld [vmem:[%s7070_s19 + $0x40] sm:$0xff] }
 0x8e8   : > { %v6077_v52 = vpop.f32.mrf.mxu2 }
 0x8e9   : > { %v5922_v31 = vmax.f32 %v5839_v38, 0.0  ;;  %v5923_v7 = vmax.f32 %v5888_v62, 0.0  ;;  %v6078_v49 = vadd.f32 %v11656_v1, %v6077_v52 }
 0x8ea   : > { %v6123_v50 = vpop.f32.mrf.mxu3 }
 0x8eb   : > { %v6124_v13 = vadd.f32 %v6123_v50, %v6075_v20 }
 0x8ed   : > { %v6159_v26 = vadd.f32 %v6970_v55, %v6124_v13  ;;  %v6976_v55 = vld [vmem:[%s7070_s19 + $0x48] sm:$0xff] }
 0x8ee   : > { %v5840_v3 = vpop.f32.mrf.mxu0  ;;  %v5889_v39 = vpop.f32.mrf.mxu1 }
 0x8ef   : > { %v5841_v8 = vadd.f32 %v5840_v3, %v11601_v43  ;;  %v5890_v23 = vadd.f32 %v5889_v39, %v11620_v29  ;;  %6175 = vst.msk [vmem:[%s11666_s27 + $0x18] sm:$0xff] %vm1462_vm10, %v6159_v26 }
 0x8f0   : > { %v6079_v59 = vpop.f32.mrf.mxu2 }
 0x8f1   : > { %v5924_v16 = vmax.f32 %v5841_v8, 0.0  ;;  %v5925_v40 = vmax.f32 %v5890_v23, 0.0  ;;  %v6080_v34 = vadd.f32 %v11656_v1, %v6079_v59  ;;  %v6977_v59 = vld [vmem:[%s7070_s19 + $0x50] sm:$0xff] }
 0x8f2   : > { %v6126_v27 = vpop.f32.mrf.mxu3 }
 0x8f3   : > { %v5944_v58 = vpack.c.bf16 %v5924_v16, %v5922_v31  ;;  %v5945_v28 = vpack.c.bf16 %v5925_v40, %v5923_v7  ;;  %v6127_v42 = vadd.f32 %v6126_v27, %v6078_v49 }
 0x8f5   : > { %6091 = vmatmul.bf16.gmra.mxu2 %v5944_v58  ;;  %6878 = vmatmul.msk.bf16.gmra.mxu3 %vm5652_vm5, %v5945_v28  ;;  %v6160_v33 = vadd.f32 %v6971_v35, %v6127_v42 }
 0x8f7   : > { %6176 = vst.msk [vmem:[%s11666_s27 + $0x20] sm:$0xff] %vm1462_vm10, %v6160_v33 }
 0x8fa   : > { %v6128_v53 = vpop.f32.mrf.mxu3 }
 0x8fb   : > { %v6129_v57 = vadd.f32 %v6128_v53, %v6080_v34 }
 0x8fd   : > { %v6161_v9 = vadd.f32 %v6972_v2, %v6129_v57 }
 0x8ff   : > { %6177 = vst.msk [vmem:[%s11666_s27 + $0x28] sm:$0xff] %vm1462_vm10, %v6161_v9  ;;  %v6978_v9 = vld [vmem:[%s7070_s19 + $0x58] sm:$0xff] }
 0x910   : > { %v5843_v51 = vpop.f32.mrf.mxu0  ;;  %v5892_v21 = vpop.f32.mrf.mxu1 }
 0x911   : > { %v5844_v24 = vadd.f32 %v5843_v51, %v11601_v43  ;;  %v5893_v19 = vadd.f32 %v5892_v21, %v11620_v29 }
 0x913   : > { %v5926_v32 = vmax.f32 %v5844_v24, 0.0  ;;  %v5927_v41 = vmax.f32 %v5893_v19, 0.0 }
 0x918   : > { %v6082_v60 = vpop.f32.mrf.mxu2  ;;  %v6131_v63 = vpop.f32.mrf.mxu3 }
 0x919   : > { %v5845_v25 = vpop.f32.mrf.mxu0  ;;  %v5894_v11 = vpop.f32.mrf.mxu1  ;;  %v6083_v46 = vadd.f32 %v11656_v1, %v6082_v60 }
 0x91a   : > { %v5846_v14 = vadd.f32 %v5845_v25, %v11601_v43  ;;  %v5895_v6 = vadd.f32 %v5894_v11, %v11620_v29 }
 0x91b   : > { %v6132_v30 = vadd.f32 %v6131_v63, %v6083_v46  ;;  %v6979_v63 = vld [vmem:[%s7070_s19 + $0x60] sm:$0xff] }
 0x91c   : > { %v5928_v47 = vmax.f32 %v5846_v14, 0.0  ;;  %v5929_v0 = vmax.f32 %v5895_v6, 0.0 }
 0x91d   : > { %v6162_v18 = vadd.f32 %v6973_v17, %v6132_v30  ;;  %v6980_v30 = vld [vmem:[%s7070_s19 + $0x68] sm:$0xff] }
 0x91e   : > { %v5946_v10 = vpack.c.bf16 %v5928_v47, %v5926_v32  ;;  %v5947_v44 = vpack.c.bf16 %v5929_v0, %v5927_v41 }
 0x91f   : > { %6178 = vst.msk [vmem:[%s11666_s27 + $0x30] sm:$0xff] %vm1462_vm10, %v6162_v18  ;;  %v6981_v18 = vld [vmem:[%s7070_s19 + $0x70] sm:$0xff] }
 0x920   : > { %6096 = vmatmul.bf16.gmra.mxu2 %v5946_v10  ;;  %6879 = vmatmul.msk.bf16.gmra.mxu3 %vm5652_vm5, %v5947_v44  ;;  %v6084_v61 = vpop.f32.mrf.mxu2  ;;  %v6133_v37 = vpop.f32.mrf.mxu3 }
 0x921   : > { %v6085_v22 = vadd.f32 %v11656_v1, %v6084_v61 }
 0x923   : > { %v6134_v48 = vadd.f32 %v6133_v37, %v6085_v22 }
 0x925   : > { %v6163_v12 = vadd.f32 %v6974_v45, %v6134_v48  ;;  %v6982_v48 = vld [vmem:[%s7070_s19 + $0x78] sm:$0xff] }
 0x927   : > { %6179 = vst.msk [vmem:[%s11666_s27 + $0x38] sm:$0xff] %vm1462_vm10, %v6163_v12 }
 0x948   : > { %v6087_v15 = vpop.f32.mrf.mxu2  ;;  %v6136_v4 = vpop.f32.mrf.mxu3 }
 0x949   : > { %v6088_v36 = vadd.f32 %v11656_v1, %v6087_v15 }
 0x94b   : > { %v6137_v56 = vadd.f32 %v6136_v4, %v6088_v36 }
 0x94d   : > { %v6164_v5 = vadd.f32 %v6975_v54, %v6137_v56 }
 0x94e   : > { %v5848_v20 = vpop.f32.mrf.mxu0  ;;  %v5897_v50 = vpop.f32.mrf.mxu1 }
 0x94f   : > { %6180 = vst.msk [vmem:[%s11666_s27 + $0x40] sm:$0xff] %vm1462_vm10, %v6164_v5  ;;  %v5849_v3 = vadd.f32 %v5848_v20, %v11601_v43  ;;  %v5898_v39 = vadd.f32 %v5897_v50, %v11620_v29 }
 0x950   : > { %v6089_v13 = vpop.f32.mrf.mxu2  ;;  %v6138_v62 = vpop.f32.mrf.mxu3 }
 0x951   : > { %v6090_v38 = vadd.f32 %v11656_v1, %v6089_v13  ;;  %v5930_v16 = vmax.f32 %v5849_v3, 0.0  ;;  %v5931_v40 = vmax.f32 %v5898_v39, 0.0 }
 0x953   : > { %v6139_v52 = vadd.f32 %v6138_v62, %v6090_v38 }
 0x955   : > { %v6165_v26 = vadd.f32 %v6976_v55, %v6139_v52 }
 0x956   : > { %v5850_v8 = vpop.f32.mrf.mxu0  ;;  %v5899_v23 = vpop.f32.mrf.mxu1 }
 0x957   : > { %6181 = vst.msk [vmem:[%s11666_s27 + $0x48] sm:$0xff] %vm1462_vm10, %v6165_v26  ;;  %v5851_v31 = vadd.f32 %v5850_v8, %v11601_v43  ;;  %v5900_v7 = vadd.f32 %v5899_v23, %v11620_v29 }
 0x959   : > { %v5932_v49 = vmax.f32 %v5851_v31, 0.0  ;;  %v5933_v58 = vmax.f32 %v5900_v7, 0.0 }
 0x95b   : > { %v5948_v28 = vpack.c.bf16 %v5932_v49, %v5930_v16  ;;  %v5949_v27 = vpack.c.bf16 %v5933_v58, %v5931_v40 }
 0x95d   : > { %6101 = vmatmul.bf16.gmra.mxu2 %v5948_v28  ;;  %6880 = vmatmul.msk.bf16.gmra.mxu3 %vm5652_vm5, %v5949_v27 }
 0x978   : > { %v6092_v42 = vpop.f32.mrf.mxu2  ;;  %v6141_v35 = vpop.f32.mrf.mxu3 }
 0x979   : > { %v6093_v33 = vadd.f32 %v11656_v1, %v6092_v42 }
 0x97b   : > { %v6142_v43 = vadd.f32 %v6141_v35, %v6093_v33 }
 0x97d   : > { %v6166_v29 = vadd.f32 %v6977_v59, %v6142_v43 }
 0x97f   : > { %6182 = vst.msk [vmem:[%s11666_s27 + $0x50] sm:$0xff] %vm1462_vm10, %v6166_v29 }
 0x980   : > { %v6094_v34 = vpop.f32.mrf.mxu2  ;;  %v6143_v57 = vpop.f32.mrf.mxu3 }
 0x981   : > { %v6095_v53 = vadd.f32 %v11656_v1, %v6094_v34 }
 0x983   : > { %v6144_v2 = vadd.f32 %v6143_v57, %v6095_v53 }
 0x985   : > { %v6167_v51 = vadd.f32 %v6978_v9, %v6144_v2 }
 0x987   : > { %6183 = vst.msk [vmem:[%s11666_s27 + $0x58] sm:$0xff] %vm1462_vm10, %v6167_v51 }
 0x9a3   : > { %v6097_v21 = vpop.f32.mrf.mxu2  ;;  %v6146_v24 = vpop.f32.mrf.mxu3 }
 0x9a4   : > { %v6098_v19 = vadd.f32 %v11656_v1, %v6097_v21 }
 0x9a6   : > { %v6147_v60 = vadd.f32 %v6146_v24, %v6098_v19 }
 0x9a8   : > { %v6168_v25 = vadd.f32 %v6979_v63, %v6147_v60 }
 0x9aa   : > { %6184 = vst.msk [vmem:[%s11666_s27 + $0x60] sm:$0xff] %vm1462_vm10, %v6168_v25 }
 0x9ab   : > { %v6099_v11 = vpop.f32.mrf.mxu2  ;;  %v6148_v14 = vpop.f32.mrf.mxu3 }
 0x9ac   : > { %v6100_v46 = vadd.f32 %v11656_v1, %v6099_v11 }
 0x9ae   : > { %v6149_v6 = vadd.f32 %v6148_v14, %v6100_v46 }
 0x9b0   : > { %v6169_v32 = vadd.f32 %v6980_v30, %v6149_v6 }
 0x9b2   : > { %6185 = vst.msk [vmem:[%s11666_s27 + $0x68] sm:$0xff] %vm1462_vm10, %v6169_v32 }
 0x9e0   : > { %v6102_v41 = vpop.f32.mrf.mxu2  ;;  %v6151_v47 = vpop.f32.mrf.mxu3 }
 0x9e1   : > { %v6103_v0 = vadd.f32 %v11656_v1, %v6102_v41 }
 0x9e3   : > { %v6152_v17 = vadd.f32 %v6151_v47, %v6103_v0 }
 0x9e5   : > { %v6170_v10 = vadd.f32 %v6981_v18, %v6152_v17 }
 0x9e7   : > { %6186 = vst.msk [vmem:[%s11666_s27 + $0x70] sm:$0xff] %vm1462_vm10, %v6170_v10 }
 0x9e8   : > { %v6104_v44 = vpop.f32.mrf.mxu2  ;;  %v6153_v22 = vpop.f32.mrf.mxu3 }
 0x9e9   : > { %v6105_v61 = vadd.f32 %v11656_v1, %v6104_v44 }
 0x9eb   : > { %v6154_v37 = vadd.f32 %v6153_v22, %v6105_v61 }
 0x9ed   : > { %v6171_v45 = vadd.f32 %v6982_v48, %v6154_v37 }
 0x9ef   : > { %6187 = vst.msk [vmem:[%s11666_s27 + $0x78] sm:$0xff] %vm1462_vm10, %v6171_v45 }
 0x9f0 PF: > { %s20_s13 = sadd.s32 1, %s6989_s13  }
 0x9f1   : > { %p17_p4 = scmp.ge.s32.totalorder %s20_s13, 4  }
 0x9f3   :  { %19 = sbr.rel (!%p17_p4) target bundleno = 1 (0x1), region = 95 }

</bundles_post_ra>
